<compile_context>
chip_gen: v5e
topology: v5e:2x2
jax: 0.10.0
libtpu: 0.0.40
codegen_flags: <defaults>
</compile_context>

<pallas_src>
import functools
from math import sqrt

import jax
import jax.numpy as jnp
from jax import lax
from jax.experimental import pallas as pl
from jax.experimental.pallas import tpu as pltpu


# ----------------------------- in-kernel helpers -----------------------------

def _layer_norm(x, g, b, eps=1e-5):
    mu = jnp.mean(x, axis=-1, keepdims=True)
    var = jnp.mean((x - mu) ** 2, axis=-1, keepdims=True)
    return (x - mu) * lax.rsqrt(var + eps) * g + b


def _softmax_last(x):
    m = jnp.max(x, axis=-1, keepdims=True)
    e = jnp.exp(x - m)
    s = jnp.sum(e, axis=-1, keepdims=True)
    # EUP reciprocal frees VALU slots (LN/GELU/softmax already fill the VPU).
    return e * pl.reciprocal(s, approx=True)


def _gelu(x):
    # TODO(synk): PyTorch nn.GELU defaults to the exact erf form; erf lowering in
    # Mosaic is not guaranteed, so the tanh approximation is used here.
    c = 0.7978845608028654
    return 0.5 * x * (1.0 + jnp.tanh(c * (x + 0.044715 * x * x * x)))


def _dot_t(a, b):
    # a @ b.T on the MXU without materializing the transpose.
    return lax.dot_general(a, b, (((1,), (1,)), ((), ())),
                           preferred_element_type=jnp.float32)


def _bf16(x):
    return x.astype(jnp.bfloat16)


def _const_spec(shape):
    nd = len(shape)
    return pl.BlockSpec(shape, lambda *_: (0,) * nd)


# --------------------------------- fused kernel -------------------------------

def fused_pipeline_kernel(slab_ref, wemb_ref, vecd_ref, vecm_ref, wqkv_ref,
                          wo_ref, w1_ref, w2_ref, mem_ref, hw1_ref, hw2_ref,
                          hb2_ref, *out_refs,
                          emit_mem, B_blk, Nseq, T_out, W, S, K, comb_rows,
                          depth, heads, dim_head, inv_sqrt_dim, use_relu):
    if emit_mem:
        mem_out_ref, head_out_ref = out_refs
    else:
        (head_out_ref,) = out_refs

    D = mem_ref.shape[0]
    H, Dh = heads, dim_head
    scale = dim_head ** -0.5
    pos_b = vecd_ref[0:1, :]                                     # (1, D)

    # ---- fused P4D tube embedding + positional embedding (one matmul / batch) --
    x_parts = []
    for b in range(B_blk):
        e = jnp.dot(slab_ref[b], wemb_ref[...],
                    preferred_element_type=jnp.float32)          # (R_b, D)
        # spatial max over k neighbors, then temporal max over window frames
        s1 = jnp.max(e[:comb_rows].reshape(T_out * W * S, K, D), axis=1)
        feats = jnp.max(s1.reshape(T_out, W, S, D), axis=1).reshape(Nseq, D)
        pos = e[comb_rows:comb_rows + Nseq] + pos_b
        xb = feats + pos
        if use_relu:
            xb = jnp.maximum(xb, 0.0)
        x_parts.append(xb)
    x = x_parts[0] if B_blk == 1 else jnp.concatenate(x_parts, axis=0)  # (R, D)

    # ---- transformer, statically unrolled over depth ---------------------------
    # TODO(synk): for large depth switch to lax.fori_loop with dynamic indexing of
    # the stacked (depth, ...) weight refs; for large Nseq switch the (N,N) logits
    # to a KV-tiled online-softmax (flash) form (v7x has half the VMEM of v6e).
    for d in range(depth):
        base = 3 + 6 * d
        xn = _layer_norm(x, vecd_ref[base:base + 1, :],
                         vecd_ref[base + 1:base + 2, :])
        qkv = jnp.dot(_bf16(xn), wqkv_ref[d],
                      preferred_element_type=jnp.float32)        # (R, 3*H*Dh)
        o_parts = []
        for b in range(B_blk):
            r0 = b * Nseq
            head_parts = []
            for h in range(H):
                q = qkv[r0:r0 + Nseq, h * Dh:(h + 1) * Dh]
                k = qkv[r0:r0 + Nseq, (H + h) * Dh:(H + h + 1) * Dh]
                v = qkv[r0:r0 + Nseq, (2 * H + h) * Dh:(2 * H + h + 1) * Dh]
                dots = _dot_t(_bf16(q), _bf16(k)) * scale
                p = _softmax_last(dots)
                head_parts.append(jnp.dot(_bf16(p), _bf16(v),
                                          preferred_element_type=jnp.float32))
            o_parts.append(head_parts[0] if H == 1
                           else jnp.concatenate(head_parts, axis=-1))
        o = o_parts[0] if B_blk == 1 else jnp.concatenate(o_parts, axis=0)
        att = jnp.dot(_bf16(o), wo_ref[d],
                      preferred_element_type=jnp.float32) + vecd_ref[base + 2:base + 3, :]
        x = x + att

        xn2 = _layer_norm(x, vecd_ref[base + 3:base + 4, :],
                          vecd_ref[base + 4:base + 5, :])
        h1 = jnp.dot(_bf16(xn2), w1_ref[d],
                     preferred_element_type=jnp.float32) + vecm_ref[1 + d:2 + d, :]
        h1 = _gelu(h1)
        ff = jnp.dot(_bf16(h1), w2_ref[d],
                     preferred_element_type=jnp.float32) + vecd_ref[base + 5:base + 6, :]
        x = x + ff

    # ---- attention memory bank -------------------------------------------------
    logits = jnp.dot(_bf16(x), mem_ref[...],
                     preferred_element_type=jnp.float32) * inv_sqrt_dim
    attn = _softmax_last(logits)                                 # softmax over slots
    mem_res = _dot_t(_bf16(attn), mem_ref[...])                  # attn @ mem.T -> (R, D)
    mem3 = mem_res.reshape(B_blk, Nseq, D)
    if emit_mem:
        # TODO(synk): a fully lane-dense (B_blk, Nseq*D) packing needs a
        # sublane->lane relayout in-kernel; kept in natural layout for robustness.
        mem_out_ref[...] = mem3

    # ---- decode head: max over sequence, LN, Linear-GELU-Linear ----------------
    pooled = jnp.max(mem3, axis=1)                               # (B_blk, D)
    pn = _layer_norm(pooled, vecd_ref[1:2, :], vecd_ref[2:3, :])
    hh = jnp.dot(_bf16(pn), hw1_ref[...],
                 preferred_element_type=jnp.float32) + vecm_ref[0:1, :]
    hh = _gelu(hh)
    head = jnp.dot(_bf16(hh), hw2_ref[...],
                   preferred_element_type=jnp.float32) + hb2_ref[...]
    head_out_ref[0] = head                                       # lane-dense 128-wide


# ------------------------------ plain-JAX glue --------------------------------

def batched_index(points, idx):
    # points (B, N, C), idx (B, ...) int -> (B, ..., C)
    return jax.vmap(lambda p, i: p[i])(points, idx)


def fps(xyz, S):
    # furthest point sampling (deterministic start at index 0)
    B, N, _ = xyz.shape

    def single(pts):
        def body(i, carry):
            idxs, dist, last = carry
            d = jnp.sum((pts - pts[last]) ** 2, axis=-1)
            dist = jnp.minimum(dist, d)
            nxt = jnp.argmax(dist).astype(jnp.int32)
            idxs = idxs.at[i].set(nxt)
            return idxs, dist, nxt

        idxs0 = jnp.zeros((S,), jnp.int32)
        dist0 = jnp.full((N,), 1e10, jnp.float32)
        idxs, _, _ = lax.fori_loop(1, S, body, (idxs0, dist0, jnp.int32(0)))
        return idxs

    return jax.vmap(single)(xyz)


def ball_query(radius, k, neighbor_xyz, anchor_xyz):
    # neighbor (B,N,3), anchor (B,S,3) -> (B,S,k) indices (pointnet2 semantics)
    B, N, _ = neighbor_xyz.shape
    d2 = jnp.sum((anchor_xyz[:, :, None, :] - neighbor_xyz[:, None, :, :]) ** 2, axis=-1)
    mask = d2 < radius * radius
    arange = jnp.arange(N, dtype=jnp.int32)[None, None, :]
    pos = jnp.cumsum(mask.astype(jnp.int32), axis=-1) - 1
    first_idx = jnp.argmax(mask, axis=-1).astype(jnp.int32)
    slots = []
    for s in range(k):
        cand = jnp.where(mask & (pos == s), arange, N)
        m = jnp.min(cand, axis=-1).astype(jnp.int32)
        slots.append(jnp.where(m == N, first_idx, m))
    return jnp.stack(slots, axis=-1)


def build_slab(inp, cfg):
    """Host-side gathers + packing of the fused [neighbor|pos] input slab."""
    xyz = inp[..., :3]                                   # (B, L, N, 3)
    B, L, N, _ = xyz.shape
    r, K = cfg["radius"], cfg["nsamples"]
    t_rad = cfg["temporal_kernel_size"] // 2
    t_stride = cfg["temporal_stride"]
    pad_f, pad_b = cfg["temporal_padding"]
    S = N // cfg["spatial_stride"]
    Cin = cfg["features"]

    # replicate-padded frame list; features == xyz coords for this module
    frames = [xyz[:, 0]] * pad_f + [xyz[:, i] for i in range(L)] + [xyz[:, L - 1]] * pad_b

    anchors, combs = [], []
    for t in range(t_rad, len(frames) - t_rad, t_stride):
        a_idx = fps(frames[t], S)                        # (B, S)
        a_xyz = batched_index(frames[t], a_idx)          # (B, S, 3)
        win = []
        for i in range(t - t_rad, t + t_rad + 1):
            idx = ball_query(r, K, frames[i], a_xyz)     # (B, S, K)
            nx = batched_index(frames[i], idx)           # (B, S, K, 3)
            disp = nx - a_xyz[:, :, None, :]
            td = jnp.full((B, S, K, 1), float(i - t), jnp.float32)
            win.append(jnp.concatenate([disp, td, nx], axis=-1))   # (B,S,K,4+Cin)
        anchors.append(a_xyz)
        combs.append(jnp.stack(win, axis=1))             # (B, W, S, K, 4+Cin)

    T_out = len(anchors)
    W = 2 * t_rad + 1
    new_xyzs = jnp.stack(anchors, axis=1)                # (B, T_out, S, 3)
    comb = jnp.stack(combs, axis=1)                      # (B, T_out, W, S, K, 4+Cin)

    C = 4 + Cin
    Cpad = -(-C // 8) * 8
    comb_rows = T_out * W * S * K
    Nseq = T_out * S

    comb_flat = comb.reshape(B, comb_rows, C)
    comb_flat = jnp.pad(comb_flat, ((0, 0), (0, 0), (0, 2 * Cpad - C)))

    t_idx = jnp.arange(1, T_out + 1, dtype=jnp.float32)[None, :, None, None]
    t_arr = jnp.broadcast_to(t_idx, (B, T_out, S, 1))
    xyzts = jnp.concatenate([new_xyzs, t_arr], axis=-1).reshape(B, Nseq, 4)
    pos_rows = jnp.pad(xyzts, ((0, 0), (0, 0), (Cpad, Cpad - 4)))

    slab = jnp.concatenate([comb_flat, pos_rows], axis=1).astype(jnp.bfloat16)
    meta = dict(T_out=T_out, W=W, S=S, K=K, Nseq=Nseq,
                comb_rows=comb_rows, R_b=comb_rows + Nseq, Cpad=Cpad)
    return slab, meta                                    # slab: (B, R_b, 2*Cpad)


def run_pipeline(packed, cfg, slab, meta, *, emit_mem):
    B_total, R_b, two_cpad = slab.shape
    Nseq, D = meta["Nseq"], cfg["dim"]
    out_dim = cfg["output_dim"]
    HPAD = max(128, -(-out_dim // 128) * 128)

    # grid=2 keeps both v7x TensorCores busy when there is enough work; otherwise
    # fold everything into one step (v5e/v6e single-TC: grid is just a loop).
    G = 2 if (B_total % 2 == 0 and B_total * Nseq >= 128) else 1
    B_blk = B_total // G

    kernel = functools.partial(
        fused_pipeline_kernel,
        emit_mem=emit_mem, B_blk=B_blk, Nseq=Nseq, T_out=meta["T_out"],
        W=meta["W"], S=meta["S"], K=meta["K"], comb_rows=meta["comb_rows"],
        depth=cfg["depth"], heads=cfg["heads"], dim_head=cfg["dim_head"],
        inv_sqrt_dim=1.0 / sqrt(D), use_relu=bool(cfg["emb_relu"]))

    consts = (packed["wemb"], packed["vecd"], packed["vecm"], packed["wqkv"],
              packed["wo"], packed["w1"], packed["w2"], packed["mem"],
              packed["hw1"], packed["hw2"], packed["hb2"])

    in_specs = [pl.BlockSpec((B_blk, R_b, two_cpad), lambda g: (g, 0, 0))]
    in_specs += [_const_spec(c.shape) for c in consts]

    head_spec = pl.BlockSpec((1, B_blk, HPAD), lambda g: (g, 0, 0))
    head_shape = jax.ShapeDtypeStruct((G, B_blk, HPAD), jnp.float32)

    if emit_mem:
        out_specs = [pl.BlockSpec((B_blk, Nseq, D), lambda g: (g, 0, 0)), head_spec]
        out_shape = [jax.ShapeDtypeStruct((B_total, Nseq, D), jnp.float32), head_shape]
    else:
        out_specs = [head_spec]
        out_shape = [head_shape]

    outs = pl.pallas_call(
        kernel,
        grid=(G,),
        in_specs=in_specs,
        out_specs=out_specs,
        out_shape=out_shape,
        compiler_params=pltpu.CompilerParams(dimension_semantics=("parallel",)),
    )(slab, *consts)

    if emit_mem:
        mem_out, head_out = outs
    else:
        (head_out,) = outs
        mem_out = None
    head_out = head_out.reshape(B_total, HPAD)[:, :out_dim]
    return mem_out, head_out


def forward_train(packed, cfg, input0, input1):
    B = input0.shape[0]
    out_dim = cfg["output_dim"]
    # Fold both training streams into one 2B batch -> one fused kernel call.
    inp = jnp.concatenate([input0, input1], axis=0)
    slab, meta = build_slab(inp, cfg)
    mem_out, head = run_pipeline(packed, cfg, slab, meta, emit_mem=True)
    o0__, o1__ = mem_out[:B], mem_out[B:]
    l_rec = jnp.mean((o0__ - o1__) ** 2)                 # F.mse_loss (mean)
    out0 = head[:B].reshape(B, 1, out_dim // 3, 3)
    out1 = head[B:].reshape(B, 1, out_dim // 3, 3)
    return out0, out1, l_rec


def forward_inference(packed, cfg, inp):
    B = inp.shape[0]
    out_dim = cfg["output_dim"]
    slab, meta = build_slab(inp, cfg)
    _, head = run_pipeline(packed, cfg, slab, meta, emit_mem=False)
    return head.reshape(B, 1, out_dim // 3, 3)


# ------------------------------- parameters -----------------------------------

def init_params(key, cfg):
    D, H, Dh = cfg["dim"], cfg["heads"], cfg["dim_head"]
    inner = H * Dh
    mlp, out_dim, M, Cin = cfg["mlp_dim"], cfg["output_dim"], cfg["mem_size"], cfg["features"]
    ks = jax.random.split(key, 8 + cfg["depth"])

    def nrm(k, shape, scale=0.1):
        return scale * jax.random.normal(k, shape, jnp.float32)

    params = {
        "conv_d_w": nrm(ks[0], (4, D)),                  # P4DConv conv_d (1x1, no bias)
        "conv_f_w": nrm(ks[1], (Cin, D)),                # P4DConv conv_f (1x1, no bias)
        "pos_w": nrm(ks[2], (4, D)),                     # Conv1d(4, dim, 1)
        "pos_b": nrm(ks[3], (1, D)),
        "mem": jax.random.normal(ks[4], (D, M), jnp.float32),  # Parameter.normal_(0, 1)
        "head_ln_g": jnp.ones((1, D), jnp.float32),
        "head_ln_b": jnp.zeros((1, D), jnp.float32),
        "head_w1": nrm(ks[5], (D, mlp)),
        "head_b1": jnp.zeros((1, mlp), jnp.float32),
        "head_w2": nrm(ks[6], (mlp, out_dim)),
        "head_b2": jnp.zeros((1, out_dim), jnp.float32),
        "layers": [],
    }
    for d in range(cfg["depth"]):
        lk = jax.random.split(ks[7 + d], 6)
        params["layers"].append({
            "ln1_g": jnp.ones((1, D), jnp.float32),
            "ln1_b": jnp.zeros((1, D), jnp.float32),
            "wqkv": nrm(lk[0], (D, 3 * inner)),          # Linear(dim, 3*inner, bias=False)
            "wo": nrm(lk[1], (inner, D)),
            "bo": jnp.zeros((1, D), jnp.float32),
            "ln2_g": jnp.ones((1, D), jnp.float32),
            "ln2_b": jnp.zeros((1, D), jnp.float32),
            "w1": nrm(lk[2], (D, mlp)),
            "b1": nrm(lk[3], (1, mlp), 0.01),
            "w2": nrm(lk[4], (mlp, D)),
            "b2": nrm(lk[5], (1, D), 0.01),
        })
    return params


def pack_params(params, cfg):
    """Stack per-layer weights, pack small vectors, pre-cast MXU weights to bf16."""
    depth = cfg["depth"]
    D, Cin, mlp, out_dim = cfg["dim"], cfg["features"], cfg["mlp_dim"], cfg["output_dim"]
    C = 4 + Cin
    Cpad = -(-C // 8) * 8
    HPAD = max(128, -(-out_dim // 128) * 128)
    L = params["layers"]

    def st(key):
        return jnp.stack([lp[key] for lp in L], axis=0)

    # fused embedding weight: comb rows use [conv_d | conv_f | pad], pos rows use [pos_w]
    wemb = jnp.zeros((2 * Cpad, D), jnp.float32)
    wemb = wemb.at[:4].set(params["conv_d_w"])
    wemb = wemb.at[4:4 + Cin].set(params["conv_f_w"])
    wemb = wemb.at[Cpad:Cpad + 4].set(params["pos_w"])

    # packed small f32 vectors (width D): [pos_b, head_ln_g, head_ln_b,
    #  per-layer (ln1_g, ln1_b, bo, ln2_g, ln2_b, b2)]
    vec_list = [params["pos_b"], params["head_ln_g"], params["head_ln_b"]]
    for lp in L:
        vec_list += [lp["ln1_g"], lp["ln1_b"], lp["bo"], lp["ln2_g"], lp["ln2_b"], lp["b2"]]
    vecd = jnp.concatenate(vec_list, axis=0)             # (3 + 6*depth, D)
    vecm = jnp.concatenate([params["head_b1"]] + [lp["b1"] for lp in L], axis=0)

    # lane-dense head output: pad final-linear columns to 128
    hw2 = jnp.zeros((mlp, HPAD), jnp.float32).at[:, :out_dim].set(params["head_w2"])
    hb2 = jnp.zeros((1, HPAD), jnp.float32).at[:, :out_dim].set(params["head_b2"])

    return {
        "wemb": _bf16(wemb),
        "vecd": vecd, "vecm": vecm,
        "wqkv": _bf16(st("wqkv")),                       # (depth, D, 3*H*Dh)
        "wo": _bf16(st("wo")),                           # (depth, H*Dh, D)
        "w1": _bf16(st("w1")), "w2": _bf16(st("w2")),
        "mem": _bf16(params["mem"]),
        "hw1": _bf16(params["head_w1"]),
        "hw2": _bf16(hw2), "hb2": hb2,
    }


# ---------------------------------- main ---------------------------------------

if __name__ == "__main__":
    cfg = dict(radius=0.7, nsamples=8, spatial_stride=2, temporal_kernel_size=3,
               temporal_stride=2, temporal_padding=(1, 1), emb_relu=False,
               dim=32, depth=2, heads=2, dim_head=16, mlp_dim=64, output_dim=12,
               mem_size=16, features=3)

    B, L, N = 2, 4, 32
    key = jax.random.PRNGKey(0)
    k0, k1, kp = jax.random.split(key, 3)
    input0 = jax.random.uniform(k0, (B, L, N, 3), jnp.float32)
    input1 = jax.random.uniform(k1, (B, L, N, 3), jnp.float32)

    params = init_params(kp, cfg)
    packed = pack_params(params, cfg)

    train_fn = jax.jit(lambda p, a, b: forward_train(p, cfg, a, b))
    infer_fn = jax.jit(lambda p, a: forward_inference(p, cfg, a))

    # Module is constructed in training mode in PyTorch -> forward_train path.
    out0, out1, l_rec = train_fn(packed, input0, input1)
    jax.block_until_ready((out0, out1, l_rec))
    assert out0.shape == (B, 1, cfg["output_dim"] // 3, 3)
    assert out1.shape == (B, 1, cfg["output_dim"] // 3, 3)

    # Also exercise the inference path (skips the mem_out writeback).
    inf = infer_fn(packed, input0)
    jax.block_until_ready(inf)
    assert inf.shape == (B, 1, cfg["output_dim"] // 3, 3)

    print("KERNEL_OK")
</pallas_src>

<mosaic_0001>
module attributes {stable_mosaic.version = 11 : i64} {
  func.func @fused_pipeline_kernel(%arg0: i32, %arg1: memref<2x800x16xbf16, #tpu.memory_space<vmem>>, %arg2: memref<16x32xbf16, #tpu.memory_space<vmem>>, %arg3: memref<15x32xf32, #tpu.memory_space<vmem>>, %arg4: memref<3x64xf32, #tpu.memory_space<vmem>>, %arg5: memref<2x32x96xbf16, #tpu.memory_space<vmem>>, %arg6: memref<2x32x32xbf16, #tpu.memory_space<vmem>>, %arg7: memref<2x32x64xbf16, #tpu.memory_space<vmem>>, %arg8: memref<2x64x32xbf16, #tpu.memory_space<vmem>>, %arg9: memref<32x16xbf16, #tpu.memory_space<vmem>>, %arg10: memref<32x64xbf16, #tpu.memory_space<vmem>>, %arg11: memref<64x128xbf16, #tpu.memory_space<vmem>>, %arg12: memref<1x128xf32, #tpu.memory_space<vmem>>, %arg13: memref<2x32x32xf32, #tpu.memory_space<vmem>>, %arg14: memref<1x2x128xf32, #tpu.memory_space<vmem>>) attributes {dimension_semantics = [#tpu.dimension_semantics<parallel>], iteration_bounds = array<i64: 2>, scalar_prefetch = 0 : i64, scratch_operands = 0 : i64, tpu.core_type = #tpu.core_type<tc>, window_params = [{transform_indices = @transform_0, window_bounds = array<i64: 2, 800, 16>}, {pipeline_mode = #tpu.pipeline_mode<synchronous>, transform_indices = @transform_1, window_bounds = array<i64: 16, 32>}, {pipeline_mode = #tpu.pipeline_mode<synchronous>, transform_indices = @transform_2, window_bounds = array<i64: 15, 32>}, {pipeline_mode = #tpu.pipeline_mode<synchronous>, transform_indices = @transform_3, window_bounds = array<i64: 3, 64>}, {pipeline_mode = #tpu.pipeline_mode<synchronous>, transform_indices = @transform_4, window_bounds = array<i64: 2, 32, 96>}, {pipeline_mode = #tpu.pipeline_mode<synchronous>, transform_indices = @transform_5, window_bounds = array<i64: 2, 32, 32>}, {pipeline_mode = #tpu.pipeline_mode<synchronous>, transform_indices = @transform_6, window_bounds = array<i64: 2, 32, 64>}, {pipeline_mode = #tpu.pipeline_mode<synchronous>, transform_indices = @transform_7, window_bounds = array<i64: 2, 64, 32>}, {pipeline_mode = #tpu.pipeline_mode<synchronous>, transform_indices = @transform_8, window_bounds = array<i64: 32, 16>}, {pipeline_mode = #tpu.pipeline_mode<synchronous>, transform_indices = @transform_9, window_bounds = array<i64: 32, 64>}, {pipeline_mode = #tpu.pipeline_mode<synchronous>, transform_indices = @transform_10, window_bounds = array<i64: 64, 128>}, {pipeline_mode = #tpu.pipeline_mode<synchronous>, transform_indices = @transform_11, window_bounds = array<i64: 1, 128>}, {transform_indices = @transform_12, window_bounds = array<i64: 2, 32, 32>}, {transform_indices = @transform_13, window_bounds = array<i64: 1, 2, 128>}]} {
    %c0 = arith.constant 0 : index
    %c0_0 = arith.constant 0 : index
    %0 = vector.load %arg3[%c0, %c0_0] : memref<15x32xf32, #tpu.memory_space<vmem>>, vector<1x32xf32>
    %c0_1 = arith.constant 0 : index
    %c0_2 = arith.constant 0 : index
    %c0_3 = arith.constant 0 : index
    %1 = vector.load %arg1[%c0_1, %c0_2, %c0_3] : memref<2x800x16xbf16, #tpu.memory_space<vmem>>, vector<1x800x16xbf16>
    %2 = vector.shape_cast %1 : vector<1x800x16xbf16> to vector<800x16xbf16>
    %c0_4 = arith.constant 0 : index
    %c0_5 = arith.constant 0 : index
    %3 = vector.load %arg2[%c0_4, %c0_5] : memref<16x32xbf16, #tpu.memory_space<vmem>>, vector<16x32xbf16>
    %cst = arith.constant dense<0.000000e+00> : vector<800x32xf32>
    %4 = tpu.matmul %2, %3, %cst {dimension_numbers = #tpu.dot_dimension_numbers<[1], [0], [0], [1], [0, 0, 1, 1], [], []>} : vector<800x16xbf16>, vector<16x32xbf16>, vector<800x32xf32> -> vector<800x32xf32>
    %5 = vector.extract_strided_slice %4 {offsets = [0, 0], sizes = [768, 32], strides = [1, 1]} : vector<800x32xf32> to vector<768x32xf32>
    %6 = vector.shape_cast %5 : vector<768x32xf32> to vector<96x8x32xf32>
    %cst_6 = arith.constant dense<0xFF800000> : vector<96x32xf32>
    %7 = vector.multi_reduction <maximumf>, %6, %cst_6 [1] : vector<96x8x32xf32> to vector<96x32xf32>
    %8 = vector.shape_cast %7 : vector<96x32xf32> to vector<2x3x16x32xf32>
    %cst_7 = arith.constant dense<0xFF800000> : vector<2x16x32xf32>
    %9 = vector.multi_reduction <maximumf>, %8, %cst_7 [1] : vector<2x3x16x32xf32> to vector<2x16x32xf32>
    %10 = vector.shape_cast %9 : vector<2x16x32xf32> to vector<32x32xf32>
    %11 = vector.extract_strided_slice %4 {offsets = [768, 0], sizes = [32, 32], strides = [1, 1]} : vector<800x32xf32> to vector<32x32xf32>
    %12 = vector.broadcast %0 : vector<1x32xf32> to vector<32x32xf32>
    %13 = arith.addf %11, %12 : vector<32x32xf32>
    %14 = arith.addf %10, %13 : vector<32x32xf32>
    %c1 = arith.constant 1 : index
    %c0_8 = arith.constant 0 : index
    %c0_9 = arith.constant 0 : index
    %15 = vector.load %arg1[%c1, %c0_8, %c0_9] : memref<2x800x16xbf16, #tpu.memory_space<vmem>>, vector<1x800x16xbf16>
    %16 = vector.shape_cast %15 : vector<1x800x16xbf16> to vector<800x16xbf16>
    %c0_10 = arith.constant 0 : index
    %c0_11 = arith.constant 0 : index
    %17 = vector.load %arg2[%c0_10, %c0_11] : memref<16x32xbf16, #tpu.memory_space<vmem>>, vector<16x32xbf16>
    %cst_12 = arith.constant dense<0.000000e+00> : vector<800x32xf32>
    %18 = tpu.matmul %16, %17, %cst_12 {dimension_numbers = #tpu.dot_dimension_numbers<[1], [0], [0], [1], [0, 0, 1, 1], [], []>} : vector<800x16xbf16>, vector<16x32xbf16>, vector<800x32xf32> -> vector<800x32xf32>
    %19 = vector.extract_strided_slice %18 {offsets = [0, 0], sizes = [768, 32], strides = [1, 1]} : vector<800x32xf32> to vector<768x32xf32>
    %20 = vector.shape_cast %19 : vector<768x32xf32> to vector<96x8x32xf32>
    %cst_13 = arith.constant dense<0xFF800000> : vector<96x32xf32>
    %21 = vector.multi_reduction <maximumf>, %20, %cst_13 [1] : vector<96x8x32xf32> to vector<96x32xf32>
    %22 = vector.shape_cast %21 : vector<96x32xf32> to vector<2x3x16x32xf32>
    %cst_14 = arith.constant dense<0xFF800000> : vector<2x16x32xf32>
    %23 = vector.multi_reduction <maximumf>, %22, %cst_14 [1] : vector<2x3x16x32xf32> to vector<2x16x32xf32>
    %24 = vector.shape_cast %23 : vector<2x16x32xf32> to vector<32x32xf32>
    %25 = vector.extract_strided_slice %18 {offsets = [768, 0], sizes = [32, 32], strides = [1, 1]} : vector<800x32xf32> to vector<32x32xf32>
    %26 = vector.broadcast %0 : vector<1x32xf32> to vector<32x32xf32>
    %27 = arith.addf %25, %26 : vector<32x32xf32>
    %28 = arith.addf %24, %27 : vector<32x32xf32>
    %29 = tpu.concatenate %14, %28 in 0 : vector<32x32xf32>, vector<32x32xf32> -> vector<64x32xf32>
    %c3 = arith.constant 3 : index
    %c0_15 = arith.constant 0 : index
    %30 = vector.load %arg3[%c3, %c0_15] : memref<15x32xf32, #tpu.memory_space<vmem>>, vector<1x32xf32>
    %c4 = arith.constant 4 : index
    %c0_16 = arith.constant 0 : index
    %31 = vector.load %arg3[%c4, %c0_16] : memref<15x32xf32, #tpu.memory_space<vmem>>, vector<1x32xf32>
    %cst_17 = arith.constant dense<0.000000e+00> : vector<64xf32>
    %32 = vector.multi_reduction <add>, %29, %cst_17 [1] : vector<64x32xf32> to vector<64xf32>
    %33 = vector.shape_cast %32 : vector<64xf32> to vector<64x1xf32>
    %cst_18 = arith.constant 3.200000e+01 : f32
    %34 = vector.broadcast %cst_18 : f32 to vector<64x1xf32>
    %35 = arith.divf %33, %34 : vector<64x1xf32>
    %36 = vector.broadcast %35 : vector<64x1xf32> to vector<64x32xf32>
    %37 = arith.subf %29, %36 : vector<64x32xf32>
    %38 = arith.mulf %37, %37 : vector<64x32xf32>
    %cst_19 = arith.constant dense<0.000000e+00> : vector<64xf32>
    %39 = vector.multi_reduction <add>, %38, %cst_19 [1] : vector<64x32xf32> to vector<64xf32>
    %40 = vector.shape_cast %39 : vector<64xf32> to vector<64x1xf32>
    %cst_20 = arith.constant 3.200000e+01 : f32
    %41 = vector.broadcast %cst_20 : f32 to vector<64x1xf32>
    %42 = arith.divf %40, %41 : vector<64x1xf32>
    %43 = vector.broadcast %35 : vector<64x1xf32> to vector<64x32xf32>
    %44 = arith.subf %29, %43 : vector<64x32xf32>
    %cst_21 = arith.constant 9.99999974E-6 : f32
    %45 = vector.broadcast %cst_21 : f32 to vector<64x1xf32>
    %46 = arith.addf %42, %45 : vector<64x1xf32>
    %47 = math.rsqrt %46 : vector<64x1xf32>
    %48 = vector.broadcast %47 : vector<64x1xf32> to vector<64x32xf32>
    %49 = arith.mulf %44, %48 : vector<64x32xf32>
    %50 = vector.broadcast %30 : vector<1x32xf32> to vector<64x32xf32>
    %51 = arith.mulf %49, %50 : vector<64x32xf32>
    %52 = vector.broadcast %31 : vector<1x32xf32> to vector<64x32xf32>
    %53 = arith.addf %51, %52 : vector<64x32xf32>
    %54 = arith.truncf %53 : vector<64x32xf32> to vector<64x32xbf16>
    %c0_22 = arith.constant 0 : index
    %c0_23 = arith.constant 0 : index
    %c0_24 = arith.constant 0 : index
    %55 = vector.load %arg5[%c0_22, %c0_23, %c0_24] : memref<2x32x96xbf16, #tpu.memory_space<vmem>>, vector<1x32x96xbf16>
    %56 = vector.shape_cast %55 : vector<1x32x96xbf16> to vector<32x96xbf16>
    %cst_25 = arith.constant dense<0.000000e+00> : vector<64x96xf32>
    %57 = tpu.matmul %54, %56, %cst_25 {dimension_numbers = #tpu.dot_dimension_numbers<[1], [0], [0], [1], [0, 0, 1, 1], [], []>} : vector<64x32xbf16>, vector<32x96xbf16>, vector<64x96xf32> -> vector<64x96xf32>
    %58 = vector.extract_strided_slice %57 {offsets = [0, 0], sizes = [32, 16], strides = [1, 1]} : vector<64x96xf32> to vector<32x16xf32>
    %59 = vector.extract_strided_slice %57 {offsets = [0, 32], sizes = [32, 16], strides = [1, 1]} : vector<64x96xf32> to vector<32x16xf32>
    %60 = vector.extract_strided_slice %57 {offsets = [0, 64], sizes = [32, 16], strides = [1, 1]} : vector<64x96xf32> to vector<32x16xf32>
    %61 = arith.truncf %58 : vector<32x16xf32> to vector<32x16xbf16>
    %62 = arith.truncf %59 : vector<32x16xf32> to vector<32x16xbf16>
    %cst_26 = arith.constant dense<0.000000e+00> : vector<32x32xf32>
    %63 = tpu.matmul %61, %62, %cst_26 {dimension_numbers = #tpu.dot_dimension_numbers<[1], [1], [0], [0], [0, 0, 1, 0], [], []>} : vector<32x16xbf16>, vector<32x16xbf16>, vector<32x32xf32> -> vector<32x32xf32>
    %cst_27 = arith.constant 2.500000e-01 : f32
    %64 = vector.broadcast %cst_27 : f32 to vector<32x32xf32>
    %65 = arith.mulf %63, %64 : vector<32x32xf32>
    %cst_28 = arith.constant dense<0xFF800000> : vector<32xf32>
    %66 = vector.multi_reduction <maximumf>, %65, %cst_28 [1] : vector<32x32xf32> to vector<32xf32>
    %67 = vector.shape_cast %66 : vector<32xf32> to vector<32x1xf32>
    %68 = vector.broadcast %67 : vector<32x1xf32> to vector<32x32xf32>
    %69 = arith.subf %65, %68 : vector<32x32xf32>
    %70 = math.exp %69 : vector<32x32xf32>
    %cst_29 = arith.constant dense<0.000000e+00> : vector<32xf32>
    %71 = vector.multi_reduction <add>, %70, %cst_29 [1] : vector<32x32xf32> to vector<32xf32>
    %72 = vector.shape_cast %71 : vector<32xf32> to vector<32x1xf32>
    %73 = tpu.reciprocal %72 {approx = true} : vector<32x1xf32> -> vector<32x1xf32>
    %74 = vector.broadcast %73 : vector<32x1xf32> to vector<32x32xf32>
    %75 = arith.mulf %70, %74 : vector<32x32xf32>
    %76 = arith.truncf %75 : vector<32x32xf32> to vector<32x32xbf16>
    %77 = arith.truncf %60 : vector<32x16xf32> to vector<32x16xbf16>
    %cst_30 = arith.constant dense<0.000000e+00> : vector<32x16xf32>
    %78 = tpu.matmul %76, %77, %cst_30 {dimension_numbers = #tpu.dot_dimension_numbers<[1], [0], [0], [1], [0, 0, 1, 1], [], []>} : vector<32x32xbf16>, vector<32x16xbf16>, vector<32x16xf32> -> vector<32x16xf32>
    %79 = vector.extract_strided_slice %57 {offsets = [0, 16], sizes = [32, 16], strides = [1, 1]} : vector<64x96xf32> to vector<32x16xf32>
    %80 = vector.extract_strided_slice %57 {offsets = [0, 48], sizes = [32, 16], strides = [1, 1]} : vector<64x96xf32> to vector<32x16xf32>
    %81 = vector.extract_strided_slice %57 {offsets = [0, 80], sizes = [32, 16], strides = [1, 1]} : vector<64x96xf32> to vector<32x16xf32>
    %82 = arith.truncf %79 : vector<32x16xf32> to vector<32x16xbf16>
    %83 = arith.truncf %80 : vector<32x16xf32> to vector<32x16xbf16>
    %cst_31 = arith.constant dense<0.000000e+00> : vector<32x32xf32>
    %84 = tpu.matmul %82, %83, %cst_31 {dimension_numbers = #tpu.dot_dimension_numbers<[1], [1], [0], [0], [0, 0, 1, 0], [], []>} : vector<32x16xbf16>, vector<32x16xbf16>, vector<32x32xf32> -> vector<32x32xf32>
    %cst_32 = arith.constant 2.500000e-01 : f32
    %85 = vector.broadcast %cst_32 : f32 to vector<32x32xf32>
    %86 = arith.mulf %84, %85 : vector<32x32xf32>
    %cst_33 = arith.constant dense<0xFF800000> : vector<32xf32>
    %87 = vector.multi_reduction <maximumf>, %86, %cst_33 [1] : vector<32x32xf32> to vector<32xf32>
    %88 = vector.shape_cast %87 : vector<32xf32> to vector<32x1xf32>
    %89 = vector.broadcast %88 : vector<32x1xf32> to vector<32x32xf32>
    %90 = arith.subf %86, %89 : vector<32x32xf32>
    %91 = math.exp %90 : vector<32x32xf32>
    %cst_34 = arith.constant dense<0.000000e+00> : vector<32xf32>
    %92 = vector.multi_reduction <add>, %91, %cst_34 [1] : vector<32x32xf32> to vector<32xf32>
    %93 = vector.shape_cast %92 : vector<32xf32> to vector<32x1xf32>
    %94 = tpu.reciprocal %93 {approx = true} : vector<32x1xf32> -> vector<32x1xf32>
    %95 = vector.broadcast %94 : vector<32x1xf32> to vector<32x32xf32>
    %96 = arith.mulf %91, %95 : vector<32x32xf32>
    %97 = arith.truncf %96 : vector<32x32xf32> to vector<32x32xbf16>
    %98 = arith.truncf %81 : vector<32x16xf32> to vector<32x16xbf16>
    %cst_35 = arith.constant dense<0.000000e+00> : vector<32x16xf32>
    %99 = tpu.matmul %97, %98, %cst_35 {dimension_numbers = #tpu.dot_dimension_numbers<[1], [0], [0], [1], [0, 0, 1, 1], [], []>} : vector<32x32xbf16>, vector<32x16xbf16>, vector<32x16xf32> -> vector<32x16xf32>
    %100 = tpu.concatenate %78, %99 in 1 : vector<32x16xf32>, vector<32x16xf32> -> vector<32x32xf32>
    %101 = vector.extract_strided_slice %57 {offsets = [32, 0], sizes = [32, 16], strides = [1, 1]} : vector<64x96xf32> to vector<32x16xf32>
    %102 = vector.extract_strided_slice %57 {offsets = [32, 32], sizes = [32, 16], strides = [1, 1]} : vector<64x96xf32> to vector<32x16xf32>
    %103 = vector.extract_strided_slice %57 {offsets = [32, 64], sizes = [32, 16], strides = [1, 1]} : vector<64x96xf32> to vector<32x16xf32>
    %104 = arith.truncf %101 : vector<32x16xf32> to vector<32x16xbf16>
    %105 = arith.truncf %102 : vector<32x16xf32> to vector<32x16xbf16>
    %cst_36 = arith.constant dense<0.000000e+00> : vector<32x32xf32>
    %106 = tpu.matmul %104, %105, %cst_36 {dimension_numbers = #tpu.dot_dimension_numbers<[1], [1], [0], [0], [0, 0, 1, 0], [], []>} : vector<32x16xbf16>, vector<32x16xbf16>, vector<32x32xf32> -> vector<32x32xf32>
    %cst_37 = arith.constant 2.500000e-01 : f32
    %107 = vector.broadcast %cst_37 : f32 to vector<32x32xf32>
    %108 = arith.mulf %106, %107 : vector<32x32xf32>
    %cst_38 = arith.constant dense<0xFF800000> : vector<32xf32>
    %109 = vector.multi_reduction <maximumf>, %108, %cst_38 [1] : vector<32x32xf32> to vector<32xf32>
    %110 = vector.shape_cast %109 : vector<32xf32> to vector<32x1xf32>
    %111 = vector.broadcast %110 : vector<32x1xf32> to vector<32x32xf32>
    %112 = arith.subf %108, %111 : vector<32x32xf32>
    %113 = math.exp %112 : vector<32x32xf32>
    %cst_39 = arith.constant dense<0.000000e+00> : vector<32xf32>
    %114 = vector.multi_reduction <add>, %113, %cst_39 [1] : vector<32x32xf32> to vector<32xf32>
    %115 = vector.shape_cast %114 : vector<32xf32> to vector<32x1xf32>
    %116 = tpu.reciprocal %115 {approx = true} : vector<32x1xf32> -> vector<32x1xf32>
    %117 = vector.broadcast %116 : vector<32x1xf32> to vector<32x32xf32>
    %118 = arith.mulf %113, %117 : vector<32x32xf32>
    %119 = arith.truncf %118 : vector<32x32xf32> to vector<32x32xbf16>
    %120 = arith.truncf %103 : vector<32x16xf32> to vector<32x16xbf16>
    %cst_40 = arith.constant dense<0.000000e+00> : vector<32x16xf32>
    %121 = tpu.matmul %119, %120, %cst_40 {dimension_numbers = #tpu.dot_dimension_numbers<[1], [0], [0], [1], [0, 0, 1, 1], [], []>} : vector<32x32xbf16>, vector<32x16xbf16>, vector<32x16xf32> -> vector<32x16xf32>
    %122 = vector.extract_strided_slice %57 {offsets = [32, 16], sizes = [32, 16], strides = [1, 1]} : vector<64x96xf32> to vector<32x16xf32>
    %123 = vector.extract_strided_slice %57 {offsets = [32, 48], sizes = [32, 16], strides = [1, 1]} : vector<64x96xf32> to vector<32x16xf32>
    %124 = vector.extract_strided_slice %57 {offsets = [32, 80], sizes = [32, 16], strides = [1, 1]} : vector<64x96xf32> to vector<32x16xf32>
    %125 = arith.truncf %122 : vector<32x16xf32> to vector<32x16xbf16>
    %126 = arith.truncf %123 : vector<32x16xf32> to vector<32x16xbf16>
    %cst_41 = arith.constant dense<0.000000e+00> : vector<32x32xf32>
    %127 = tpu.matmul %125, %126, %cst_41 {dimension_numbers = #tpu.dot_dimension_numbers<[1], [1], [0], [0], [0, 0, 1, 0], [], []>} : vector<32x16xbf16>, vector<32x16xbf16>, vector<32x32xf32> -> vector<32x32xf32>
    %cst_42 = arith.constant 2.500000e-01 : f32
    %128 = vector.broadcast %cst_42 : f32 to vector<32x32xf32>
    %129 = arith.mulf %127, %128 : vector<32x32xf32>
    %cst_43 = arith.constant dense<0xFF800000> : vector<32xf32>
    %130 = vector.multi_reduction <maximumf>, %129, %cst_43 [1] : vector<32x32xf32> to vector<32xf32>
    %131 = vector.shape_cast %130 : vector<32xf32> to vector<32x1xf32>
    %132 = vector.broadcast %131 : vector<32x1xf32> to vector<32x32xf32>
    %133 = arith.subf %129, %132 : vector<32x32xf32>
    %134 = math.exp %133 : vector<32x32xf32>
    %cst_44 = arith.constant dense<0.000000e+00> : vector<32xf32>
    %135 = vector.multi_reduction <add>, %134, %cst_44 [1] : vector<32x32xf32> to vector<32xf32>
    %136 = vector.shape_cast %135 : vector<32xf32> to vector<32x1xf32>
    %137 = tpu.reciprocal %136 {approx = true} : vector<32x1xf32> -> vector<32x1xf32>
    %138 = vector.broadcast %137 : vector<32x1xf32> to vector<32x32xf32>
    %139 = arith.mulf %134, %138 : vector<32x32xf32>
    %140 = arith.truncf %139 : vector<32x32xf32> to vector<32x32xbf16>
    %141 = arith.truncf %124 : vector<32x16xf32> to vector<32x16xbf16>
    %cst_45 = arith.constant dense<0.000000e+00> : vector<32x16xf32>
    %142 = tpu.matmul %140, %141, %cst_45 {dimension_numbers = #tpu.dot_dimension_numbers<[1], [0], [0], [1], [0, 0, 1, 1], [], []>} : vector<32x32xbf16>, vector<32x16xbf16>, vector<32x16xf32> -> vector<32x16xf32>
    %143 = tpu.concatenate %121, %142 in 1 : vector<32x16xf32>, vector<32x16xf32> -> vector<32x32xf32>
    %144 = tpu.concatenate %100, %143 in 0 : vector<32x32xf32>, vector<32x32xf32> -> vector<64x32xf32>
    %145 = arith.truncf %144 : vector<64x32xf32> to vector<64x32xbf16>
    %c0_46 = arith.constant 0 : index
    %c0_47 = arith.constant 0 : index
    %c0_48 = arith.constant 0 : index
    %146 = vector.load %arg6[%c0_46, %c0_47, %c0_48] : memref<2x32x32xbf16, #tpu.memory_space<vmem>>, vector<1x32x32xbf16>
    %147 = vector.shape_cast %146 : vector<1x32x32xbf16> to vector<32x32xbf16>
    %cst_49 = arith.constant dense<0.000000e+00> : vector<64x32xf32>
    %148 = tpu.matmul %145, %147, %cst_49 {dimension_numbers = #tpu.dot_dimension_numbers<[1], [0], [0], [1], [0, 0, 1, 1], [], []>} : vector<64x32xbf16>, vector<32x32xbf16>, vector<64x32xf32> -> vector<64x32xf32>
    %c5 = arith.constant 5 : index
    %c0_50 = arith.constant 0 : index
    %149 = vector.load %arg3[%c5, %c0_50] : memref<15x32xf32, #tpu.memory_space<vmem>>, vector<1x32xf32>
    %150 = vector.broadcast %149 : vector<1x32xf32> to vector<64x32xf32>
    %151 = arith.addf %148, %150 : vector<64x32xf32>
    %152 = arith.addf %29, %151 : vector<64x32xf32>
    %c6 = arith.constant 6 : index
    %c0_51 = arith.constant 0 : index
    %153 = vector.load %arg3[%c6, %c0_51] : memref<15x32xf32, #tpu.memory_space<vmem>>, vector<1x32xf32>
    %c7 = arith.constant 7 : index
    %c0_52 = arith.constant 0 : index
    %154 = vector.load %arg3[%c7, %c0_52] : memref<15x32xf32, #tpu.memory_space<vmem>>, vector<1x32xf32>
    %cst_53 = arith.constant dense<0.000000e+00> : vector<64xf32>
    %155 = vector.multi_reduction <add>, %152, %cst_53 [1] : vector<64x32xf32> to vector<64xf32>
    %156 = vector.shape_cast %155 : vector<64xf32> to vector<64x1xf32>
    %cst_54 = arith.constant 3.200000e+01 : f32
    %157 = vector.broadcast %cst_54 : f32 to vector<64x1xf32>
    %158 = arith.divf %156, %157 : vector<64x1xf32>
    %159 = vector.broadcast %158 : vector<64x1xf32> to vector<64x32xf32>
    %160 = arith.subf %152, %159 : vector<64x32xf32>
    %161 = arith.mulf %160, %160 : vector<64x32xf32>
    %cst_55 = arith.constant dense<0.000000e+00> : vector<64xf32>
    %162 = vector.multi_reduction <add>, %161, %cst_55 [1] : vector<64x32xf32> to vector<64xf32>
    %163 = vector.shape_cast %162 : vector<64xf32> to vector<64x1xf32>
    %cst_56 = arith.constant 3.200000e+01 : f32
    %164 = vector.broadcast %cst_56 : f32 to vector<64x1xf32>
    %165 = arith.divf %163, %164 : vector<64x1xf32>
    %166 = vector.broadcast %158 : vector<64x1xf32> to vector<64x32xf32>
    %167 = arith.subf %152, %166 : vector<64x32xf32>
    %cst_57 = arith.constant 9.99999974E-6 : f32
    %168 = vector.broadcast %cst_57 : f32 to vector<64x1xf32>
    %169 = arith.addf %165, %168 : vector<64x1xf32>
    %170 = math.rsqrt %169 : vector<64x1xf32>
    %171 = vector.broadcast %170 : vector<64x1xf32> to vector<64x32xf32>
    %172 = arith.mulf %167, %171 : vector<64x32xf32>
    %173 = vector.broadcast %153 : vector<1x32xf32> to vector<64x32xf32>
    %174 = arith.mulf %172, %173 : vector<64x32xf32>
    %175 = vector.broadcast %154 : vector<1x32xf32> to vector<64x32xf32>
    %176 = arith.addf %174, %175 : vector<64x32xf32>
    %177 = arith.truncf %176 : vector<64x32xf32> to vector<64x32xbf16>
    %c0_58 = arith.constant 0 : index
    %c0_59 = arith.constant 0 : index
    %c0_60 = arith.constant 0 : index
    %178 = vector.load %arg7[%c0_58, %c0_59, %c0_60] : memref<2x32x64xbf16, #tpu.memory_space<vmem>>, vector<1x32x64xbf16>
    %179 = vector.shape_cast %178 : vector<1x32x64xbf16> to vector<32x64xbf16>
    %cst_61 = arith.constant dense<0.000000e+00> : vector<64x64xf32>
    %180 = tpu.matmul %177, %179, %cst_61 {dimension_numbers = #tpu.dot_dimension_numbers<[1], [0], [0], [1], [0, 0, 1, 1], [], []>} : vector<64x32xbf16>, vector<32x64xbf16>, vector<64x64xf32> -> vector<64x64xf32>
    %c1_62 = arith.constant 1 : index
    %c0_63 = arith.constant 0 : index
    %181 = vector.load %arg4[%c1_62, %c0_63] : memref<3x64xf32, #tpu.memory_space<vmem>>, vector<1x64xf32>
    %182 = vector.broadcast %181 : vector<1x64xf32> to vector<64x64xf32>
    %183 = arith.addf %180, %182 : vector<64x64xf32>
    %cst_64 = arith.constant 5.000000e-01 : f32
    %184 = vector.broadcast %cst_64 : f32 to vector<64x64xf32>
    %185 = arith.mulf %184, %183 : vector<64x64xf32>
    %cst_65 = arith.constant 4.471500e-02 : f32
    %186 = vector.broadcast %cst_65 : f32 to vector<64x64xf32>
    %187 = arith.mulf %186, %183 : vector<64x64xf32>
    %188 = arith.mulf %187, %183 : vector<64x64xf32>
    %189 = arith.mulf %188, %183 : vector<64x64xf32>
    %190 = arith.addf %183, %189 : vector<64x64xf32>
    %cst_66 = arith.constant 0.797884583 : f32
    %191 = vector.broadcast %cst_66 : f32 to vector<64x64xf32>
    %192 = arith.mulf %191, %190 : vector<64x64xf32>
    %193 = math.tanh %192 : vector<64x64xf32>
    %cst_67 = arith.constant 1.000000e+00 : f32
    %194 = vector.broadcast %cst_67 : f32 to vector<64x64xf32>
    %195 = arith.addf %194, %193 : vector<64x64xf32>
    %196 = arith.mulf %185, %195 : vector<64x64xf32>
    %197 = arith.truncf %196 : vector<64x64xf32> to vector<64x64xbf16>
    %c0_68 = arith.constant 0 : index
    %c0_69 = arith.constant 0 : index
    %c0_70 = arith.constant 0 : index
    %198 = vector.load %arg8[%c0_68, %c0_69, %c0_70] : memref<2x64x32xbf16, #tpu.memory_space<vmem>>, vector<1x64x32xbf16>
    %199 = vector.shape_cast %198 : vector<1x64x32xbf16> to vector<64x32xbf16>
    %cst_71 = arith.constant dense<0.000000e+00> : vector<64x32xf32>
    %200 = tpu.matmul %197, %199, %cst_71 {dimension_numbers = #tpu.dot_dimension_numbers<[1], [0], [0], [1], [0, 0, 1, 1], [], []>} : vector<64x64xbf16>, vector<64x32xbf16>, vector<64x32xf32> -> vector<64x32xf32>
    %c8 = arith.constant 8 : index
    %c0_72 = arith.constant 0 : index
    %201 = vector.load %arg3[%c8, %c0_72] : memref<15x32xf32, #tpu.memory_space<vmem>>, vector<1x32xf32>
    %202 = vector.broadcast %201 : vector<1x32xf32> to vector<64x32xf32>
    %203 = arith.addf %200, %202 : vector<64x32xf32>
    %204 = arith.addf %152, %203 : vector<64x32xf32>
    %c9 = arith.constant 9 : index
    %c0_73 = arith.constant 0 : index
    %205 = vector.load %arg3[%c9, %c0_73] : memref<15x32xf32, #tpu.memory_space<vmem>>, vector<1x32xf32>
    %c10 = arith.constant 10 : index
    %c0_74 = arith.constant 0 : index
    %206 = vector.load %arg3[%c10, %c0_74] : memref<15x32xf32, #tpu.memory_space<vmem>>, vector<1x32xf32>
    %cst_75 = arith.constant dense<0.000000e+00> : vector<64xf32>
    %207 = vector.multi_reduction <add>, %204, %cst_75 [1] : vector<64x32xf32> to vector<64xf32>
    %208 = vector.shape_cast %207 : vector<64xf32> to vector<64x1xf32>
    %cst_76 = arith.constant 3.200000e+01 : f32
    %209 = vector.broadcast %cst_76 : f32 to vector<64x1xf32>
    %210 = arith.divf %208, %209 : vector<64x1xf32>
    %211 = vector.broadcast %210 : vector<64x1xf32> to vector<64x32xf32>
    %212 = arith.subf %204, %211 : vector<64x32xf32>
    %213 = arith.mulf %212, %212 : vector<64x32xf32>
    %cst_77 = arith.constant dense<0.000000e+00> : vector<64xf32>
    %214 = vector.multi_reduction <add>, %213, %cst_77 [1] : vector<64x32xf32> to vector<64xf32>
    %215 = vector.shape_cast %214 : vector<64xf32> to vector<64x1xf32>
    %cst_78 = arith.constant 3.200000e+01 : f32
    %216 = vector.broadcast %cst_78 : f32 to vector<64x1xf32>
    %217 = arith.divf %215, %216 : vector<64x1xf32>
    %218 = vector.broadcast %210 : vector<64x1xf32> to vector<64x32xf32>
    %219 = arith.subf %204, %218 : vector<64x32xf32>
    %cst_79 = arith.constant 9.99999974E-6 : f32
    %220 = vector.broadcast %cst_79 : f32 to vector<64x1xf32>
    %221 = arith.addf %217, %220 : vector<64x1xf32>
    %222 = math.rsqrt %221 : vector<64x1xf32>
    %223 = vector.broadcast %222 : vector<64x1xf32> to vector<64x32xf32>
    %224 = arith.mulf %219, %223 : vector<64x32xf32>
    %225 = vector.broadcast %205 : vector<1x32xf32> to vector<64x32xf32>
    %226 = arith.mulf %224, %225 : vector<64x32xf32>
    %227 = vector.broadcast %206 : vector<1x32xf32> to vector<64x32xf32>
    %228 = arith.addf %226, %227 : vector<64x32xf32>
    %229 = arith.truncf %228 : vector<64x32xf32> to vector<64x32xbf16>
    %c1_80 = arith.constant 1 : index
    %c0_81 = arith.constant 0 : index
    %c0_82 = arith.constant 0 : index
    %230 = vector.load %arg5[%c1_80, %c0_81, %c0_82] : memref<2x32x96xbf16, #tpu.memory_space<vmem>>, vector<1x32x96xbf16>
    %231 = vector.shape_cast %230 : vector<1x32x96xbf16> to vector<32x96xbf16>
    %cst_83 = arith.constant dense<0.000000e+00> : vector<64x96xf32>
    %232 = tpu.matmul %229, %231, %cst_83 {dimension_numbers = #tpu.dot_dimension_numbers<[1], [0], [0], [1], [0, 0, 1, 1], [], []>} : vector<64x32xbf16>, vector<32x96xbf16>, vector<64x96xf32> -> vector<64x96xf32>
    %233 = vector.extract_strided_slice %232 {offsets = [0, 0], sizes = [32, 16], strides = [1, 1]} : vector<64x96xf32> to vector<32x16xf32>
    %234 = vector.extract_strided_slice %232 {offsets = [0, 32], sizes = [32, 16], strides = [1, 1]} : vector<64x96xf32> to vector<32x16xf32>
    %235 = vector.extract_strided_slice %232 {offsets = [0, 64], sizes = [32, 16], strides = [1, 1]} : vector<64x96xf32> to vector<32x16xf32>
    %236 = arith.truncf %233 : vector<32x16xf32> to vector<32x16xbf16>
    %237 = arith.truncf %234 : vector<32x16xf32> to vector<32x16xbf16>
    %cst_84 = arith.constant dense<0.000000e+00> : vector<32x32xf32>
    %238 = tpu.matmul %236, %237, %cst_84 {dimension_numbers = #tpu.dot_dimension_numbers<[1], [1], [0], [0], [0, 0, 1, 0], [], []>} : vector<32x16xbf16>, vector<32x16xbf16>, vector<32x32xf32> -> vector<32x32xf32>
    %cst_85 = arith.constant 2.500000e-01 : f32
    %239 = vector.broadcast %cst_85 : f32 to vector<32x32xf32>
    %240 = arith.mulf %238, %239 : vector<32x32xf32>
    %cst_86 = arith.constant dense<0xFF800000> : vector<32xf32>
    %241 = vector.multi_reduction <maximumf>, %240, %cst_86 [1] : vector<32x32xf32> to vector<32xf32>
    %242 = vector.shape_cast %241 : vector<32xf32> to vector<32x1xf32>
    %243 = vector.broadcast %242 : vector<32x1xf32> to vector<32x32xf32>
    %244 = arith.subf %240, %243 : vector<32x32xf32>
    %245 = math.exp %244 : vector<32x32xf32>
    %cst_87 = arith.constant dense<0.000000e+00> : vector<32xf32>
    %246 = vector.multi_reduction <add>, %245, %cst_87 [1] : vector<32x32xf32> to vector<32xf32>
    %247 = vector.shape_cast %246 : vector<32xf32> to vector<32x1xf32>
    %248 = tpu.reciprocal %247 {approx = true} : vector<32x1xf32> -> vector<32x1xf32>
    %249 = vector.broadcast %248 : vector<32x1xf32> to vector<32x32xf32>
    %250 = arith.mulf %245, %249 : vector<32x32xf32>
    %251 = arith.truncf %250 : vector<32x32xf32> to vector<32x32xbf16>
    %252 = arith.truncf %235 : vector<32x16xf32> to vector<32x16xbf16>
    %cst_88 = arith.constant dense<0.000000e+00> : vector<32x16xf32>
    %253 = tpu.matmul %251, %252, %cst_88 {dimension_numbers = #tpu.dot_dimension_numbers<[1], [0], [0], [1], [0, 0, 1, 1], [], []>} : vector<32x32xbf16>, vector<32x16xbf16>, vector<32x16xf32> -> vector<32x16xf32>
    %254 = vector.extract_strided_slice %232 {offsets = [0, 16], sizes = [32, 16], strides = [1, 1]} : vector<64x96xf32> to vector<32x16xf32>
    %255 = vector.extract_strided_slice %232 {offsets = [0, 48], sizes = [32, 16], strides = [1, 1]} : vector<64x96xf32> to vector<32x16xf32>
    %256 = vector.extract_strided_slice %232 {offsets = [0, 80], sizes = [32, 16], strides = [1, 1]} : vector<64x96xf32> to vector<32x16xf32>
    %257 = arith.truncf %254 : vector<32x16xf32> to vector<32x16xbf16>
    %258 = arith.truncf %255 : vector<32x16xf32> to vector<32x16xbf16>
    %cst_89 = arith.constant dense<0.000000e+00> : vector<32x32xf32>
    %259 = tpu.matmul %257, %258, %cst_89 {dimension_numbers = #tpu.dot_dimension_numbers<[1], [1], [0], [0], [0, 0, 1, 0], [], []>} : vector<32x16xbf16>, vector<32x16xbf16>, vector<32x32xf32> -> vector<32x32xf32>
    %cst_90 = arith.constant 2.500000e-01 : f32
    %260 = vector.broadcast %cst_90 : f32 to vector<32x32xf32>
    %261 = arith.mulf %259, %260 : vector<32x32xf32>
    %cst_91 = arith.constant dense<0xFF800000> : vector<32xf32>
    %262 = vector.multi_reduction <maximumf>, %261, %cst_91 [1] : vector<32x32xf32> to vector<32xf32>
    %263 = vector.shape_cast %262 : vector<32xf32> to vector<32x1xf32>
    %264 = vector.broadcast %263 : vector<32x1xf32> to vector<32x32xf32>
    %265 = arith.subf %261, %264 : vector<32x32xf32>
    %266 = math.exp %265 : vector<32x32xf32>
    %cst_92 = arith.constant dense<0.000000e+00> : vector<32xf32>
    %267 = vector.multi_reduction <add>, %266, %cst_92 [1] : vector<32x32xf32> to vector<32xf32>
    %268 = vector.shape_cast %267 : vector<32xf32> to vector<32x1xf32>
    %269 = tpu.reciprocal %268 {approx = true} : vector<32x1xf32> -> vector<32x1xf32>
    %270 = vector.broadcast %269 : vector<32x1xf32> to vector<32x32xf32>
    %271 = arith.mulf %266, %270 : vector<32x32xf32>
    %272 = arith.truncf %271 : vector<32x32xf32> to vector<32x32xbf16>
    %273 = arith.truncf %256 : vector<32x16xf32> to vector<32x16xbf16>
    %cst_93 = arith.constant dense<0.000000e+00> : vector<32x16xf32>
    %274 = tpu.matmul %272, %273, %cst_93 {dimension_numbers = #tpu.dot_dimension_numbers<[1], [0], [0], [1], [0, 0, 1, 1], [], []>} : vector<32x32xbf16>, vector<32x16xbf16>, vector<32x16xf32> -> vector<32x16xf32>
    %275 = tpu.concatenate %253, %274 in 1 : vector<32x16xf32>, vector<32x16xf32> -> vector<32x32xf32>
    %276 = vector.extract_strided_slice %232 {offsets = [32, 0], sizes = [32, 16], strides = [1, 1]} : vector<64x96xf32> to vector<32x16xf32>
    %277 = vector.extract_strided_slice %232 {offsets = [32, 32], sizes = [32, 16], strides = [1, 1]} : vector<64x96xf32> to vector<32x16xf32>
    %278 = vector.extract_strided_slice %232 {offsets = [32, 64], sizes = [32, 16], strides = [1, 1]} : vector<64x96xf32> to vector<32x16xf32>
    %279 = arith.truncf %276 : vector<32x16xf32> to vector<32x16xbf16>
    %280 = arith.truncf %277 : vector<32x16xf32> to vector<32x16xbf16>
    %cst_94 = arith.constant dense<0.000000e+00> : vector<32x32xf32>
    %281 = tpu.matmul %279, %280, %cst_94 {dimension_numbers = #tpu.dot_dimension_numbers<[1], [1], [0], [0], [0, 0, 1, 0], [], []>} : vector<32x16xbf16>, vector<32x16xbf16>, vector<32x32xf32> -> vector<32x32xf32>
    %cst_95 = arith.constant 2.500000e-01 : f32
    %282 = vector.broadcast %cst_95 : f32 to vector<32x32xf32>
    %283 = arith.mulf %281, %282 : vector<32x32xf32>
    %cst_96 = arith.constant dense<0xFF800000> : vector<32xf32>
    %284 = vector.multi_reduction <maximumf>, %283, %cst_96 [1] : vector<32x32xf32> to vector<32xf32>
    %285 = vector.shape_cast %284 : vector<32xf32> to vector<32x1xf32>
    %286 = vector.broadcast %285 : vector<32x1xf32> to vector<32x32xf32>
    %287 = arith.subf %283, %286 : vector<32x32xf32>
    %288 = math.exp %287 : vector<32x32xf32>
    %cst_97 = arith.constant dense<0.000000e+00> : vector<32xf32>
    %289 = vector.multi_reduction <add>, %288, %cst_97 [1] : vector<32x32xf32> to vector<32xf32>
    %290 = vector.shape_cast %289 : vector<32xf32> to vector<32x1xf32>
    %291 = tpu.reciprocal %290 {approx = true} : vector<32x1xf32> -> vector<32x1xf32>
    %292 = vector.broadcast %291 : vector<32x1xf32> to vector<32x32xf32>
    %293 = arith.mulf %288, %292 : vector<32x32xf32>
    %294 = arith.truncf %293 : vector<32x32xf32> to vector<32x32xbf16>
    %295 = arith.truncf %278 : vector<32x16xf32> to vector<32x16xbf16>
    %cst_98 = arith.constant dense<0.000000e+00> : vector<32x16xf32>
    %296 = tpu.matmul %294, %295, %cst_98 {dimension_numbers = #tpu.dot_dimension_numbers<[1], [0], [0], [1], [0, 0, 1, 1], [], []>} : vector<32x32xbf16>, vector<32x16xbf16>, vector<32x16xf32> -> vector<32x16xf32>
    %297 = vector.extract_strided_slice %232 {offsets = [32, 16], sizes = [32, 16], strides = [1, 1]} : vector<64x96xf32> to vector<32x16xf32>
    %298 = vector.extract_strided_slice %232 {offsets = [32, 48], sizes = [32, 16], strides = [1, 1]} : vector<64x96xf32> to vector<32x16xf32>
    %299 = vector.extract_strided_slice %232 {offsets = [32, 80], sizes = [32, 16], strides = [1, 1]} : vector<64x96xf32> to vector<32x16xf32>
    %300 = arith.truncf %297 : vector<32x16xf32> to vector<32x16xbf16>
    %301 = arith.truncf %298 : vector<32x16xf32> to vector<32x16xbf16>
    %cst_99 = arith.constant dense<0.000000e+00> : vector<32x32xf32>
    %302 = tpu.matmul %300, %301, %cst_99 {dimension_numbers = #tpu.dot_dimension_numbers<[1], [1], [0], [0], [0, 0, 1, 0], [], []>} : vector<32x16xbf16>, vector<32x16xbf16>, vector<32x32xf32> -> vector<32x32xf32>
    %cst_100 = arith.constant 2.500000e-01 : f32
    %303 = vector.broadcast %cst_100 : f32 to vector<32x32xf32>
    %304 = arith.mulf %302, %303 : vector<32x32xf32>
    %cst_101 = arith.constant dense<0xFF800000> : vector<32xf32>
    %305 = vector.multi_reduction <maximumf>, %304, %cst_101 [1] : vector<32x32xf32> to vector<32xf32>
    %306 = vector.shape_cast %305 : vector<32xf32> to vector<32x1xf32>
    %307 = vector.broadcast %306 : vector<32x1xf32> to vector<32x32xf32>
    %308 = arith.subf %304, %307 : vector<32x32xf32>
    %309 = math.exp %308 : vector<32x32xf32>
    %cst_102 = arith.constant dense<0.000000e+00> : vector<32xf32>
    %310 = vector.multi_reduction <add>, %309, %cst_102 [1] : vector<32x32xf32> to vector<32xf32>
    %311 = vector.shape_cast %310 : vector<32xf32> to vector<32x1xf32>
    %312 = tpu.reciprocal %311 {approx = true} : vector<32x1xf32> -> vector<32x1xf32>
    %313 = vector.broadcast %312 : vector<32x1xf32> to vector<32x32xf32>
    %314 = arith.mulf %309, %313 : vector<32x32xf32>
    %315 = arith.truncf %314 : vector<32x32xf32> to vector<32x32xbf16>
    %316 = arith.truncf %299 : vector<32x16xf32> to vector<32x16xbf16>
    %cst_103 = arith.constant dense<0.000000e+00> : vector<32x16xf32>
    %317 = tpu.matmul %315, %316, %cst_103 {dimension_numbers = #tpu.dot_dimension_numbers<[1], [0], [0], [1], [0, 0, 1, 1], [], []>} : vector<32x32xbf16>, vector<32x16xbf16>, vector<32x16xf32> -> vector<32x16xf32>
    %318 = tpu.concatenate %296, %317 in 1 : vector<32x16xf32>, vector<32x16xf32> -> vector<32x32xf32>
    %319 = tpu.concatenate %275, %318 in 0 : vector<32x32xf32>, vector<32x32xf32> -> vector<64x32xf32>
    %320 = arith.truncf %319 : vector<64x32xf32> to vector<64x32xbf16>
    %c1_104 = arith.constant 1 : index
    %c0_105 = arith.constant 0 : index
    %c0_106 = arith.constant 0 : index
    %321 = vector.load %arg6[%c1_104, %c0_105, %c0_106] : memref<2x32x32xbf16, #tpu.memory_space<vmem>>, vector<1x32x32xbf16>
    %322 = vector.shape_cast %321 : vector<1x32x32xbf16> to vector<32x32xbf16>
    %cst_107 = arith.constant dense<0.000000e+00> : vector<64x32xf32>
    %323 = tpu.matmul %320, %322, %cst_107 {dimension_numbers = #tpu.dot_dimension_numbers<[1], [0], [0], [1], [0, 0, 1, 1], [], []>} : vector<64x32xbf16>, vector<32x32xbf16>, vector<64x32xf32> -> vector<64x32xf32>
    %c11 = arith.constant 11 : index
    %c0_108 = arith.constant 0 : index
    %324 = vector.load %arg3[%c11, %c0_108] : memref<15x32xf32, #tpu.memory_space<vmem>>, vector<1x32xf32>
    %325 = vector.broadcast %324 : vector<1x32xf32> to vector<64x32xf32>
    %326 = arith.addf %323, %325 : vector<64x32xf32>
    %327 = arith.addf %204, %326 : vector<64x32xf32>
    %c12 = arith.constant 12 : index
    %c0_109 = arith.constant 0 : index
    %328 = vector.load %arg3[%c12, %c0_109] : memref<15x32xf32, #tpu.memory_space<vmem>>, vector<1x32xf32>
    %c13 = arith.constant 13 : index
    %c0_110 = arith.constant 0 : index
    %329 = vector.load %arg3[%c13, %c0_110] : memref<15x32xf32, #tpu.memory_space<vmem>>, vector<1x32xf32>
    %cst_111 = arith.constant dense<0.000000e+00> : vector<64xf32>
    %330 = vector.multi_reduction <add>, %327, %cst_111 [1] : vector<64x32xf32> to vector<64xf32>
    %331 = vector.shape_cast %330 : vector<64xf32> to vector<64x1xf32>
    %cst_112 = arith.constant 3.200000e+01 : f32
    %332 = vector.broadcast %cst_112 : f32 to vector<64x1xf32>
    %333 = arith.divf %331, %332 : vector<64x1xf32>
    %334 = vector.broadcast %333 : vector<64x1xf32> to vector<64x32xf32>
    %335 = arith.subf %327, %334 : vector<64x32xf32>
    %336 = arith.mulf %335, %335 : vector<64x32xf32>
    %cst_113 = arith.constant dense<0.000000e+00> : vector<64xf32>
    %337 = vector.multi_reduction <add>, %336, %cst_113 [1] : vector<64x32xf32> to vector<64xf32>
    %338 = vector.shape_cast %337 : vector<64xf32> to vector<64x1xf32>
    %cst_114 = arith.constant 3.200000e+01 : f32
    %339 = vector.broadcast %cst_114 : f32 to vector<64x1xf32>
    %340 = arith.divf %338, %339 : vector<64x1xf32>
    %341 = vector.broadcast %333 : vector<64x1xf32> to vector<64x32xf32>
    %342 = arith.subf %327, %341 : vector<64x32xf32>
    %cst_115 = arith.constant 9.99999974E-6 : f32
    %343 = vector.broadcast %cst_115 : f32 to vector<64x1xf32>
    %344 = arith.addf %340, %343 : vector<64x1xf32>
    %345 = math.rsqrt %344 : vector<64x1xf32>
    %346 = vector.broadcast %345 : vector<64x1xf32> to vector<64x32xf32>
    %347 = arith.mulf %342, %346 : vector<64x32xf32>
    %348 = vector.broadcast %328 : vector<1x32xf32> to vector<64x32xf32>
    %349 = arith.mulf %347, %348 : vector<64x32xf32>
    %350 = vector.broadcast %329 : vector<1x32xf32> to vector<64x32xf32>
    %351 = arith.addf %349, %350 : vector<64x32xf32>
    %352 = arith.truncf %351 : vector<64x32xf32> to vector<64x32xbf16>
    %c1_116 = arith.constant 1 : index
    %c0_117 = arith.constant 0 : index
    %c0_118 = arith.constant 0 : index
    %353 = vector.load %arg7[%c1_116, %c0_117, %c0_118] : memref<2x32x64xbf16, #tpu.memory_space<vmem>>, vector<1x32x64xbf16>
    %354 = vector.shape_cast %353 : vector<1x32x64xbf16> to vector<32x64xbf16>
    %cst_119 = arith.constant dense<0.000000e+00> : vector<64x64xf32>
    %355 = tpu.matmul %352, %354, %cst_119 {dimension_numbers = #tpu.dot_dimension_numbers<[1], [0], [0], [1], [0, 0, 1, 1], [], []>} : vector<64x32xbf16>, vector<32x64xbf16>, vector<64x64xf32> -> vector<64x64xf32>
    %c2 = arith.constant 2 : index
    %c0_120 = arith.constant 0 : index
    %356 = vector.load %arg4[%c2, %c0_120] : memref<3x64xf32, #tpu.memory_space<vmem>>, vector<1x64xf32>
    %357 = vector.broadcast %356 : vector<1x64xf32> to vector<64x64xf32>
    %358 = arith.addf %355, %357 : vector<64x64xf32>
    %cst_121 = arith.constant 5.000000e-01 : f32
    %359 = vector.broadcast %cst_121 : f32 to vector<64x64xf32>
    %360 = arith.mulf %359, %358 : vector<64x64xf32>
    %cst_122 = arith.constant 4.471500e-02 : f32
    %361 = vector.broadcast %cst_122 : f32 to vector<64x64xf32>
    %362 = arith.mulf %361, %358 : vector<64x64xf32>
    %363 = arith.mulf %362, %358 : vector<64x64xf32>
    %364 = arith.mulf %363, %358 : vector<64x64xf32>
    %365 = arith.addf %358, %364 : vector<64x64xf32>
    %cst_123 = arith.constant 0.797884583 : f32
    %366 = vector.broadcast %cst_123 : f32 to vector<64x64xf32>
    %367 = arith.mulf %366, %365 : vector<64x64xf32>
    %368 = math.tanh %367 : vector<64x64xf32>
    %cst_124 = arith.constant 1.000000e+00 : f32
    %369 = vector.broadcast %cst_124 : f32 to vector<64x64xf32>
    %370 = arith.addf %369, %368 : vector<64x64xf32>
    %371 = arith.mulf %360, %370 : vector<64x64xf32>
    %372 = arith.truncf %371 : vector<64x64xf32> to vector<64x64xbf16>
    %c1_125 = arith.constant 1 : index
    %c0_126 = arith.constant 0 : index
    %c0_127 = arith.constant 0 : index
    %373 = vector.load %arg8[%c1_125, %c0_126, %c0_127] : memref<2x64x32xbf16, #tpu.memory_space<vmem>>, vector<1x64x32xbf16>
    %374 = vector.shape_cast %373 : vector<1x64x32xbf16> to vector<64x32xbf16>
    %cst_128 = arith.constant dense<0.000000e+00> : vector<64x32xf32>
    %375 = tpu.matmul %372, %374, %cst_128 {dimension_numbers = #tpu.dot_dimension_numbers<[1], [0], [0], [1], [0, 0, 1, 1], [], []>} : vector<64x64xbf16>, vector<64x32xbf16>, vector<64x32xf32> -> vector<64x32xf32>
    %c14 = arith.constant 14 : index
    %c0_129 = arith.constant 0 : index
    %376 = vector.load %arg3[%c14, %c0_129] : memref<15x32xf32, #tpu.memory_space<vmem>>, vector<1x32xf32>
    %377 = vector.broadcast %376 : vector<1x32xf32> to vector<64x32xf32>
    %378 = arith.addf %375, %377 : vector<64x32xf32>
    %379 = arith.addf %327, %378 : vector<64x32xf32>
    %380 = arith.truncf %379 : vector<64x32xf32> to vector<64x32xbf16>
    %c0_130 = arith.constant 0 : index
    %c0_131 = arith.constant 0 : index
    %381 = vector.load %arg9[%c0_130, %c0_131] : memref<32x16xbf16, #tpu.memory_space<vmem>>, vector<32x16xbf16>
    %cst_132 = arith.constant dense<0.000000e+00> : vector<64x16xf32>
    %382 = tpu.matmul %380, %381, %cst_132 {dimension_numbers = #tpu.dot_dimension_numbers<[1], [0], [0], [1], [0, 0, 1, 1], [], []>} : vector<64x32xbf16>, vector<32x16xbf16>, vector<64x16xf32> -> vector<64x16xf32>
    %cst_133 = arith.constant 0.176776692 : f32
    %383 = vector.broadcast %cst_133 : f32 to vector<64x16xf32>
    %384 = arith.mulf %382, %383 : vector<64x16xf32>
    %cst_134 = arith.constant dense<0xFF800000> : vector<64xf32>
    %385 = vector.multi_reduction <maximumf>, %384, %cst_134 [1] : vector<64x16xf32> to vector<64xf32>
    %386 = vector.shape_cast %385 : vector<64xf32> to vector<64x1xf32>
    %387 = vector.broadcast %386 : vector<64x1xf32> to vector<64x16xf32>
    %388 = arith.subf %384, %387 : vector<64x16xf32>
    %389 = math.exp %388 : vector<64x16xf32>
    %cst_135 = arith.constant dense<0.000000e+00> : vector<64xf32>
    %390 = vector.multi_reduction <add>, %389, %cst_135 [1] : vector<64x16xf32> to vector<64xf32>
    %391 = vector.shape_cast %390 : vector<64xf32> to vector<64x1xf32>
    %392 = tpu.reciprocal %391 {approx = true} : vector<64x1xf32> -> vector<64x1xf32>
    %393 = vector.broadcast %392 : vector<64x1xf32> to vector<64x16xf32>
    %394 = arith.mulf %389, %393 : vector<64x16xf32>
    %395 = arith.truncf %394 : vector<64x16xf32> to vector<64x16xbf16>
    %c0_136 = arith.constant 0 : index
    %c0_137 = arith.constant 0 : index
    %396 = vector.load %arg9[%c0_136, %c0_137] : memref<32x16xbf16, #tpu.memory_space<vmem>>, vector<32x16xbf16>
    %cst_138 = arith.constant dense<0.000000e+00> : vector<64x32xf32>
    %397 = tpu.matmul %395, %396, %cst_138 {dimension_numbers = #tpu.dot_dimension_numbers<[1], [1], [0], [0], [0, 0, 1, 0], [], []>} : vector<64x16xbf16>, vector<32x16xbf16>, vector<64x32xf32> -> vector<64x32xf32>
    %398 = vector.shape_cast %397 : vector<64x32xf32> to vector<2x32x32xf32>
    %c0_139 = arith.constant 0 : index
    %c0_140 = arith.constant 0 : index
    %c0_141 = arith.constant 0 : index
    %399 = vector.load %arg13[%c0_139, %c0_140, %c0_141] : memref<2x32x32xf32, #tpu.memory_space<vmem>>, vector<2x32x32xf32>
    tpu.vector_store %arg13[%c0_139, %c0_140, %c0_141], %398 {strides = array<i32>} : memref<2x32x32xf32, #tpu.memory_space<vmem>>, vector<2x32x32xf32>,
    %cst_142 = arith.constant dense<0xFF800000> : vector<2x32xf32>
    %400 = vector.multi_reduction <maximumf>, %398, %cst_142 [1] : vector<2x32x32xf32> to vector<2x32xf32>
    %c1_143 = arith.constant 1 : index
    %c0_144 = arith.constant 0 : index
    %401 = vector.load %arg3[%c1_143, %c0_144] : memref<15x32xf32, #tpu.memory_space<vmem>>, vector<1x32xf32>
    %c2_145 = arith.constant 2 : index
    %c0_146 = arith.constant 0 : index
    %402 = vector.load %arg3[%c2_145, %c0_146] : memref<15x32xf32, #tpu.memory_space<vmem>>, vector<1x32xf32>
    %cst_147 = arith.constant dense<0.000000e+00> : vector<2xf32>
    %403 = vector.multi_reduction <add>, %400, %cst_147 [1] : vector<2x32xf32> to vector<2xf32>
    %404 = vector.shape_cast %403 : vector<2xf32> to vector<2x1xf32>
    %cst_148 = arith.constant 3.200000e+01 : f32
    %405 = vector.broadcast %cst_148 : f32 to vector<2x1xf32>
    %406 = arith.divf %404, %405 : vector<2x1xf32>
    %407 = vector.broadcast %406 : vector<2x1xf32> to vector<2x32xf32>
    %408 = arith.subf %400, %407 : vector<2x32xf32>
    %409 = arith.mulf %408, %408 : vector<2x32xf32>
    %cst_149 = arith.constant dense<0.000000e+00> : vector<2xf32>
    %410 = vector.multi_reduction <add>, %409, %cst_149 [1] : vector<2x32xf32> to vector<2xf32>
    %411 = vector.shape_cast %410 : vector<2xf32> to vector<2x1xf32>
    %cst_150 = arith.constant 3.200000e+01 : f32
    %412 = vector.broadcast %cst_150 : f32 to vector<2x1xf32>
    %413 = arith.divf %411, %412 : vector<2x1xf32>
    %414 = vector.broadcast %406 : vector<2x1xf32> to vector<2x32xf32>
    %415 = arith.subf %400, %414 : vector<2x32xf32>
    %cst_151 = arith.constant 9.99999974E-6 : f32
    %416 = vector.broadcast %cst_151 : f32 to vector<2x1xf32>
    %417 = arith.addf %413, %416 : vector<2x1xf32>
    %418 = math.rsqrt %417 : vector<2x1xf32>
    %419 = vector.broadcast %418 : vector<2x1xf32> to vector<2x32xf32>
    %420 = arith.mulf %415, %419 : vector<2x32xf32>
    %421 = vector.broadcast %401 : vector<1x32xf32> to vector<2x32xf32>
    %422 = arith.mulf %420, %421 : vector<2x32xf32>
    %423 = vector.broadcast %402 : vector<1x32xf32> to vector<2x32xf32>
    %424 = arith.addf %422, %423 : vector<2x32xf32>
    %425 = arith.truncf %424 : vector<2x32xf32> to vector<2x32xbf16>
    %c0_152 = arith.constant 0 : index
    %c0_153 = arith.constant 0 : index
    %426 = vector.load %arg10[%c0_152, %c0_153] : memref<32x64xbf16, #tpu.memory_space<vmem>>, vector<32x64xbf16>
    %cst_154 = arith.constant dense<0.000000e+00> : vector<2x64xf32>
    %427 = tpu.matmul %425, %426, %cst_154 {dimension_numbers = #tpu.dot_dimension_numbers<[1], [0], [0], [1], [0, 0, 1, 1], [], []>} : vector<2x32xbf16>, vector<32x64xbf16>, vector<2x64xf32> -> vector<2x64xf32>
    %c0_155 = arith.constant 0 : index
    %c0_156 = arith.constant 0 : index
    %428 = vector.load %arg4[%c0_155, %c0_156] : memref<3x64xf32, #tpu.memory_space<vmem>>, vector<1x64xf32>
    %429 = vector.broadcast %428 : vector<1x64xf32> to vector<2x64xf32>
    %430 = arith.addf %427, %429 : vector<2x64xf32>
    %cst_157 = arith.constant 5.000000e-01 : f32
    %431 = vector.broadcast %cst_157 : f32 to vector<2x64xf32>
    %432 = arith.mulf %431, %430 : vector<2x64xf32>
    %cst_158 = arith.constant 4.471500e-02 : f32
    %433 = vector.broadcast %cst_158 : f32 to vector<2x64xf32>
    %434 = arith.mulf %433, %430 : vector<2x64xf32>
    %435 = arith.mulf %434, %430 : vector<2x64xf32>
    %436 = arith.mulf %435, %430 : vector<2x64xf32>
    %437 = arith.addf %430, %436 : vector<2x64xf32>
    %cst_159 = arith.constant 0.797884583 : f32
    %438 = vector.broadcast %cst_159 : f32 to vector<2x64xf32>
    %439 = arith.mulf %438, %437 : vector<2x64xf32>
    %440 = math.tanh %439 : vector<2x64xf32>
    %cst_160 = arith.constant 1.000000e+00 : f32
    %441 = vector.broadcast %cst_160 : f32 to vector<2x64xf32>
    %442 = arith.addf %441, %440 : vector<2x64xf32>
    %443 = arith.mulf %432, %442 : vector<2x64xf32>
    %444 = arith.truncf %443 : vector<2x64xf32> to vector<2x64xbf16>
    %c0_161 = arith.constant 0 : index
    %c0_162 = arith.constant 0 : index
    %445 = vector.load %arg11[%c0_161, %c0_162] : memref<64x128xbf16, #tpu.memory_space<vmem>>, vector<64x128xbf16>
    %cst_163 = arith.constant dense<0.000000e+00> : vector<2x128xf32>
    %446 = tpu.matmul %444, %445, %cst_163 {dimension_numbers = #tpu.dot_dimension_numbers<[1], [0], [0], [1], [0, 0, 1, 1], [], []>} : vector<2x64xbf16>, vector<64x128xbf16>, vector<2x128xf32> -> vector<2x128xf32>
    %c0_164 = arith.constant 0 : index
    %c0_165 = arith.constant 0 : index
    %447 = vector.load %arg12[%c0_164, %c0_165] : memref<1x128xf32, #tpu.memory_space<vmem>>, vector<1x128xf32>
    %448 = vector.broadcast %447 : vector<1x128xf32> to vector<2x128xf32>
    %449 = arith.addf %446, %448 : vector<2x128xf32>
    %c0_166 = arith.constant 0 : index
    %c0_167 = arith.constant 0 : index
    %c0_168 = arith.constant 0 : index
    %450 = vector.load %arg14[%c0_166, %c0_167, %c0_168] : memref<1x2x128xf32, #tpu.memory_space<vmem>>, vector<1x2x128xf32>
    %451 = vector.shape_cast %450 : vector<1x2x128xf32> to vector<2x128xf32>
    %452 = vector.shape_cast %449 : vector<2x128xf32> to vector<1x2x128xf32>
    tpu.vector_store %arg14[%c0_166, %c0_167, %c0_168], %452 {strides = array<i32>} : memref<1x2x128xf32, #tpu.memory_space<vmem>>, vector<1x2x128xf32>,
    return
  }
  func.func @transform_0(%arg0: i32) -> (i32, i32, i32) {
    %c0_i32 = arith.constant 0 : i32
    %c0_i32_0 = arith.constant 0 : i32
    %c0_i32_1 = arith.constant 0 : i32
    return %arg0, %c0_i32, %c0_i32_0 : i32, i32, i32
  }
  func.func @transform_1(%arg0: i32) -> (i32, i32) {
    %c0_i32 = arith.constant 0 : i32
    %c0_i32_0 = arith.constant 0 : i32
    %c0_i32_1 = arith.constant 0 : i32
    return %c0_i32, %c0_i32_0 : i32, i32
  }
  func.func @transform_2(%arg0: i32) -> (i32, i32) {
    %c0_i32 = arith.constant 0 : i32
    %c0_i32_0 = arith.constant 0 : i32
    %c0_i32_1 = arith.constant 0 : i32
    return %c0_i32, %c0_i32_0 : i32, i32
  }
  func.func @transform_3(%arg0: i32) -> (i32, i32) {
    %c0_i32 = arith.constant 0 : i32
    %c0_i32_0 = arith.constant 0 : i32
    %c0_i32_1 = arith.constant 0 : i32
    return %c0_i32, %c0_i32_0 : i32, i32
  }
  func.func @transform_4(%arg0: i32) -> (i32, i32, i32) {
    %c0_i32 = arith.constant 0 : i32
    %c0_i32_0 = arith.constant 0 : i32
    %c0_i32_1 = arith.constant 0 : i32
    %c0_i32_2 = arith.constant 0 : i32
    return %c0_i32, %c0_i32_0, %c0_i32_1 : i32, i32, i32
  }
  func.func @transform_5(%arg0: i32) -> (i32, i32, i32) {
    %c0_i32 = arith.constant 0 : i32
    %c0_i32_0 = arith.constant 0 : i32
    %c0_i32_1 = arith.constant 0 : i32
    %c0_i32_2 = arith.constant 0 : i32
    return %c0_i32, %c0_i32_0, %c0_i32_1 : i32, i32, i32
  }
  func.func @transform_6(%arg0: i32) -> (i32, i32, i32) {
    %c0_i32 = arith.constant 0 : i32
    %c0_i32_0 = arith.constant 0 : i32
    %c0_i32_1 = arith.constant 0 : i32
    %c0_i32_2 = arith.constant 0 : i32
    return %c0_i32, %c0_i32_0, %c0_i32_1 : i32, i32, i32
  }
  func.func @transform_7(%arg0: i32) -> (i32, i32, i32) {
    %c0_i32 = arith.constant 0 : i32
    %c0_i32_0 = arith.constant 0 : i32
    %c0_i32_1 = arith.constant 0 : i32
    %c0_i32_2 = arith.constant 0 : i32
    return %c0_i32, %c0_i32_0, %c0_i32_1 : i32, i32, i32
  }
  func.func @transform_8(%arg0: i32) -> (i32, i32) {
    %c0_i32 = arith.constant 0 : i32
    %c0_i32_0 = arith.constant 0 : i32
    %c0_i32_1 = arith.constant 0 : i32
    return %c0_i32, %c0_i32_0 : i32, i32
  }
  func.func @transform_9(%arg0: i32) -> (i32, i32) {
    %c0_i32 = arith.constant 0 : i32
    %c0_i32_0 = arith.constant 0 : i32
    %c0_i32_1 = arith.constant 0 : i32
    return %c0_i32, %c0_i32_0 : i32, i32
  }
  func.func @transform_10(%arg0: i32) -> (i32, i32) {
    %c0_i32 = arith.constant 0 : i32
    %c0_i32_0 = arith.constant 0 : i32
    %c0_i32_1 = arith.constant 0 : i32
    return %c0_i32, %c0_i32_0 : i32, i32
  }
  func.func @transform_11(%arg0: i32) -> (i32, i32) {
    %c0_i32 = arith.constant 0 : i32
    %c0_i32_0 = arith.constant 0 : i32
    %c0_i32_1 = arith.constant 0 : i32
    return %c0_i32, %c0_i32_0 : i32, i32
  }
  func.func @transform_12(%arg0: i32) -> (i32, i32, i32) {
    %c0_i32 = arith.constant 0 : i32
    %c0_i32_0 = arith.constant 0 : i32
    %c0_i32_1 = arith.constant 0 : i32
    return %arg0, %c0_i32, %c0_i32_0 : i32, i32, i32
  }
  func.func @transform_13(%arg0: i32) -> (i32, i32, i32) {
    %c0_i32 = arith.constant 0 : i32
    %c0_i32_0 = arith.constant 0 : i32
    %c0_i32_1 = arith.constant 0 : i32
    return %arg0, %c0_i32, %c0_i32_0 : i32, i32, i32
  }
}

</mosaic_0001>

<bundles_post_ra>
// kernel: custom-call.18
= control target key start
LH: loop header
LB: loop body
LE: loop exit
PB: predicated region body
PF: predicated region fallthrough
CT: control target
= control target key end

     0   :  { %s6_s0 = inlined_call_operand.vmem [shape: f32[4,32], index: 0, kind: output, shape index: {}]  }

// kernel: _lambda_.1
= control target key start
LH: loop header
LB: loop body
LE: loop exit
PB: predicated region body
PF: predicated region fallthrough
CT: control target
= control target key end

     0   :  { %s8457_s25 = smov 0   ;;  %s11341_s0 = inlined_call_operand.vmem [shape: bf16[4,800,16], index: 0, kind: input, shape index: {}]   ;;  %s11342_s1 = inlined_call_operand.vmem [shape: bf16[16,32], index: 1, kind: input, shape index: {}]   ;;  %s11343_s2 = inlined_call_operand.vmem [shape: f32[15,32], index: 2, kind: input, shape index: {}]   ;;  %s11344_s3 = inlined_call_operand.vmem [shape: f32[3,64], index: 3, kind: input, shape index: {}]   ;;  %s11345_s4 = inlined_call_operand.vmem [shape: bf16[2,32,96], index: 4, kind: input, shape index: {}]   ;;  %s11346_s5 = inlined_call_operand.vmem [shape: bf16[2,32,32], index: 5, kind: input, shape index: {}]   ;;  %s11347_s6 = inlined_call_operand.vmem [shape: bf16[2,32,64], index: 6, kind: input, shape index: {}]   ;;  %s11348_s7 = inlined_call_operand.vmem [shape: bf16[2,64,32], index: 7, kind: input, shape index: {}]   ;;  %s11349_s8 = inlined_call_operand.vmem [shape: bf16[32,16], index: 8, kind: input, shape index: {}]   ;;  %s11350_s9 = inlined_call_operand.vmem [shape: bf16[32,64], index: 9, kind: input, shape index: {}]   ;;  %s11351_s10 = inlined_call_operand.vmem [shape: bf16[64,128], index: 10, kind: input, shape index: {}]   ;;  %s11352_s11 = inlined_call_operand.vmem [shape: f32[1,128], index: 11, kind: input, shape index: {}]   ;;  %s11353_s12 = inlined_call_operand.vmem [shape: f32[4,32,32], index: 12, kind: output, shape index: {0}]   ;;  %s11354_s13 = inlined_call_operand.vmem [shape: f32[2,2,128], index: 13, kind: output, shape index: {1}]  }
   0x1 LB: > { %s8463_s26 = sadd.s32 4294967295, %s8378_s25   ;;  %p7083_p0 = scmp.ge.s32.totalorder %s8378_s25, 1  ;;  %s8378_s25 = sphi %s8457_s25, %s24_s25  }
   0x2   : > { %p392_p1 = scmp.lt.s32.totalorder %s8378_s25, 3 }
   0x4   : > { %p393_p2 = pnand %p7083_p0, %p392_p1 }
   0x6   : > { %396 = sbr.rel (%p393_p2) target bundleno = 6161 (0x1811), region = 68 }
   0xb   : > { %v7953_v0 = vld [vmem:[%s11342_s1] sm:$0xff]  ;;  %s7084_s29 = sshll.u32 %s8463_s26, 1  ;;  %vm820_vm0 = vcmask 130048   ;;  %vm1230_vm1 = vcmask 261120   ;;  %vm3889_vm2 = vcmask 1041409   ;;  %vm3892_vm3 = vcmask 1042434  }
   0xc   : > { %p443_p3 = scmp.lt.s32.totalorder %s7084_s29, 3  ;;  %978 = vmatpush.bf16.msra.mxu0 %v7953_v0  ;;  %2672 = vmatpush.bf16.msra.mxu1 %v7953_v0  ;;  %vm3895_vm4 = vcmask 1043459   ;;  %vm3898_vm5 = vcmask 1044484   ;;  %vm3901_vm6 = vcmask 1045509   ;;  %vm3904_vm7 = vcmask 1046534   ;;  %s8381_s15 = smov 96  }
   0xd   : > { %8032 = vmatpush.bf16.msra.mxu3 %v7953_v0  ;;  %8033 = vmatpush.bf16.msra.mxu2 %v7953_v0  ;;  %vm3907_vm8 = vcmask 1047559   ;;  %s8383_s17 = smov 112   ;;  %s8384_s18 = smov 64  }
   0xe   : > { %s11628_s29 = smov (!%p443_p3, %s7084_s29), 3  ;;  %s8385_s19 = smov 48  }
   0xf   : > { %s8034_s30 = smul.u32 400, %s11628_s29  ;;  %s8386_s20 = smov 16  }
  0x10   : > { %p456_p4 = scmp.lt.s32.totalorder %s8463_s26, 1 }
  0x11   : > { %s8477_s16 = scalar_lea.vmem %s11341_s0, %s8034_s30 }
  0x12   : > { %v7903_v1 = vld [vmem:[%s8477_s16] sm:$0xff]  ;;  %v7954_v2 = vld [vmem:[%s8477_s16 + $0x190] sm:$0xff]  ;;  %v7904_v3 = vld [vmem:[%s8477_s16 + $0x8] sm:$0xff]  ;;  %s11630_s26 = smov (!%p456_p4, %s8463_s26), 1 }
  0x13   : > { %7294 = vmatmul.msk.bf16.vlgmr.msra.gmra.mxu0 %vm820_vm0, %v7903_v1  ;;  %7644 = vmatmul.msk.bf16.vlgmr.msra.gmra.mxu1 %vm820_vm0, %v7954_v2  ;;  %v7955_v4 = vld [vmem:[%s8477_s16 + $0x198] sm:$0xff]  ;;  %v7905_v5 = vld [vmem:[%s8477_s16 + $0x10] sm:$0xff]  ;;  %v7956_v6 = vld [vmem:[%s8477_s16 + $0x1a0] sm:$0xff]  ;;  %s7089_s27 = sshll.u32 %s11630_s26, 1 }
  0x14   : > { %v7906_v7 = vld [vmem:[%s8477_s16 + $0x18] sm:$0xff]  ;;  %v7957_v8 = vld [vmem:[%s8477_s16 + $0x1a8] sm:$0xff]  ;;  %v7907_v9 = vld [vmem:[%s8477_s16 + $0x20] sm:$0xff]  ;;  %s459_s22 = scalar_lea.vmem %s11354_s13, %s7089_s27 }
  0x15   : > { %v7958_v10 = vld [vmem:[%s8477_s16 + $0x1b0] sm:$0xff]  ;;  %v7908_v11 = vld [vmem:[%s8477_s16 + $0x28] sm:$0xff]  ;;  %v7959_v12 = vld [vmem:[%s8477_s16 + $0x1b8] sm:$0xff] }
  0x16   : > { %v7909_v13 = vld [vmem:[%s8477_s16 + $0x30] sm:$0xff]  ;;  %v7960_v14 = vld [vmem:[%s8477_s16 + $0x1c0] sm:$0xff]  ;;  %v7910_v15 = vld [vmem:[%s8477_s16 + $0x38] sm:$0xff] }
  0x17   : > { %v7961_v16 = vld [vmem:[%s8477_s16 + $0x1c8] sm:$0xff]  ;;  %v7911_v17 = vld [vmem:[%s8477_s16 + $0x40] sm:$0xff]  ;;  %v7962_v18 = vld [vmem:[%s8477_s16 + $0x1d0] sm:$0xff] }
  0x18   : > { %v7912_v23 = vld [vmem:[%s8477_s16 + $0x48] sm:$0xff]  ;;  %v7963_v24 = vld [vmem:[%s8477_s16 + $0x1d8] sm:$0xff]  ;;  %v7913_v29 = vld [vmem:[%s8477_s16 + $0x50] sm:$0xff] }
  0x19   : > { %v7964_v30 = vld [vmem:[%s8477_s16 + $0x1e0] sm:$0xff]  ;;  %v7998_v36 = vld [vmem:[%s8477_s16 + $0x2f0] sm:$0xff]  ;;  %v7914_v37 = vld [vmem:[%s8477_s16 + $0x58] sm:$0xff] }
  0x1a   : > { %v7947_v35 = vld [vmem:[%s8477_s16 + $0x160] sm:$0xff]  ;;  %7688 = vmatmul.msk.bf16.vlgmr.msra.gmra.mxu2 %vm820_vm0, %v7998_v36  ;;  %v7965_v38 = vld [vmem:[%s8477_s16 + $0x1e8] sm:$0xff]  ;;  %v7999_v44 = vld [vmem:[%s8477_s16 + $0x2f8] sm:$0xff] }
  0x1b   : > { %7338 = vmatmul.msk.bf16.vlgmr.msra.gmra.mxu3 %vm820_vm0, %v7947_v35  ;;  %v7948_v43 = vld [vmem:[%s8477_s16 + $0x168] sm:$0xff]  ;;  %v7915_v45 = vld [vmem:[%s8477_s16 + $0x60] sm:$0xff]  ;;  %v7966_v46 = vld [vmem:[%s8477_s16 + $0x1f0] sm:$0xff] }
  0x1c   : > { %v7949_v51 = vld [vmem:[%s8477_s16 + $0x170] sm:$0xff]  ;;  %v8000_v52 = vld [vmem:[%s8477_s16 + $0x300] sm:$0xff]  ;;  %v7916_v53 = vld [vmem:[%s8477_s16 + $0x68] sm:$0xff] }
  0x1d   : > { %v7967_v54 = vld [vmem:[%s8477_s16 + $0x1f8] sm:$0xff]  ;;  %v8001_v60 = vld [vmem:[%s8477_s16 + $0x308] sm:$0xff]  ;;  %v7917_v61 = vld [vmem:[%s8477_s16 + $0x70] sm:$0xff] }
  0x1e   : > { %v7950_v59 = vld [vmem:[%s8477_s16 + $0x178] sm:$0xff]  ;;  %v7968_v62 = vld [vmem:[%s8477_s16 + $0x200] sm:$0xff] }
  0x23   : > { %7295 = vmatmul.msk.bf16.gmra.mxu0 %vm820_vm0, %v7904_v3  ;;  %7645 = vmatmul.msk.bf16.gmra.mxu1 %vm820_vm0, %v7955_v4  ;;  %v7951_v3 = vld [vmem:[%s8477_s16 + $0x180] sm:$0xff]  ;;  %v8002_v4 = vld [vmem:[%s8477_s16 + $0x310] sm:$0xff] }
  0x2a   : > { %7689 = vmatmul.msk.bf16.gmra.mxu2 %vm820_vm0, %v7999_v44 }
  0x2b   : > { %7339 = vmatmul.msk.bf16.gmra.mxu3 %vm820_vm0, %v7948_v43 }
  0x33   : > { %7296 = vmatmul.msk.bf16.gmra.mxu0 %vm820_vm0, %v7905_v5  ;;  %7646 = vmatmul.msk.bf16.gmra.mxu1 %vm820_vm0, %v7956_v6 }
  0x3a   : > { %7690 = vmatmul.msk.bf16.gmra.mxu2 %vm820_vm0, %v8000_v52 }
  0x3b   : > { %7340 = vmatmul.msk.bf16.gmra.mxu3 %vm820_vm0, %v7949_v51 }
  0x43   : > { %7297 = vmatmul.msk.bf16.gmra.mxu0 %vm820_vm0, %v7906_v7  ;;  %7647 = vmatmul.msk.bf16.gmra.mxu1 %vm820_vm0, %v7957_v8 }
  0x4a   : > { %7691 = vmatmul.msk.bf16.gmra.mxu2 %vm820_vm0, %v8001_v60 }
  0x4b   : > { %7341 = vmatmul.msk.bf16.gmra.mxu3 %vm820_vm0, %v7950_v59 }
  0x53   : > { %7298 = vmatmul.msk.bf16.gmra.mxu0 %vm820_vm0, %v7907_v9  ;;  %7648 = vmatmul.msk.bf16.gmra.mxu1 %vm820_vm0, %v7958_v10 }
  0x5a   : > { %7692 = vmatmul.msk.bf16.gmra.mxu2 %vm820_vm0, %v8002_v4  ;;  %v7970_v4 = vld [vmem:[%s8477_s16 + $0x210] sm:$0xff] }
  0x5b   : > { %7342 = vmatmul.msk.bf16.gmra.mxu3 %vm820_vm0, %v7951_v3  ;;  %v7919_v3 = vld [vmem:[%s8477_s16 + $0x80] sm:$0xff] }
  0x63   : > { %7299 = vmatmul.msk.bf16.gmra.mxu0 %vm820_vm0, %v7908_v11  ;;  %7649 = vmatmul.msk.bf16.gmra.mxu1 %vm820_vm0, %v7959_v12 }
  0x73   : > { %7300 = vmatmul.msk.bf16.gmra.mxu0 %vm820_vm0, %v7909_v13  ;;  %7650 = vmatmul.msk.bf16.gmra.mxu1 %vm820_vm0, %v7960_v14  ;;  %v7918_v13 = vld [vmem:[%s8477_s16 + $0x78] sm:$0xff]  ;;  %v7969_v14 = vld [vmem:[%s8477_s16 + $0x208] sm:$0xff] }
  0x83   : > { %7301 = vmatmul.msk.bf16.gmra.mxu0 %vm820_vm0, %v7910_v15  ;;  %7651 = vmatmul.msk.bf16.gmra.mxu1 %vm820_vm0, %v7961_v16 }
  0x90   : > { %v8513_v19 = vpop.f32.mrf.mxu0  ;;  %v8515_v20 = vpop.f32.mrf.mxu1 }
  0x91   : > { %v1231_v5 = vsel %vm1230_vm1, %v8513_v19, -inf  ;;  %v2924_v6 = vsel %vm1230_vm1, %v8515_v20, -inf }
  0x92   : > { %v1232_v9 = vrot.slane %v1231_v5, 4  ;;  %v2925_v10 = vrot.slane %v2924_v6, 4 }
  0x93   : > { %7302 = vmatmul.msk.bf16.gmra.mxu0 %vm820_vm0, %v7911_v17  ;;  %7652 = vmatmul.msk.bf16.gmra.mxu1 %vm820_vm0, %v7962_v18 }
  0x94   : > { %v1233_v17 = vmax.f32 %v1231_v5, %v1232_v9  ;;  %v2926_v18 = vmax.f32 %v2924_v6, %v2925_v10 }
  0x98   : > { %v8519_v21 = vpop.f32.mrf.mxu0  ;;  %v8521_v22 = vpop.f32.mrf.mxu1 }
  0x99   : > { %v1238_v7 = vsel %vm1230_vm1, %v8519_v21, -inf  ;;  %v2931_v8 = vsel %vm1230_vm1, %v8521_v22, -inf  ;;  %v1234_v21 = vrot.slane %v1233_v17, 2  ;;  %v2927_v22 = vrot.slane %v2926_v18, 2 }
  0x9a   : > { %v1239_v11 = vrot.slane %v1238_v7, 4  ;;  %v2932_v12 = vrot.slane %v2931_v8, 4 }
  0x9b   : > { %v1235_v44 = vmax.f32 %v1233_v17, %v1234_v21 }
  0x9c   : > { %v1240_v19 = vmax.f32 %v1238_v7, %v1239_v11  ;;  %v2933_v20 = vmax.f32 %v2931_v8, %v2932_v12 }
  0xa0   : > { %v8525_v25 = vpop.f32.mrf.mxu0  ;;  %v8527_v26 = vpop.f32.mrf.mxu1 }
  0xa3   : > { %7303 = vmatmul.msk.bf16.gmra.mxu0 %vm820_vm0, %v7912_v23  ;;  %7653 = vmatmul.msk.bf16.gmra.mxu1 %vm820_vm0, %v7963_v24  ;;  %v1245_v23 = vsel %vm1230_vm1, %v8525_v25, -inf  ;;  %v2938_v24 = vsel %vm1230_vm1, %v8527_v26, -inf }
  0xa4   : > { %v1246_v35 = vrot.slane %v1245_v23, 4  ;;  %v2939_v36 = vrot.slane %v2938_v24, 4 }
  0xa6   : > { %v1247_v52 = vmax.f32 %v1245_v23, %v1246_v35  ;;  %v2940_v26 = vmax.f32 %v2938_v24, %v2939_v36 }
  0xa8   : > { %v8531_v27 = vpop.f32.mrf.mxu0  ;;  %v8533_v28 = vpop.f32.mrf.mxu1  ;;  %v1248_v5 = vrot.slane %v1247_v52, 2  ;;  %v2941_v6 = vrot.slane %v2940_v26, 2 }
  0xaa   : > { %v2942_v21 = vmax.f32 %v2940_v26, %v2941_v6 }
  0xb0   : > { %v8537_v31 = vpop.f32.mrf.mxu0  ;;  %v8539_v32 = vpop.f32.mrf.mxu1 }
  0xb1   : > { %v2952_v35 = vsel %vm1230_vm1, %v8539_v32, -inf }
  0xb3   : > { %7304 = vmatmul.msk.bf16.gmra.mxu0 %vm820_vm0, %v7913_v29  ;;  %7654 = vmatmul.msk.bf16.gmra.mxu1 %vm820_vm0, %v7964_v30  ;;  %v1241_v29 = vrot.slane %v1240_v19, 2  ;;  %v2934_v30 = vrot.slane %v2933_v20, 2 }
  0xb5   : > { %v2935_v25 = vmax.f32 %v2933_v20, %v2934_v30  ;;  %v1249_v20 = vmax.f32 %v1247_v52, %v1248_v5  ;;  %v1259_v30 = vsel %vm1230_vm1, %v8537_v31, -inf  ;;  %v2943_v52 = vrot.slane %v2942_v21, 1 }
  0xb6   : > { %v1260_v31 = vrot.slane %v1259_v30, 4 }
  0xb8   : > { %v8543_v33 = vpop.f32.mrf.mxu0  ;;  %v8545_v34 = vpop.f32.mrf.mxu1 }
  0xc0   : > { %v8553_v39 = vpop.f32.mrf.mxu0  ;;  %v8555_v40 = vpop.f32.mrf.mxu1 }
  0xc3   : > { %7305 = vmatmul.msk.bf16.gmra.mxu0 %vm820_vm0, %v7914_v37  ;;  %7655 = vmatmul.msk.bf16.gmra.mxu1 %vm820_vm0, %v7965_v38  ;;  %v1252_v37 = vsel %vm1230_vm1, %v8531_v27, -inf  ;;  %v2936_v27 = vrot.slane %v2935_v25, 1 }
  0xc4   : > { %v1253_v51 = vrot.slane %v1252_v37, 4 }
  0xc5   : > { %v2937_v17 = vmax.f32 %v2935_v25, %v2936_v27 }
  0xc8   : > { %v8559_v41 = vpop.f32.mrf.mxu0  ;;  %v8561_v42 = vpop.f32.mrf.mxu1 }
  0xd0   : > { %v8569_v47 = vpop.f32.mrf.mxu0  ;;  %v8571_v48 = vpop.f32.mrf.mxu1 }
  0xd3   : > { %7306 = vmatmul.msk.bf16.gmra.mxu0 %vm820_vm0, %v7915_v45  ;;  %7656 = vmatmul.msk.bf16.gmra.mxu1 %vm820_vm0, %v7966_v46  ;;  %v2928_v45 = vmax.f32 %v2926_v18, %v2927_v22  ;;  %v1242_v46 = vmax.f32 %v1240_v19, %v1241_v29 }
  0xd5   : > { %v2929_v59 = vrot.slane %v2928_v45, 1  ;;  %v1243_v60 = vrot.slane %v1242_v46, 1 }
  0xd7   : > { %v2930_v10 = vmax.f32 %v2928_v45, %v2929_v59  ;;  %v8663_v45 = vsel %vm1230_vm1, %v2937_v17, -inf }
  0xd8   : > { %v8575_v49 = vpop.f32.mrf.mxu0  ;;  %v8577_v50 = vpop.f32.mrf.mxu1 }
  0xd9   : > { %v8653_v29 = vsel %vm1230_vm1, %v2930_v10, -inf }
  0xe0   : > { %v8585_v55 = vpop.f32.mrf.mxu0  ;;  %v8587_v56 = vpop.f32.mrf.mxu1 }
  0xe3   : > { %7307 = vmatmul.msk.bf16.gmra.mxu0 %vm820_vm0, %v7916_v53  ;;  %7657 = vmatmul.msk.bf16.gmra.mxu1 %vm820_vm0, %v7967_v54  ;;  %v2945_v53 = vsel %vm1230_vm1, %v8533_v28, -inf  ;;  %v1236_v54 = vrot.slane %v1235_v44, 1 }
  0xe5   : > { %v1237_v9 = vmax.f32 %v1235_v44, %v1236_v54 }
  0xe7   : > { %v8650_v24 = vsel %vm1230_vm1, %v1237_v9, -inf }
  0xe8   : > { %v8591_v57 = vpop.f32.mrf.mxu0  ;;  %v8593_v58 = vpop.f32.mrf.mxu1 }
  0xf0   : > { %v8601_v63 = vpop.f32.mrf.mxu0  ;;  %v8603_v0 = vpop.f32.mrf.mxu1 }
  0xf3   : > { %7308 = vmatmul.msk.bf16.gmra.mxu0 %vm820_vm0, %v7917_v61  ;;  %7658 = vmatmul.msk.bf16.gmra.mxu1 %vm820_vm0, %v7968_v62  ;;  %v1254_v61 = vmax.f32 %v1252_v37, %v1253_v51  ;;  %v2946_v62 = vrot.slane %v2945_v53, 4  ;;  %v1250_v51 = vrot.slane %v1249_v20, 1 }
  0xf5   : > { %v1255_v18 = vrot.slane %v1254_v61, 2  ;;  %v2947_v19 = vmax.f32 %v2945_v53, %v2946_v62 }
  0xf7   : > { %v2948_v25 = vrot.slane %v2947_v19, 2 }
  0xf8   : > { %v8607_v1 = vpop.f32.mrf.mxu0  ;;  %v8609_v2 = vpop.f32.mrf.mxu1 }
 0x100   : > { %v8625_v15 = vpop.f32.mrf.mxu0  ;;  %v8627_v16 = vpop.f32.mrf.mxu1 }
 0x103   : > { %7309 = vmatmul.msk.bf16.gmra.mxu0 %vm820_vm0, %v7918_v13  ;;  %7659 = vmatmul.msk.bf16.gmra.mxu1 %vm820_vm0, %v7969_v14  ;;  %v1244_v14 = vmax.f32 %v1242_v46, %v1243_v60  ;;  %v1256_v46 = vmax.f32 %v1254_v61, %v1255_v18  ;;  %v2953_v60 = vrot.slane %v2952_v35, 4  ;;  %v1266_v61 = vsel %vm1230_vm1, %v8543_v33, -inf }
 0x105   : > { %v8660_v44 = vsel %vm1230_vm1, %v1244_v14, -inf  ;;  %v1257_v6 = vrot.slane %v1256_v46, 1  ;;  %v1261_v14 = vmax.f32 %v1259_v30, %v1260_v31  ;;  %v2954_v17 = vmax.f32 %v2952_v35, %v2953_v60 }
 0x107   : > { %v1258_v30 = vmax.f32 %v1256_v46, %v1257_v6 }
 0x108   : > { %v8637_v38 = vpop.f32.mrf.mxu0  ;;  %v8639_v43 = vpop.f32.mrf.mxu1 }
 0x110   : > { %v1020_v7 = vpop.f32.mrf.mxu0  ;;  %v2714_v8 = vpop.f32.mrf.mxu1 }
 0x111   : > { %v1343_v11 = vsel %vm1230_vm1, %v1020_v7, -inf  ;;  %v3036_v12 = vsel %vm1230_vm1, %v2714_v8, -inf  ;;  %v2949_v7 = vmax.f32 %v2947_v19, %v2948_v25  ;;  %v2959_v8 = vsel %vm1230_vm1, %v8545_v34, -inf }
 0x112   : > { %v1344_v13 = vrot.slane %v1343_v11, 4  ;;  %v3037_v28 = vrot.slane %v3036_v12, 4  ;;  %v2960_v34 = vrot.slane %v2959_v8, 4 }
 0x113   : > { %7310 = vmatmul.msk.bf16.gmra.mxu0 %vm820_vm0, %v7919_v3  ;;  %7660 = vmatmul.msk.bf16.gmra.mxu1 %vm820_vm0, %v7970_v4  ;;  %v2950_v35 = vrot.slane %v2949_v7, 1 }
 0x114   : > { %v1345_v22 = vmax.f32 %v1343_v11, %v1344_v13  ;;  %v3038_v23 = vmax.f32 %v3036_v12, %v3037_v28  ;;  %v1251_v13 = vmax.f32 %v1249_v20, %v1250_v51  ;;  %v2944_v28 = vmax.f32 %v2942_v21, %v2943_v52  ;;  %v7920_v20 = vld [vmem:[%s8477_s16 + $0x88] sm:$0xff]  ;;  %v7971_v21 = vld [vmem:[%s8477_s16 + $0x218] sm:$0xff] }
 0x116   : > { %v1346_v36 = vrot.slane %v1345_v22, 2  ;;  %v3039_v37 = vrot.slane %v3038_v23, 2  ;;  %v8689_v46 = vsel %vm1230_vm1, %v2944_v28, -inf }
 0x117   : > { %11409 = vst [vmem:[#allocation2_spill] sm:$0xff] %v8689_v46 }
 0x118   : > { %v1347_v26 = vmax.f32 %v1345_v22, %v1346_v36  ;;  %v3040_v53 = vmax.f32 %v3038_v23, %v3039_v37  ;;  %v1022_v54 = vpop.f32.mrf.mxu0  ;;  %v2716_v59 = vpop.f32.mrf.mxu1  ;;  %v1267_v23 = vrot.slane %v1266_v61, 4 }
 0x119   : > { %v1350_v32 = vsel %vm1230_vm1, %v1022_v54, -inf  ;;  %v3043_v27 = vsel %vm1230_vm1, %v2716_v59, -inf  ;;  %v2955_v54 = vrot.slane %v2954_v17, 2 }
 0x11a   : > { %v1348_v62 = vrot.slane %v1347_v26, 1  ;;  %v3041_v3 = vrot.slane %v3040_v53, 1  ;;  %v1351_v4 = vrot.slane %v1350_v32, 4  ;;  %v3044_v5 = vrot.slane %v3043_v27, 4 }
 0x11c   : > { %v1349_v9 = vmax.f32 %v1347_v26, %v1348_v62  ;;  %v3042_v10 = vmax.f32 %v3040_v53, %v3041_v3  ;;  %v1352_v11 = vmax.f32 %v1350_v32, %v1351_v4  ;;  %v3045_v12 = vmax.f32 %v3043_v27, %v3044_v5 }
 0x11d   : > { %v1262_v53 = vrot.slane %v1261_v14, 2  ;;  %v8686_v3 = vsel %vm1230_vm1, %v1251_v13, -inf  ;;  %v1268_v4 = vmax.f32 %v1266_v61, %v1267_v23  ;;  %v2961_v5 = vmax.f32 %v2959_v8, %v2960_v34 }
 0x11e   : > { %v8672_v18 = vsel %vm1230_vm1, %v1349_v9, -inf  ;;  %v8675_v19 = vsel %vm1230_vm1, %v3042_v10, -inf  ;;  %v1353_v33 = vrot.slane %v1352_v11, 2  ;;  %v3046_v22 = vrot.slane %v3045_v12, 2 }
 0x11f   : > { %v2956_v13 = vmax.f32 %v2954_v17, %v2955_v54  ;;  %v1269_v23 = vrot.slane %v1268_v4, 2  ;;  %v2962_v34 = vrot.slane %v2961_v5, 2 }
 0x120   : > { %v1354_v25 = vmax.f32 %v1352_v11, %v1353_v33  ;;  %v3047_v51 = vmax.f32 %v3045_v12, %v3046_v22  ;;  %v1025_v52 = vpop.f32.mrf.mxu0  ;;  %v2719_v26 = vpop.f32.mrf.mxu1  ;;  %v8694_v12 = vsel %vm1230_vm1, %v1258_v30, -inf  ;;  %v2951_v33 = vmax.f32 %v2949_v7, %v2950_v35 }
 0x121   : > { %v1357_v59 = vsel %vm1230_vm1, %v1025_v52, -inf  ;;  %v3050_v31 = vsel %vm1230_vm1, %v2719_v26, -inf  ;;  %v1263_v22 = vmax.f32 %v1261_v14, %v1262_v53  ;;  %v1273_v7 = vsel %vm1230_vm1, %v8553_v39, -inf }
 0x122   : > { %v1355_v60 = vrot.slane %v1354_v25, 1  ;;  %v3048_v32 = vrot.slane %v3047_v51, 1  ;;  %v1358_v27 = vrot.slane %v1357_v59, 4  ;;  %v3051_v62 = vrot.slane %v3050_v31, 4 }
 0x123   : > { %7311 = vmatmul.msk.bf16.gmra.mxu0 %vm820_vm0, %v7920_v20  ;;  %7661 = vmatmul.msk.bf16.gmra.mxu1 %vm820_vm0, %v7971_v21  ;;  %v2966_v14 = vsel %vm1230_vm1, %v8555_v40, -inf  ;;  %v2957_v26 = vrot.slane %v2956_v13, 1  ;;  %v1274_v39 = vrot.slane %v1273_v7, 4 }
 0x124   : > { %v1356_v6 = vmax.f32 %v1354_v25, %v1355_v60  ;;  %v3049_v9 = vmax.f32 %v3047_v51, %v3048_v32  ;;  %v1359_v10 = vmax.f32 %v1357_v59, %v1358_v27  ;;  %v3052_v11 = vmax.f32 %v3050_v31, %v3051_v62 }
 0x125   : > { %v1264_v51 = vrot.slane %v1263_v22, 1  ;;  %v1270_v27 = vmax.f32 %v1268_v4, %v1269_v23  ;;  %v2963_v62 = vmax.f32 %v2961_v5, %v2962_v34  ;;  %v1275_v34 = vmax.f32 %v1273_v7, %v1274_v39 }
 0x126   : > { %v8697_v52 = vsel %vm1230_vm1, %v1356_v6, -inf  ;;  %v8700_v61 = vsel %vm1230_vm1, %v3049_v9, -inf  ;;  %v1360_v8 = vrot.slane %v1359_v10, 2  ;;  %v3053_v28 = vrot.slane %v3052_v11, 2 }
 0x127   : > { %v2967_v6 = vrot.slane %v2966_v14, 4 }
 0x128   : > { %v1361_v17 = vmax.f32 %v1359_v10, %v1360_v8  ;;  %v3054_v30 = vmax.f32 %v3052_v11, %v3053_v28  ;;  %v1027_v35 = vpop.f32.mrf.mxu0  ;;  %v2721_v25 = vpop.f32.mrf.mxu1  ;;  %v8713_v8 = vsel %vm1230_vm1, %v2951_v33, -inf  ;;  %v1265_v28 = vmax.f32 %v1263_v22, %v1264_v51  ;;  %v7921_v22 = vld [vmem:[%s8477_s16 + $0x90] sm:$0xff] }
 0x129   : > { %v1364_v53 = vsel %vm1230_vm1, %v1027_v35, -inf  ;;  %v3057_v54 = vsel %vm1230_vm1, %v2721_v25, -inf  ;;  %v2958_v35 = vmax.f32 %v2956_v13, %v2957_v26  ;;  %v1280_v25 = vsel %vm1230_vm1, %v8559_v41, -inf  ;;  %v7972_v13 = vld [vmem:[%s8477_s16 + $0x220] sm:$0xff] }
 0x12a   : > { %v1362_v59 = vrot.slane %v1361_v17, 1  ;;  %v3055_v31 = vrot.slane %v3054_v30, 1  ;;  %v1365_v60 = vrot.slane %v1364_v53, 4  ;;  %v3058_v32 = vrot.slane %v3057_v54, 4 }
 0x12b   : > { %v1271_v51 = vrot.slane %v1270_v27, 1  ;;  %v2964_v41 = vrot.slane %v2963_v62, 1 }
 0x12c   : > { %v1363_v9 = vmax.f32 %v1361_v17, %v1362_v59  ;;  %v3056_v40 = vmax.f32 %v3054_v30, %v3055_v31  ;;  %v1366_v10 = vmax.f32 %v1364_v53, %v1365_v60  ;;  %v3059_v11 = vmax.f32 %v3057_v54, %v3058_v32 }
 0x12d   : > { %v2968_v17 = vmax.f32 %v2966_v14, %v2967_v6  ;;  %v1281_v31 = vrot.slane %v1280_v25, 4  ;;  %v2973_v60 = vsel %vm1230_vm1, %v8561_v42, -inf  ;;  %v1272_v33 = vmax.f32 %v1270_v27, %v1271_v51 }
 0x12e   : > { %v8718_v21 = vsel %vm1230_vm1, %v1363_v9, -inf  ;;  %v8721_v4 = vsel %vm1230_vm1, %v3056_v40, -inf  ;;  %v1367_v5 = vrot.slane %v1366_v10, 2  ;;  %v3060_v23 = vrot.slane %v3059_v11, 2 }
 0x12f   : > { %11410 = vst [vmem:[#allocation3_spill] sm:$0xff] %v8721_v4  ;;  %v8734_v40 = vsel %vm1230_vm1, %v1265_v28, -inf  ;;  %v2965_v30 = vmax.f32 %v2963_v62, %v2964_v41  ;;  %v1282_v20 = vmax.f32 %v1280_v25, %v1281_v31  ;;  %v2974_v36 = vrot.slane %v2973_v60, 4 }
 0x130   : > { %v1368_v26 = vmax.f32 %v1366_v10, %v1367_v5  ;;  %v3061_v53 = vmax.f32 %v3059_v11, %v3060_v23  ;;  %v1030_v54 = vpop.f32.mrf.mxu0  ;;  %v2724_v59 = vpop.f32.mrf.mxu1  ;;  %v8737_v10 = vsel %vm1230_vm1, %v2958_v35, -inf  ;;  %v1276_v11 = vrot.slane %v1275_v34, 2 }
 0x131   : > { %v1371_v7 = vsel %vm1230_vm1, %v1030_v54, -inf  ;;  %v3064_v14 = vsel %vm1230_vm1, %v2724_v59, -inf  ;;  %v2969_v5 = vrot.slane %v2968_v17, 2  ;;  %v1287_v27 = vsel %vm1230_vm1, %v8569_v47, -inf }
 0x132   : > { %v1369_v32 = vrot.slane %v1368_v26, 1  ;;  %v3062_v39 = vrot.slane %v3061_v53, 1  ;;  %v1372_v6 = vrot.slane %v1371_v7, 4  ;;  %v3065_v9 = vrot.slane %v3064_v14, 4 }
 0x133   : > { %7312 = vmatmul.msk.bf16.gmra.mxu0 %vm820_vm0, %v7921_v22  ;;  %7662 = vmatmul.msk.bf16.gmra.mxu1 %vm820_vm0, %v7972_v13  ;;  %v1277_v46 = vmax.f32 %v1275_v34, %v1276_v11  ;;  %v2970_v22 = vmax.f32 %v2968_v17, %v2969_v5  ;;  %v2980_v62 = vsel %vm1230_vm1, %v8571_v48, -inf  ;;  %v1283_v31 = vrot.slane %v1282_v20, 2 }
 0x134   : > { %v1370_v42 = vmax.f32 %v1368_v26, %v1369_v32  ;;  %v3063_v23 = vmax.f32 %v3061_v53, %v3062_v39  ;;  %v1373_v54 = vmax.f32 %v1371_v7, %v1372_v6  ;;  %v3066_v59 = vmax.f32 %v3064_v14, %v3065_v9 }
 0x135   : > { %v2975_v7 = vmax.f32 %v2973_v60, %v2974_v36  ;;  %v1278_v9 = vrot.slane %v1277_v46, 1  ;;  %v2971_v11 = vrot.slane %v2970_v22, 1  ;;  %v1288_v47 = vrot.slane %v1287_v27, 4 }
 0x136   : > { %v8742_v28 = vsel %vm1230_vm1, %v1370_v42, -inf  ;;  %v8745_v35 = vsel %vm1230_vm1, %v3063_v23, -inf  ;;  %v1374_v37 = vrot.slane %v1373_v54, 2  ;;  %v3067_v4 = vrot.slane %v3066_v59, 2 }
 0x137   : > { %v2981_v5 = vrot.slane %v2980_v62, 4  ;;  %v8758_v36 = vsel %vm1230_vm1, %v1272_v33, -inf  ;;  %v8761_v60 = vsel %vm1230_vm1, %v2965_v30, -inf  ;;  %v1284_v23 = vmax.f32 %v1282_v20, %v1283_v31  ;;  %v7922_v30 = vld [vmem:[%s8477_s16 + $0x98] sm:$0xff] }
 0x138   : > { %v1375_v25 = vmax.f32 %v1373_v54, %v1374_v37  ;;  %v3068_v51 = vmax.f32 %v3066_v59, %v3067_v4  ;;  %v1032_v41 = vpop.f32.mrf.mxu0  ;;  %v2726_v53 = vpop.f32.mrf.mxu1  ;;  %11411 = vst [vmem:[#allocation4_spill] sm:$0xff] %v8758_v36  ;;  %v2976_v54 = vrot.slane %v2975_v7, 2  ;;  %v1279_v20 = vmax.f32 %v1277_v46, %v1278_v9 }
 0x139   : > { %v1378_v34 = vsel %vm1230_vm1, %v1032_v41, -inf  ;;  %v3071_v17 = vsel %vm1230_vm1, %v2726_v53, -inf  ;;  %11412 = vst [vmem:[#allocation5_spill] sm:$0xff] %v8761_v60  ;;  %v2972_v31 = vmax.f32 %v2970_v22, %v2971_v11  ;;  %v1294_v26 = vsel %vm1230_vm1, %v8575_v49, -inf }
 0x13a   : > { %v1376_v14 = vrot.slane %v1375_v25, 1  ;;  %v3069_v32 = vrot.slane %v3068_v51, 1  ;;  %v1379_v39 = vrot.slane %v1378_v34, 4  ;;  %v3072_v6 = vrot.slane %v3071_v17, 4 }
 0x13b   : > { %v1285_v13 = vrot.slane %v1284_v23, 1  ;;  %v2987_v22 = vsel %vm1230_vm1, %v8577_v50, -inf }
 0x13c   : > { %v1377_v42 = vmax.f32 %v1375_v25, %v1376_v14  ;;  %v3070_v48 = vmax.f32 %v3068_v51, %v3069_v32  ;;  %v1380_v37 = vmax.f32 %v1378_v34, %v1379_v39  ;;  %v3073_v4 = vmax.f32 %v3071_v17, %v3072_v6  ;;  %v7973_v17 = vld [vmem:[%s8477_s16 + $0x228] sm:$0xff] }
 0x13d   : > { %v1289_v51 = vmax.f32 %v1287_v27, %v1288_v47  ;;  %v2982_v14 = vmax.f32 %v2980_v62, %v2981_v5 }
 0x13e   : > { %v8764_v59 = vsel %vm1230_vm1, %v1377_v42, -inf  ;;  %v8767_v41 = vsel %vm1230_vm1, %v3070_v48, -inf  ;;  %v1381_v25 = vrot.slane %v1380_v37, 2  ;;  %v3074_v53 = vrot.slane %v3073_v4, 2 }
 0x13f   : > { %11413 = vst [vmem:[#allocation6_spill] sm:$0xff] %v8767_v41  ;;  %v2977_v48 = vmax.f32 %v2975_v7, %v2976_v54  ;;  %v1290_v41 = vrot.slane %v1289_v51, 2  ;;  %v2983_v46 = vrot.slane %v2982_v14, 2 }
 0x140   : > { %v1382_v32 = vmax.f32 %v1380_v37, %v1381_v25  ;;  %v3075_v39 = vmax.f32 %v3073_v4, %v3074_v53  ;;  %v1035_v6 = vpop.f32.mrf.mxu0  ;;  %v2729_v42 = vpop.f32.mrf.mxu1  ;;  %v8784_v37 = vsel %vm1230_vm1, %v1279_v20, -inf  ;;  %v8787_v4 = vsel %vm1230_vm1, %v2972_v31, -inf }
 0x141   : > { %v1385_v27 = vsel %vm1230_vm1, %v1035_v6, -inf  ;;  %v3078_v62 = vsel %vm1230_vm1, %v2729_v42, -inf  ;;  %11414 = vst [vmem:[#allocation7_spill] sm:$0xff] %v8784_v37  ;;  %v2978_v54 = vrot.slane %v2977_v48, 1  ;;  %v1295_v25 = vrot.slane %v1294_v26, 4 }
 0x142   : > { %v1383_v47 = vrot.slane %v1382_v32, 1  ;;  %v3076_v5 = vrot.slane %v3075_v39, 1  ;;  %v1386_v34 = vrot.slane %v1385_v27, 4  ;;  %v3079_v33 = vrot.slane %v3078_v62, 4  ;;  %11415 = vst [vmem:[#allocation8_spill] sm:$0xff] %v8787_v4 }
 0x143   : > { %7313 = vmatmul.msk.bf16.gmra.mxu0 %vm820_vm0, %v7922_v30  ;;  %7663 = vmatmul.msk.bf16.gmra.mxu1 %vm820_vm0, %v7973_v17  ;;  %v1286_v20 = vmax.f32 %v1284_v23, %v1285_v13  ;;  %v2984_v31 = vmax.f32 %v2982_v14, %v2983_v46  ;;  %v2979_v36 = vmax.f32 %v2977_v48, %v2978_v54  ;;  %v2994_v23 = vsel %vm1230_vm1, %v8587_v56, -inf }
 0x144   : > { %v1384_v7 = vmax.f32 %v1382_v32, %v1383_v47  ;;  %v3077_v49 = vmax.f32 %v3075_v39, %v3076_v5  ;;  %v1387_v9 = vmax.f32 %v1385_v27, %v1386_v34  ;;  %v3080_v11 = vmax.f32 %v3078_v62, %v3079_v33 }
 0x145   : > { %v1291_v32 = vmax.f32 %v1289_v51, %v1290_v41  ;;  %v2988_v39 = vrot.slane %v2987_v22, 4  ;;  %v1296_v47 = vmax.f32 %v1294_v26, %v1295_v25  ;;  %v1301_v5 = vsel %vm1230_vm1, %v8585_v55, -inf }
 0x146   : > { %v8790_v53 = vsel %vm1230_vm1, %v1384_v7, -inf  ;;  %v8793_v50 = vsel %vm1230_vm1, %v3077_v49, -inf  ;;  %v1388_v30 = vrot.slane %v1387_v9, 2  ;;  %v3081_v17 = vrot.slane %v3080_v11, 2 }
 0x147   : > { %11416 = vst [vmem:[#allocation9_spill] sm:$0xff] %v8790_v53  ;;  %v1292_v33 = vrot.slane %v1291_v32, 1  ;;  %v2989_v13 = vmax.f32 %v2987_v22, %v2988_v39  ;;  %v1297_v25 = vrot.slane %v1296_v47, 2  ;;  %v2995_v39 = vrot.slane %v2994_v23, 4 }
 0x148   : > { %11417 = vst [vmem:[#allocation10_spill] sm:$0xff] %v8793_v50  ;;  %v1389_v6 = vmax.f32 %v1387_v9, %v1388_v30  ;;  %v3082_v42 = vmax.f32 %v3080_v11, %v3081_v17  ;;  %v1037_v27 = vpop.f32.mrf.mxu0  ;;  %v2731_v62 = vpop.f32.mrf.mxu1  ;;  %v8806_v9 = vsel %vm1230_vm1, %v1286_v20, -inf  ;;  %v2985_v11 = vrot.slane %v2984_v31, 1  ;;  %v7923_v20 = vld [vmem:[%s8477_s16 + $0xa0] sm:$0xff] }
 0x149   : > { %v1392_v7 = vsel %vm1230_vm1, %v1037_v27, -inf  ;;  %v3085_v41 = vsel %vm1230_vm1, %v2731_v62, -inf  ;;  %v1302_v30 = vrot.slane %v1301_v5, 4  ;;  %v2990_v54 = vrot.slane %v2989_v13, 2  ;;  %v8822_v27 = vpop.f32.mrf.mxu2 }
 0x14a   : > { %v1390_v51 = vrot.slane %v1389_v6, 1  ;;  %v3083_v49 = vrot.slane %v3082_v42, 1  ;;  %v1393_v34 = vrot.slane %v1392_v7, 4  ;;  %v3086_v53 = vrot.slane %v3085_v41, 4  ;;  %11421 = vst [vmem:[#allocation14_spill] sm:$0xff] %v8822_v27 }
 0x14b   : > { %v8825_v62 = vsel %vm1230_vm1, %v2979_v36, -inf  ;;  %v1303_v50 = vmax.f32 %v1301_v5, %v1302_v30  ;;  %v2986_v37 = vmax.f32 %v2984_v31, %v2985_v11  ;;  %v2991_v27 = vmax.f32 %v2989_v13, %v2990_v54 }
 0x14c   : > { %v1391_v14 = vmax.f32 %v1389_v6, %v1390_v51  ;;  %v3084_v26 = vmax.f32 %v3082_v42, %v3083_v49  ;;  %v1394_v46 = vmax.f32 %v1392_v7, %v1393_v34  ;;  %v3087_v55 = vmax.f32 %v3085_v41, %v3086_v53  ;;  %v7974_v6 = vld [vmem:[%s8477_s16 + $0x230] sm:$0xff]  ;;  %v8820_v42 = vpop.f32.mrf.mxu3 }
 0x14d   : > { %11420 = vst [vmem:[#allocation13_spill] sm:$0xff] %v8820_v42  ;;  %v1293_v7 = vmax.f32 %v1291_v32, %v1292_v33  ;;  %v2996_v60 = vmax.f32 %v2994_v23, %v2995_v39  ;;  %v1308_v36 = vsel %vm1230_vm1, %v8591_v57, -inf  ;;  %v3001_v31 = vsel %vm1230_vm1, %v8593_v58, -inf }
 0x14e   : > { %v8809_v17 = vsel %vm1230_vm1, %v1391_v14, -inf  ;;  %v8812_v48 = vsel %vm1230_vm1, %v3084_v26, -inf  ;;  %v1395_v22 = vrot.slane %v1394_v46, 2  ;;  %v3088_v56 = vrot.slane %v3087_v55, 2 }
 0x14f   : > { %11418 = vst [vmem:[#allocation11_spill] sm:$0xff] %v8809_v17  ;;  %v1298_v26 = vmax.f32 %v1296_v47, %v1297_v25  ;;  %v1304_v25 = vrot.slane %v1303_v50, 2  ;;  %v2997_v30 = vrot.slane %v2996_v60, 2  ;;  %v2992_v58 = vrot.slane %v2991_v27, 1 }
 0x150   : > { %11419 = vst [vmem:[#allocation12_spill] sm:$0xff] %v8812_v48  ;;  %v1396_v41 = vmax.f32 %v1394_v46, %v1395_v22  ;;  %v3089_v51 = vmax.f32 %v3087_v55, %v3088_v56  ;;  %v1040_v49 = vpop.f32.mrf.mxu0  ;;  %v2734_v14 = vpop.f32.mrf.mxu1  ;;  %v8834_v46 = vsel %vm1230_vm1, %v1293_v7, -inf  ;;  %v8849_v22 = vsel %vm1230_vm1, %v2986_v37, -inf }
 0x151   : > { %v1399_v34 = vsel %vm1230_vm1, %v1040_v49, -inf  ;;  %v3092_v53 = vsel %vm1230_vm1, %v2734_v14, -inf  ;;  %11422 = vst [vmem:[#allocation15_spill] sm:$0xff] %v8834_v46  ;;  %v1299_v55 = vrot.slane %v1298_v26, 1 }
 0x152   : > { %v1397_v48 = vrot.slane %v1396_v41, 1  ;;  %v3090_v4 = vrot.slane %v3089_v51, 1  ;;  %v1400_v17 = vrot.slane %v1399_v34, 4  ;;  %v3093_v42 = vrot.slane %v3092_v53, 4 }
 0x153   : > { %7314 = vmatmul.msk.bf16.gmra.mxu0 %vm820_vm0, %v7923_v20  ;;  %7664 = vmatmul.msk.bf16.gmra.mxu1 %vm820_vm0, %v7974_v6  ;;  %v3002_v20 = vrot.slane %v3001_v31, 4 }
 0x154   : > { %v1398_v32 = vmax.f32 %v1396_v41, %v1397_v48  ;;  %v3091_v33 = vmax.f32 %v3089_v51, %v3090_v4  ;;  %v1401_v47 = vmax.f32 %v1399_v34, %v1400_v17  ;;  %v3094_v5 = vmax.f32 %v3092_v53, %v3093_v42  ;;  %v8853_v7 = vpop.f32.mrf.mxu3  ;;  %v8855_v41 = vpop.f32.mrf.mxu2 }
 0x155   : > { %v1309_v4 = vrot.slane %v1308_v36, 4  ;;  %v1300_v53 = vmax.f32 %v1298_v26, %v1299_v55  ;;  %11423 = vst [vmem:[#allocation16_spill] sm:$0xff] %v8853_v7  ;;  %v3003_v48 = vmax.f32 %v3001_v31, %v3002_v20  ;;  %v3008_v17 = vsel %vm1230_vm1, %v8603_v0, -inf  ;;  %v7924_v31 = vld [vmem:[%s8477_s16 + $0xa8] sm:$0xff] }
 0x156   : > { %v8839_v13 = vsel %vm1230_vm1, %v1398_v32, -inf  ;;  %v8842_v57 = vsel %vm1230_vm1, %v3091_v33, -inf  ;;  %v1402_v23 = vrot.slane %v1401_v47, 2  ;;  %v3095_v11 = vrot.slane %v3094_v5, 2  ;;  %11424 = vst [vmem:[#allocation17_spill] sm:$0xff] %v8855_v41 }
 0x157   : > { %v1305_v32 = vmax.f32 %v1303_v50, %v1304_v25  ;;  %v2998_v33 = vmax.f32 %v2996_v60, %v2997_v30 }
 0x158   : > { %v1403_v56 = vmax.f32 %v1401_v47, %v1402_v23  ;;  %v3096_v54 = vmax.f32 %v3094_v5, %v3095_v11  ;;  %v1042_v39 = vpop.f32.mrf.mxu0  ;;  %v2736_v34 = vpop.f32.mrf.mxu1  ;;  %v1310_v47 = vmax.f32 %v1308_v36, %v1309_v4  ;;  %v1315_v5 = vsel %vm1230_vm1, %v8601_v63, -inf }
 0x159   : > { %v1406_v6 = vsel %vm1230_vm1, %v1042_v39, -inf  ;;  %v3099_v42 = vsel %vm1230_vm1, %v2736_v34, -inf  ;;  %v8860_v39 = vsel %vm1230_vm1, %v1300_v53, -inf  ;;  %v2993_v34 = vmax.f32 %v2991_v27, %v2992_v58  ;;  %v7975_v58 = vld [vmem:[%s8477_s16 + $0x238] sm:$0xff] }
 0x15a   : > { %v1404_v51 = vrot.slane %v1403_v56, 1  ;;  %v3097_v49 = vrot.slane %v3096_v54, 1  ;;  %v1407_v14 = vrot.slane %v1406_v6, 4  ;;  %v3100_v37 = vrot.slane %v3099_v42, 4 }
 0x15b   : > { %v1311_v25 = vrot.slane %v1310_v47, 2  ;;  %v1316_v30 = vrot.slane %v1315_v5, 4  ;;  %v2999_v0 = vrot.slane %v2998_v33, 1  ;;  %v8879_v27 = vsel %vm1230_vm1, %v2993_v34, -inf }
 0x15c   : > { %v1405_v26 = vmax.f32 %v1403_v56, %v1404_v51  ;;  %v3098_v55 = vmax.f32 %v3096_v54, %v3097_v49  ;;  %v1408_v23 = vmax.f32 %v1406_v6, %v1407_v14  ;;  %v3101_v11 = vmax.f32 %v3099_v42, %v3100_v37 }
 0x15d   : > { %v1306_v56 = vrot.slane %v1305_v32, 1  ;;  %v3004_v42 = vrot.slane %v3003_v48, 2  ;;  %v3009_v51 = vrot.slane %v3008_v17, 4  ;;  %v1312_v41 = vmax.f32 %v1310_v47, %v1311_v25 }
 0x15e   : > { %v8865_v60 = vsel %vm1230_vm1, %v1405_v26, -inf  ;;  %v8868_v50 = vsel %vm1230_vm1, %v3098_v55, -inf  ;;  %v1409_v63 = vrot.slane %v1408_v23, 2  ;;  %v3102_v36 = vrot.slane %v3101_v11, 2 }
 0x15f   : > { %11425 = vst [vmem:[#allocation18_spill] sm:$0xff] %v8865_v60  ;;  %v1317_v7 = vmax.f32 %v1315_v5, %v1316_v30  ;;  %v1307_v46 = vmax.f32 %v1305_v32, %v1306_v56  ;;  %v3000_v34 = vmax.f32 %v2998_v33, %v2999_v0  ;;  %v3010_v47 = vmax.f32 %v3008_v17, %v3009_v51 }
 0x160   : > { %11426 = vst [vmem:[#allocation19_spill] sm:$0xff] %v8868_v50  ;;  %v1410_v54 = vmax.f32 %v1408_v23, %v1409_v63  ;;  %v3103_v53 = vmax.f32 %v3101_v11, %v3102_v36  ;;  %v1045_v20 = vpop.f32.mrf.mxu0  ;;  %v2739_v6 = vpop.f32.mrf.mxu1  ;;  %v3015_v23 = vsel %vm1230_vm1, %v8609_v2, -inf  ;;  %v3005_v50 = vmax.f32 %v3003_v48, %v3004_v42 }
 0x161   : > { %v1413_v49 = vsel %vm1230_vm1, %v1045_v20, -inf  ;;  %v3106_v14 = vsel %vm1230_vm1, %v2739_v6, -inf  ;;  %v8885_v11 = vpop.f32.mrf.mxu3  ;;  %v8887_v63 = vpop.f32.mrf.mxu2  ;;  %v1313_v32 = vrot.slane %v1312_v41, 1  ;;  %v1322_v17 = vsel %vm1230_vm1, %v8607_v1, -inf }
 0x162   : > { %v1411_v37 = vrot.slane %v1410_v54, 1  ;;  %v3104_v26 = vrot.slane %v3103_v53, 1  ;;  %v1414_v55 = vrot.slane %v1413_v49, 4  ;;  %v3107_v4 = vrot.slane %v3106_v14, 4  ;;  %11427 = vst [vmem:[#allocation20_spill] sm:$0xff] %v8885_v11 }
 0x163   : > { %7315 = vmatmul.msk.bf16.gmra.mxu0 %vm820_vm0, %v7924_v31  ;;  %7665 = vmatmul.msk.bf16.gmra.mxu1 %vm820_vm0, %v7975_v58  ;;  %11428 = vst [vmem:[#allocation21_spill] sm:$0xff] %v8887_v63  ;;  %v1318_v31 = vrot.slane %v1317_v7, 2  ;;  %v3016_v58 = vrot.slane %v3015_v23, 4  ;;  %v3011_v42 = vrot.slane %v3010_v47, 2 }
 0x164   : > { %v1412_v36 = vmax.f32 %v1410_v54, %v1411_v37  ;;  %v3105_v20 = vmax.f32 %v3103_v53, %v3104_v26  ;;  %v1415_v6 = vmax.f32 %v1413_v49, %v1414_v55  ;;  %v3108_v60 = vmax.f32 %v3106_v14, %v3107_v4 }
 0x165   : > { %v3006_v53 = vrot.slane %v3005_v50, 1  ;;  %v1323_v4 = vrot.slane %v1322_v17, 4  ;;  %v3017_v1 = vmax.f32 %v3015_v23, %v3016_v58  ;;  %v3012_v63 = vmax.f32 %v3010_v47, %v3011_v42  ;;  %v7976_v47 = vld [vmem:[%s8477_s16 + $0x240] sm:$0xff] }
 0x166   : > { %v8890_v5 = vsel %vm1230_vm1, %v1412_v36, -inf  ;;  %v8893_v2 = vsel %vm1230_vm1, %v3105_v20, -inf  ;;  %v1416_v25 = vrot.slane %v1415_v6, 2  ;;  %v3109_v30 = vrot.slane %v3108_v60, 2 }
 0x167   : > { %11429 = vst [vmem:[#allocation22_spill] sm:$0xff] %v8893_v2  ;;  %v8904_v36 = vsel %vm1230_vm1, %v3000_v34, -inf  ;;  %v1319_v20 = vmax.f32 %v1317_v7, %v1318_v31  ;;  %v3007_v54 = vmax.f32 %v3005_v50, %v3006_v53  ;;  %v1324_v58 = vmax.f32 %v1322_v17, %v1323_v4  ;;  %v7925_v50 = vld [vmem:[%s8477_s16 + $0xb0] sm:$0xff] }
 0x168   : > { %v1417_v48 = vmax.f32 %v1415_v6, %v1416_v25  ;;  %v3110_v33 = vmax.f32 %v3108_v60, %v3109_v30  ;;  %v1047_v56 = vpop.f32.mrf.mxu0  ;;  %v2741_v0 = vpop.f32.mrf.mxu1  ;;  %v1329_v4 = vsel %vm1230_vm1, %v8625_v15, -inf }
 0x169   : > { %v1420_v51 = vsel %vm1230_vm1, %v1047_v56, -inf  ;;  %v3113_v49 = vsel %vm1230_vm1, %v2741_v0, -inf  ;;  %v8907_v56 = vsel %vm1230_vm1, %v1307_v46, -inf  ;;  %v1314_v0 = vmax.f32 %v1312_v41, %v1313_v32  ;;  %v8909_v11 = vpop.f32.mrf.mxu3  ;;  %v8911_v2 = vpop.f32.mrf.mxu2 }
 0x16a   : > { %v1418_v14 = vrot.slane %v1417_v48, 1  ;;  %v3111_v37 = vrot.slane %v3110_v33, 1  ;;  %v1421_v26 = vrot.slane %v1420_v51, 4  ;;  %v3114_v55 = vrot.slane %v3113_v49, 4  ;;  %11430 = vst [vmem:[#allocation23_spill] sm:$0xff] %v8909_v11 }
 0x16b   : > { %11431 = vst [vmem:[#allocation24_spill] sm:$0xff] %v8911_v2  ;;  %v1320_v32 = vrot.slane %v1319_v20, 1  ;;  %v8932_v41 = vsel %vm1230_vm1, %v3007_v54, -inf  ;;  %v1330_v11 = vrot.slane %v1329_v4, 4 }
 0x16c   : > { %v1419_v6 = vmax.f32 %v1417_v48, %v1418_v14  ;;  %v3112_v60 = vmax.f32 %v3110_v33, %v3111_v37  ;;  %v1422_v25 = vmax.f32 %v1420_v51, %v1421_v26  ;;  %v3115_v30 = vmax.f32 %v3113_v49, %v3114_v55 }
 0x16d   : > { %v3018_v48 = vrot.slane %v3017_v1, 2  ;;  %v3022_v33 = vsel %vm1230_vm1, %v8627_v16, -inf  ;;  %v3013_v14 = vrot.slane %v3012_v63, 1  ;;  %v1325_v16 = vrot.slane %v1324_v58, 2 }
 0x16e   : > { %v8914_v7 = vsel %vm1230_vm1, %v1419_v6, -inf  ;;  %v8917_v23 = vsel %vm1230_vm1, %v3112_v60, -inf  ;;  %v1423_v34 = vrot.slane %v1422_v25, 2  ;;  %v3116_v31 = vrot.slane %v3115_v30, 2 }
 0x16f   : > { %11432 = vst [vmem:[#allocation25_spill] sm:$0xff] %v8917_v23  ;;  %v1321_v46 = vmax.f32 %v1319_v20, %v1320_v32  ;;  %v3014_v2 = vmax.f32 %v3012_v63, %v3013_v14  ;;  %v1326_v23 = vmax.f32 %v1324_v58, %v1325_v16  ;;  %v3029_v32 = vsel %vm1230_vm1, %v8639_v43, -inf }
 0x170   : > { %v1424_v53 = vmax.f32 %v1422_v25, %v1423_v34  ;;  %v3117_v42 = vmax.f32 %v3115_v30, %v3116_v31  ;;  %v1050_v51 = vpop.f32.mrf.mxu0  ;;  %v2744_v49 = vpop.f32.mrf.mxu1  ;;  %v3019_v25 = vmax.f32 %v3017_v1, %v3018_v48  ;;  %v3023_v30 = vrot.slane %v3022_v33, 4 }
 0x171   : > { %v1427_v17 = vsel %vm1230_vm1, %v1050_v51, -inf  ;;  %v3120_v37 = vsel %vm1230_vm1, %v2744_v49, -inf  ;;  %v8937_v49 = vsel %vm1230_vm1, %v1314_v0, -inf  ;;  %v8951_v63 = vpop.f32.mrf.mxu2  ;;  %v1331_v58 = vmax.f32 %v1329_v4, %v1330_v11 }
 0x172   : > { %v1425_v26 = vrot.slane %v1424_v53, 1  ;;  %v3118_v55 = vrot.slane %v3117_v42, 1  ;;  %v1428_v6 = vrot.slane %v1427_v17, 4  ;;  %v3121_v60 = vrot.slane %v3120_v37, 4  ;;  %11435 = vst [vmem:[#allocation28_spill] sm:$0xff] %v8951_v63 }
 0x173   : > { %7316 = vmatmul.msk.bf16.gmra.mxu0 %vm820_vm0, %v7925_v50  ;;  %7666 = vmatmul.msk.bf16.gmra.mxu1 %vm820_vm0, %v7976_v47  ;;  %v3024_v47 = vmax.f32 %v3022_v33, %v3023_v30  ;;  %v3020_v20 = vrot.slane %v3019_v25, 1  ;;  %v1336_v33 = vsel %vm1230_vm1, %v8637_v38, -inf  ;;  %v1327_v43 = vrot.slane %v1326_v23, 1 }
 0x174   : > { %v1426_v34 = vmax.f32 %v1424_v53, %v1425_v26  ;;  %v3119_v15 = vmax.f32 %v3117_v42, %v3118_v55  ;;  %v1429_v31 = vmax.f32 %v1427_v17, %v1428_v6  ;;  %v3122_v51 = vmax.f32 %v3120_v37, %v3121_v60  ;;  %v8949_v42 = vpop.f32.mrf.mxu3 }
 0x175   : > { %11434 = vst [vmem:[#allocation27_spill] sm:$0xff] %v8949_v42  ;;  %v1337_v0 = vrot.slane %v1336_v33, 4 }
 0x176   : > { %v8940_v54 = vsel %vm1230_vm1, %v1426_v34, -inf  ;;  %v8943_v1 = vsel %vm1230_vm1, %v3119_v15, -inf  ;;  %v1430_v48 = vrot.slane %v1429_v31, 2  ;;  %v3123_v50 = vrot.slane %v3122_v51, 2 }
 0x177   : > { %11433 = vst [vmem:[#allocation26_spill] sm:$0xff] %v8943_v1  ;;  %v8960_v15 = vsel %vm1230_vm1, %v3014_v2, -inf }
 0x178   : > { %v1431_v14 = vmax.f32 %v1429_v31, %v1430_v48  ;;  %v3124_v17 = vmax.f32 %v3122_v51, %v3123_v50  ;;  %v1052_v37 = vpop.f32.mrf.mxu0  ;;  %v2746_v26 = vpop.f32.mrf.mxu1  ;;  %v3025_v31 = vrot.slane %v3024_v47, 2  ;;  %v3030_v51 = vrot.slane %v3029_v32, 4 }
 0x179   : > { %v1434_v55 = vsel %vm1230_vm1, %v1052_v37, -inf  ;;  %v3127_v6 = vsel %vm1230_vm1, %v2746_v26, -inf  ;;  %v8963_v50 = vsel %vm1230_vm1, %v1321_v46, -inf  ;;  %v3021_v37 = vmax.f32 %v3019_v25, %v3020_v20  ;;  %v7977_v25 = vld [vmem:[%s8477_s16 + $0x248] sm:$0xff] }
 0x17a   : > { %v1432_v60 = vrot.slane %v1431_v14, 1  ;;  %v3125_v16 = vrot.slane %v3124_v17, 1  ;;  %v1435_v30 = vrot.slane %v1434_v55, 4  ;;  %v3128_v34 = vrot.slane %v3127_v6, 4 }
 0x17b   : > { %v1332_v26 = vrot.slane %v1331_v58, 2  ;;  %v1328_v20 = vmax.f32 %v1326_v23, %v1327_v43  ;;  %v8984_v23 = vsel %vm1230_vm1, %v3021_v37, -inf }
 0x17c   : > { %v1433_v48 = vmax.f32 %v1431_v14, %v1432_v60  ;;  %v3126_v11 = vmax.f32 %v3124_v17, %v3125_v16  ;;  %v1436_v4 = vmax.f32 %v1434_v55, %v1435_v30  ;;  %v3129_v38 = vmax.f32 %v3127_v6, %v3128_v34  ;;  %v7926_v55 = vld [vmem:[%s8477_s16 + $0xb8] sm:$0xff] }
 0x17d   : > { %v3026_v14 = vmax.f32 %v3024_v47, %v3025_v31  ;;  %v3031_v60 = vmax.f32 %v3029_v32, %v3030_v51  ;;  %v8979_v32 = vpop.f32.mrf.mxu3  ;;  %v8981_v31 = vpop.f32.mrf.mxu2 }
 0x17e   : > { %v8966_v53 = vsel %vm1230_vm1, %v1433_v48, -inf  ;;  %v8969_v2 = vsel %vm1230_vm1, %v3126_v11, -inf  ;;  %v1437_v63 = vrot.slane %v1436_v4, 2  ;;  %v3130_v42 = vrot.slane %v3129_v38, 2  ;;  %11437 = vst [vmem:[#allocation30_spill] sm:$0xff] %v8979_v32 }
 0x17f   : > { %11436 = vst [vmem:[#allocation29_spill] sm:$0xff] %v8969_v2  ;;  %v1333_v48 = vmax.f32 %v1331_v58, %v1332_v26  ;;  %v1338_v11 = vmax.f32 %v1336_v33, %v1337_v0 }
 0x180   : > { %v1438_v6 = vmax.f32 %v1436_v4, %v1437_v63  ;;  %v3131_v16 = vmax.f32 %v3129_v38, %v3130_v42  ;;  %v1055_v30 = vpop.f32.mrf.mxu0  ;;  %v2749_v34 = vpop.f32.mrf.mxu1  ;;  %11438 = vst [vmem:[#allocation31_spill] sm:$0xff] %v8981_v31  ;;  %v3027_v42 = vrot.slane %v3026_v14, 1  ;;  %v3032_v63 = vrot.slane %v3031_v60, 2 }
 0x181   : > { %v1441_v1 = vsel %vm1230_vm1, %v1055_v30, -inf  ;;  %v3134_v47 = vsel %vm1230_vm1, %v2749_v34, -inf  ;;  %v8989_v4 = vsel %vm1230_vm1, %v1328_v20, -inf  ;;  %v1334_v38 = vrot.slane %v1333_v48, 1 }
 0x182   : > { %v1439_v51 = vrot.slane %v1438_v6, 1  ;;  %v3132_v17 = vrot.slane %v3131_v16, 1  ;;  %v1442_v46 = vrot.slane %v1441_v1, 4  ;;  %v3135_v2 = vrot.slane %v3134_v47, 4 }
 0x183   : > { %7317 = vmatmul.msk.bf16.gmra.mxu0 %vm820_vm0, %v7926_v55  ;;  %7667 = vmatmul.msk.bf16.gmra.mxu1 %vm820_vm0, %v7977_v25  ;;  %v1339_v26 = vrot.slane %v1338_v11, 2  ;;  %v3028_v55 = vmax.f32 %v3026_v14, %v3027_v42  ;;  %v3033_v32 = vmax.f32 %v3031_v60, %v3032_v63 }
 0x184   : > { %v1440_v0 = vmax.f32 %v1438_v6, %v1439_v51  ;;  %v3133_v58 = vmax.f32 %v3131_v16, %v3132_v17  ;;  %v1443_v33 = vmax.f32 %v1441_v1, %v1442_v46  ;;  %v3136_v43 = vmax.f32 %v3134_v47, %v3135_v2 }
 0x185   : > { %v1335_v6 = vmax.f32 %v1333_v48, %v1334_v38  ;;  %v1340_v16 = vmax.f32 %v1338_v11, %v1339_v26  ;;  %v9004_v42 = vsel %vm1230_vm1, %v3028_v55, -inf  ;;  %v3034_v63 = vrot.slane %v3033_v32, 1  ;;  %v9006_v1 = vpop.f32.mrf.mxu3 }
 0x186   : > { %v8992_v30 = vsel %vm1230_vm1, %v1440_v0, -inf  ;;  %v8995_v37 = vsel %vm1230_vm1, %v3133_v58, -inf  ;;  %v1444_v34 = vrot.slane %v1443_v33, 2  ;;  %v3137_v31 = vrot.slane %v3136_v43, 2  ;;  %11439 = vst [vmem:[#allocation32_spill] sm:$0xff] %v9004_v42 }
 0x187   : > { %11440 = vst [vmem:[#allocation33_spill] sm:$0xff] %v9006_v1  ;;  %v9011_v38 = vsel %vm1230_vm1, %v1335_v6, -inf  ;;  %v1341_v26 = vrot.slane %v1340_v16, 1  ;;  %v3035_v17 = vmax.f32 %v3033_v32, %v3034_v63 }
 0x188   : > { %v1445_v2 = vmax.f32 %v1443_v33, %v1444_v34  ;;  %v3138_v46 = vmax.f32 %v3136_v43, %v3137_v31  ;;  %v1057_v25 = vpop.f32.mrf.mxu0  ;;  %v2751_v20 = vpop.f32.mrf.mxu1 }
 0x189   : > { %v1448_v47 = vsel %vm1230_vm1, %v1057_v25, -inf  ;;  %v3141_v51 = vsel %vm1230_vm1, %v2751_v20, -inf  ;;  %v9008_v31 = vpop.f32.mrf.mxu2 }
 0x18a   : > { %v1446_v0 = vrot.slane %v1445_v2, 1  ;;  %v3139_v58 = vrot.slane %v3138_v46, 1  ;;  %v1449_v14 = vrot.slane %v1448_v47, 4  ;;  %v3142_v60 = vrot.slane %v3141_v51, 4  ;;  %11441 = vst [vmem:[#allocation34_spill] sm:$0xff] %v9008_v31 }
 0x18b   : > { %v9028_v31 = vsel %vm1230_vm1, %v3035_v17, -inf }
 0x18c   : > { %v1447_v48 = vmax.f32 %v1445_v2, %v1446_v0  ;;  %v3140_v11 = vmax.f32 %v3138_v46, %v3139_v58  ;;  %v1450_v33 = vmax.f32 %v1448_v47, %v1449_v14  ;;  %v3143_v43 = vmax.f32 %v3141_v51, %v3142_v60  ;;  %v7927_v46 = vld [vmem:[%s8477_s16 + $0xc0] sm:$0xff]  ;;  %v7978_v47 = vld [vmem:[%s8477_s16 + $0x250] sm:$0xff]  ;;  %11443 = vst [vmem:[#allocation36_spill] sm:$0xff] %v9028_v31  ;;  %v7928_v31 = vld [vmem:[%s8477_s16 + $0xc8] sm:$0xff] }
 0x18d   : > { %v1342_v14 = vmax.f32 %v1340_v16, %v1341_v26  ;;  %v9035_v26 = vpop.f32.mrf.mxu3 }
 0x18e   : > { %v9014_v34 = vsel %vm1230_vm1, %v1447_v48, -inf  ;;  %v9017_v55 = vsel %vm1230_vm1, %v3140_v11, -inf  ;;  %v1451_v25 = vrot.slane %v1450_v33, 2  ;;  %v3144_v20 = vrot.slane %v3143_v43, 2  ;;  %11445 = vst [vmem:[#allocation38_spill] sm:$0xff] %v9035_v26 }
 0x18f   : > { %11442 = vst [vmem:[#allocation35_spill] sm:$0xff] %v9017_v55  ;;  %v9033_v16 = vsel %vm1230_vm1, %v1342_v14, -inf }
 0x190   : > { %v1452_v6 = vmax.f32 %v1450_v33, %v1451_v25  ;;  %v3145_v51 = vmax.f32 %v3143_v43, %v3144_v20  ;;  %v1060_v0 = vpop.f32.mrf.mxu0  ;;  %v2754_v58 = vpop.f32.mrf.mxu1  ;;  %11444 = vst [vmem:[#allocation37_spill] sm:$0xff] %v9033_v16 }
 0x191   : > { %v1455_v60 = vsel %vm1230_vm1, %v1060_v0, -inf  ;;  %v3148_v48 = vsel %vm1230_vm1, %v2754_v58, -inf  ;;  %v9037_v0 = vpop.f32.mrf.mxu2 }
 0x192   : > { %v1453_v11 = vrot.slane %v1452_v6, 1  ;;  %v3146_v1 = vrot.slane %v3145_v51, 1  ;;  %v1456_v32 = vrot.slane %v1455_v60, 4  ;;  %v3149_v63 = vrot.slane %v3148_v48, 4  ;;  %11446 = vst [vmem:[#allocation39_spill] sm:$0xff] %v9037_v0 }
 0x193   : > { %7318 = vmatmul.msk.bf16.gmra.mxu0 %vm820_vm0, %v7927_v46  ;;  %7668 = vmatmul.msk.bf16.gmra.mxu1 %vm820_vm0, %v7978_v47 }
 0x194   : > { %v1454_v33 = vmax.f32 %v1452_v6, %v1453_v11  ;;  %v3147_v43 = vmax.f32 %v3145_v51, %v3146_v1  ;;  %v1457_v25 = vmax.f32 %v1455_v60, %v1456_v32  ;;  %v3150_v20 = vmax.f32 %v3148_v48, %v3149_v63 }
 0x196   : > { %v9040_v58 = vsel %vm1230_vm1, %v1454_v33, -inf  ;;  %v9043_v17 = vsel %vm1230_vm1, %v3147_v43, -inf  ;;  %v1458_v46 = vrot.slane %v1457_v25, 2  ;;  %v3151_v2 = vrot.slane %v3150_v20, 2 }
 0x197   : > { %11447 = vst [vmem:[#allocation40_spill] sm:$0xff] %v9040_v58 }
 0x198   : > { %11448 = vst [vmem:[#allocation41_spill] sm:$0xff] %v9043_v17  ;;  %v1459_v6 = vmax.f32 %v1457_v25, %v1458_v46  ;;  %v3152_v51 = vmax.f32 %v3150_v20, %v3151_v2  ;;  %v1062_v14 = vpop.f32.mrf.mxu0  ;;  %v2756_v60 = vpop.f32.mrf.mxu1  ;;  %v11449_v20 = vmax.f32 %v8653_v29, %v8675_v19 }
 0x199   : > { %v1462_v48 = vsel %vm1230_vm1, %v1062_v14, -inf  ;;  %v3155_v11 = vsel %vm1230_vm1, %v2756_v60, -inf  ;;  %v1220_v14 = vpop.f32.mrf.mxu3  ;;  %v9058_v60 = vld [vmem:[%s11343_s2] ss:$0 sm:$0xff]  ;;  %v2914_v17 = vpop.f32.mrf.mxu2 }
 0x19a   : > { %v3153_v32 = vrot.slane %v3152_v51, 1  ;;  %v1463_v63 = vrot.slane %v1462_v48, 4  ;;  %v3156_v33 = vrot.slane %v3155_v11, 4  ;;  %v1460_v43 = vrot.slane %v1459_v6, 1 }
 0x19b   : > { %v9069_v16 = vadd.f32 %v9058_v60, %v2914_v17  ;;  %v11450_v17 = vmax.f32 %v8650_v24, %v8672_v18 }
 0x19c   : > { %v3154_v0 = vmax.f32 %v3152_v51, %v3153_v32  ;;  %v1464_v26 = vmax.f32 %v1462_v48, %v1463_v63  ;;  %v3157_v1 = vmax.f32 %v3155_v11, %v3156_v33  ;;  %v1461_v2 = vmax.f32 %v1459_v6, %v1460_v43  ;;  %v7979_v51 = vld [vmem:[%s8477_s16 + $0x258] sm:$0xff] }
 0x19e   : > { %v3599_v58 = vsel %vm1230_vm1, %v3154_v0, -inf  ;;  %v1465_v47 = vrot.slane %v1464_v26, 2  ;;  %v3158_v25 = vrot.slane %v3157_v1, 2  ;;  %v1906_v43 = vsel %vm1230_vm1, %v1461_v2, -inf }
 0x19f   : > { %v3600_v46 = vmax.f32 %v11449_v20, %v3599_v58  ;;  %v9066_v20 = vadd.f32 %v9058_v60, %v1220_v14 }
 0x1a0   : > { %v1466_v48 = vmax.f32 %v1464_v26, %v1465_v47  ;;  %v3159_v11 = vmax.f32 %v3157_v1, %v3158_v25  ;;  %v1065_v32 = vpop.f32.mrf.mxu0  ;;  %v2759_v0 = vpop.f32.mrf.mxu1 }
 0x1a1   : > { %v1469_v63 = vsel %vm1230_vm1, %v1065_v32, -inf  ;;  %v3162_v6 = vsel %vm1230_vm1, %v2759_v0, -inf  ;;  %v2072_v32 = vrot.slane %v9066_v20, 1  ;;  %v3764_v0 = vrot.slane %v9069_v16, 1 }
 0x1a2   : > { %v1467_v33 = vrot.slane %v1466_v48, 1  ;;  %v3160_v29 = vrot.slane %v3159_v11, 1  ;;  %v1470_v19 = vrot.slane %v1469_v63, 4  ;;  %v3163_v58 = vrot.slane %v3162_v6, 4 }
 0x1a3   : > { %7319 = vmatmul.msk.bf16.gmra.mxu0 %vm820_vm0, %v7928_v31  ;;  %7669 = vmatmul.msk.bf16.gmra.mxu1 %vm820_vm0, %v7979_v51  ;;  %v1907_v31 = vmax.f32 %v11450_v17, %v1906_v43  ;;  %v11451_v51 = vmax.f32 %v8660_v44, %v8697_v52 }
 0x1a4   : > { %v1468_v26 = vmax.f32 %v1466_v48, %v1467_v33  ;;  %v3161_v1 = vmax.f32 %v3159_v11, %v3160_v29  ;;  %v1471_v47 = vmax.f32 %v1469_v63, %v1470_v19  ;;  %v3164_v25 = vmax.f32 %v3162_v6, %v3163_v58 }
 0x1a5   : > { %v11452_v11 = vmax.f32 %v8663_v45, %v8700_v61  ;;  %v2132_v52 = vadd.f32 %v9066_v20, %v1907_v31  ;;  %v3824_v45 = vadd.f32 %v9069_v16, %v3600_v46 }
 0x1a6   : > { %v1911_v2 = vsel %vm1230_vm1, %v1468_v26, -inf  ;;  %v3604_v14 = vsel %vm1230_vm1, %v3161_v1, -inf  ;;  %v1472_v55 = vrot.slane %v1471_v47, 2  ;;  %v3165_v42 = vrot.slane %v3164_v25, 2 }
 0x1a7   : > { %v1912_v48 = vmax.f32 %v11451_v51, %v1911_v2  ;;  %v3605_v63 = vmax.f32 %v11452_v11, %v3604_v14  ;;  %v2073_v14 = vrot.slane %v9066_v20, 2 }
 0x1a8   : > { %v1473_v6 = vmax.f32 %v1471_v47, %v1472_v55  ;;  %v3166_v33 = vmax.f32 %v3164_v25, %v3165_v42  ;;  %v1067_v29 = vpop.f32.mrf.mxu0  ;;  %v2761_v19 = vpop.f32.mrf.mxu1 }
 0x1a9   : > { %v1476_v58 = vsel %vm1230_vm1, %v1067_v29, -inf  ;;  %v3169_v26 = vsel %vm1230_vm1, %v2761_v19, -inf  ;;  %v2133_v1 = vadd.f32 %v2072_v32, %v1912_v48  ;;  %v3825_v24 = vadd.f32 %v3764_v0, %v3605_v63  ;;  %v11455_v29 = vld [vmem:[#allocation3_spill] sm:$0xff] }
 0x1aa   : > { %v1474_v18 = vrot.slane %v1473_v6, 1  ;;  %v3167_v43 = vrot.slane %v3166_v33, 1  ;;  %v1477_v17 = vrot.slane %v1476_v58, 4  ;;  %v3170_v44 = vrot.slane %v3169_v26, 4 }
 0x1ab   : > { %v3888_v2 = vrot.slane %v2133_v1, 7  ;;  %v3987_v61 = vrot.slane %v3825_v24, 7  ;;  %v3765_v32 = vrot.slane %v9069_v16, 2  ;;  %v11453_v63 = vmax.f32 %v8686_v3, %v8718_v21  ;;  %v7980_v1 = vld [vmem:[%s8477_s16 + $0x260] sm:$0xff] }
 0x1ac   : > { %v1475_v42 = vmax.f32 %v1473_v6, %v1474_v18  ;;  %v3168_v55 = vmax.f32 %v3166_v33, %v3167_v43  ;;  %v1478_v47 = vmax.f32 %v1476_v58, %v1477_v17  ;;  %v3171_v25 = vmax.f32 %v3169_v26, %v3170_v44  ;;  %v11454_v33 = vld [vmem:[#allocation2_spill] sm:$0xff]  ;;  %v7929_v26 = vld [vmem:[%s8477_s16 + $0xd0] sm:$0xff] }
 0x1ad   : > { %v3890_v0 = vsel %vm3889_vm2, %v3888_v2, %v2132_v52  ;;  %v3988_v51 = vsel %vm3889_vm2, %v3987_v61, %v3824_v45  ;;  %v11456_v19 = vmax.f32 %v11454_v33, %v11455_v29 }
 0x1ae   : > { %v1916_v31 = vsel %vm1230_vm1, %v1475_v42, -inf  ;;  %v3609_v48 = vsel %vm1230_vm1, %v3168_v55, -inf  ;;  %v1479_v46 = vrot.slane %v1478_v47, 2  ;;  %v3172_v11 = vrot.slane %v3171_v25, 2 }
 0x1af   : > { %v1917_v6 = vmax.f32 %v11453_v63, %v1916_v31  ;;  %v3610_v58 = vmax.f32 %v11456_v19, %v3609_v48 }
 0x1b0   : > { %v1480_v24 = vmax.f32 %v1478_v47, %v1479_v46  ;;  %v3173_v18 = vmax.f32 %v3171_v25, %v3172_v11  ;;  %v1070_v43 = vpop.f32.mrf.mxu0  ;;  %v2764_v17 = vpop.f32.mrf.mxu1 }
 0x1b1   : > { %v2134_v44 = vadd.f32 %v2073_v14, %v1917_v6  ;;  %v3826_v52 = vadd.f32 %v3765_v32, %v3610_v58  ;;  %v1483_v2 = vsel %vm1230_vm1, %v1070_v43, -inf  ;;  %v3176_v45 = vsel %vm1230_vm1, %v2764_v17, -inf }
 0x1b2   : > { %v1481_v61 = vrot.slane %v1480_v24, 1  ;;  %v3174_v3 = vrot.slane %v3173_v18, 1  ;;  %v1484_v21 = vrot.slane %v1483_v2, 4  ;;  %v3177_v42 = vrot.slane %v3176_v45, 4 }
 0x1b3   : > { %v3891_v55 = vrot.slane %v2134_v44, 6  ;;  %v3989_v31 = vrot.slane %v3826_v52, 6  ;;  %7320 = vmatmul.msk.bf16.gmra.mxu0 %vm820_vm0, %v7929_v26  ;;  %7670 = vmatmul.msk.bf16.gmra.mxu1 %vm820_vm0, %v7980_v1  ;;  %v2074_v14 = vrot.slane %v9066_v20, 3  ;;  %v3766_v32 = vrot.slane %v9069_v16, 3 }
 0x1b4   : > { %v1482_v47 = vmax.f32 %v1480_v24, %v1481_v61  ;;  %v3175_v25 = vmax.f32 %v3173_v18, %v3174_v3  ;;  %v1485_v48 = vmax.f32 %v1483_v2, %v1484_v21  ;;  %v3178_v46 = vmax.f32 %v3176_v45, %v3177_v42 }
 0x1b5   : > { %v3893_v11 = vsel %vm3892_vm3, %v3891_v55, %v3890_v0  ;;  %v3990_v63 = vsel %vm3892_vm3, %v3989_v31, %v3988_v51  ;;  %v11457_v58 = vmax.f32 %v8694_v12, %v8742_v28  ;;  %v11458_v1 = vmax.f32 %v8713_v8, %v8745_v35 }
 0x1b6   : > { %v1921_v6 = vsel %vm1230_vm1, %v1482_v47, -inf  ;;  %v3614_v33 = vsel %vm1230_vm1, %v3175_v25, -inf  ;;  %v1486_v29 = vrot.slane %v1485_v48, 2  ;;  %v3179_v19 = vrot.slane %v3178_v46, 2 }
 0x1b7   : > { %v1922_v26 = vmax.f32 %v11457_v58, %v1921_v6  ;;  %v3615_v24 = vmax.f32 %v11458_v1, %v3614_v33  ;;  %v2075_v31 = vrot.slane %v9066_v20, 4  ;;  %v3767_v47 = vrot.slane %v9069_v16, 4  ;;  %v7930_v1 = vld [vmem:[%s8477_s16 + $0xd8] sm:$0xff] }
 0x1b8   : > { %v1487_v18 = vmax.f32 %v1485_v48, %v1486_v29  ;;  %v3180_v43 = vmax.f32 %v3178_v46, %v3179_v19  ;;  %v1072_v17 = vpop.f32.mrf.mxu0  ;;  %v2766_v0 = vpop.f32.mrf.mxu1  ;;  %v11459_v33 = vmax.f32 %v8734_v40, %v8764_v59  ;;  %v11460_v19 = vld [vmem:[#allocation6_spill] sm:$0xff] }
 0x1b9   : > { %v2135_v51 = vadd.f32 %v2074_v14, %v1922_v26  ;;  %v3827_v44 = vadd.f32 %v3766_v32, %v3615_v24  ;;  %v1490_v52 = vsel %vm1230_vm1, %v1072_v17, -inf  ;;  %v3183_v2 = vsel %vm1230_vm1, %v2766_v0, -inf  ;;  %v7981_v24 = vld [vmem:[%s8477_s16 + $0x268] sm:$0xff] }
 0x1ba   : > { %v1488_v45 = vrot.slane %v1487_v18, 1  ;;  %v3181_v61 = vrot.slane %v3180_v43, 1  ;;  %v1491_v3 = vrot.slane %v1490_v52, 4  ;;  %v3184_v12 = vrot.slane %v3183_v2, 4 }
 0x1bb   : > { %v3894_v28 = vrot.slane %v2135_v51, 5  ;;  %v3991_v21 = vrot.slane %v3827_v44, 5  ;;  %v11461_v58 = vmax.f32 %v8737_v10, %v11460_v19  ;;  %v11466_v19 = vld [vmem:[#allocation10_spill] sm:$0xff] }
 0x1bc   : > { %v1489_v8 = vmax.f32 %v1487_v18, %v1488_v45  ;;  %v3182_v35 = vmax.f32 %v3180_v43, %v3181_v61  ;;  %v1492_v42 = vmax.f32 %v1490_v52, %v1491_v3  ;;  %v3185_v55 = vmax.f32 %v3183_v2, %v3184_v12 }
 0x1bd   : > { %v3896_v25 = vsel %vm3895_vm4, %v3894_v28, %v3893_v11  ;;  %v3992_v48 = vsel %vm3895_vm4, %v3991_v21, %v3990_v63  ;;  %v3768_v21 = vrot.slane %v9069_v16, 5 }
 0x1be   : > { %v1926_v46 = vsel %vm1230_vm1, %v1489_v8, -inf  ;;  %v3619_v14 = vsel %vm1230_vm1, %v3182_v35, -inf  ;;  %v1493_v32 = vrot.slane %v1492_v42, 2  ;;  %v3186_v6 = vrot.slane %v3185_v55, 2 }
 0x1bf   : > { %v1927_v29 = vmax.f32 %v11459_v33, %v1926_v46  ;;  %v3620_v26 = vmax.f32 %v11461_v58, %v3619_v14  ;;  %v2076_v8 = vrot.slane %v9066_v20, 5  ;;  %v11462_v14 = vld [vmem:[#allocation4_spill] sm:$0xff] }
 0x1c0   : > { %v1494_v18 = vmax.f32 %v1492_v42, %v1493_v32  ;;  %v3187_v11 = vmax.f32 %v3185_v55, %v3186_v6  ;;  %v1075_v43 = vpop.f32.mrf.mxu0  ;;  %v2769_v63 = vpop.f32.mrf.mxu1  ;;  %v11463_v32 = vld [vmem:[#allocation9_spill] sm:$0xff] }
 0x1c1   : > { %v2136_v17 = vadd.f32 %v2075_v31, %v1927_v29  ;;  %v3828_v0 = vadd.f32 %v3767_v47, %v3620_v26  ;;  %v1497_v51 = vsel %vm1230_vm1, %v1075_v43, -inf  ;;  %v3190_v44 = vsel %vm1230_vm1, %v2769_v63, -inf  ;;  %v11465_v29 = vld [vmem:[#allocation5_spill] sm:$0xff] }
 0x1c2   : > { %v1495_v52 = vrot.slane %v1494_v18, 1  ;;  %v3188_v40 = vrot.slane %v3187_v11, 1  ;;  %v1498_v59 = vrot.slane %v1497_v51, 4  ;;  %v3191_v2 = vrot.slane %v3190_v44, 4 }
 0x1c3   : > { %v3897_v45 = vrot.slane %v2136_v17, 4  ;;  %v3993_v10 = vrot.slane %v3828_v0, 4  ;;  %7321 = vmatmul.msk.bf16.gmra.mxu0 %vm820_vm0, %v7930_v1  ;;  %7671 = vmatmul.msk.bf16.gmra.mxu1 %vm820_vm0, %v7981_v24  ;;  %v11464_v6 = vmax.f32 %v11462_v14, %v11463_v32  ;;  %v11467_v58 = vmax.f32 %v11465_v29, %v11466_v19 }
 0x1c4   : > { %v1496_v61 = vmax.f32 %v1494_v18, %v1495_v52  ;;  %v3189_v3 = vmax.f32 %v3187_v11, %v3188_v40  ;;  %v1499_v12 = vmax.f32 %v1497_v51, %v1498_v59  ;;  %v3192_v28 = vmax.f32 %v3190_v44, %v3191_v2 }
 0x1c5   : > { %v3899_v35 = vsel %vm3898_vm5, %v3897_v45, %v3896_v25  ;;  %v3994_v42 = vsel %vm3898_vm5, %v3993_v10, %v3992_v48 }
 0x1c6   : > { %v1931_v55 = vsel %vm1230_vm1, %v1496_v61, -inf  ;;  %v3624_v31 = vsel %vm1230_vm1, %v3189_v3, -inf  ;;  %v1500_v47 = vrot.slane %v1499_v12, 2  ;;  %v3193_v46 = vrot.slane %v3192_v28, 2 }
 0x1c7   : > { %v1932_v33 = vmax.f32 %v11464_v6, %v1931_v55  ;;  %v3625_v26 = vmax.f32 %v11467_v58, %v3624_v31  ;;  %v2077_v61 = vrot.slane %v9066_v20, 6  ;;  %v11471_v6 = vld [vmem:[#allocation8_spill] sm:$0xff]  ;;  %v7931_v58 = vld [vmem:[%s8477_s16 + $0xe0] sm:$0xff] }
 0x1c8   : > { %v1501_v1 = vmax.f32 %v1499_v12, %v1500_v47  ;;  %v3194_v24 = vmax.f32 %v3192_v28, %v3193_v46  ;;  %v1077_v18 = vpop.f32.mrf.mxu0  ;;  %v2771_v25 = vpop.f32.mrf.mxu1  ;;  %v3769_v12 = vrot.slane %v9069_v16, 6  ;;  %v11468_v47 = vld [vmem:[#allocation7_spill] sm:$0xff] }
 0x1c9   : > { %v3829_v48 = vadd.f32 %v3768_v21, %v3625_v26  ;;  %v1504_v11 = vsel %vm1230_vm1, %v1077_v18, -inf  ;;  %v3197_v43 = vsel %vm1230_vm1, %v2771_v25, -inf  ;;  %v2137_v63 = vadd.f32 %v2076_v8, %v1932_v33  ;;  %v11469_v46 = vld [vmem:[#allocation11_spill] sm:$0xff]  ;;  %v11472_v33 = vld [vmem:[#allocation12_spill] sm:$0xff] }
 0x1ca   : > { %v1502_v17 = vrot.slane %v1501_v1, 1  ;;  %v3195_v0 = vrot.slane %v3194_v24, 1  ;;  %v1505_v51 = vrot.slane %v1504_v11, 4  ;;  %v3198_v44 = vrot.slane %v3197_v43, 4 }
 0x1cb   : > { %v3900_v52 = vrot.slane %v2137_v63, 3  ;;  %v3995_v40 = vrot.slane %v3829_v48, 3  ;;  %v11470_v14 = vmax.f32 %v11468_v47, %v11469_v46  ;;  %v11473_v29 = vmax.f32 %v11471_v6, %v11472_v33 }
 0x1cc   : > { %v1503_v59 = vmax.f32 %v1501_v1, %v1502_v17  ;;  %v3196_v2 = vmax.f32 %v3194_v24, %v3195_v0  ;;  %v1506_v45 = vmax.f32 %v1504_v11, %v1505_v51  ;;  %v3199_v10 = vmax.f32 %v3197_v43, %v3198_v44 }
 0x1cd   : > { %v3902_v3 = vsel %vm3901_vm6, %v3900_v52, %v3899_v35  ;;  %v3996_v28 = vsel %vm3901_vm6, %v3995_v40, %v3994_v42  ;;  %v7982_v35 = vld [vmem:[%s8477_s16 + $0x270] sm:$0xff]  ;;  %v11474_v47 = vmax.f32 %v8806_v9, %v8839_v13 }
 0x1ce   : > { %v1936_v21 = vsel %vm1230_vm1, %v1503_v59, -inf  ;;  %v3629_v8 = vsel %vm1230_vm1, %v3196_v2, -inf  ;;  %v1507_v55 = vrot.slane %v1506_v45, 2  ;;  %v3200_v31 = vrot.slane %v3199_v10, 2 }
 0x1cf   : > { %v1937_v32 = vmax.f32 %v11470_v14, %v1936_v21  ;;  %v3630_v19 = vmax.f32 %v11473_v29, %v3629_v8  ;;  %v11475_v14 = vmax.f32 %v8825_v62, %v8842_v57 }
 0x1d0   : > { %v1508_v26 = vmax.f32 %v1506_v45, %v1507_v55  ;;  %v3201_v1 = vmax.f32 %v3199_v10, %v3200_v31  ;;  %v1080_v24 = vpop.f32.mrf.mxu0  ;;  %v2774_v42 = vpop.f32.mrf.mxu1  ;;  %v2078_v45 = vrot.slane %v9066_v20, 7 }
 0x1d1   : > { %v1511_v18 = vsel %vm1230_vm1, %v1080_v24, -inf  ;;  %v3204_v25 = vsel %vm1230_vm1, %v2774_v42, -inf  ;;  %v2138_v48 = vadd.f32 %v2077_v61, %v1937_v32  ;;  %v3830_v11 = vadd.f32 %v3769_v12, %v3630_v19 }
 0x1d2   : > { %v1509_v43 = vrot.slane %v1508_v26, 1  ;;  %v3202_v63 = vrot.slane %v3201_v1, 1  ;;  %v1512_v17 = vrot.slane %v1511_v18, 4  ;;  %v3205_v0 = vrot.slane %v3204_v25, 4 }
 0x1d3   : > { %7322 = vmatmul.msk.bf16.gmra.mxu0 %vm820_vm0, %v7931_v58  ;;  %7672 = vmatmul.msk.bf16.gmra.mxu1 %vm820_vm0, %v7982_v35  ;;  %v3903_v51 = vrot.slane %v2138_v48, 2  ;;  %v3997_v44 = vrot.slane %v3830_v11, 2  ;;  %v3770_v61 = vrot.slane %v9069_v16, 7 }
 0x1d4   : > { %v1510_v52 = vmax.f32 %v1508_v26, %v1509_v43  ;;  %v3203_v40 = vmax.f32 %v3201_v1, %v3202_v63  ;;  %v1513_v59 = vmax.f32 %v1511_v18, %v1512_v17  ;;  %v3206_v2 = vmax.f32 %v3204_v25, %v3205_v0  ;;  %v11478_v63 = vld [vmem:[#allocation19_spill] sm:$0xff] }
 0x1d5   : > { %v3905_v10 = vsel %vm3904_vm7, %v3903_v51, %v3902_v3  ;;  %v3998_v12 = vsel %vm3904_vm7, %v3997_v44, %v3996_v28  ;;  %v11479_v17 = vmax.f32 %v8849_v22, %v11478_v63  ;;  %v1222_v51 = vpop.f32.mrf.mxu3  ;;  %v2916_v44 = vpop.f32.mrf.mxu2 }
 0x1d6   : > { %v1941_v21 = vsel %vm1230_vm1, %v1510_v52, -inf  ;;  %v3634_v8 = vsel %vm1230_vm1, %v3203_v40, -inf  ;;  %v1514_v55 = vrot.slane %v1513_v59, 2  ;;  %v3207_v31 = vrot.slane %v3206_v2, 2  ;;  %v7932_v40 = vld [vmem:[%s8477_s16 + $0xe8] sm:$0xff] }
 0x1d7   : > { %v1942_v46 = vmax.f32 %v11474_v47, %v1941_v21  ;;  %v3635_v20 = vmax.f32 %v11475_v14, %v3634_v8  ;;  %v9207_v14 = vadd.f32 %v9058_v60, %v2916_v44 }
 0x1d8   : > { %v1515_v32 = vmax.f32 %v1513_v59, %v1514_v55  ;;  %v3208_v3 = vmax.f32 %v3206_v2, %v3207_v31  ;;  %v1082_v6 = vpop.f32.mrf.mxu0  ;;  %v2776_v16 = vpop.f32.mrf.mxu1  ;;  %v7983_v59 = vld [vmem:[%s8477_s16 + $0x278] sm:$0xff] }
 0x1d9   : > { %v1518_v28 = vsel %vm1230_vm1, %v1082_v6, -inf  ;;  %v3211_v33 = vsel %vm1230_vm1, %v2776_v16, -inf  ;;  %v2139_v29 = vadd.f32 %v2078_v45, %v1942_v46  ;;  %v3831_v19 = vadd.f32 %v3770_v61, %v3635_v20 }
 0x1da   : > { %v3209_v58 = vrot.slane %v3208_v3, 1  ;;  %v1519_v35 = vrot.slane %v1518_v28, 4  ;;  %v3212_v26 = vrot.slane %v3211_v33, 4  ;;  %v1516_v9 = vrot.slane %v1515_v32, 1 }
 0x1db   : > { %v3906_v13 = vrot.slane %v2139_v29, 1  ;;  %v3999_v62 = vrot.slane %v3831_v19, 1  ;;  %v9204_v46 = vadd.f32 %v9058_v60, %v1222_v51  ;;  %v11480_v60 = vld [vmem:[#allocation15_spill] sm:$0xff] }
 0x1dc   : > { %v3210_v57 = vmax.f32 %v3208_v3, %v3209_v58  ;;  %v1520_v1 = vmax.f32 %v1518_v28, %v1519_v35  ;;  %v3213_v24 = vmax.f32 %v3211_v33, %v3212_v26  ;;  %v1517_v43 = vmax.f32 %v1515_v32, %v1516_v9  ;;  %v11481_v35 = vld [vmem:[#allocation18_spill] sm:$0xff] }
 0x1dd   : > { %v9187_v42 = vsel %vm3907_vm8, %v3906_v13, %v3905_v10  ;;  %v9190_v18 = vsel %vm3907_vm8, %v3999_v62, %v3998_v12  ;;  %v2079_v16 = vrot.slane %v9204_v46, 1  ;;  %v3771_v28 = vrot.slane %v9207_v14, 1 }
 0x1de   : > { %11476 = vst [vmem:[#allocation2_spill] sm:$0xff] %v9187_v42  ;;  %v3639_v25 = vsel %vm1230_vm1, %v3210_v57, -inf  ;;  %v1521_v48 = vrot.slane %v1520_v1, 2  ;;  %v3214_v11 = vrot.slane %v3213_v24, 2  ;;  %v4049_v52 = vsel %vm1230_vm1, %v9187_v42, 0.0  ;;  %v11484_v57 = vld [vmem:[#allocation22_spill] sm:$0xff] }
 0x1df   : > { %11477 = vst [vmem:[#allocation3_spill] sm:$0xff] %v9190_v18  ;;  %v3640_v0 = vmax.f32 %v11479_v17, %v3639_v25  ;;  %4050 = vadd.xlane.f32.xlu0 %v4049_v52  ;;  %v1946_v47 = vsel %vm1230_vm1, %v1517_v43, -inf  ;;  %v11482_v26 = vmax.f32 %v11480_v60, %v11481_v35  ;;  %v11483_v13 = vmax.f32 %v8860_v39, %v8890_v5 }
 0x1e0   : > { %v1522_v2 = vmax.f32 %v1520_v1, %v1521_v48  ;;  %v3215_v45 = vmax.f32 %v3213_v24, %v3214_v11  ;;  %v1085_v10 = vpop.f32.mrf.mxu0  ;;  %v2779_v61 = vpop.f32.mrf.mxu1  ;;  %v11485_v1 = vmax.f32 %v8879_v27, %v11484_v57 }
 0x1e1   : > { %v1525_v12 = vsel %vm1230_vm1, %v1085_v10, -inf  ;;  %v3218_v21 = vsel %vm1230_vm1, %v2779_v61, -inf  ;;  %v1947_v9 = vmax.f32 %v11482_v26, %v1946_v47  ;;  %v3832_v27 = vadd.f32 %v9207_v14, %v3640_v0 }
 0x1e2   : > { %v1523_v8 = vrot.slane %v1522_v2, 1  ;;  %v3216_v55 = vrot.slane %v3215_v45, 1  ;;  %v1526_v22 = vrot.slane %v1525_v12, 4  ;;  %v3219_v31 = vrot.slane %v3218_v21, 4 }
 0x1e3   : > { %7323 = vmatmul.msk.bf16.gmra.mxu0 %vm820_vm0, %v7932_v40  ;;  %7673 = vmatmul.msk.bf16.gmra.mxu1 %vm820_vm0, %v7983_v59  ;;  %v2140_v39 = vadd.f32 %v9204_v46, %v1947_v9 }
 0x1e4   : > { %v1524_v20 = vmax.f32 %v1522_v2, %v1523_v8  ;;  %v3217_v32 = vmax.f32 %v3215_v45, %v3216_v55  ;;  %v1527_v3 = vmax.f32 %v1525_v12, %v1526_v22  ;;  %v3220_v6 = vmax.f32 %v3218_v21, %v3219_v31 }
 0x1e5   : > { %v2080_v8 = vrot.slane %v9204_v46, 2  ;;  %v3772_v55 = vrot.slane %v9207_v14, 2 }
 0x1e6   : > { %v1951_v33 = vsel %vm1230_vm1, %v1524_v20, -inf  ;;  %v3644_v29 = vsel %vm1230_vm1, %v3217_v32, -inf  ;;  %v1528_v19 = vrot.slane %v1527_v3, 2  ;;  %v3221_v58 = vrot.slane %v3220_v6, 2 }
 0x1e7   : > { %v1952_v62 = vmax.f32 %v11483_v13, %v1951_v33  ;;  %v3645_v24 = vmax.f32 %v11485_v1, %v3644_v29  ;;  %v7933_v29 = vld [vmem:[%s8477_s16 + $0xf0] sm:$0xff] }
 0x1e8   : > { %v1529_v25 = vmax.f32 %v1527_v3, %v1528_v19  ;;  %v3222_v48 = vmax.f32 %v3220_v6, %v3221_v58  ;;  %v1087_v11 = vpop.f32.mrf.mxu0  ;;  %v2781_v43 = vpop.f32.mrf.mxu1  ;;  %v11486_v3 = vmax.f32 %v8907_v56, %v8914_v7  ;;  %v7984_v19 = vld [vmem:[%s8477_s16 + $0x280] sm:$0xff] }
 0x1e9   : > { %v1532_v63 = vsel %vm1230_vm1, %v1087_v11, -inf  ;;  %v3225_v17 = vsel %vm1230_vm1, %v2781_v43, -inf  ;;  %v2141_v51 = vadd.f32 %v2079_v16, %v1952_v62  ;;  %v3833_v44 = vadd.f32 %v3771_v28, %v3645_v24  ;;  %v11487_v16 = vld [vmem:[#allocation25_spill] sm:$0xff] }
 0x1ea   : > { %v1530_v52 = vrot.slane %v1529_v25, 1  ;;  %v3223_v40 = vrot.slane %v3222_v48, 1  ;;  %v1533_v59 = vrot.slane %v1532_v63, 4  ;;  %v3226_v2 = vrot.slane %v3225_v17, 4 }
 0x1eb   : > { %v3909_v5 = vrot.slane %v2141_v51, 7  ;;  %v4001_v45 = vrot.slane %v3833_v44, 7  ;;  %v11488_v28 = vmax.f32 %v8904_v36, %v11487_v16  ;;  %v3773_v51 = vrot.slane %v9207_v14, 3 }
 0x1ec   : > { %v1531_v10 = vmax.f32 %v1529_v25, %v1530_v52  ;;  %v3224_v61 = vmax.f32 %v3222_v48, %v3223_v40  ;;  %v1534_v12 = vmax.f32 %v1532_v63, %v1533_v59  ;;  %v3227_v21 = vmax.f32 %v3225_v17, %v3226_v2 }
 0x1ed   : > { %v3910_v22 = vsel %vm3889_vm2, %v3909_v5, %v2140_v39  ;;  %v4002_v31 = vsel %vm3889_vm2, %v4001_v45, %v3832_v27  ;;  %v2081_v17 = vrot.slane %v9204_v46, 3  ;;  %v11489_v5 = vmax.f32 %v8937_v49, %v8940_v54  ;;  %v11490_v45 = vld [vmem:[#allocation26_spill] sm:$0xff] }
 0x1ee   : > { %v1956_v47 = vsel %vm1230_vm1, %v1531_v10, -inf  ;;  %v3649_v20 = vsel %vm1230_vm1, %v3224_v61, -inf  ;;  %v1535_v0 = vrot.slane %v1534_v12, 2  ;;  %v3228_v32 = vrot.slane %v3227_v21, 2 }
 0x1ef   : > { %v1957_v6 = vmax.f32 %v11486_v3, %v1956_v47  ;;  %v3650_v33 = vmax.f32 %v11488_v28, %v3649_v20  ;;  %v11491_v10 = vmax.f32 %v8932_v41, %v11490_v45  ;;  %v2083_v45 = vrot.slane %v9204_v46, 5 }
 0x1f0   : > { %v1536_v58 = vmax.f32 %v1534_v12, %v1535_v0  ;;  %v3229_v60 = vmax.f32 %v3227_v21, %v3228_v32  ;;  %v1090_v35 = vpop.f32.mrf.mxu0  ;;  %v2784_v26 = vpop.f32.mrf.mxu1 }
 0x1f1   : > { %v2142_v9 = vadd.f32 %v2080_v8, %v1957_v6  ;;  %v3834_v13 = vadd.f32 %v3772_v55, %v3650_v33  ;;  %v1539_v62 = vsel %vm1230_vm1, %v1090_v35, -inf  ;;  %v3232_v57 = vsel %vm1230_vm1, %v2784_v26, -inf }
 0x1f2   : > { %v1537_v1 = vrot.slane %v1536_v58, 1  ;;  %v3230_v24 = vrot.slane %v3229_v60, 1  ;;  %v1540_v56 = vrot.slane %v1539_v62, 4  ;;  %v3233_v7 = vrot.slane %v3232_v57, 4 }
 0x1f3   : > { %v3911_v25 = vrot.slane %v2142_v9, 6  ;;  %v4003_v48 = vrot.slane %v3834_v13, 6  ;;  %7324 = vmatmul.msk.bf16.gmra.mxu0 %vm820_vm0, %v7933_v29  ;;  %7674 = vmatmul.msk.bf16.gmra.mxu1 %vm820_vm0, %v7984_v19  ;;  %v2082_v29 = vrot.slane %v9204_v46, 4  ;;  %v3774_v19 = vrot.slane %v9207_v14, 4 }
 0x1f4   : > { %v1538_v36 = vmax.f32 %v1536_v58, %v1537_v1  ;;  %v3231_v11 = vmax.f32 %v3229_v60, %v3230_v24  ;;  %v1541_v43 = vmax.f32 %v1539_v62, %v1540_v56  ;;  %v3234_v63 = vmax.f32 %v3232_v57, %v3233_v7  ;;  %v11493_v1 = vld [vmem:[#allocation29_spill] sm:$0xff] }
 0x1f5   : > { %v3912_v44 = vsel %vm3892_vm3, %v3911_v25, %v3910_v22  ;;  %v4004_v52 = vsel %vm3892_vm3, %v4003_v48, %v4002_v31  ;;  %v11492_v62 = vmax.f32 %v8963_v50, %v8966_v53  ;;  %v11494_v24 = vmax.f32 %v8960_v15, %v11493_v1  ;;  %v7934_v7 = vld [vmem:[%s8477_s16 + $0xf8] sm:$0xff]  ;;  %v7985_v25 = vld [vmem:[%s8477_s16 + $0x288] sm:$0xff] }
 0x1f6   : > { %v1961_v40 = vsel %vm1230_vm1, %v1538_v36, -inf  ;;  %v3654_v59 = vsel %vm1230_vm1, %v3231_v11, -inf  ;;  %v1542_v2 = vrot.slane %v1541_v43, 2  ;;  %v3235_v39 = vrot.slane %v3234_v63, 2 }
 0x1f7   : > { %v1962_v27 = vmax.f32 %v11489_v5, %v1961_v40  ;;  %v3655_v61 = vmax.f32 %v11491_v10, %v3654_v59  ;;  %v3775_v10 = vrot.slane %v9207_v14, 5 }
 0x1f8   : > { %v1543_v12 = vmax.f32 %v1541_v43, %v1542_v2  ;;  %v3236_v21 = vmax.f32 %v3234_v63, %v3235_v39  ;;  %v1092_v8 = vpop.f32.mrf.mxu0  ;;  %v2786_v55 = vpop.f32.mrf.mxu1 }
 0x1f9   : > { %v2143_v22 = vadd.f32 %v2081_v17, %v1962_v27  ;;  %v3835_v31 = vadd.f32 %v3773_v51, %v3655_v61  ;;  %v1546_v47 = vsel %vm1230_vm1, %v1092_v8, -inf  ;;  %v3239_v20 = vsel %vm1230_vm1, %v2786_v55, -inf }
 0x1fa   : > { %v1544_v0 = vrot.slane %v1543_v12, 1  ;;  %v3237_v32 = vrot.slane %v3236_v21, 1  ;;  %v1547_v3 = vrot.slane %v1546_v47, 4  ;;  %v3240_v6 = vrot.slane %v3239_v20, 4 }
 0x1fb   : > { %v3913_v49 = vrot.slane %v2143_v22, 5  ;;  %v4005_v54 = vrot.slane %v3835_v31, 5  ;;  %v11495_v31 = vmax.f32 %v8989_v4, %v8992_v30 }
 0x1fc   : > { %v1545_v41 = vmax.f32 %v1543_v12, %v1544_v0  ;;  %v3238_v16 = vmax.f32 %v3236_v21, %v3237_v32  ;;  %v1548_v28 = vmax.f32 %v1546_v47, %v1547_v3  ;;  %v3241_v33 = vmax.f32 %v3239_v20, %v3240_v6 }
 0x1fd   : > { %v3914_v58 = vsel %vm3895_vm4, %v3913_v49, %v3912_v44  ;;  %v4006_v60 = vsel %vm3895_vm4, %v4005_v54, %v4004_v52  ;;  %v11496_v20 = vmax.f32 %v8984_v23, %v8995_v37 }
 0x1fe   : > { %v1966_v35 = vsel %vm1230_vm1, %v1545_v41, -inf  ;;  %v3659_v26 = vsel %vm1230_vm1, %v3238_v16, -inf  ;;  %v1549_v9 = vrot.slane %v1548_v28, 2  ;;  %v3242_v13 = vrot.slane %v3241_v33, 2 }
 0x1ff   : > { %v1967_v57 = vmax.f32 %v11492_v62, %v1966_v35  ;;  %v3660_v56 = vmax.f32 %v11494_v24, %v3659_v26  ;;  %v2084_v26 = vrot.slane %v9204_v46, 6 }
 0x200   : > { %v1550_v48 = vmax.f32 %v1548_v28, %v1549_v9  ;;  %v3243_v36 = vmax.f32 %v3241_v33, %v3242_v13  ;;  %v1095_v11 = vpop.f32.mrf.mxu0  ;;  %v2789_v43 = vpop.f32.mrf.mxu1  ;;  %v3776_v13 = vrot.slane %v9207_v14, 6 }
 0x201   : > { %v2144_v63 = vadd.f32 %v2082_v29, %v1967_v57  ;;  %v3836_v17 = vadd.f32 %v3774_v19, %v3660_v56  ;;  %v1553_v51 = vsel %vm1230_vm1, %v1095_v11, -inf  ;;  %v3246_v44 = vsel %vm1230_vm1, %v2789_v43, -inf }
 0x202   : > { %v1551_v52 = vrot.slane %v1550_v48, 1  ;;  %v3244_v40 = vrot.slane %v3243_v36, 1  ;;  %v1554_v53 = vrot.slane %v1553_v51, 4  ;;  %v3247_v50 = vrot.slane %v3246_v44, 4 }
 0x203   : > { %v3915_v59 = vrot.slane %v2144_v63, 4  ;;  %v4007_v2 = vrot.slane %v3836_v17, 4  ;;  %7325 = vmatmul.msk.bf16.gmra.mxu0 %vm820_vm0, %v7934_v7  ;;  %7675 = vmatmul.msk.bf16.gmra.mxu1 %vm820_vm0, %v7985_v25  ;;  %v11497_v7 = vmax.f32 %v9011_v38, %v9014_v34  ;;  %v7935_v63 = vld [vmem:[%s8477_s16 + $0x100] sm:$0xff]  ;;  %v7986_v17 = vld [vmem:[%s8477_s16 + $0x290] sm:$0xff] }
 0x204   : > { %v1552_v15 = vmax.f32 %v1550_v48, %v1551_v52  ;;  %v3245_v39 = vmax.f32 %v3243_v36, %v3244_v40  ;;  %v1555_v5 = vmax.f32 %v1553_v51, %v1554_v53  ;;  %v3248_v27 = vmax.f32 %v3246_v44, %v3247_v50  ;;  %v11498_v48 = vld [vmem:[#allocation32_spill] sm:$0xff]  ;;  %v11499_v36 = vld [vmem:[#allocation35_spill] sm:$0xff] }
 0x205   : > { %v3916_v61 = vsel %vm3898_vm5, %v3915_v59, %v3914_v58  ;;  %v4008_v12 = vsel %vm3898_vm5, %v4007_v2, %v4006_v60  ;;  %v11500_v11 = vmax.f32 %v11498_v48, %v11499_v36 }
 0x206   : > { %v1971_v21 = vsel %vm1230_vm1, %v1552_v15, -inf  ;;  %v3664_v8 = vsel %vm1230_vm1, %v3245_v39, -inf  ;;  %v1556_v55 = vrot.slane %v1555_v5, 2  ;;  %v3249_v22 = vrot.slane %v3248_v27, 2 }
 0x207   : > { %v1972_v47 = vmax.f32 %v11495_v31, %v1971_v21  ;;  %v3665_v0 = vmax.f32 %v11496_v20, %v3664_v8  ;;  %v11501_v21 = vld [vmem:[#allocation37_spill] sm:$0xff]  ;;  %v11502_v8 = vld [vmem:[#allocation40_spill] sm:$0xff] }
 0x208   : > { %v1557_v32 = vmax.f32 %v1555_v5, %v1556_v55  ;;  %v3250_v3 = vmax.f32 %v3248_v27, %v3249_v22  ;;  %v1097_v6 = vpop.f32.mrf.mxu0  ;;  %v2791_v49 = vpop.f32.mrf.mxu1  ;;  %v2085_v5 = vrot.slane %v9204_v46, 7  ;;  %v11503_v55 = vmax.f32 %v11501_v21, %v11502_v8  ;;  %v11504_v31 = vld [vmem:[#allocation36_spill] sm:$0xff] }
 0x209   : > { %v2145_v54 = vadd.f32 %v2083_v45, %v1972_v47  ;;  %v3837_v41 = vadd.f32 %v3775_v10, %v3665_v0  ;;  %v1560_v16 = vsel %vm1230_vm1, %v1097_v6, -inf  ;;  %v3253_v28 = vsel %vm1230_vm1, %v2791_v49, -inf  ;;  %v11505_v47 = vld [vmem:[#allocation41_spill] sm:$0xff] }
 0x20a   : > { %v1558_v33 = vrot.slane %v1557_v32, 1  ;;  %v3251_v29 = vrot.slane %v3250_v3, 1  ;;  %v1561_v19 = vrot.slane %v1560_v16, 4  ;;  %v3254_v58 = vrot.slane %v3253_v28, 4 }
 0x20b   : > { %v3917_v4 = vrot.slane %v2145_v54, 3  ;;  %v4009_v30 = vrot.slane %v3837_v41, 3  ;;  %v3777_v45 = vrot.slane %v9207_v14, 7  ;;  %v11506_v20 = vmax.f32 %v11504_v31, %v11505_v47 }
 0x20c   : > { %v1559_v23 = vmax.f32 %v1557_v32, %v1558_v33  ;;  %v3252_v37 = vmax.f32 %v3250_v3, %v3251_v29  ;;  %v1562_v60 = vmax.f32 %v1560_v16, %v1561_v19  ;;  %v3255_v35 = vmax.f32 %v3253_v28, %v3254_v58  ;;  %v7936_v28 = vld [vmem:[%s8477_s16 + $0x108] sm:$0xff]  ;;  %v7987_v33 = vld [vmem:[%s8477_s16 + $0x298] sm:$0xff] }
 0x20d   : > { %v3918_v9 = vsel %vm3901_vm6, %v3917_v4, %v3916_v61  ;;  %v4010_v62 = vsel %vm3901_vm6, %v4009_v30, %v4008_v12  ;;  %v7937_v30 = vld [vmem:[%s8477_s16 + $0x110] sm:$0xff] }
 0x20e   : > { %v1976_v57 = vsel %vm1230_vm1, %v1559_v23, -inf  ;;  %v3669_v1 = vsel %vm1230_vm1, %v3252_v37, -inf  ;;  %v1563_v24 = vrot.slane %v1562_v60, 2  ;;  %v3256_v56 = vrot.slane %v3255_v35, 2  ;;  %v7988_v23 = vld [vmem:[%s8477_s16 + $0x2a0] sm:$0xff] }
 0x20f   : > { %v1977_v25 = vmax.f32 %v11497_v7, %v1976_v57  ;;  %v3670_v43 = vmax.f32 %v11500_v11, %v3669_v1  ;;  %v7938_v1 = vld [vmem:[%s8477_s16 + $0x118] sm:$0xff] }
 0x210   : > { %v1564_v51 = vmax.f32 %v1562_v60, %v1563_v24  ;;  %v3257_v44 = vmax.f32 %v3255_v35, %v3256_v56  ;;  %v9306_v52 = vpop.f32.mrf.mxu0  ;;  %v9308_v40 = vpop.f32.mrf.mxu1  ;;  %v7952_v35 = vld [vmem:[%s8477_s16 + $0x188] sm:$0xff] }
 0x211   : > { %v2146_v53 = vadd.f32 %v2084_v26, %v1977_v25  ;;  %v3838_v50 = vadd.f32 %v3776_v13, %v3670_v43  ;;  %7343 = vmatmul.msk.bf16.gmra.mxu3 %vm820_vm0, %v7952_v35  ;;  %v8380_v13 = vmov 32.0   ;;  %v7989_v24 = vld [vmem:[%s8477_s16 + $0x2a8] sm:$0xff] }
 0x212   : > { %v1565_v59 = vrot.slane %v1564_v51, 1  ;;  %v3258_v2 = vrot.slane %v3257_v44, 1  ;;  %8109 = vrcp.f32 %v8380_v13  ;;  %v11521_v13 = vld [vmem:[#allocation24_spill] sm:$0xff] }
 0x213   : > { %7326 = vmatmul.msk.bf16.gmra.mxu0 %vm820_vm0, %v7935_v63  ;;  %7676 = vmatmul.msk.bf16.gmra.mxu1 %vm820_vm0, %v7986_v17  ;;  %v3919_v38 = vrot.slane %v2146_v53, 2  ;;  %v4011_v34 = vrot.slane %v3838_v50, 2  ;;  %v7939_v17 = vld [vmem:[%s8477_s16 + $0x120] sm:$0xff]  ;;  %v11511_v50 = vld [vmem:[#allocation13_spill] sm:$0xff] }
 0x214   : > { %v1566_v15 = vmax.f32 %v1564_v51, %v1565_v59  ;;  %v3259_v39 = vmax.f32 %v3257_v44, %v3258_v2  ;;  %v7990_v51 = vld [vmem:[%s8477_s16 + $0x2b0] sm:$0xff]  ;;  %v1847_v59 = vsel %vm1230_vm1, %v11511_v50, -inf  ;;  %v11512_v2 = vld [vmem:[#allocation14_spill] sm:$0xff] }
 0x215   : > { %v3920_v27 = vsel %vm3904_vm7, %v3919_v38, %v3918_v9  ;;  %v4012_v10 = vsel %vm3904_vm7, %v4011_v34, %v4010_v62  ;;  %v8003_v62 = vld [vmem:[%s8477_s16 + $0x318] sm:$0xff]  ;;  %v3540_v38 = vsel %vm1230_vm1, %v11512_v2, -inf  ;;  %v11513_v34 = vld [vmem:[#allocation16_spill] sm:$0xff] }
 0x216   : > { %v1981_v61 = vsel %vm1230_vm1, %v1566_v15, -inf  ;;  %v3674_v12 = vsel %vm1230_vm1, %v3259_v39, -inf  ;;  %7693 = vmatmul.msk.bf16.gmra.mxu2 %vm820_vm0, %v8003_v62  ;;  %v1854_v15 = vsel %vm1230_vm1, %v11513_v34, -inf  ;;  %v3541_v21 = vrot.slane %v3540_v38, 4 }
 0x217   : > { %v1982_v22 = vmax.f32 %v11503_v55, %v1981_v61  ;;  %v3675_v46 = vmax.f32 %v11506_v20, %v3674_v12  ;;  %v11515_v61 = vld [vmem:[#allocation20_spill] sm:$0xff]  ;;  %v1855_v8 = vrot.slane %v1854_v15, 4  ;;  %v11516_v55 = vld [vmem:[#allocation21_spill] sm:$0xff]  ;;  %v3561_v62 = vsel %vm1230_vm1, %v11521_v13, -inf }
 0x218   : > { %v9324_v0 = vpop.f32.mrf.mxu0  ;;  %v9326_v32 = vpop.f32.mrf.mxu1  ;;  %v1861_v12 = vsel %vm1230_vm1, %v11515_v61, -inf }
 0x219   : > { %v2147_v14 = vadd.f32 %v2085_v5, %v1982_v22  ;;  %v3839_v3 = vadd.f32 %v3777_v45, %v3675_v46  ;;  %v8110_v57 = vpop.eup %8109  ;;  %v11514_v5 = vld [vmem:[#allocation17_spill] sm:$0xff]  ;;  %v3554_v22 = vsel %vm1230_vm1, %v11516_v55, -inf  ;;  %v1862_v20 = vrot.slane %v1861_v12, 4 }
 0x21a   : > { %v4074_v25 = vmul.f32 32.0, %v8110_v57  ;;  %vm4078_vm9 = vweird.f32 %v8110_v57  ;;  %v7991_v55 = vld [vmem:[%s8477_s16 + $0x2b8] sm:$0xff] }
 0x21b   : > { %v3921_v6 = vrot.slane %v2147_v14, 1  ;;  %v4013_v49 = vrot.slane %v3839_v3, 1  ;;  %v3555_v3 = vrot.slane %v3554_v22, 4 }
 0x21c   : > { %v4075_v48 = vsub.f32 1.0, %v4074_v25 }
 0x21d   : > { %v9329_v54 = vsel %vm3907_vm8, %v3921_v6, %v3920_v27  ;;  %v9332_v41 = vsel %vm3907_vm8, %v4013_v49, %v4012_v10  ;;  %v3547_v27 = vsel %vm1230_vm1, %v11514_v5, -inf  ;;  %v1848_v10 = vrot.slane %v1847_v59, 4 }
 0x21e   : > { %11507 = vst [vmem:[#allocation6_spill] sm:$0xff] %v9329_v54  ;;  %v4052_v16 = vsel %vm1230_vm1, %v9329_v54, 0.0  ;;  %v4076_v43 = vmul.f32 %v8110_v57, %v4075_v48  ;;  %v3548_v47 = vrot.slane %v3547_v27, 4  ;;  %v1863_v48 = vmax.f32 %v1861_v12, %v1862_v20 }
 0x21f   : > { %11508 = vst [vmem:[#allocation4_spill] sm:$0xff] %v9332_v41  ;;  %4053 = vadd.xlane.f32.xlu0 %v4052_v16  ;;  %v1849_v14 = vmax.f32 %v1847_v59, %v1848_v10  ;;  %v3542_v16 = vmax.f32 %v3540_v38, %v3541_v21  ;;  %v3556_v59 = vmax.f32 %v3554_v22, %v3555_v3  ;;  %v3562_v38 = vrot.slane %v3561_v62, 4 }
 0x220   : > { %v9338_v29 = vpop.f32.mrf.mxu0  ;;  %v9340_v19 = vpop.f32.mrf.mxu1  ;;  %v4077_v63 = vadd.f32 %v8110_v57, %v4076_v43  ;;  %v3549_v35 = vmax.f32 %v3547_v27, %v3548_v47  ;;  %v11524_v43 = vld [vmem:[#allocation30_spill] sm:$0xff]  ;;  %v1864_v21 = vrot.slane %v1863_v48, 2 }
 0x221   : > { %v1850_v5 = vrot.slane %v1849_v14, 2  ;;  %v3543_v27 = vrot.slane %v3542_v16, 2  ;;  %v3563_v22 = vmax.f32 %v3561_v62, %v3562_v38 }
 0x222   : > { %v9388_v39 = vsel %vm4078_vm9, %v8110_v57, %v4077_v63  ;;  %v11522_v57 = vld [vmem:[#allocation27_spill] sm:$0xff]  ;;  %v1882_v63 = vsel %vm1230_vm1, %v11524_v43, -inf  ;;  %v3550_v12 = vrot.slane %v3549_v35, 2 }
 0x223   : > { %7327 = vmatmul.msk.bf16.gmra.mxu0 %vm820_vm0, %v7936_v28  ;;  %7677 = vmatmul.msk.bf16.gmra.mxu1 %vm820_vm0, %v7987_v33  ;;  %v1856_v28 = vmax.f32 %v1854_v15, %v1855_v8  ;;  %v11520_v33 = vld [vmem:[#allocation23_spill] sm:$0xff]  ;;  %v1851_v13 = vmax.f32 %v1849_v14, %v1850_v5 }
 0x224   : > { %v7940_v8 = vld [vmem:[%s8477_s16 + $0x128] sm:$0xff] }
 0x225   : > { %v1857_v61 = vrot.slane %v1856_v28, 2 }
 0x228   : > { %v9344_v58 = vpop.f32.mrf.mxu0  ;;  %v9346_v4 = vpop.f32.mrf.mxu1 }
 0x230   : > { %v9350_v37 = vpop.f32.mrf.mxu0  ;;  %v9352_v60 = vpop.f32.mrf.mxu1 }
 0x233   : > { %7328 = vmatmul.msk.bf16.gmra.mxu0 %vm820_vm0, %v7937_v30  ;;  %7678 = vmatmul.msk.bf16.gmra.mxu1 %vm820_vm0, %v7988_v23  ;;  %v1868_v30 = vsel %vm1230_vm1, %v11520_v33, -inf }
 0x234   : > { %v1869_v2 = vrot.slane %v1868_v30, 4 }
 0x236   : > { %v1870_v47 = vmax.f32 %v1868_v30, %v1869_v2  ;;  %v11528_v2 = vld [vmem:[#allocation33_spill] sm:$0xff] }
 0x238   : > { %v9358_v26 = vpop.f32.mrf.mxu0  ;;  %v9360_v9 = vpop.f32.mrf.mxu1  ;;  %v1871_v30 = vrot.slane %v1870_v47, 2 }
 0x23a   : > { %v1872_v5 = vmax.f32 %v1870_v47, %v1871_v30 }
 0x23c   : > { %v1873_v47 = vrot.slane %v1872_v5, 1 }
 0x240   : > { %v9365_v56 = vpop.f32.mrf.mxu0  ;;  %v9367_v7 = vpop.f32.mrf.mxu1 }
 0x243   : > { %7329 = vmatmul.msk.bf16.gmra.mxu0 %vm820_vm0, %v7938_v1  ;;  %7679 = vmatmul.msk.bf16.gmra.mxu1 %vm820_vm0, %v7989_v24  ;;  %v1875_v1 = vsel %vm1230_vm1, %v11522_v57, -inf  ;;  %v11523_v24 = vld [vmem:[#allocation28_spill] sm:$0xff]  ;;  %v3544_v57 = vmax.f32 %v3542_v16, %v3543_v27 }
 0x244   : > { %v3568_v25 = vsel %vm1230_vm1, %v11523_v24, -inf  ;;  %v1876_v34 = vrot.slane %v1875_v1, 4 }
 0x245   : > { %v3569_v15 = vrot.slane %v3568_v25, 4 }
 0x246   : > { %v1877_v3 = vmax.f32 %v1875_v1, %v1876_v34  ;;  %v3564_v1 = vrot.slane %v3563_v22, 2 }
 0x248   : > { %v9372_v36 = vpop.f32.mrf.mxu0  ;;  %v9374_v11 = vpop.f32.mrf.mxu1  ;;  %v1878_v14 = vrot.slane %v1877_v3, 2 }
 0x250   : > { %v9378_v44 = vpop.f32.mrf.mxu0  ;;  %v9380_v53 = vpop.f32.mrf.mxu1 }
 0x251   : > { %11509 = vst [vmem:[#allocation9_spill] sm:$0xff] %v9378_v44 }
 0x252   : > { %11510 = vst [vmem:[#allocation5_spill] sm:$0xff] %v9380_v53  ;;  %v4051_v45 = vpop.xlane.xlu0 %4050 }
 0x253   : > { %7330 = vmatmul.msk.bf16.gmra.mxu0 %vm820_vm0, %v7939_v17  ;;  %7680 = vmatmul.msk.bf16.gmra.mxu1 %vm820_vm0, %v7990_v51  ;;  %v4080_v31 = vmul.f32 %v9388_v39, %v4051_v45  ;;  %v11525_v17 = vld [vmem:[#allocation31_spill] sm:$0xff]  ;;  %v1883_v45 = vrot.slane %v1882_v63, 4 }
 0x254   : > { %v3575_v51 = vsel %vm1230_vm1, %v11525_v17, -inf  ;;  %v1858_v17 = vmax.f32 %v1856_v28, %v1857_v61  ;;  %v1879_v61 = vmax.f32 %v1877_v3, %v1878_v14 }
 0x255   : > { %v9400_v46 = vsub.f32 %v9187_v42, %v4080_v31  ;;  %v3576_v10 = vrot.slane %v3575_v51, 4  ;;  %v3557_v31 = vrot.slane %v3556_v59, 2  ;;  %v1884_v24 = vmax.f32 %v1882_v63, %v1883_v45 }
 0x256   : > { %v1865_v42 = vmax.f32 %v1863_v48, %v1864_v21  ;;  %v3545_v63 = vrot.slane %v3544_v57, 1  ;;  %v1859_v48 = vrot.slane %v1858_v17, 1 }
 0x257   : > { %11517 = vst [vmem:[#allocation10_spill] sm:$0xff] %v9400_v46  ;;  %v4096_v23 = vmul.f32 %v9400_v46, %v9400_v46  ;;  %v3577_v43 = vmax.f32 %v3575_v51, %v3576_v10  ;;  %v3558_v41 = vmax.f32 %v3556_v59, %v3557_v31  ;;  %v1889_v46 = vsel %vm1230_vm1, %v11528_v2, -inf }
 0x258   : > { %v9402_v6 = vpop.f32.mrf.mxu0  ;;  %v9404_v49 = vpop.f32.mrf.mxu1  ;;  %v1885_v28 = vrot.slane %v1884_v24, 2  ;;  %v1890_v38 = vrot.slane %v1889_v46, 4  ;;  %v3565_v10 = vmax.f32 %v3563_v22, %v3564_v1  ;;  %v1874_v1 = vmax.f32 %v1872_v5, %v1873_v47 }
 0x259   : > { %11518 = vst [vmem:[#allocation7_spill] sm:$0xff] %v9402_v6  ;;  %v4104_v50 = vsel %vm1230_vm1, %v4096_v23, 0.0  ;;  %v3570_v23 = vmax.f32 %v3568_v25, %v3569_v15  ;;  %v1852_v25 = vrot.slane %v1851_v13, 1  ;;  %v1866_v15 = vrot.slane %v1865_v42, 1 }
 0x25a   : > { %11519 = vst [vmem:[#allocation11_spill] sm:$0xff] %v9404_v49  ;;  %4105 = vadd.xlane.f32.xlu2 %v4104_v50  ;;  %v3551_v50 = vmax.f32 %v3549_v35, %v3550_v12  ;;  %v3578_v35 = vrot.slane %v3577_v43, 2  ;;  %v3559_v59 = vrot.slane %v3558_v41, 1  ;;  %v3566_v30 = vrot.slane %v3565_v10, 1 }
 0x25b   : > { %v3571_v16 = vrot.slane %v3570_v23, 2  ;;  %v1853_v21 = vmax.f32 %v1851_v13, %v1852_v25  ;;  %v1867_v6 = vmax.f32 %v1865_v42, %v1866_v15  ;;  %v1574_v5 = vsel %vm1230_vm1, %v9324_v0, -inf }
 0x25c   : > { %v3552_v51 = vrot.slane %v3551_v50, 1  ;;  %v3579_v31 = vmax.f32 %v3577_v43, %v3578_v35  ;;  %v3560_v53 = vmax.f32 %v3558_v41, %v3559_v59  ;;  %v7941_v43 = vld [vmem:[%s8477_s16 + $0x130] sm:$0xff]  ;;  %v3274_v47 = vsel %vm1230_vm1, %v9340_v19, -inf }
 0x25d   : > { %v3572_v12 = vmax.f32 %v3570_v23, %v3571_v16  ;;  %v9440_v3 = vsel %vm1230_vm1, %v1853_v21, -inf  ;;  %v3288_v19 = vsel %vm1230_vm1, %v9352_v60, -inf }
 0x25e   : > { %v3553_v2 = vmax.f32 %v3551_v50, %v3552_v51  ;;  %v9454_v50 = vsel %vm1230_vm1, %v1867_v6, -inf  ;;  %v1567_v6 = vsel %vm1230_vm1, %v9306_v52, -inf }
 0x25f   : > { %v3573_v44 = vrot.slane %v3572_v12, 1 }
 0x260   : > { %v9423_v20 = vpop.f32.mrf.mxu0  ;;  %v9425_v33 = vpop.f32.mrf.mxu1  ;;  %v9449_v42 = vsel %vm1230_vm1, %v3553_v2, -inf }
 0x261   : > { %11526 = vst [vmem:[#allocation8_spill] sm:$0xff] %v9423_v20  ;;  %v1891_v20 = vmax.f32 %v1889_v46, %v1890_v38  ;;  %v3580_v46 = vrot.slane %v3579_v31, 1  ;;  %v3574_v35 = vmax.f32 %v3572_v12, %v3573_v44  ;;  %v9476_v44 = vsel %vm1230_vm1, %v1874_v1, -inf }
 0x262   : > { %11527 = vst [vmem:[#allocation12_spill] sm:$0xff] %v9425_v33  ;;  %v11529_v33 = vld [vmem:[#allocation34_spill] sm:$0xff]  ;;  %v1575_v12 = vrot.slane %v1574_v5, 4 }
 0x263   : > { %7331 = vmatmul.msk.bf16.gmra.mxu0 %vm820_vm0, %v7940_v8  ;;  %7681 = vmatmul.msk.bf16.gmra.mxu1 %vm820_vm0, %v7991_v55  ;;  %v3582_v62 = vsel %vm1230_vm1, %v11529_v33, -inf  ;;  %v3546_v8 = vmax.f32 %v3544_v57, %v3545_v63  ;;  %v1886_v55 = vmax.f32 %v1884_v24, %v1885_v28  ;;  %v1860_v33 = vmax.f32 %v1858_v17, %v1859_v48  ;;  %v7992_v17 = vld [vmem:[%s8477_s16 + $0x2c0] sm:$0xff]  ;;  %v11533_v48 = vld [vmem:[#allocation39_spill] sm:$0xff] }
 0x264   : > { %v3583_v34 = vrot.slane %v3582_v62, 4  ;;  %v1892_v41 = vrot.slane %v1891_v20, 2  ;;  %v3567_v63 = vmax.f32 %v3565_v10, %v3566_v30  ;;  %v3589_v51 = vsel %vm1230_vm1, %v11533_v48, -inf }
 0x265   : > { %v9443_v23 = vsel %vm1230_vm1, %v3546_v8, -inf  ;;  %v1887_v13 = vrot.slane %v1886_v55, 1  ;;  %v9446_v57 = vsel %vm1230_vm1, %v1860_v33, -inf  ;;  %v3590_v52 = vrot.slane %v3589_v51, 4 }
 0x266   : > { %v3584_v49 = vmax.f32 %v3582_v62, %v3583_v34  ;;  %v9457_v62 = vsel %vm1230_vm1, %v3560_v53, -inf  ;;  %v3581_v34 = vmax.f32 %v3579_v31, %v3580_v46  ;;  %v3260_v53 = vsel %vm1230_vm1, %v9308_v40, -inf }
 0x267   : > { %v1888_v38 = vmax.f32 %v1886_v55, %v1887_v13  ;;  %v1893_v15 = vmax.f32 %v1891_v20, %v1892_v41  ;;  %v1581_v40 = vsel %vm1230_vm1, %v9338_v29, -inf  ;;  %v1568_v20 = vrot.slane %v1567_v6, 4 }
 0x268   : > { %v9433_v27 = vpop.f32.mrf.mxu0  ;;  %v9435_v45 = vpop.f32.mrf.mxu1  ;;  %v3585_v24 = vrot.slane %v3584_v49, 2  ;;  %v9487_v10 = vsel %vm1230_vm1, %v3574_v35, -inf  ;;  %v9493_v8 = vsel %vm1230_vm1, %v3581_v34, -inf  ;;  %v1582_v31 = vrot.slane %v1581_v40, 4 }
 0x269   : > { %11530 = vst [vmem:[#allocation19_spill] sm:$0xff] %v9433_v27  ;;  %v1880_v27 = vrot.slane %v1879_v61, 1  ;;  %v1894_v29 = vrot.slane %v1893_v15, 1  ;;  %v3591_v2 = vmax.f32 %v3589_v51, %v3590_v52  ;;  %v1588_v30 = vsel %vm1230_vm1, %v9344_v58, -inf }
 0x26a   : > { %11531 = vst [vmem:[#allocation15_spill] sm:$0xff] %v9435_v45  ;;  %v11532_v45 = vld [vmem:[#allocation38_spill] sm:$0xff]  ;;  %v3586_v59 = vmax.f32 %v3584_v49, %v3585_v24  ;;  %v9481_v49 = vsel %vm1230_vm1, %v3567_v63, -inf  ;;  %v1569_v46 = vmax.f32 %v1567_v6, %v1568_v20  ;;  %v3281_v24 = vsel %vm1230_vm1, %v9346_v4, -inf }
 0x26b   : > { %v1896_v22 = vsel %vm1230_vm1, %v11532_v45, -inf  ;;  %v1881_v28 = vmax.f32 %v1879_v61, %v1880_v27  ;;  %v3267_v27 = vsel %vm1230_vm1, %v9326_v32, -inf  ;;  %v3261_v32 = vrot.slane %v3260_v53, 4  ;;  %11535 = vst [vmem:[#allocation22_spill] sm:$0xff] %v9487_v10 }
 0x26c   : > { %v1897_v14 = vrot.slane %v1896_v22, 4  ;;  %v9490_v61 = vsel %vm1230_vm1, %v1888_v38, -inf  ;;  %v3268_v21 = vrot.slane %v3267_v27, 4  ;;  %11537 = vst [vmem:[#allocation26_spill] sm:$0xff] %v9493_v8  ;;  %v3587_v55 = vrot.slane %v3586_v59, 1 }
 0x26d   : > { %v9484_v0 = vsel %vm1230_vm1, %v1881_v28, -inf  ;;  %11536 = vst [vmem:[#allocation25_spill] sm:$0xff] %v9490_v61  ;;  %v3262_v41 = vmax.f32 %v3260_v53, %v3261_v32  ;;  %v1602_v58 = vsel %vm1230_vm1, %v9358_v26, -inf  ;;  %v3275_v63 = vrot.slane %v3274_v47, 4 }
 0x26e   : > { %v1898_v45 = vmax.f32 %v1896_v22, %v1897_v14  ;;  %11534 = vst [vmem:[#allocation18_spill] sm:$0xff] %v9484_v0  ;;  %v3269_v1 = vmax.f32 %v3267_v27, %v3268_v21  ;;  %v1583_v14 = vmax.f32 %v1581_v40, %v1582_v31  ;;  %v1589_v28 = vrot.slane %v1588_v30, 4 }
 0x26f   : > { %v3295_v35 = vsel %vm1230_vm1, %v9360_v9, -inf  ;;  %v1895_v48 = vmax.f32 %v1893_v15, %v1894_v29  ;;  %v3588_v4 = vmax.f32 %v3586_v59, %v3587_v55  ;;  %v3282_v51 = vrot.slane %v3281_v24, 4  ;;  %v7993_v9 = vld [vmem:[%s8477_s16 + $0x2c8] sm:$0xff] }
 0x270   : > { %v9459_v16 = vpop.f32.mrf.mxu0  ;;  %v9461_v25 = vpop.f32.mrf.mxu1  ;;  %v1899_v33 = vrot.slane %v1898_v45, 2  ;;  %v3592_v34 = vrot.slane %v3591_v2, 2  ;;  %v3289_v6 = vrot.slane %v3288_v19, 4  ;;  %v1603_v53 = vrot.slane %v1602_v58, 4 }
 0x271   : > { %v1570_v60 = vrot.slane %v1569_v46, 2  ;;  %v3296_v26 = vrot.slane %v3295_v35, 4  ;;  %v3270_v52 = vrot.slane %v3269_v1, 2  ;;  %v1584_v40 = vrot.slane %v1583_v14, 2 }
 0x272   : > { %v1900_v38 = vmax.f32 %v1898_v45, %v1899_v33  ;;  %v3276_v20 = vmax.f32 %v3274_v47, %v3275_v63  ;;  %v1590_v32 = vmax.f32 %v1588_v30, %v1589_v28  ;;  %v9516_v15 = vsel %vm1230_vm1, %v1895_v48, -inf }
 0x273   : > { %7332 = vmatmul.msk.bf16.gmra.mxu0 %vm820_vm0, %v7941_v43  ;;  %7682 = vmatmul.msk.bf16.gmra.mxu1 %vm820_vm0, %v7992_v17  ;;  %v1595_v43 = vsel %vm1230_vm1, %v9350_v37, -inf  ;;  %v1576_v17 = vmax.f32 %v1574_v5, %v1575_v12  ;;  %v3263_v5 = vrot.slane %v3262_v41, 2  ;;  %v7942_v12 = vld [vmem:[%s8477_s16 + $0x138] sm:$0xff]  ;;  %11538 = vst [vmem:[#allocation29_spill] sm:$0xff] %v9516_v15  ;;  %v9519_v59 = vsel %vm1230_vm1, %v3588_v4, -inf }
 0x274   : > { %v1596_v37 = vrot.slane %v1595_v43, 4  ;;  %11539 = vst [vmem:[#allocation32_spill] sm:$0xff] %v9519_v59  ;;  %v3283_v45 = vmax.f32 %v3281_v24, %v3282_v51  ;;  %v1901_v31 = vrot.slane %v1900_v38, 1  ;;  %v3593_v33 = vmax.f32 %v3591_v2, %v3592_v34 }
 0x275   : > { %v1577_v27 = vrot.slane %v1576_v17, 2  ;;  %v3290_v8 = vmax.f32 %v3288_v19, %v3289_v6  ;;  %v1604_v61 = vmax.f32 %v1602_v58, %v1603_v53  ;;  %v1571_v47 = vmax.f32 %v1569_v46, %v1570_v60 }
 0x276   : > { %v1597_v21 = vmax.f32 %v1595_v43, %v1596_v37  ;;  %v3264_v30 = vmax.f32 %v3262_v41, %v3263_v5  ;;  %v3297_v28 = vmax.f32 %v3295_v35, %v3296_v26  ;;  %v3271_v10 = vmax.f32 %v3269_v1, %v3270_v52 }
 0x277   : > { %v1578_v63 = vmax.f32 %v1576_v17, %v1577_v27  ;;  %v1585_v48 = vmax.f32 %v1583_v14, %v1584_v40  ;;  %v3277_v15 = vrot.slane %v3276_v20, 2  ;;  %v1591_v0 = vrot.slane %v1590_v32, 2 }
 0x278   : > { %v9499_v22 = vpop.f32.mrf.mxu0  ;;  %v9501_v13 = vpop.f32.mrf.mxu1  ;;  %v3284_v24 = vrot.slane %v3283_v45, 2  ;;  %v1598_v43 = vrot.slane %v1597_v21, 2  ;;  %v1609_v4 = vsel %vm1230_vm1, %v9365_v56, -inf  ;;  %v3302_v2 = vsel %vm1230_vm1, %v9367_v7, -inf }
 0x279   : > { %v1902_v46 = vmax.f32 %v1900_v38, %v1901_v31  ;;  %v3594_v41 = vrot.slane %v3593_v33, 1  ;;  %v3291_v17 = vrot.slane %v3290_v8, 2  ;;  %v1605_v19 = vrot.slane %v1604_v61, 2 }
 0x27a   : > { %v1572_v1 = vrot.slane %v1571_v47, 1  ;;  %v3265_v58 = vrot.slane %v3264_v30, 1  ;;  %v1579_v14 = vrot.slane %v1578_v63, 1  ;;  %v3298_v35 = vrot.slane %v3297_v28, 2 }
 0x27b   : > { %v3278_v51 = vmax.f32 %v3276_v20, %v3277_v15  ;;  %v1592_v37 = vmax.f32 %v1590_v32, %v1591_v0  ;;  %v1610_v34 = vrot.slane %v1609_v4, 4  ;;  %v3303_v6 = vrot.slane %v3302_v2, 4 }
 0x27c   : > { %v3272_v53 = vrot.slane %v3271_v10, 1  ;;  %v1586_v60 = vrot.slane %v1585_v48, 1  ;;  %v3285_v5 = vmax.f32 %v3283_v45, %v3284_v24  ;;  %v1599_v27 = vmax.f32 %v1597_v21, %v1598_v43 }
 0x27d   : > { %v9536_v7 = vsel %vm1230_vm1, %v1902_v46, -inf  ;;  %v3595_v38 = vmax.f32 %v3593_v33, %v3594_v41  ;;  %v3292_v52 = vmax.f32 %v3290_v8, %v3291_v17  ;;  %v1606_v40 = vmax.f32 %v1604_v61, %v1605_v19  ;;  %v7943_v41 = vld [vmem:[%s8477_s16 + $0x140] sm:$0xff]  ;;  %v7994_v17 = vld [vmem:[%s8477_s16 + $0x2d0] sm:$0xff] }
 0x27e   : > { %11540 = vst [vmem:[#allocation35_spill] sm:$0xff] %v9536_v7  ;;  %v1580_v20 = vmax.f32 %v1578_v63, %v1579_v14  ;;  %v3299_v0 = vmax.f32 %v3297_v28, %v3298_v35  ;;  %v3279_v32 = vrot.slane %v3278_v51, 1  ;;  %v1593_v15 = vrot.slane %v1592_v37, 1 }
 0x27f   : > { %v1611_v31 = vmax.f32 %v1609_v4, %v1610_v34  ;;  %v3304_v59 = vmax.f32 %v3302_v2, %v3303_v6  ;;  %v3273_v45 = vmax.f32 %v3271_v10, %v3272_v53  ;;  %v1587_v21 = vmax.f32 %v1585_v48, %v1586_v60 }
 0x280   : > { %v9521_v29 = vpop.f32.mrf.mxu0  ;;  %v9523_v55 = vpop.f32.mrf.mxu1  ;;  %v3286_v24 = vrot.slane %v3285_v5, 1  ;;  %v1600_v43 = vrot.slane %v1599_v27, 1  ;;  %v9539_v46 = vsel %vm1230_vm1, %v3595_v38, -inf  ;;  %v3293_v33 = vrot.slane %v3292_v52, 1 }
 0x281   : > { %v1607_v8 = vrot.slane %v1606_v40, 1  ;;  %v9543_v61 = vsel %vm1230_vm1, %v9190_v18, 0.0  ;;  %v9552_v10 = vsel %vm1230_vm1, %v1580_v20, -inf  ;;  %v3300_v63 = vrot.slane %v3299_v0, 1 }
 0x282   : > { %11543 = vst [vmem:[#allocation36_spill] sm:$0xff] %v9552_v10  ;;  %v3280_v28 = vmax.f32 %v3278_v51, %v3279_v32  ;;  %v1594_v48 = vmax.f32 %v1592_v37, %v1593_v15  ;;  %v1612_v4 = vrot.slane %v1611_v31, 2  ;;  %v3305_v2 = vrot.slane %v3304_v59, 2 }
 0x283   : > { %7333 = vmatmul.msk.bf16.gmra.mxu0 %vm820_vm0, %v7942_v12  ;;  %7683 = vmatmul.msk.bf16.gmra.mxu1 %vm820_vm0, %v7993_v9  ;;  %v1573_v12 = vmax.f32 %v1571_v47, %v1572_v1  ;;  %v3266_v9 = vmax.f32 %v3264_v30, %v3265_v58  ;;  %v9557_v19 = vsel %vm1230_vm1, %v3273_v45, -inf  ;;  %v9560_v1 = vsel %vm1230_vm1, %v1587_v21, -inf }
 0x284   : > { %11544 = vst [vmem:[#allocation41_spill] sm:$0xff] %v9557_v19  ;;  %v3287_v58 = vmax.f32 %v3285_v5, %v3286_v24  ;;  %v1601_v14 = vmax.f32 %v1599_v27, %v1600_v43  ;;  %v3294_v6 = vmax.f32 %v3292_v52, %v3293_v33  ;;  %v1608_v53 = vmax.f32 %v1606_v40, %v1607_v8 }
 0x285   : > { %v9546_v47 = vsel %vm1230_vm1, %v1573_v12, -inf  ;;  %v9549_v30 = vsel %vm1230_vm1, %v3266_v9, -inf  ;;  %v3301_v37 = vmax.f32 %v3299_v0, %v3300_v63  ;;  %v1616_v38 = vsel %vm1230_vm1, %v9372_v36, -inf }
 0x286   : > { %11541 = vst [vmem:[#allocation37_spill] sm:$0xff] %v9546_v47  ;;  %v9567_v20 = vsel %vm1230_vm1, %v3280_v28, -inf  ;;  %v9570_v5 = vsel %vm1230_vm1, %v1594_v48, -inf  ;;  %v1613_v27 = vmax.f32 %v1611_v31, %v1612_v4  ;;  %v3306_v32 = vmax.f32 %v3304_v59, %v3305_v2  ;;  %v11550_v4 = vld [vmem:[#allocation9_spill] sm:$0xff] }
 0x287   : > { %11542 = vst [vmem:[#allocation40_spill] sm:$0xff] %v9549_v30  ;;  %v9575_v40 = vsel %vm1230_vm1, %v3287_v58, -inf  ;;  %v3309_v36 = vsel %vm1230_vm1, %v9374_v11, -inf  ;;  %v9580_v45 = vsel %vm1230_vm1, %v1601_v14, -inf  ;;  %v9583_v21 = vsel %vm1230_vm1, %v3294_v6, -inf }
 0x288   : > { %v9531_v56 = vpop.f32.mrf.mxu0  ;;  %v9533_v26 = vpop.f32.mrf.mxu1  ;;  %11545 = vst [vmem:[#allocation13_spill] sm:$0xff] %v9575_v40  ;;  %v1617_v59 = vrot.slane %v1616_v38, 4  ;;  %v9587_v24 = vsel %vm1230_vm1, %v1608_v53, -inf  ;;  %v9590_v43 = vsel %vm1230_vm1, %v3301_v37, -inf  ;;  %v1614_v11 = vrot.slane %v1613_v27, 1 }
 0x289   : > { %11546 = vst [vmem:[#allocation14_spill] sm:$0xff] %v9580_v45  ;;  %v3307_v63 = vrot.slane %v3306_v32, 1  ;;  %v3310_v28 = vrot.slane %v3309_v36, 4  ;;  %v1623_v2 = vsel %vm1230_vm1, %v11550_v4, -inf }
 0x28a   : > { %11547 = vst [vmem:[#allocation16_spill] sm:$0xff] %v9583_v21  ;;  %v1618_v6 = vmax.f32 %v1616_v38, %v1617_v59  ;;  %v1624_v4 = vrot.slane %v1623_v2, 4 }
 0x28b   : > { %11548 = vst [vmem:[#allocation17_spill] sm:$0xff] %v9590_v43 }
 0x290   : > { %v1140_v35 = vpop.f32.mrf.mxu0  ;;  %v2834_v34 = vpop.f32.mrf.mxu1 }
 0x291   : > { %v1679_v60 = vsel %vm1230_vm1, %v1140_v35, -inf  ;;  %v3372_v51 = vsel %vm1230_vm1, %v2834_v34, -inf }
 0x292   : > { %v1680_v12 = vrot.slane %v1679_v60, 4  ;;  %v3373_v9 = vrot.slane %v3372_v51, 4  ;;  %v4054_v52 = vpop.xlane.xlu0 %4053 }
 0x293   : > { %7334 = vmatmul.msk.bf16.gmra.mxu0 %vm820_vm0, %v7943_v41  ;;  %7684 = vmatmul.msk.bf16.gmra.mxu1 %vm820_vm0, %v7994_v17  ;;  %v4081_v31 = vmul.f32 %v9388_v39, %v4054_v52  ;;  %v11551_v41 = vld [vmem:[#allocation5_spill] sm:$0xff] }
 0x294   : > { %v1681_v0 = vmax.f32 %v1679_v60, %v1680_v12  ;;  %v3374_v15 = vmax.f32 %v3372_v51, %v3373_v9  ;;  %v3316_v17 = vsel %vm1230_vm1, %v11551_v41, -inf  ;;  %v3308_v41 = vmax.f32 %v3306_v32, %v3307_v63  ;;  %v7944_v32 = vld [vmem:[%s8477_s16 + $0x148] sm:$0xff] }
 0x295   : > { %v9593_v48 = vsub.f32 %v9329_v54, %v4081_v31  ;;  %v3311_v31 = vmax.f32 %v3309_v36, %v3310_v28  ;;  %v3317_v54 = vrot.slane %v3316_v17, 4 }
 0x296   : > { %v1682_v33 = vrot.slane %v1681_v0, 2  ;;  %v3375_v8 = vrot.slane %v3374_v15, 2 }
 0x297   : > { %11549 = vst [vmem:[#allocation20_spill] sm:$0xff] %v9593_v48  ;;  %v4097_v51 = vmul.f32 %v9593_v48, %v9593_v48  ;;  %v3312_v63 = vrot.slane %v3311_v31, 2 }
 0x298   : > { %v1683_v58 = vmax.f32 %v1681_v0, %v1682_v33  ;;  %v3376_v14 = vmax.f32 %v3374_v15, %v3375_v8  ;;  %v1142_v35 = vpop.f32.mrf.mxu0  ;;  %v2836_v34 = vpop.f32.mrf.mxu1  ;;  %v1615_v8 = vmax.f32 %v1613_v27, %v1614_v11  ;;  %v7995_v11 = vld [vmem:[%s8477_s16 + $0x2d8] sm:$0xff] }
 0x299   : > { %v1686_v53 = vsel %vm1230_vm1, %v1142_v35, -inf  ;;  %v3379_v60 = vsel %vm1230_vm1, %v2836_v34, -inf  ;;  %v4107_v0 = vsel %vm1230_vm1, %v4097_v51, 0.0  ;;  %v1619_v35 = vrot.slane %v1618_v6, 2  ;;  %v11552_v34 = vld [vmem:[#allocation7_spill] sm:$0xff] }
 0x29a   : > { %v1684_v37 = vrot.slane %v1683_v58, 1  ;;  %v3377_v12 = vrot.slane %v3376_v14, 1  ;;  %v1687_v9 = vrot.slane %v1686_v53, 4  ;;  %v3380_v52 = vrot.slane %v3379_v60, 4  ;;  %4108 = vadd.xlane.f32.xlu2 %v4107_v0 }
 0x29b   : > { %v1630_v18 = vsel %vm1230_vm1, %v11552_v34, -inf  ;;  %v3318_v51 = vmax.f32 %v3316_v17, %v3317_v54  ;;  %v9623_v27 = vsel %vm1230_vm1, %v1615_v8, -inf }
 0x29c   : > { %v1685_v15 = vmax.f32 %v1683_v58, %v1684_v37  ;;  %v3378_v33 = vmax.f32 %v3376_v14, %v3377_v12  ;;  %v1688_v38 = vmax.f32 %v1686_v53, %v1687_v9  ;;  %v3381_v59 = vmax.f32 %v3379_v60, %v3380_v52  ;;  %v11555_v60 = vld [vmem:[#allocation11_spill] sm:$0xff] }
 0x29d   : > { %v1625_v14 = vmax.f32 %v1623_v2, %v1624_v4  ;;  %v3323_v37 = vsel %vm1230_vm1, %v11555_v60, -inf  ;;  %v3319_v47 = vrot.slane %v3318_v51, 2 }
 0x29e   : > { %v9607_v48 = vsel %vm1230_vm1, %v1685_v15, -inf  ;;  %v9610_v36 = vsel %vm1230_vm1, %v3378_v33, -inf  ;;  %v1689_v28 = vrot.slane %v1688_v38, 2  ;;  %v3382_v58 = vrot.slane %v3381_v59, 2 }
 0x29f   : > { %11553 = vst [vmem:[#allocation21_spill] sm:$0xff] %v9607_v48  ;;  %v1620_v15 = vmax.f32 %v1618_v6, %v1619_v35  ;;  %v1631_v33 = vrot.slane %v1630_v18, 4  ;;  %v1626_v48 = vrot.slane %v1625_v14, 2  ;;  %v3324_v60 = vrot.slane %v3323_v37, 4 }
 0x2a0   : > { %11554 = vst [vmem:[#allocation23_spill] sm:$0xff] %v9610_v36  ;;  %v1690_v12 = vmax.f32 %v1688_v38, %v1689_v28  ;;  %v3383_v9 = vmax.f32 %v3381_v59, %v3382_v58  ;;  %v1145_v52 = vpop.f32.mrf.mxu0  ;;  %v2839_v0 = vpop.f32.mrf.mxu1  ;;  %v9629_v28 = vsel %vm1230_vm1, %v3308_v41, -inf  ;;  %v3320_v41 = vmax.f32 %v3318_v51, %v3319_v47 }
 0x2a1   : > { %v1693_v54 = vsel %vm1230_vm1, %v1145_v52, -inf  ;;  %v3386_v2 = vsel %vm1230_vm1, %v2839_v0, -inf  ;;  %11556 = vst [vmem:[#allocation24_spill] sm:$0xff] %v9629_v28  ;;  %v1621_v58 = vrot.slane %v1620_v15, 1  ;;  %v3313_v52 = vmax.f32 %v3311_v31, %v3312_v63 }
 0x2a2   : > { %v1691_v17 = vrot.slane %v1690_v12, 1  ;;  %v3384_v4 = vrot.slane %v3383_v9, 1  ;;  %v1694_v34 = vrot.slane %v1693_v54, 4  ;;  %v3387_v53 = vrot.slane %v3386_v2, 4  ;;  %4062 = vadd.xlane.f32.xlu2 %v9543_v61 }
 0x2a3   : > { %7335 = vmatmul.msk.bf16.gmra.mxu0 %vm820_vm0, %v7944_v32  ;;  %7685 = vmatmul.msk.bf16.gmra.mxu1 %vm820_vm0, %v7995_v11  ;;  %v1632_v8 = vmax.f32 %v1630_v18, %v1631_v33  ;;  %v3314_v47 = vrot.slane %v3313_v52, 1 }
 0x2a4   : > { %v1692_v6 = vmax.f32 %v1690_v12, %v1691_v17  ;;  %v3385_v38 = vmax.f32 %v3383_v9, %v3384_v4  ;;  %v1695_v59 = vmax.f32 %v1693_v54, %v1694_v34  ;;  %v3388_v35 = vmax.f32 %v3386_v2, %v3387_v53  ;;  %v11559_v54 = vld [vmem:[#allocation8_spill] sm:$0xff] }
 0x2a5   : > { %v1627_v12 = vmax.f32 %v1625_v14, %v1626_v48  ;;  %v3325_v9 = vmax.f32 %v3323_v37, %v3324_v60  ;;  %v1637_v18 = vsel %vm1230_vm1, %v11559_v54, -inf  ;;  %v1633_v17 = vrot.slane %v1632_v8, 2  ;;  %v11560_v4 = vld [vmem:[#allocation12_spill] sm:$0xff] }
 0x2a6   : > { %v9632_v0 = vsel %vm1230_vm1, %v1692_v6, -inf  ;;  %v9635_v36 = vsel %vm1230_vm1, %v3385_v38, -inf  ;;  %v1696_v32 = vrot.slane %v1695_v59, 2  ;;  %v3389_v11 = vrot.slane %v3388_v35, 2 }
 0x2a7   : > { %11557 = vst [vmem:[#allocation27_spill] sm:$0xff] %v9632_v0  ;;  %v3330_v34 = vsel %vm1230_vm1, %v11560_v4, -inf  ;;  %v1628_v51 = vrot.slane %v1627_v12, 1  ;;  %v3326_v61 = vrot.slane %v3325_v9, 2  ;;  %v1638_v54 = vrot.slane %v1637_v18, 4 }
 0x2a8   : > { %11558 = vst [vmem:[#allocation28_spill] sm:$0xff] %v9635_v36  ;;  %v1697_v31 = vmax.f32 %v1695_v59, %v1696_v32  ;;  %v3390_v63 = vmax.f32 %v3388_v35, %v3389_v11  ;;  %v1147_v33 = vpop.f32.mrf.mxu0  ;;  %v2841_v2 = vpop.f32.mrf.mxu1  ;;  %v1622_v53 = vmax.f32 %v1620_v15, %v1621_v58  ;;  %v3321_v4 = vrot.slane %v3320_v41, 1  ;;  %v7945_v15 = vld [vmem:[%s8477_s16 + $0x150] sm:$0xff]  ;;  %v7996_v58 = vld [vmem:[%s8477_s16 + $0x2e0] sm:$0xff] }
 0x2a9   : > { %v1700_v48 = vsel %vm1230_vm1, %v1147_v33, -inf  ;;  %v3393_v14 = vsel %vm1230_vm1, %v2841_v2, -inf  ;;  %v1634_v36 = vmax.f32 %v1632_v8, %v1633_v17  ;;  %v3331_v33 = vrot.slane %v3330_v34, 4 }
 0x2aa   : > { %v1698_v37 = vrot.slane %v1697_v31, 1  ;;  %v3391_v60 = vrot.slane %v3390_v63, 1  ;;  %v1701_v6 = vrot.slane %v1700_v48, 4  ;;  %v3394_v38 = vrot.slane %v3393_v14, 4 }
 0x2ab   : > { %v3327_v30 = vmax.f32 %v3325_v9, %v3326_v61  ;;  %v1639_v7 = vmax.f32 %v1637_v18, %v1638_v54  ;;  %v3315_v8 = vmax.f32 %v3313_v52, %v3314_v47  ;;  %v1629_v17 = vmax.f32 %v1627_v12, %v1628_v51 }
 0x2ac   : > { %v1699_v59 = vmax.f32 %v1697_v31, %v1698_v37  ;;  %v3392_v35 = vmax.f32 %v3390_v63, %v3391_v60  ;;  %v1702_v32 = vmax.f32 %v1700_v48, %v1701_v6  ;;  %v3395_v11 = vmax.f32 %v3393_v14, %v3394_v38 }
 0x2ad   : > { %v3322_v6 = vmax.f32 %v3320_v41, %v3321_v4  ;;  %v3332_v38 = vmax.f32 %v3330_v34, %v3331_v33  ;;  %v9662_v63 = vsel %vm1230_vm1, %v1622_v53, -inf  ;;  %v1635_v31 = vrot.slane %v1634_v36, 1 }
 0x2ae   : > { %v9648_v2 = vsel %vm1230_vm1, %v1699_v59, -inf  ;;  %v9651_v19 = vsel %vm1230_vm1, %v3392_v35, -inf  ;;  %v1703_v0 = vrot.slane %v1702_v32, 2  ;;  %v3396_v10 = vrot.slane %v3395_v11, 2  ;;  %11561 = vst [vmem:[#allocation30_spill] sm:$0xff] %v9662_v63 }
 0x2af   : > { %v3328_v52 = vrot.slane %v3327_v30, 1  ;;  %v1640_v12 = vrot.slane %v1639_v7, 2  ;;  %v9667_v47 = vsel %vm1230_vm1, %v3315_v8, -inf  ;;  %v9670_v51 = vsel %vm1230_vm1, %v1629_v17, -inf }
 0x2b0   : > { %v1704_v48 = vmax.f32 %v1702_v32, %v1703_v0  ;;  %v3397_v14 = vmax.f32 %v3395_v11, %v3396_v10  ;;  %v1150_v37 = vpop.f32.mrf.mxu0  ;;  %v2844_v60 = vpop.f32.mrf.mxu1  ;;  %11562 = vst [vmem:[#allocation31_spill] sm:$0xff] %v9667_v47  ;;  %v9673_v53 = vsel %vm1230_vm1, %v3322_v6, -inf  ;;  %v3333_v32 = vrot.slane %v3332_v38, 2 }
 0x2b1   : > { %v1707_v59 = vsel %vm1230_vm1, %v1150_v37, -inf  ;;  %v3400_v9 = vsel %vm1230_vm1, %v2844_v60, -inf  ;;  %v11564_v37 = vld [vmem:[#allocation19_spill] sm:$0xff] }
 0x2b2   : > { %v1705_v61 = vrot.slane %v1704_v48, 1  ;;  %v3398_v18 = vrot.slane %v3397_v14, 1  ;;  %v1708_v54 = vrot.slane %v1707_v59, 4  ;;  %v3401_v35 = vrot.slane %v3400_v9, 4 }
 0x2b3   : > { %7336 = vmatmul.msk.bf16.gmra.mxu0 %vm820_vm0, %v7945_v15  ;;  %7686 = vmatmul.msk.bf16.gmra.mxu1 %vm820_vm0, %v7996_v58  ;;  %v1636_v58 = vmax.f32 %v1634_v36, %v1635_v31  ;;  %v1644_v60 = vsel %vm1230_vm1, %v11564_v37, -inf }
 0x2b4   : > { %v1706_v10 = vmax.f32 %v1704_v48, %v1705_v61  ;;  %v3399_v0 = vmax.f32 %v3397_v14, %v3398_v18  ;;  %v1709_v41 = vmax.f32 %v1707_v59, %v1708_v54  ;;  %v3402_v34 = vmax.f32 %v3400_v9, %v3401_v35  ;;  %v11565_v54 = vld [vmem:[#allocation15_spill] sm:$0xff] }
 0x2b5   : > { %v1641_v48 = vmax.f32 %v1639_v7, %v1640_v12  ;;  %v3329_v14 = vmax.f32 %v3327_v30, %v3328_v52  ;;  %v3334_v18 = vmax.f32 %v3332_v38, %v3333_v32  ;;  %v3337_v35 = vsel %vm1230_vm1, %v11565_v54, -inf }
 0x2b6   : > { %v9676_v11 = vsel %vm1230_vm1, %v1706_v10, -inf  ;;  %v9679_v4 = vsel %vm1230_vm1, %v3399_v0, -inf  ;;  %v1710_v33 = vrot.slane %v1709_v41, 2  ;;  %v3403_v15 = vrot.slane %v3402_v34, 2 }
 0x2b7   : > { %11563 = vst [vmem:[#allocation33_spill] sm:$0xff] %v9679_v4  ;;  %v9692_v30 = vsel %vm1230_vm1, %v1636_v58, -inf  ;;  %v1642_v52 = vrot.slane %v1641_v48, 1  ;;  %v9697_v37 = vsel %vm1230_vm1, %v3329_v14, -inf  ;;  %v3344_v58 = vsel %vm1230_vm1, %v9461_v25, -inf }
 0x2b8   : > { %v1711_v6 = vmax.f32 %v1709_v41, %v1710_v33  ;;  %v3404_v59 = vmax.f32 %v3402_v34, %v3403_v15  ;;  %v1152_v9 = vpop.f32.mrf.mxu0  ;;  %v2846_v61 = vpop.f32.mrf.mxu1  ;;  %v1645_v41 = vrot.slane %v1644_v60, 4  ;;  %v1651_v34 = vsel %vm1230_vm1, %v9459_v16, -inf }
 0x2b9   : > { %v1714_v7 = vsel %vm1230_vm1, %v1152_v9, -inf  ;;  %v3407_v36 = vsel %vm1230_vm1, %v2846_v61, -inf  ;;  %v3335_v9 = vrot.slane %v3334_v18, 1  ;;  %v3338_v61 = vrot.slane %v3337_v35, 4 }
 0x2ba   : > { %v1712_v31 = vrot.slane %v1711_v6, 1  ;;  %v3405_v12 = vrot.slane %v3404_v59, 1  ;;  %v1715_v10 = vrot.slane %v1714_v7, 4  ;;  %v3408_v0 = vrot.slane %v3407_v36, 4 }
 0x2bb   : > { %v1658_v25 = vsel %vm1230_vm1, %v9499_v22, -inf  ;;  %v3339_v4 = vmax.f32 %v3337_v35, %v3338_v61  ;;  %v3345_v40 = vrot.slane %v3344_v58, 4  ;;  %v3351_v22 = vsel %vm1230_vm1, %v9501_v13, -inf }
 0x2bc   : > { %v1713_v38 = vmax.f32 %v1711_v6, %v1712_v31  ;;  %v3406_v32 = vmax.f32 %v3404_v59, %v3405_v12  ;;  %v1716_v33 = vmax.f32 %v1714_v7, %v1715_v10  ;;  %v3409_v15 = vmax.f32 %v3407_v36, %v3408_v0  ;;  %v7946_v36 = vld [vmem:[%s8477_s16 + $0x158] sm:$0xff]  ;;  %v7997_v12 = vld [vmem:[%s8477_s16 + $0x2e8] sm:$0xff]  ;;  %s8382_s16 = smov 80  }
 0x2bd   : > { %v1646_v59 = vmax.f32 %v1644_v60, %v1645_v41  ;;  %v1652_v31 = vrot.slane %v1651_v34, 4  ;;  %v1643_v10 = vmax.f32 %v1641_v48, %v1642_v52  ;;  %v1659_v48 = vrot.slane %v1658_v25, 4 }
 0x2be   : > { %v9702_v54 = vsel %vm1230_vm1, %v1713_v38, -inf  ;;  %v9705_v17 = vsel %vm1230_vm1, %v3406_v32, -inf  ;;  %v1717_v16 = vrot.slane %v1716_v33, 2  ;;  %v3410_v6 = vrot.slane %v3409_v15, 2 }
 0x2bf   : > { %11566 = vst [vmem:[#allocation34_spill] sm:$0xff] %v9702_v54  ;;  %v1653_v21 = vmax.f32 %v1651_v34, %v1652_v31  ;;  %v3336_v61 = vmax.f32 %v3334_v18, %v3335_v9 }
 0x2c0   : > { %11567 = vst [vmem:[#allocation38_spill] sm:$0xff] %v9705_v17  ;;  %v1718_v0 = vmax.f32 %v1716_v33, %v1717_v16  ;;  %v3411_v38 = vmax.f32 %v3409_v15, %v3410_v6  ;;  %v1155_v32 = vpop.f32.mrf.mxu0  ;;  %v2849_v8 = vpop.f32.mrf.mxu1  ;;  %v1647_v17 = vrot.slane %v1646_v59, 2  ;;  %v3340_v16 = vrot.slane %v3339_v4, 2 }
 0x2c1   : > { %v1721_v60 = vsel %vm1230_vm1, %v1155_v32, -inf  ;;  %v3414_v41 = vsel %vm1230_vm1, %v2849_v8, -inf  ;;  %v9722_v8 = vsel %vm1230_vm1, %v1643_v10, -inf  ;;  %v3346_v6 = vmax.f32 %v3344_v58, %v3345_v40 }
 0x2c2   : > { %v1719_v7 = vrot.slane %v1718_v0, 1  ;;  %v3412_v54 = vrot.slane %v3411_v38, 1  ;;  %v1722_v45 = vrot.slane %v1721_v60, 4  ;;  %v3415_v14 = vrot.slane %v3414_v41, 4 }
 0x2c3   : > { %7337 = vmatmul.msk.bf16.gmra.mxu0 %vm820_vm0, %v7946_v36  ;;  %7687 = vmatmul.msk.bf16.gmra.mxu1 %vm820_vm0, %v7997_v12  ;;  %v1660_v32 = vmax.f32 %v1658_v25, %v1659_v48  ;;  %v3352_v12 = vrot.slane %v3351_v22, 4  ;;  %v1654_v18 = vrot.slane %v1653_v21, 2  ;;  %v1665_v10 = vsel %vm1230_vm1, %v9521_v29, -inf }
 0x2c4   : > { %v1720_v35 = vmax.f32 %v1718_v0, %v1719_v7  ;;  %v3413_v52 = vmax.f32 %v3411_v38, %v3412_v54  ;;  %v1723_v33 = vmax.f32 %v1721_v60, %v1722_v45  ;;  %v3416_v15 = vmax.f32 %v3414_v41, %v3415_v14 }
 0x2c5   : > { %v1648_v7 = vmax.f32 %v1646_v59, %v1647_v17  ;;  %v3358_v0 = vsel %vm1230_vm1, %v9523_v55, -inf  ;;  %v3341_v17 = vmax.f32 %v3339_v4, %v3340_v16  ;;  %v3347_v59 = vrot.slane %v3346_v6, 2 }
 0x2c6   : > { %v9725_v34 = vsel %vm1230_vm1, %v1720_v35, -inf  ;;  %v9728_v31 = vsel %vm1230_vm1, %v3413_v52, -inf  ;;  %v1724_v13 = vrot.slane %v1723_v33, 2  ;;  %v3417_v36 = vrot.slane %v3416_v15, 2 }
 0x2c7   : > { %11568 = vst [vmem:[#allocation39_spill] sm:$0xff] %v9725_v34  ;;  %v1661_v52 = vrot.slane %v1660_v32, 2  ;;  %v1649_v29 = vrot.slane %v1648_v7, 1  ;;  %v1655_v45 = vmax.f32 %v1653_v21, %v1654_v18  ;;  %v3359_v55 = vrot.slane %v3358_v0, 4 }
 0x2c8   : > { %11569 = vst [vmem:[#allocation9_spill] sm:$0xff] %v9728_v31  ;;  %v1725_v9 = vmax.f32 %v1723_v33, %v1724_v13  ;;  %v3418_v40 = vmax.f32 %v3416_v15, %v3417_v36  ;;  %v1157_v58 = vpop.f32.mrf.mxu0  ;;  %v2851_v14 = vpop.f32.mrf.mxu1  ;;  %v3353_v33 = vmax.f32 %v3351_v22, %v3352_v12  ;;  %v1666_v31 = vrot.slane %v1665_v10, 4 }
 0x2c9   : > { %v1728_v25 = vsel %vm1230_vm1, %v1157_v58, -inf  ;;  %v3421_v38 = vsel %vm1230_vm1, %v2851_v14, -inf  ;;  %v3342_v4 = vrot.slane %v3341_v17, 1  ;;  %v3348_v16 = vmax.f32 %v3346_v6, %v3347_v59 }
 0x2ca   : > { %v1726_v60 = vrot.slane %v1725_v9, 1  ;;  %v3419_v41 = vrot.slane %v3418_v40, 1  ;;  %v1729_v48 = vrot.slane %v1728_v25, 4  ;;  %v3422_v35 = vrot.slane %v3421_v38, 4 }
 0x2cb   : > { %v3354_v21 = vrot.slane %v3353_v33, 2  ;;  %v9753_v22 = vsel %vm1230_vm1, %v3336_v61, -inf  ;;  %v1650_v12 = vmax.f32 %v1648_v7, %v1649_v29 }
 0x2cc   : > { %v1727_v15 = vmax.f32 %v1725_v9, %v1726_v60  ;;  %v3420_v13 = vmax.f32 %v3418_v40, %v3419_v41  ;;  %v1730_v36 = vmax.f32 %v1728_v25, %v1729_v48  ;;  %v3423_v54 = vmax.f32 %v3421_v38, %v3422_v35 }
 0x2cd   : > { %v1662_v9 = vmax.f32 %v1660_v32, %v1661_v52  ;;  %v1656_v60 = vrot.slane %v1655_v45, 1  ;;  %v1667_v41 = vmax.f32 %v1665_v10, %v1666_v31  ;;  %v3349_v32 = vrot.slane %v3348_v16, 1 }
 0x2ce   : > { %v9741_v58 = vsel %vm1230_vm1, %v1727_v15, -inf  ;;  %v9744_v14 = vsel %vm1230_vm1, %v3420_v13, -inf  ;;  %v1731_v43 = vrot.slane %v1730_v36, 2  ;;  %v3424_v34 = vrot.slane %v3423_v54, 2 }
 0x2cf   : > { %11570 = vst [vmem:[#allocation5_spill] sm:$0xff] %v9744_v14  ;;  %v3360_v15 = vmax.f32 %v3358_v0, %v3359_v55  ;;  %v3343_v14 = vmax.f32 %v3341_v17, %v3342_v4  ;;  %v1657_v31 = vmax.f32 %v1655_v45, %v1656_v60  ;;  %v1668_v28 = vrot.slane %v1667_v41, 2  ;;  %v9765_v17 = vpop.f32.mrf.mxu2 }
 0x2d0   : > { %v1732_v18 = vmax.f32 %v1730_v36, %v1731_v43  ;;  %v3425_v40 = vmax.f32 %v3423_v54, %v3424_v34  ;;  %v1160_v25 = vpop.f32.mrf.mxu0  ;;  %v2854_v38 = vpop.f32.mrf.mxu1  ;;  %v1663_v43 = vrot.slane %v1662_v9, 1  ;;  %v3355_v34 = vmax.f32 %v3353_v33, %v3354_v21 }
 0x2d1   : > { %v1735_v48 = vsel %vm1230_vm1, %v1160_v25, -inf  ;;  %v3428_v35 = vsel %vm1230_vm1, %v2854_v38, -inf  ;;  %v3361_v38 = vrot.slane %v3360_v15, 2  ;;  %v9768_v45 = vsel %vm1230_vm1, %v1650_v12, -inf }
 0x2d2   : > { %v1733_v6 = vrot.slane %v1732_v18, 1  ;;  %v3426_v59 = vrot.slane %v3425_v40, 1  ;;  %v1736_v13 = vrot.slane %v1735_v48, 4  ;;  %v3429_v52 = vrot.slane %v3428_v35, 4 }
 0x2d3   : > { %v3350_v4 = vmax.f32 %v3348_v16, %v3349_v32  ;;  %v1664_v21 = vmax.f32 %v1662_v9, %v1663_v43  ;;  %v9778_v16 = vsel %vm1230_vm1, %v1657_v31, -inf  ;;  %v3362_v9 = vmax.f32 %v3360_v15, %v3361_v38  ;;  %v4106_v31 = vpop.xlane.xlu2 %4105 }
 0x2d4   : > { %v1734_v54 = vmax.f32 %v1732_v18, %v1733_v6  ;;  %v3427_v36 = vmax.f32 %v3425_v40, %v3426_v59  ;;  %v1737_v10 = vmax.f32 %v1735_v48, %v1736_v13  ;;  %v3430_v25 = vmax.f32 %v3428_v35, %v3429_v52  ;;  %v9771_v59 = vpop.f32.mrf.mxu3 }
 0x2d5   : > { %v3356_v18 = vrot.slane %v3355_v34, 1  ;;  %v9775_v52 = vsel %vm1230_vm1, %v3343_v14, -inf  ;;  %v9786_v14 = vsel %vm1230_vm1, %v1664_v21, -inf  ;;  %v3365_v15 = vsel %vm1230_vm1, %v9533_v26, -inf }
 0x2d6   : > { %v9756_v0 = vsel %vm1230_vm1, %v1734_v54, -inf  ;;  %v9759_v55 = vsel %vm1230_vm1, %v3427_v36, -inf  ;;  %v1738_v33 = vrot.slane %v1737_v10, 2  ;;  %v3431_v29 = vrot.slane %v3430_v25, 2 }
 0x2d7   : > { %11571 = vst [vmem:[#allocation7_spill] sm:$0xff] %v9756_v0  ;;  %v1669_v54 = vmax.f32 %v1667_v41, %v1668_v28  ;;  %v3357_v28 = vmax.f32 %v3355_v34, %v3356_v18  ;;  %v4128_v26 = vmul.f32 %v4106_v31, %v9388_v39 }
 0x2d8   : > { %11572 = vst [vmem:[#allocation11_spill] sm:$0xff] %v9759_v55  ;;  %v1162_v40 = vpop.f32.mrf.mxu0  ;;  %v2856_v60 = vpop.f32.mrf.mxu1  ;;  %v1739_v48 = vmax.f32 %v1737_v10, %v1738_v33  ;;  %v3432_v35 = vmax.f32 %v3430_v25, %v3431_v29  ;;  %v9781_v10 = vsel %vm1230_vm1, %v3350_v4, -inf  ;;  %v1672_v25 = vsel %vm1230_vm1, %v9531_v56, -inf }
 0x2d9   : > { %v1742_v6 = vsel %vm1230_vm1, %v1162_v40, -inf  ;;  %v3435_v13 = vsel %vm1230_vm1, %v2856_v60, -inf  ;;  %v1670_v60 = vrot.slane %v1669_v54, 1  ;;  %v3363_v4 = vrot.slane %v3362_v9, 1 }
 0x2da   : > { %v1743_v36 = vrot.slane %v1742_v6, 4  ;;  %v3436_v12 = vrot.slane %v3435_v13, 4  ;;  %v1740_v32 = vrot.slane %v1739_v48, 1  ;;  %v3433_v43 = vrot.slane %v3432_v35, 1 }
 0x2db   : > { %v1673_v61 = vrot.slane %v1672_v25, 4 }
 0x2dc   : > { %v1744_v33 = vmax.f32 %v1742_v6, %v1743_v36  ;;  %v3437_v29 = vmax.f32 %v3435_v13, %v3436_v12  ;;  %v1741_v41 = vmax.f32 %v1739_v48, %v1740_v32  ;;  %v3434_v40 = vmax.f32 %v3432_v35, %v3433_v43  ;;  %v2921_v32 = vpop.f32.mrf.mxu2 }
 0x2dd   : > { %v3366_v13 = vrot.slane %v3365_v15, 4  ;;  %v1674_v31 = vmax.f32 %v1672_v25, %v1673_v61 }
 0x2de   : > { %v1745_v38 = vrot.slane %v1744_v33, 2  ;;  %v3438_v7 = vrot.slane %v3437_v29, 2  ;;  %v2024_v55 = vsel %vm1230_vm1, %v1741_v41, -inf  ;;  %v3717_v56 = vsel %vm1230_vm1, %v3434_v40, -inf }
 0x2df   : > { %v2025_v6 = vmax.f32 %v9670_v51, %v2024_v55  ;;  %v3718_v21 = vmax.f32 %v9673_v53, %v3717_v56  ;;  %v9802_v53 = vsel %vm1230_vm1, %v3357_v28, -inf }
 0x2e0   : > { %v1746_v34 = vmax.f32 %v1744_v33, %v1745_v38  ;;  %v3439_v18 = vmax.f32 %v3437_v29, %v3438_v7  ;;  %v1165_v48 = vpop.f32.mrf.mxu0  ;;  %v2859_v35 = vpop.f32.mrf.mxu1  ;;  %v1671_v7 = vmax.f32 %v1669_v54, %v1670_v60  ;;  %v9816_v60 = vadd.f32 1e-05, %v4128_v26 }
 0x2e1   : > { %v1749_v36 = vsel %vm1230_vm1, %v1165_v48, -inf  ;;  %v3442_v12 = vsel %vm1230_vm1, %v2859_v35, -inf  ;;  %v9798_v43 = vmax.f32 %v2025_v6, %v9440_v3  ;;  %v3720_v41 = vmax.f32 %v3718_v21, %v9443_v23  ;;  %v1227_v29 = vpop.f32.mrf.mxu3  ;;  %v9807_v48 = vld [vmem:[%s11343_s2] ss:$0 sm:$0xff] }
 0x2e2   : > { %v1747_v51 = vrot.slane %v1746_v34, 1  ;;  %v3440_v55 = vrot.slane %v3439_v18, 1  ;;  %v1750_v33 = vrot.slane %v1749_v36, 4  ;;  %v3443_v40 = vrot.slane %v3442_v12, 4 }
 0x2e3   : > { %v9810_v3 = vadd.f32 %v9807_v48, %v2921_v32  ;;  %v9812_v23 = vmax.f32 %v3362_v9, %v3363_v4  ;;  %v9814_v6 = vmax.f32 %v3365_v15, %v3366_v13  ;;  %v9821_v21 = vadd.f32 %v9807_v48, %v1227_v29 }
 0x2e4   : > { %v1748_v38 = vmax.f32 %v1746_v34, %v1747_v51  ;;  %v3441_v56 = vmax.f32 %v3439_v18, %v3440_v55  ;;  %v1751_v28 = vmax.f32 %v1749_v36, %v1750_v33  ;;  %v3444_v54 = vmax.f32 %v3442_v12, %v3443_v40 }
 0x2e5   : > { %v9826_v15 = vsel %vm1230_vm1, %v1671_v7, -inf  ;;  %v1675_v4 = vrot.slane %v1674_v31, 2  ;;  %v3785_v36 = vrot.slane %v9810_v3, 1  ;;  %v2093_v12 = vrot.slane %v9821_v21, 1 }
 0x2e6   : > { %v2029_v61 = vsel %vm1230_vm1, %v1748_v38, -inf  ;;  %v3722_v25 = vsel %vm1230_vm1, %v3441_v56, -inf  ;;  %v1752_v35 = vrot.slane %v1751_v28, 2  ;;  %v3445_v9 = vrot.slane %v3444_v54, 2 }
 0x2e7   : > { %v2030_v34 = vmax.f32 %v9692_v30, %v2029_v61  ;;  %v3723_v18 = vmax.f32 %v9697_v37, %v3722_v25  ;;  %v3368_v37 = vrot.slane %v9814_v6, 2  ;;  %8111 = vrsqrt.f32 %v9816_v60 }
 0x2e8   : > { %v1167_v13 = vpop.f32.mrf.mxu0  ;;  %v2861_v26 = vpop.f32.mrf.mxu1  ;;  %v1753_v55 = vmax.f32 %v1751_v28, %v1752_v35  ;;  %v3446_v30 = vmax.f32 %v3444_v54, %v3445_v9  ;;  %v9836_v61 = vmax.f32 %v1674_v31, %v1675_v4  ;;  %v3786_v35 = vrot.slane %v9810_v3, 2 }
 0x2e9   : > { %v2032_v32 = vmax.f32 %v2030_v34, %v9446_v57  ;;  %v3725_v51 = vmax.f32 %v3723_v18, %v9449_v42  ;;  %v1756_v7 = vsel %vm1230_vm1, %v1167_v13, -inf  ;;  %v3449_v33 = vsel %vm1230_vm1, %v2861_v26, -inf }
 0x2ea   : > { %v1754_v29 = vrot.slane %v1753_v55, 1  ;;  %v3447_v40 = vrot.slane %v3446_v30, 1  ;;  %v1757_v38 = vrot.slane %v1756_v7, 4  ;;  %v3450_v56 = vrot.slane %v3449_v33, 4 }
 0x2eb   : > { %v3848_v57 = vadd.f32 %v9810_v3, %v3720_v41  ;;  %v3849_v25 = vadd.f32 %v3785_v36, %v3725_v51  ;;  %v2157_v42 = vadd.f32 %v2093_v12, %v2032_v32  ;;  %v2094_v13 = vrot.slane %v9821_v21, 2 }
 0x2ec   : > { %v1755_v28 = vmax.f32 %v1753_v55, %v1754_v29  ;;  %v3448_v54 = vmax.f32 %v3446_v30, %v3447_v40  ;;  %v1758_v34 = vmax.f32 %v1756_v7, %v1757_v38  ;;  %v3451_v18 = vmax.f32 %v3449_v33, %v3450_v56 }
 0x2ed   : > { %v4029_v9 = vrot.slane %v3849_v25, 7  ;;  %v3937_v26 = vrot.slane %v2157_v42, 7  ;;  %v9843_v63 = vpop.eup %8111  ;;  %v2156_v55 = vadd.f32 %v9821_v21, %v9798_v43  ;;  %vm4150_vm11 = vweird.f32 %v9816_v60 }
 0x2ee   : > { %v2034_v47 = vsel %vm1230_vm1, %v1755_v28, -inf  ;;  %v3727_v0 = vsel %vm1230_vm1, %v3448_v54, -inf  ;;  %v1759_v31 = vrot.slane %v1758_v34, 2  ;;  %v3452_v4 = vrot.slane %v3451_v18, 2 }
 0x2ef   : > { %v2035_v41 = vmax.f32 %v9722_v8, %v2034_v47  ;;  %v3728_v36 = vmax.f32 %v9753_v22, %v3727_v0  ;;  %v4030_v51 = vsel %vm3889_vm2, %v4029_v9, %v3848_v57  ;;  %v4145_v22 = vmul.f32 %v9843_v63, %v9816_v60 }
 0x2f0   : > { %v1170_v12 = vpop.f32.mrf.mxu0  ;;  %v2864_v32 = vpop.f32.mrf.mxu1  ;;  %v1760_v30 = vmax.f32 %v1758_v34, %v1759_v31  ;;  %v3453_v7 = vmax.f32 %v3451_v18, %v3452_v4  ;;  %v3938_v57 = vsel %vm3889_vm2, %v3937_v26, %v2156_v55  ;;  %v9858_v54 = vmax.f32 %v9814_v6, %v3368_v37 }
 0x2f1   : > { %v1763_v33 = vsel %vm1230_vm1, %v1170_v12, -inf  ;;  %v3456_v29 = vsel %vm1230_vm1, %v2864_v32, -inf  ;;  %v2037_v40 = vmax.f32 %v2035_v41, %v9454_v50  ;;  %v3730_v38 = vmax.f32 %v3728_v36, %v9457_v62 }
 0x2f2   : > { %v1764_v47 = vrot.slane %v1763_v33, 4  ;;  %v3457_v8 = vrot.slane %v3456_v29, 4  ;;  %v1761_v0 = vrot.slane %v1760_v30, 1  ;;  %v3454_v56 = vrot.slane %v3453_v7, 1 }
 0x2f3   : > { %v3850_v42 = vadd.f32 %v3786_v35, %v3730_v38  ;;  %v2158_v28 = vadd.f32 %v2094_v13, %v2037_v40  ;;  %v2095_v50 = vrot.slane %v9821_v21, 3  ;;  %v4146_v41 = vmul.f32 %v9843_v63, %v4145_v22 }
 0x2f4   : > { %v1765_v43 = vmax.f32 %v1763_v33, %v1764_v47  ;;  %v3458_v25 = vmax.f32 %v3456_v29, %v3457_v8  ;;  %v1762_v34 = vmax.f32 %v1760_v30, %v1761_v0  ;;  %v3455_v62 = vmax.f32 %v3453_v7, %v3454_v56 }
 0x2f5   : > { %v4031_v31 = vrot.slane %v3850_v42, 6  ;;  %v3939_v4 = vrot.slane %v2158_v28, 6  ;;  %v3787_v35 = vrot.slane %v9810_v3, 3  ;;  %v4147_v8 = vmul.f32 0.5, %v4146_v41 }
 0x2f6   : > { %v1766_v18 = vrot.slane %v1765_v43, 2  ;;  %v3459_v9 = vrot.slane %v3458_v25, 2  ;;  %v2039_v36 = vsel %vm1230_vm1, %v1762_v34, -inf  ;;  %v3732_v26 = vsel %vm1230_vm1, %v3455_v62, -inf }
 0x2f7   : > { %v2040_v13 = vmax.f32 %v9768_v45, %v2039_v36  ;;  %v3733_v6 = vmax.f32 %v9775_v52, %v3732_v26  ;;  %v4032_v33 = vsel %vm3892_vm3, %v4031_v31, %v4030_v51  ;;  %v3940_v29 = vsel %vm3892_vm3, %v3939_v4, %v3938_v57 }
 0x2f8   : > { %v1767_v37 = vmax.f32 %v1765_v43, %v1766_v18  ;;  %v3460_v12 = vmax.f32 %v3458_v25, %v3459_v9  ;;  %v1172_v32 = vpop.f32.mrf.mxu0  ;;  %v2866_v55 = vpop.f32.mrf.mxu1  ;;  %v1677_v52 = vrot.slane %v9836_v61, 1  ;;  %v3370_v28 = vrot.slane %v9858_v54, 1 }
 0x2f9   : > { %v1770_v30 = vsel %vm1230_vm1, %v1172_v32, -inf  ;;  %v3463_v7 = vsel %vm1230_vm1, %v2866_v55, -inf  ;;  %v2042_v40 = vmax.f32 %v2040_v13, %v9476_v44  ;;  %v3735_v38 = vmax.f32 %v3733_v6, %v9481_v49  ;;  %v11574_v32 = vld [vmem:[#allocation22_spill] sm:$0xff] }
 0x2fa   : > { %v1768_v47 = vrot.slane %v1767_v37, 1  ;;  %v3461_v45 = vrot.slane %v3460_v12, 1  ;;  %v1771_v22 = vrot.slane %v1770_v30, 4  ;;  %v3464_v0 = vrot.slane %v3463_v7, 4 }
 0x2fb   : > { %v2159_v56 = vadd.f32 %v2095_v50, %v2042_v40  ;;  %v3851_v42 = vadd.f32 %v3787_v35, %v3735_v38  ;;  %v2096_v51 = vrot.slane %v9821_v21, 4  ;;  %v4148_v41 = vsub.f32 1.5, %v4147_v8 }
 0x2fc   : > { %v1769_v43 = vmax.f32 %v1767_v37, %v1768_v47  ;;  %v3462_v25 = vmax.f32 %v3460_v12, %v3461_v45  ;;  %v1772_v57 = vmax.f32 %v1770_v30, %v1771_v22  ;;  %v3465_v34 = vmax.f32 %v3463_v7, %v3464_v0  ;;  %v11573_v37 = vld [vmem:[#allocation18_spill] sm:$0xff] }
 0x2fd   : > { %v3941_v44 = vrot.slane %v2159_v56, 5  ;;  %v4033_v18 = vrot.slane %v3851_v42, 5  ;;  %v3788_v35 = vrot.slane %v9810_v3, 4  ;;  %v3371_v8 = vmax.f32 %v9858_v54, %v3370_v28 }
 0x2fe   : > { %v2044_v49 = vsel %vm1230_vm1, %v1769_v43, -inf  ;;  %v3737_v62 = vsel %vm1230_vm1, %v3462_v25, -inf  ;;  %v1773_v50 = vrot.slane %v1772_v57, 2  ;;  %v3466_v4 = vrot.slane %v3465_v34, 2 }
 0x2ff   : > { %v2045_v9 = vmax.f32 %v9778_v16, %v2044_v49  ;;  %v3738_v31 = vmax.f32 %v9781_v10, %v3737_v62  ;;  %v4034_v13 = vsel %vm3895_vm4, %v4033_v18, %v4032_v33  ;;  %v3942_v6 = vsel %vm3895_vm4, %v3941_v44, %v3940_v29 }
 0x300   : > { %v1175_v36 = vpop.f32.mrf.mxu0  ;;  %v2869_v26 = vpop.f32.mrf.mxu1  ;;  %v1774_v30 = vmax.f32 %v1772_v57, %v1773_v50  ;;  %v3467_v7 = vmax.f32 %v3465_v34, %v3466_v4  ;;  %v9887_v16 = vsel %vm1230_vm1, %v9812_v23, -inf  ;;  %v1678_v10 = vmax.f32 %v9836_v61, %v1677_v52 }
 0x301   : > { %v2047_v12 = vmax.f32 %v2045_v9, %v11573_v37  ;;  %v3740_v55 = vmax.f32 %v3738_v31, %v11574_v32  ;;  %v1777_v40 = vsel %vm1230_vm1, %v1175_v36, -inf  ;;  %v3470_v38 = vsel %vm1230_vm1, %v2869_v26, -inf  ;;  %v8005_v36 = vld [vmem:[%s11345_s4 + $0x8] sm:$0xff] }
 0x302   : > { %v1775_v33 = vrot.slane %v1774_v30, 1  ;;  %v3468_v45 = vrot.slane %v3467_v7, 1  ;;  %v1778_v29 = vrot.slane %v1777_v40, 4  ;;  %vm4151_vm10 = vweird.f32 %v9843_v63  ;;  %4288 = vmatpush.bf16.msrb.mxu2 %v8005_v36  ;;  %v9944_v36 = vld [vmem:[%s11343_s2 + $0x3] ss:$0 sm:$0xff] }
 0x303   : > { %v2160_v47 = vadd.f32 %v2096_v51, %v2047_v12  ;;  %v3471_v22 = vrot.slane %v3470_v38, 4  ;;  %v3852_v0 = vadd.f32 %v3788_v35, %v3740_v55  ;;  %v4149_v56 = vmul.f32 %v9843_v63, %v4148_v41  ;;  %vm9910_vm12 = vmor %vm4150_vm11, %vm4151_vm10  ;;  %v11578_v35 = vld [vmem:[#allocation26_spill] sm:$0xff] }
 0x304   : > { %v1776_v23 = vmax.f32 %v1774_v30, %v1775_v33  ;;  %v3469_v43 = vmax.f32 %v3467_v7, %v3468_v45  ;;  %v1779_v25 = vmax.f32 %v1777_v40, %v1778_v29  ;;  %v3789_v52 = vrot.slane %v9810_v3, 5 }
 0x305   : > { %v3472_v61 = vmax.f32 %v3470_v38, %v3471_v22  ;;  %v4035_v42 = vrot.slane %v3852_v0, 4  ;;  %v2097_v51 = vrot.slane %v9821_v21, 5  ;;  %v3943_v57 = vrot.slane %v2160_v47, 4  ;;  %v11579_v0 = vld [vmem:[#allocation10_spill] sm:$0xff] }
 0x306   : > { %v2049_v34 = vsel %vm1230_vm1, %v1776_v23, -inf  ;;  %v3742_v54 = vsel %vm1230_vm1, %v3469_v43, -inf  ;;  %v1780_v28 = vrot.slane %v1779_v25, 2  ;;  %v4153_v12 = vsel %vm9910_vm12, %v9843_v63, %v4149_v56  ;;  %v8004_v63 = vld [vmem:[%s11345_s4] sm:$0xff] }
 0x307   : > { %v2050_v44 = vmax.f32 %v9786_v14, %v2049_v34  ;;  %v3743_v49 = vmax.f32 %v9802_v53, %v3742_v54  ;;  %v3473_v62 = vrot.slane %v3472_v61, 2  ;;  %v4036_v31 = vsel %vm3898_vm5, %v4035_v42, %v4034_v13  ;;  %v11577_v53 = vld [vmem:[#allocation25_spill] sm:$0xff]  ;;  %4289 = vmatpush.bf16.msrb.mxu2 %v8004_v63 }
 0x308   : > { %v1177_v18 = vpop.f32.mrf.mxu0  ;;  %v2871_v9 = vpop.f32.mrf.mxu1  ;;  %v1781_v50 = vmax.f32 %v1779_v25, %v1780_v28  ;;  %v3944_v30 = vsel %vm3898_vm5, %v3943_v57, %v3942_v6  ;;  %v9921_v33 = vsel %vm1230_vm1, %v1678_v10, -inf  ;;  %v9924_v45 = vsel %vm1230_vm1, %v3371_v8, -inf }
 0x309   : > { %v1784_v4 = vsel %vm1230_vm1, %v1177_v18, -inf  ;;  %v3477_v41 = vsel %vm1230_vm1, %v2871_v9, -inf  ;;  %v2052_v26 = vmax.f32 %v2050_v44, %v11577_v53  ;;  %v3745_v13 = vmax.f32 %v3743_v49, %v11578_v35  ;;  %v11580_v9 = vld [vmem:[#allocation29_spill] sm:$0xff] }
 0x30a   : > { %v3474_v60 = vmax.f32 %v3472_v61, %v3473_v62  ;;  %v1785_v37 = vrot.slane %v1784_v4, 4  ;;  %v1782_v32 = vrot.slane %v1781_v50, 1  ;;  %v3478_v55 = vrot.slane %v3477_v41, 4 }
 0x30b   : > { %v3853_v38 = vadd.f32 %v3789_v52, %v3745_v13  ;;  %v2161_v47 = vadd.f32 %v2097_v51, %v2052_v26  ;;  %v4224_v56 = vmul.f32 %v4153_v12, %v11579_v0  ;;  %v3790_v43 = vrot.slane %v9810_v3, 6 }
 0x30c   : > { %v3475_v7 = vrot.slane %v3474_v60, 1  ;;  %v1786_v40 = vmax.f32 %v1784_v4, %v1785_v37  ;;  %v1783_v29 = vmax.f32 %v1781_v50, %v1782_v32  ;;  %v3479_v22 = vmax.f32 %v3477_v41, %v3478_v55 }
 0x30d   : > { %v4109_v10 = vpop.xlane.xlu2 %4108  ;;  %v4037_v52 = vrot.slane %v3853_v38, 3  ;;  %v3945_v8 = vrot.slane %v2161_v47, 3  ;;  %v9948_v14 = vadd.f32 %v9807_v48, %v9771_v59  ;;  %v9953_v13 = vadd.f32 %v9807_v48, %v9765_v17 }
 0x30e   : > { %v3476_v23 = vmax.f32 %v3474_v60, %v3475_v7  ;;  %v1787_v6 = vrot.slane %v1786_v40, 2  ;;  %v2054_v25 = vsel %vm1230_vm1, %v1783_v29, -inf  ;;  %v3480_v61 = vrot.slane %v3479_v22, 2 }
 0x30f   : > { %v2055_v42 = vmax.f32 %v9826_v15, %v2054_v25  ;;  %v4129_v34 = vmul.f32 %v4109_v10, %v9388_v39  ;;  %v4038_v7 = vsel %vm3901_vm6, %v4037_v52, %v4036_v31  ;;  %v9959_v38 = vmul.f32 %v9944_v36, %v4224_v56 }
 0x310   : > { %v3747_v51 = vsel %vm1230_vm1, %v3476_v23, -inf  ;;  %v1788_v57 = vmax.f32 %v1786_v40, %v1787_v6  ;;  %v1180_v54 = vpop.f32.mrf.mxu0  ;;  %v2874_v28 = vpop.f32.mrf.mxu1  ;;  %v3481_v49 = vmax.f32 %v3479_v22, %v3480_v61  ;;  %v9962_v47 = vsel %vm3901_vm6, %v3945_v8, %v3944_v30 }
 0x311   : > { %v3748_v44 = vmax.f32 %v9887_v16, %v3747_v51  ;;  %v1791_v62 = vsel %vm1230_vm1, %v1180_v54, -inf  ;;  %v3484_v18 = vsel %vm1230_vm1, %v2874_v28, -inf  ;;  %v2057_v50 = vmax.f32 %v2055_v42, %v11580_v9  ;;  %v11581_v16 = vld [vmem:[#allocation32_spill] sm:$0xff] }
 0x312   : > { %v1789_v4 = vrot.slane %v1788_v57, 1  ;;  %v9939_v41 = vadd.f32 1e-05, %v4129_v34  ;;  %v1792_v15 = vrot.slane %v1791_v62, 4  ;;  %v3482_v26 = vrot.slane %v3481_v49, 1 }
 0x313   : > { %v3750_v53 = vmax.f32 %v3748_v44, %v11581_v16  ;;  %v3485_v35 = vrot.slane %v3484_v18, 4  ;;  %v3791_v6 = vrot.slane %v9810_v3, 7  ;;  %v2086_v3 = vrot.slane %v9948_v14, 1 }
 0x314   : > { %v1790_v60 = vmax.f32 %v1788_v57, %v1789_v4  ;;  %8113 = vrsqrt.f32 %v9939_v41  ;;  %v1793_v37 = vmax.f32 %v1791_v62, %v1792_v15  ;;  %v3483_v12 = vmax.f32 %v3481_v49, %v3482_v26  ;;  %v11582_v26 = vld [vmem:[#allocation35_spill] sm:$0xff] }
 0x315   : > { %v3486_v32 = vmax.f32 %v3484_v18, %v3485_v35  ;;  %v3854_v55 = vadd.f32 %v3790_v43, %v3750_v53  ;;  %v2098_v43 = vrot.slane %v9821_v21, 6  ;;  %v3778_v44 = vrot.slane %v9953_v13, 1 }
 0x316   : > { %v2059_v59 = vsel %vm1230_vm1, %v1790_v60, -inf  ;;  %v1794_v40 = vrot.slane %v1793_v37, 2  ;;  %v3752_v48 = vsel %vm1230_vm1, %v3483_v12, -inf  ;;  %vm4160_vm13 = vweird.f32 %v9939_v41  ;;  %v11583_v60 = vld [vmem:[#allocation40_spill] sm:$0xff] }
 0x317   : > { %v2060_v17 = vmax.f32 %v9921_v33, %v2059_v59  ;;  %v3487_v29 = vrot.slane %v3486_v32, 2  ;;  %v4039_v22 = vrot.slane %v3854_v55, 2  ;;  %v3753_v63 = vmax.f32 %v9924_v45, %v3752_v48 }
 0x318   : > { %v1795_v0 = vmax.f32 %v1793_v37, %v1794_v40  ;;  %v1182_v23 = vpop.f32.mrf.mxu0  ;;  %v2876_v31 = vpop.f32.mrf.mxu1  ;;  %v2099_v45 = vrot.slane %v9821_v21, 7  ;;  %v2162_v9 = vadd.f32 %v2098_v43, %v2057_v50  ;;  %v11584_v37 = vld [vmem:[#allocation23_spill] sm:$0xff]  ;;  %v11587_v43 = vld [vmem:[#allocation21_spill] sm:$0xff] }
 0x319   : > { %v3488_v56 = vmax.f32 %v3486_v32, %v3487_v29  ;;  %v1798_v25 = vsel %vm1230_vm1, %v1182_v23, -inf  ;;  %v3491_v30 = vsel %vm1230_vm1, %v2876_v31, -inf  ;;  %v4040_v33 = vsel %vm3904_vm7, %v4039_v22, %v4038_v7 }
 0x31a   : > { %v8114_v61 = vpop.eup %8113  ;;  %v1796_v10 = vrot.slane %v1795_v0, 1  ;;  %v1799_v52 = vrot.slane %v1798_v25, 4  ;;  %v3492_v8 = vrot.slane %v3491_v30, 4  ;;  %v3755_v57 = vmax.f32 %v3753_v63, %v9539_v46 }
 0x31b   : > { %v4155_v42 = vmul.f32 %v8114_v61, %v9939_v41  ;;  %v3489_v51 = vrot.slane %v3488_v56, 1  ;;  %vm4161_vm14 = vweird.f32 %v8114_v61  ;;  %v2062_v46 = vmax.f32 %v2060_v17, %v11582_v26  ;;  %v11594_v26 = vld [vmem:[#allocation28_spill] sm:$0xff] }
 0x31c   : > { %v1797_v34 = vmax.f32 %v1795_v0, %v1796_v10  ;;  %v1800_v54 = vmax.f32 %v1798_v25, %v1799_v52  ;;  %v3493_v28 = vmax.f32 %v3491_v30, %v3492_v8  ;;  %v3855_v18 = vadd.f32 %v3791_v6, %v3755_v57  ;;  %v11586_v6 = vld [vmem:[#allocation37_spill] sm:$0xff]  ;;  %v9996_v52 = vld [vmem:[%s11343_s2 + $0x4] ss:$0 sm:$0xff]  ;;  %vm4162_vm15 = vmor %vm4160_vm13, %vm4161_vm14 }
 0x31d   : > { %v4156_v49 = vmul.f32 %v8114_v61, %v4155_v42  ;;  %v3490_v62 = vmax.f32 %v3488_v56, %v3489_v51  ;;  %v11585_v12 = vmax.f32 %v11583_v60, %v11584_v37  ;;  %v3947_v22 = vrot.slane %v2162_v9, 2 }
 0x31e   : > { %v1801_v21 = vrot.slane %v1800_v54, 2  ;;  %v3494_v4 = vrot.slane %v3493_v28, 2  ;;  %v4041_v53 = vrot.slane %v3855_v18, 1  ;;  %v1986_v35 = vsel %vm1230_vm1, %v1797_v34, -inf }
 0x31f   : > { %v4157_v15 = vmul.f32 0.5, %v4156_v49  ;;  %v3679_v16 = vsel %vm1230_vm1, %v3490_v62, -inf  ;;  %v11588_v56 = vmax.f32 %v11586_v6, %v11587_v43  ;;  %v11589_v49 = vld [vmem:[#allocation20_spill] sm:$0xff]  ;;  %v2087_v43 = vrot.slane %v9948_v14, 2 }
 0x320   : > { %v3680_v32 = vmax.f32 %v11585_v12, %v3679_v16  ;;  %v1802_v55 = vmax.f32 %v1800_v54, %v1801_v21  ;;  %v3495_v7 = vmax.f32 %v3493_v28, %v3494_v4  ;;  %v1185_v50 = vpop.f32.mrf.mxu0  ;;  %v2879_v59 = vpop.f32.mrf.mxu1  ;;  %v9991_v10 = vsel %vm3907_vm8, %v4041_v53, %v4040_v33  ;;  %v11590_v21 = vld [vmem:[#allocation36_spill] sm:$0xff]  ;;  %v11591_v4 = vld [vmem:[#allocation27_spill] sm:$0xff]  ;;  %v11593_v53 = vld [vmem:[#allocation41_spill] sm:$0xff] }
 0x321   : > { %v4158_v40 = vsub.f32 1.5, %v4157_v15  ;;  %v1805_v48 = vsel %vm1230_vm1, %v1185_v50, -inf  ;;  %v3498_v29 = vsel %vm1230_vm1, %v2879_v59, -inf  ;;  %v1987_v25 = vmax.f32 %v11588_v56, %v1986_v35 }
 0x322   : > { %v3840_v63 = vadd.f32 %v9953_v13, %v3680_v32  ;;  %v1803_v0 = vrot.slane %v1802_v55, 1  ;;  %v3496_v17 = vrot.slane %v3495_v7, 1  ;;  %v1806_v23 = vrot.slane %v1805_v48, 4 }
 0x323   : > { %v4159_v31 = vmul.f32 %v8114_v61, %v4158_v40  ;;  %v3499_v30 = vrot.slane %v3498_v29, 4  ;;  %v4070_v57 = vsel %vm1230_vm1, %v9991_v10, 0.0  ;;  %v2163_v33 = vadd.f32 %v2099_v45, %v2062_v46 }
 0x324   : > { %v1804_v8 = vmax.f32 %v1802_v55, %v1803_v0  ;;  %v3497_v42 = vmax.f32 %v3495_v7, %v3496_v17  ;;  %v1807_v51 = vmax.f32 %v1805_v48, %v1806_v23  ;;  %4071 = vadd.xlane.f32.xlu2 %v4070_v57  ;;  %v3948_v28 = vsel %vm3904_vm7, %v3947_v22, %v9962_v47 }
 0x325   : > { %v4163_v34 = vsel %vm4162_vm15, %v8114_v61, %v4159_v31  ;;  %v3500_v54 = vmax.f32 %v3498_v29, %v3499_v30  ;;  %v11592_v15 = vmax.f32 %v11590_v21, %v11591_v4  ;;  %v11595_v61 = vmax.f32 %v11593_v53, %v11594_v26 }
 0x326   : > { %v4225_v62 = vmul.f32 %v4163_v34, %v11589_v49  ;;  %v1991_v18 = vsel %vm1230_vm1, %v1804_v8, -inf  ;;  %v3684_v41 = vsel %vm1230_vm1, %v3497_v42, -inf  ;;  %v1808_v9 = vrot.slane %v1807_v51, 2 }
 0x327   : > { %v1992_v16 = vmax.f32 %v11592_v15, %v1991_v18  ;;  %v3685_v35 = vmax.f32 %v11595_v61, %v3684_v41  ;;  %v3501_v60 = vrot.slane %v3500_v54, 2  ;;  %v4242_v45 = vadd.f32 %v9996_v52, %v9959_v38 }
 0x328   : > { %v2148_v47 = vadd.f32 %v9948_v14, %v1987_v25  ;;  %v1809_v46 = vmax.f32 %v1807_v51, %v1808_v9  ;;  %v1187_v37 = vpop.f32.mrf.mxu0  ;;  %v2881_v12 = vpop.f32.mrf.mxu1  ;;  %v4234_v32 = vmul.f32 %v9944_v36, %v4225_v62  ;;  %v3949_v55 = vrot.slane %v2163_v33, 1 }
 0x329   : > { %v2149_v7 = vadd.f32 %v2086_v3, %v1992_v16  ;;  %v3841_v50 = vadd.f32 %v3778_v44, %v3685_v35  ;;  %v3502_v59 = vmax.f32 %v3500_v54, %v3501_v60  ;;  %v1812_v40 = vsel %vm1230_vm1, %v1187_v37, -inf }
 0x32a   : > { %v1810_v48 = vrot.slane %v1809_v46, 1  ;;  %v1813_v29 = vrot.slane %v1812_v40, 4  ;;  %v3505_v22 = vsel %vm1230_vm1, %v2881_v12, -inf  ;;  %v4243_v0 = vadd.f32 %v9996_v52, %v4234_v32 }
 0x32b   : > { %v3923_v38 = vrot.slane %v2149_v7, 7  ;;  %v4015_v17 = vrot.slane %v3841_v50, 7  ;;  %v3503_v23 = vrot.slane %v3502_v59, 1  ;;  %v3506_v31 = vrot.slane %v3505_v22, 4 }
 0x32c   : > { %v1811_v6 = vmax.f32 %v1809_v46, %v1810_v48  ;;  %v1814_v56 = vmax.f32 %v1812_v40, %v1813_v29  ;;  %v4250_v25 = vpack.c.bf16 %v4243_v0, %v4242_v45  ;;  %v3779_v51 = vrot.slane %v9953_v13, 2  ;;  %v11599_v29 = vld [vmem:[#allocation13_spill] sm:$0xff] }
 0x32d   : > { %v4016_v3 = vsel %vm3889_vm2, %v4015_v17, %v3840_v63  ;;  %v3504_v44 = vmax.f32 %v3502_v59, %v3503_v23  ;;  %v3507_v30 = vmax.f32 %v3505_v22, %v3506_v31  ;;  %v3924_v8 = vsel %vm3889_vm2, %v3923_v38, %v2148_v47  ;;  %v11600_v22 = vld [vmem:[#allocation33_spill] sm:$0xff] }
 0x32e   : > { %v1996_v42 = vsel %vm1230_vm1, %v1811_v6, -inf  ;;  %v1815_v57 = vrot.slane %v1814_v56, 2  ;;  %7702 = vmatmul.msk.bf16.vlgmr.msrb.gmra.mxu2 %vm1230_vm1, %v4250_v25  ;;  %v10028_v34 = vsel %vm3907_vm8, %v3949_v55, %v3948_v28  ;;  %v11596_v54 = vmax.f32 %v9560_v1, %v9648_v2 }
 0x32f   : > { %v3689_v63 = vsel %vm1230_vm1, %v3504_v44, -inf  ;;  %v3508_v49 = vrot.slane %v3507_v30, 2  ;;  %v11597_v62 = vmax.f32 %v9567_v20, %v9651_v19  ;;  %v2088_v20 = vrot.slane %v9948_v14, 3 }
 0x330   : > { %v1997_v33 = vmax.f32 %v11596_v54, %v1996_v42  ;;  %v1816_v41 = vmax.f32 %v1814_v56, %v1815_v57  ;;  %v1190_v9 = vpop.f32.mrf.mxu0  ;;  %v2884_v21 = vpop.f32.mrf.mxu1  ;;  %v3780_v37 = vrot.slane %v9953_v13, 3  ;;  %v11598_v59 = vmax.f32 %v9570_v5, %v9676_v11 }
 0x331   : > { %v3690_v18 = vmax.f32 %v11597_v62, %v3689_v63  ;;  %v3509_v15 = vmax.f32 %v3507_v30, %v3508_v49  ;;  %v1819_v16 = vsel %vm1230_vm1, %v1190_v9, -inf  ;;  %v3512_v28 = vsel %vm1230_vm1, %v2884_v21, -inf }
 0x332   : > { %v2150_v4 = vadd.f32 %v2087_v43, %v1997_v33  ;;  %v1817_v26 = vrot.slane %v1816_v41, 1  ;;  %v1820_v1 = vrot.slane %v1819_v16, 4  ;;  %v3513_v2 = vrot.slane %v3512_v28, 4 }
 0x333   : > { %v3842_v53 = vadd.f32 %v3779_v51, %v3690_v18  ;;  %v3510_v35 = vrot.slane %v3509_v15, 1  ;;  %v11601_v0 = vmax.f32 %v11599_v29, %v11600_v22  ;;  %v2089_v33 = vrot.slane %v9948_v14, 4 }
 0x334   : > { %v3925_v61 = vrot.slane %v2150_v4, 6  ;;  %v1818_v45 = vmax.f32 %v1816_v41, %v1817_v26  ;;  %v1821_v47 = vmax.f32 %v1819_v16, %v1820_v1  ;;  %v3514_v19 = vmax.f32 %v3512_v28, %v3513_v2  ;;  %v11602_v4 = vld [vmem:[#allocation14_spill] sm:$0xff] }
 0x335   : > { %v4017_v60 = vrot.slane %v3842_v53, 6  ;;  %v3511_v46 = vmax.f32 %v3509_v15, %v3510_v35  ;;  %v3781_v63 = vrot.slane %v9953_v13, 4  ;;  %v11603_v15 = vld [vmem:[#allocation34_spill] sm:$0xff]  ;;  %v11605_v53 = vld [vmem:[#allocation16_spill] sm:$0xff] }
 0x336   : > { %v3926_v12 = vsel %vm3892_vm3, %v3925_v61, %v3924_v8  ;;  %v2001_v32 = vsel %vm1230_vm1, %v1818_v45, -inf  ;;  %v1822_v55 = vrot.slane %v1821_v47, 2  ;;  %v3515_v7 = vrot.slane %v3514_v19, 2  ;;  %v11606_v26 = vld [vmem:[#allocation38_spill] sm:$0xff] }
 0x337   : > { %v4018_v50 = vsel %vm3892_vm3, %v4017_v60, %v4016_v3  ;;  %v2002_v40 = vmax.f32 %v11598_v59, %v2001_v32  ;;  %v3694_v48 = vsel %vm1230_vm1, %v3511_v46, -inf  ;;  %v11604_v16 = vmax.f32 %v11602_v4, %v11603_v15 }
 0x338   : > { %v3695_v38 = vmax.f32 %v11601_v0, %v3694_v48  ;;  %v1823_v17 = vmax.f32 %v1821_v47, %v1822_v55  ;;  %v3516_v23 = vmax.f32 %v3514_v19, %v3515_v7  ;;  %v1192_v31 = vpop.f32.mrf.mxu0  ;;  %v2886_v6 = vpop.f32.mrf.mxu1  ;;  %v11607_v1 = vmax.f32 %v11605_v53, %v11606_v26 }
 0x339   : > { %v2151_v43 = vadd.f32 %v2088_v20, %v2002_v40  ;;  %v1826_v56 = vsel %vm1230_vm1, %v1192_v31, -inf  ;;  %v3519_v25 = vsel %vm1230_vm1, %v2886_v6, -inf  ;;  %v2090_v48 = vrot.slane %v9948_v14, 5 }
 0x33a   : > { %v3843_v3 = vadd.f32 %v3780_v37, %v3695_v38  ;;  %v1824_v44 = vrot.slane %v1823_v17, 1  ;;  %v3517_v30 = vrot.slane %v3516_v23, 1  ;;  %v1827_v5 = vrot.slane %v1826_v56, 4 }
 0x33b   : > { %v3927_v11 = vrot.slane %v2151_v43, 5  ;;  %v3520_v8 = vrot.slane %v3519_v25, 4  ;;  %v3782_v31 = vrot.slane %v9953_v13, 5  ;;  %v11608_v43 = vld [vmem:[#allocation39_spill] sm:$0xff]  ;;  %v2091_v26 = vrot.slane %v9948_v14, 6 }
 0x33c   : > { %v4019_v42 = vrot.slane %v3843_v3, 5  ;;  %v1825_v51 = vmax.f32 %v1823_v17, %v1824_v44  ;;  %v3518_v57 = vmax.f32 %v3516_v23, %v3517_v30  ;;  %v1828_v54 = vmax.f32 %v1826_v56, %v1827_v5  ;;  %v11610_v30 = vld [vmem:[#allocation17_spill] sm:$0xff] }
 0x33d   : > { %v3521_v49 = vmax.f32 %v3519_v25, %v3520_v8  ;;  %v3928_v62 = vsel %vm3895_vm4, %v3927_v11, %v3926_v12  ;;  %v11609_v56 = vmax.f32 %v9587_v24, %v11608_v43  ;;  %v11611_v5 = vld [vmem:[#allocation9_spill] sm:$0xff]  ;;  %v11618_v43 = vld [vmem:[#allocation7_spill] sm:$0xff] }
 0x33e   : > { %v2006_v18 = vsel %vm1230_vm1, %v1825_v51, -inf  ;;  %v3699_v41 = vsel %vm1230_vm1, %v3518_v57, -inf  ;;  %v1829_v9 = vrot.slane %v1828_v54, 2  ;;  %v4020_v21 = vsel %vm3895_vm4, %v4019_v42, %v4018_v50 }
 0x33f   : > { %v2007_v28 = vmax.f32 %v11604_v16, %v2006_v18  ;;  %v3700_v2 = vmax.f32 %v11607_v1, %v3699_v41  ;;  %v3522_v61 = vrot.slane %v3521_v49, 2  ;;  %v11612_v11 = vmax.f32 %v11610_v30, %v11611_v5 }
 0x340   : > { %v1830_v35 = vmax.f32 %v1828_v54, %v1829_v9  ;;  %v1195_v60 = vpop.f32.mrf.mxu0  ;;  %v2889_v45 = vpop.f32.mrf.mxu1 }
 0x341   : > { %v2152_v47 = vadd.f32 %v2089_v33, %v2007_v28  ;;  %v3844_v19 = vadd.f32 %v3781_v63, %v3700_v2  ;;  %v3523_v20 = vmax.f32 %v3521_v49, %v3522_v61  ;;  %v1833_v46 = vsel %vm1230_vm1, %v1195_v60, -inf }
 0x342   : > { %v1831_v37 = vrot.slane %v1830_v35, 1  ;;  %v1834_v12 = vrot.slane %v1833_v46, 4  ;;  %v3526_v32 = vsel %vm1230_vm1, %v2889_v45, -inf  ;;  %v3783_v2 = vrot.slane %v9953_v13, 6 }
 0x343   : > { %v3929_v55 = vrot.slane %v2152_v47, 4  ;;  %v4021_v7 = vrot.slane %v3844_v19, 4  ;;  %v3524_v50 = vrot.slane %v3523_v20, 1  ;;  %v3527_v59 = vrot.slane %v3526_v32, 4 }
 0x344   : > { %v1832_v40 = vmax.f32 %v1830_v35, %v1831_v37  ;;  %v1835_v29 = vmax.f32 %v1833_v46, %v1834_v12  ;;  %v11613_v47 = vmax.f32 %v9623_v27, %v9741_v58  ;;  %v11614_v46 = vld [vmem:[#allocation24_spill] sm:$0xff]  ;;  %v11615_v37 = vld [vmem:[#allocation5_spill] sm:$0xff]  ;;  %v3784_v27 = vrot.slane %v9953_v13, 7 }
 0x345   : > { %v3525_v22 = vmax.f32 %v3523_v20, %v3524_v50  ;;  %v3528_v0 = vmax.f32 %v3526_v32, %v3527_v59  ;;  %v3930_v38 = vsel %vm3898_vm5, %v3929_v55, %v3928_v62  ;;  %v4022_v17 = vsel %vm3898_vm5, %v4021_v7, %v4020_v21 }
 0x346   : > { %v2011_v23 = vsel %vm1230_vm1, %v1832_v40, -inf  ;;  %v1836_v6 = vrot.slane %v1835_v29, 2  ;;  %v11616_v12 = vmax.f32 %v11614_v46, %v11615_v37 }
 0x347   : > { %v2012_v25 = vmax.f32 %v11609_v56, %v2011_v23  ;;  %v3704_v3 = vsel %vm1230_vm1, %v3525_v22, -inf  ;;  %v3529_v44 = vrot.slane %v3528_v0, 2 }
 0x348   : > { %v3705_v8 = vmax.f32 %v11612_v11, %v3704_v3  ;;  %v1837_v42 = vmax.f32 %v1835_v29, %v1836_v6  ;;  %v1197_v51 = vpop.f32.mrf.mxu0  ;;  %v2891_v57 = vpop.f32.mrf.mxu1  ;;  %v11617_v6 = vld [vmem:[#allocation30_spill] sm:$0xff]  ;;  %v11620_v3 = vld [vmem:[#allocation31_spill] sm:$0xff]  ;;  %v2092_v11 = vrot.slane %v9948_v14, 7 }
 0x349   : > { %v2153_v54 = vadd.f32 %v2090_v48, %v2012_v25  ;;  %v3530_v33 = vmax.f32 %v3528_v0, %v3529_v44  ;;  %v1840_v63 = vsel %vm1230_vm1, %v1197_v51, -inf  ;;  %v3533_v49 = vsel %vm1230_vm1, %v2891_v57, -inf  ;;  %v11621_v44 = vld [vmem:[#allocation11_spill] sm:$0xff] }
 0x34a   : > { %v3845_v62 = vadd.f32 %v3782_v31, %v3705_v8  ;;  %v1838_v18 = vrot.slane %v1837_v42, 1  ;;  %v1841_v24 = vrot.slane %v1840_v63, 4  ;;  %v3534_v41 = vrot.slane %v3533_v49, 4 }
 0x34b   : > { %v3531_v9 = vrot.slane %v3530_v33, 1  ;;  %v3931_v21 = vrot.slane %v2153_v54, 3  ;;  %v11619_v56 = vmax.f32 %v11617_v6, %v11618_v43  ;;  %v11622_v30 = vmax.f32 %v11620_v3, %v11621_v44 }
 0x34c   : > { %v4023_v4 = vrot.slane %v3845_v62, 3  ;;  %v1839_v15 = vmax.f32 %v1837_v42, %v1838_v18  ;;  %v1842_v16 = vmax.f32 %v1840_v63, %v1841_v24  ;;  %v3535_v28 = vmax.f32 %v3533_v49, %v3534_v41  ;;  %v4063_v41 = vpop.xlane.xlu2 %4062 }
 0x34d   : > { %v3532_v53 = vmax.f32 %v3530_v33, %v3531_v9  ;;  %v3932_v1 = vsel %vm3901_vm6, %v3931_v21, %v3930_v38  ;;  %v4058_v63 = vsel %vm1230_vm1, %v10028_v34, 0.0 }
 0x34e   : > { %v2016_v61 = vsel %vm1230_vm1, %v1839_v15, -inf  ;;  %v1843_v35 = vrot.slane %v1842_v16, 2  ;;  %v3536_v60 = vrot.slane %v3535_v28, 2  ;;  %v4024_v45 = vsel %vm3901_vm6, %v4023_v4, %v4022_v17 }
 0x34f   : > { %v2017_v19 = vmax.f32 %v11613_v47, %v2016_v61  ;;  %v3709_v20 = vsel %vm1230_vm1, %v3532_v53, -inf  ;;  %v4084_v4 = vmul.f32 %v9388_v39, %v4063_v41 }
 0x350   : > { %v3710_v32 = vmax.f32 %v11616_v12, %v3709_v20  ;;  %v1844_v55 = vmax.f32 %v1842_v16, %v1843_v35  ;;  %v3537_v7 = vmax.f32 %v3535_v28, %v3536_v60  ;;  %v11623_v28 = vld [vmem:[#allocation3_spill] sm:$0xff] }
 0x351   : > { %v2154_v50 = vadd.f32 %v2091_v26, %v2017_v19  ;;  %v10122_v53 = vsub.f32 %v11623_v28, %v4084_v4  ;;  %v11624_v26 = vld [vmem:[#allocation4_spill] sm:$0xff] }
 0x352   : > { %v1845_v59 = vrot.slane %v1844_v55, 1  ;;  %v3538_v40 = vrot.slane %v3537_v7, 1  ;;  %v3846_v48 = vadd.f32 %v3783_v2, %v3710_v32 }
 0x353   : > { %v3933_v29 = vrot.slane %v2154_v50, 2  ;;  %v4100_v60 = vmul.f32 %v10122_v53, %v10122_v53 }
 0x354   : > { %v1846_v22 = vmax.f32 %v1844_v55, %v1845_v59  ;;  %v3539_v0 = vmax.f32 %v3537_v7, %v3538_v40  ;;  %v4025_v38 = vrot.slane %v3846_v48, 2 }
 0x355   : > { %v3934_v17 = vsel %vm3904_vm7, %v3933_v29, %v3932_v1  ;;  %v4064_v1 = vsel %vm1230_vm1, %v11624_v26, 0.0  ;;  %v4116_v47 = vsel %vm1230_vm1, %v4100_v60, 0.0 }
 0x356   : > { %v2021_v58 = vsel %vm1230_vm1, %v1846_v22, -inf  ;;  %v3714_v23 = vsel %vm1230_vm1, %v3539_v0, -inf  ;;  %v4026_v31 = vsel %vm3904_vm7, %v4025_v38, %v4024_v45 }
 0x357   : > { %v2022_v25 = vmax.f32 %v11619_v56, %v2021_v58  ;;  %v3715_v5 = vmax.f32 %v11622_v30, %v3714_v23 }
 0x359   : > { %v2155_v8 = vadd.f32 %v2092_v11, %v2022_v25  ;;  %v3847_v42 = vadd.f32 %v3784_v27, %v3715_v5 }
 0x35b   : > { %v3935_v51 = vrot.slane %v2155_v8, 1  ;;  %v4027_v13 = vrot.slane %v3847_v42, 1 }
 0x35d   : > { %v10106_v57 = vsel %vm3907_vm8, %v3935_v51, %v3934_v17  ;;  %v10109_v54 = vsel %vm3907_vm8, %v4027_v13, %v4026_v31 }
 0x35e   : > { %v4055_v33 = vsel %vm1230_vm1, %v10106_v57, 0.0  ;;  %v4067_v19 = vsel %vm1230_vm1, %v10109_v54, 0.0 }
 0x35f   : > { %4056 = vadd.xlane.f32.xlu1 %v4055_v33 }
 0x367   : > { %4059 = vadd.xlane.f32.xlu1 %v4058_v63 }
 0x397   : > { %v4072_v61 = vpop.xlane.xlu2 %4071 }
 0x398   : > { %v4087_v35 = vmul.f32 %v9388_v39, %v4072_v61 }
 0x39a   : > { %v10131_v45 = vsub.f32 %v9991_v10, %v4087_v35 }
 0x39c   : > { %v4103_v20 = vmul.f32 %v10131_v45, %v10131_v45 }
 0x39e   : > { %v4125_v46 = vsel %vm1230_vm1, %v4103_v20, 0.0 }
 0x3d2   : > { %v4057_v49 = vpop.xlane.xlu1 %4056 }
 0x3d3   : > { %v4082_v14 = vmul.f32 %v9388_v39, %v4057_v49  ;;  %v4291_v49 = vpop.f32.mrf.mxu2 }
 0x3d5   : > { %v4090_v62 = vsub.f32 %v10106_v57, %v4082_v14 }
 0x3d7   : > { %v4098_v18 = vmul.f32 %v4090_v62, %v4090_v62 }
 0x3d9   : > { %v4110_v24 = vsel %vm1230_vm1, %v4098_v18, 0.0 }
 0x3da   : > { %4111 = vadd.xlane.f32.xlu0 %v4110_v24  ;;  %v4060_v9 = vpop.xlane.xlu1 %4059 }
 0x3db   : > { %v4083_v21 = vmul.f32 %v9388_v39, %v4060_v9  ;;  %v4293_v9 = vpop.f32.mrf.mxu2 }
 0x3dd   : > { %v4091_v15 = vsub.f32 %v10028_v34, %v4083_v21  ;;  %v10160_v21 = vpack.c.bf16 %v4293_v9, %v4291_v49 }
 0x3df   : > { %v4099_v16 = vmul.f32 %v4091_v15, %v4091_v15 }
 0x3e1   : > { %v4113_v2 = vsel %vm1230_vm1, %v4099_v16, 0.0 }
 0x3e2   : > { %4065 = vadd.xlane.f32.xlu0 %v4064_v1  ;;  %4114 = vadd.xlane.f32.xlu1 %v4113_v2 }
 0x3ea   : > { %4117 = vadd.xlane.f32.xlu0 %v4116_v47  ;;  %4068 = vadd.xlane.f32.xlu1 %v4067_v19 }
 0x3f2   : > { %4126 = vadd.xlane.f32.xlu0 %v4125_v46 }
 0x44d   : > { %v4112_v37 = vpop.xlane.xlu0 %4111 }
 0x44e   : > { %v4130_v12 = vmul.f32 %v4112_v37, %v9388_v39 }
 0x450   : > { %v4138_v32 = vadd.f32 1e-05, %v4130_v12 }
 0x452   : > { %8115 = vrsqrt.f32 %v4138_v32  ;;  %vm4170_vm4 = vweird.f32 %v4138_v32 }
 0x455   : > { %v4066_v55 = vpop.xlane.xlu0 %4065  ;;  %v4115_v7 = vpop.xlane.xlu1 %4114 }
 0x456   : > { %v4085_v50 = vmul.f32 %v9388_v39, %v4066_v55  ;;  %v4131_v59 = vmul.f32 %v4115_v7, %v9388_v39 }
 0x458   : > { %v8116_v40 = vpop.eup %8115  ;;  %v10143_v48 = vsub.f32 %v11624_v26, %v4085_v50  ;;  %v4139_v29 = vadd.f32 1e-05, %v4131_v59 }
 0x459   : > { %v4165_v22 = vmul.f32 %v8116_v40, %v4138_v32  ;;  %vm4171_vm3 = vweird.f32 %v8116_v40 }
 0x45a   : > { %8117 = vrsqrt.f32 %v4139_v29  ;;  %v4101_v0 = vmul.f32 %v10143_v48, %v10143_v48  ;;  %vm4172_vm5 = vmor %vm4170_vm4, %vm4171_vm3  ;;  %vm4180_vm7 = vweird.f32 %v4139_v29 }
 0x45b   : > { %v4166_v38 = vmul.f32 %v8116_v40, %v4165_v22 }
 0x45c   : > { %v4119_v17 = vsel %vm1230_vm1, %v4101_v0, 0.0 }
 0x45d   : > { %v4167_v27 = vmul.f32 0.5, %v4166_v38  ;;  %4120 = vadd.xlane.f32.xlu1 %v4119_v17  ;;  %v4069_v58 = vpop.xlane.xlu1 %4068 }
 0x45e   : > { %v4086_v23 = vmul.f32 %v9388_v39, %v4069_v58 }
 0x45f   : > { %v4168_v31 = vsub.f32 1.5, %v4167_v27 }
 0x460   : > { %v8118_v6 = vpop.eup %8117  ;;  %v10150_v43 = vsub.f32 %v10109_v54, %v4086_v23 }
 0x461   : > { %v4169_v56 = vmul.f32 %v8116_v40, %v4168_v31  ;;  %v4175_v25 = vmul.f32 %v8118_v6, %v4139_v29  ;;  %vm4181_vm6 = vweird.f32 %v8118_v6 }
 0x462   : > { %v4102_v3 = vmul.f32 %v10150_v43, %v10150_v43  ;;  %vm4182_vm8 = vmor %vm4180_vm7, %vm4181_vm6 }
 0x463   : > { %v4176_v44 = vmul.f32 %v8118_v6, %v4175_v25  ;;  %v4173_v5 = vsel %vm4172_vm5, %v8116_v40, %v4169_v56 }
 0x464   : > { %v4122_v30 = vsel %vm1230_vm1, %v4102_v3, 0.0  ;;  %v4226_v42 = vmul.f32 %v4173_v5, %v4090_v62  ;;  %v4118_v62 = vpop.xlane.xlu0 %4117 }
 0x465   : > { %v4177_v11 = vmul.f32 0.5, %v4176_v44  ;;  %4123 = vadd.xlane.f32.xlu2 %v4122_v30  ;;  %v4132_v4 = vmul.f32 %v4118_v62, %v9388_v39 }
 0x466   : > { %v4235_v63 = vmul.f32 %v9944_v36, %v4226_v42 }
 0x467   : > { %v4178_v8 = vsub.f32 1.5, %v4177_v11 }
 0x468   : > { %v4244_v18 = vadd.f32 %v9996_v52, %v4235_v63 }
 0x469   : > { %v4179_v51 = vmul.f32 %v8118_v6, %v4178_v8 }
 0x46b   : > { %v4183_v13 = vsel %vm4182_vm8, %v8118_v6, %v4179_v51 }
 0x46c   : > { %v4227_v33 = vmul.f32 %v4183_v13, %v4091_v15  ;;  %v4140_v15 = vadd.f32 1e-05, %v4132_v4  ;;  %v4127_v16 = vpop.xlane.xlu0 %4126 }
 0x46d   : > { %v4135_v2 = vmul.f32 %v4127_v16, %v9388_v39 }
 0x46e   : > { %v4236_v14 = vmul.f32 %v9944_v36, %v4227_v33  ;;  %8119 = vrsqrt.f32 %v4140_v15  ;;  %vm4190_vm10 = vweird.f32 %v4140_v15 }
 0x46f   : > { %v4143_v35 = vadd.f32 1e-05, %v4135_v2 }
 0x470   : > { %v4245_v24 = vadd.f32 %v9996_v52, %v4236_v14 }
 0x471   : > { %8121 = vrsqrt.f32 %v4143_v35  ;;  %vm4220_vm6 = vweird.f32 %v4143_v35 }
 0x472   : > { %v4251_v41 = vpack.c.bf16 %v4245_v24, %v4244_v18 }
 0x474   : > { %7703 = vmatmul.msk.bf16.gmra.mxu2 %vm1230_vm1, %v4251_v41  ;;  %v8120_v1 = vpop.eup %8119 }
 0x475   : > { %v4185_v61 = vmul.f32 %v8120_v1, %v4140_v15  ;;  %vm4191_vm9 = vweird.f32 %v8120_v1 }
 0x476   : > { %vm4192_vm11 = vmor %vm4190_vm10, %vm4191_vm9 }
 0x477   : > { %v4186_v60 = vmul.f32 %v8120_v1, %v4185_v61  ;;  %v8122_v32 = vpop.eup %8121 }
 0x478   : > { %v4215_v40 = vmul.f32 %v8122_v32, %v4143_v35  ;;  %vm4221_vm3 = vweird.f32 %v8122_v32 }
 0x479   : > { %v4187_v46 = vmul.f32 0.5, %v4186_v60  ;;  %vm4222_vm7 = vmor %vm4220_vm6, %vm4221_vm3 }
 0x47a   : > { %v4216_v38 = vmul.f32 %v8122_v32, %v4215_v40 }
 0x47b   : > { %v4188_v37 = vsub.f32 1.5, %v4187_v46 }
 0x47c   : > { %v4217_v31 = vmul.f32 0.5, %v4216_v38 }
 0x47d   : > { %4315 = vrot.lane.b32.xlu2 %v10160_v21, %s8381_s15  ;;  %v4189_v59 = vmul.f32 %v8120_v1, %v4188_v37 }
 0x47e   : > { %v4218_v5 = vsub.f32 1.5, %v4217_v31 }
 0x47f   : > { %v4193_v0 = vsel %vm4192_vm11, %v8120_v1, %v4189_v59 }
 0x480   : > { %v4228_v23 = vmul.f32 %v4193_v0, %v10122_v53  ;;  %v4219_v13 = vmul.f32 %v8122_v32, %v4218_v5 }
 0x482   : > { %v4237_v30 = vmul.f32 %v9944_v36, %v4228_v23  ;;  %v4223_v49 = vsel %vm4222_vm7, %v8122_v32, %v4219_v13 }
 0x483   : > { %v4231_v18 = vmul.f32 %v4223_v49, %v10131_v45 }
 0x484   : > { %v4246_v51 = vadd.f32 %v9996_v52, %v4237_v30 }
 0x485   : > { %4435 = vrot.lane.b32.xlu2 %v10160_v21, %s8382_s16  ;;  %v4240_v9 = vmul.f32 %v9944_v36, %v4231_v18 }
 0x487   : > { %v4249_v4 = vadd.f32 %v9996_v52, %v4240_v9 }
 0x4d0   : > { %v4121_v47 = vpop.xlane.xlu1 %4120 }
 0x4d1   : > { %v4133_v19 = vmul.f32 %v4121_v47, %v9388_v39 }
 0x4d3   : > { %v4141_v20 = vadd.f32 1e-05, %v4133_v19 }
 0x4d5   : > { %8123 = vrsqrt.f32 %v4141_v20  ;;  %vm4200_vm13 = vweird.f32 %v4141_v20 }
 0x4d8   : > { %v4124_v12 = vpop.xlane.xlu2 %4123 }
 0x4d9   : > { %v4134_v55 = vmul.f32 %v4124_v12, %v9388_v39 }
 0x4db   : > { %v8124_v7 = vpop.eup %8123  ;;  %v4142_v50 = vadd.f32 1e-05, %v4134_v55 }
 0x4dc   : > { %v4195_v29 = vmul.f32 %v8124_v7, %v4141_v20  ;;  %vm4201_vm12 = vweird.f32 %v8124_v7 }
 0x4dd   : > { %8125 = vrsqrt.f32 %v4142_v50  ;;  %vm4202_vm14 = vmor %vm4200_vm13, %vm4201_vm12  ;;  %vm4210_vm4 = vweird.f32 %v4142_v50 }
 0x4de   : > { %v4196_v22 = vmul.f32 %v8124_v7, %v4195_v29 }
 0x4e0   : > { %v4197_v17 = vmul.f32 0.5, %v4196_v22 }
 0x4e2   : > { %v4198_v27 = vsub.f32 1.5, %v4197_v17 }
 0x4e3   : > { %v8126_v58 = vpop.eup %8125 }
 0x4e4   : > { %v4199_v6 = vmul.f32 %v8124_v7, %v4198_v27  ;;  %v4205_v56 = vmul.f32 %v8126_v58, %v4142_v50  ;;  %vm4211_vm15 = vweird.f32 %v8126_v58 }
 0x4e5   : > { %vm4212_vm5 = vmor %vm4210_vm4, %vm4211_vm15 }
 0x4e6   : > { %v4203_v25 = vsel %vm4202_vm14, %v8124_v7, %v4199_v6  ;;  %v4206_v3 = vmul.f32 %v8126_v58, %v4205_v56 }
 0x4e7   : > { %v4229_v44 = vmul.f32 %v4203_v25, %v10143_v48 }
 0x4e8   : > { %v4207_v11 = vmul.f32 0.5, %v4206_v3 }
 0x4e9   : > { %v4238_v8 = vmul.f32 %v9944_v36, %v4229_v44 }
 0x4ea   : > { %v4208_v42 = vsub.f32 1.5, %v4207_v11 }
 0x4eb   : > { %v4247_v53 = vadd.f32 %v9996_v52, %v4238_v8 }
 0x4ec   : > { %v4209_v33 = vmul.f32 %v8126_v58, %v4208_v42 }
 0x4ed   : > { %v4252_v63 = vpack.c.bf16 %v4247_v53, %v4246_v51 }
 0x4ee   : > { %v4213_v48 = vsel %vm4212_vm5, %v8126_v58, %v4209_v33 }
 0x4ef   : > { %7704 = vmatmul.msk.bf16.gmra.mxu2 %vm1230_vm1, %v4252_v63  ;;  %v4230_v14 = vmul.f32 %v4213_v48, %v10150_v43 }
 0x4f1   : > { %v4239_v24 = vmul.f32 %v9944_v36, %v4230_v14  ;;  %v4316_v36 = vpop.permute.xlu2 %4315 }
 0x4f2   : > { %v4326_v19 = vsel %vm820_vm0, %v4316_v36, 0 }
 0x4f3   : > { %v4248_v62 = vadd.f32 %v9996_v52, %v4239_v24 }
 0x4f5   : > { %v4253_v15 = vpack.c.bf16 %v4249_v4, %v4248_v62 }
 0x4f7   : > { %v4296_v41 = vpop.f32.mrf.mxu2 }
 0x4f9   : > { %v4436_v35 = vpop.permute.xlu2 %4435 }
 0x4fa   : > { %v4446_v20 = vsel %vm820_vm0, %v4436_v35, 0 }
 0x4ff   : > { %v4298_v16 = vpop.f32.mrf.mxu2  ;;  %7705 = vmatmul.msk.bf16.gmra.mxu2 %vm1230_vm1, %v4253_v15 }
 0x500   : > { %v10184_v1 = vpack.c.bf16 %v4298_v16, %v4296_v41 }
 0x502   : > { %4437 = vrot.lane.b32.xlu0 %v10184_v1, %s8382_s16  ;;  %4317 = vrot.lane.b32.xlu1 %v10184_v1, %s8381_s15 }
 0x50a   : > { %4433 = vrot.lane.b32.xlu0 %v10184_v1, %s8383_s17  ;;  %4431 = vrot.lane.b32.xlu1 %v10160_v21, %s8383_s17 }
 0x572   : > { %v4301_v52 = vpop.f32.mrf.mxu2 }
 0x574   : > { %v4438_v45 = vpop.permute.xlu0 %4437  ;;  %v4318_v43 = vpop.permute.xlu1 %4317 }
 0x575   : > { %v4449_v2 = vsel %vm820_vm0, %v4438_v45, 0  ;;  %v4329_v61 = vsel %vm820_vm0, %v4318_v43, 0 }
 0x576   : > { %4337 = vmatpush.bf16.xpose.msrb.mxu3 %v4329_v61  ;;  %4457 = vmatpush.bf16.xpose.msra.mxu2 %v4449_v2 }
 0x57a   : > { %v4303_v60 = vpop.f32.mrf.mxu2 }
 0x57b   : > { %v10196_v47 = vpack.c.bf16 %v4303_v60, %v4301_v52 }
 0x57c   : > { %v4432_v37 = vpop.permute.xlu1 %4431  ;;  %v4434_v55 = vpop.permute.xlu0 %4433 }
 0x57d   : > { %4575 = vrot.lane.b32.xlu1 %v10196_v47, %s8381_s15 }
 0x57e   : > { %4338 = vmatpush.bf16.xpose.msrb.mxu3 %v4326_v19  ;;  %4458 = vmatpush.bf16.xpose.msra.mxu2 %v4446_v20 }
 0x582   : > { %v4306_v46 = vpop.f32.mrf.mxu2 }
 0x585   : > { %4691 = vrot.lane.b32.xlu1 %v10196_v47, %s8383_s17  ;;  %7706 = vmatmul.msk.bf16.vlgmr.msrb.gmra.mxu3 %vm820_vm0, %v10160_v21 }
 0x586   : > { %7710 = vmatmul.msk.bf16.vlgmr.msra.gmra.mxu2 %vm820_vm0, %v4432_v37 }
 0x58a   : > { %v4308_v12 = vpop.f32.mrf.mxu2 }
 0x58b   : > { %v10207_v32 = vpack.c.bf16 %v4308_v12, %v4306_v46 }
 0x58d   : > { %4697 = vrot.lane.b32.xlu0 %v10207_v32, %s8382_s16  ;;  %4577 = vrot.lane.b32.xlu2 %v10207_v32, %s8381_s15 }
 0x595   : > { %4693 = vrot.lane.b32.xlu0 %v10207_v32, %s8383_s17  ;;  %4695 = vrot.lane.b32.xlu2 %v10196_v47, %s8382_s16 }
 0x596   : > { %7707 = vmatmul.msk.bf16.gmra.mxu3 %vm820_vm0, %v10184_v1  ;;  %7711 = vmatmul.msk.bf16.gmra.mxu2 %vm820_vm0, %v4434_v55 }
 0x59d   : > { %4400 = vrot.lane.b32.xlu0 %v10160_v21, %s8384_s18 }
 0x5e7   : > { %v4578_v7 = vpop.permute.xlu2 %4577 }
 0x5e8   : > { %v4589_v50 = vsel %vm820_vm0, %v4578_v7, 0 }
 0x5e9   : > { %4597 = vmatpush.bf16.xpose.msrb.mxu2 %v4589_v50 }
 0x5ef   : > { %v4576_v59 = vpop.permute.xlu1 %4575  ;;  %v4696_v0 = vpop.permute.xlu2 %4695 }
 0x5f0   : > { %v4586_v40 = vsel %vm820_vm0, %v4576_v59, 0  ;;  %v4706_v17 = vsel %vm820_vm0, %v4696_v0, 0 }
 0x5f1   : > { %4598 = vmatpush.bf16.xpose.msrb.mxu2 %v4586_v40 }
 0x5f7   : > { %v4692_v11 = vpop.permute.xlu1 %4691 }
 0x5f8   : > { %7714 = vmatmul.msk.bf16.vlgmr.msrb.gmra.mxu2 %vm820_vm0, %v10196_v47 }
 0x5ff   : > { %v4698_v29 = vpop.permute.xlu0 %4697 }
 0x600   : > { %v4709_v22 = vsel %vm820_vm0, %v4698_v29, 0 }
 0x601   : > { %4717 = vmatpush.bf16.xpose.msra.mxu2 %v4709_v22 }
 0x607   : > { %v4694_v14 = vpop.permute.xlu0 %4693 }
 0x608   : > { %v4340_v38 = vpop.f32.mrf.mxu3  ;;  %7715 = vmatmul.msk.bf16.gmra.mxu2 %vm820_vm0, %v10207_v32 }
 0x609   : > { %v4350_v27 = vmul.f32 0.25, %v4340_v38  ;;  %v4460_v58 = vpop.f32.mrf.mxu2  ;;  %4718 = vmatpush.bf16.xpose.msra.mxu2 %v4706_v17 }
 0x60a   : > { %v4470_v23 = vmul.f32 0.25, %v4460_v58 }
 0x60b   : > { %v4354_v31 = vsel %vm1230_vm1, %v4350_v27, -inf }
 0x60c   : > { %4355 = vmax.xlane.f32.xlu2 %v4354_v31  ;;  %v4474_v6 = vsel %vm1230_vm1, %v4470_v23, -inf }
 0x60d   : > { %4475 = vmax.xlane.f32.xlu1 %v4474_v6 }
 0x60f   : > { %v4401_v37 = vpop.permute.xlu0 %4400 }
 0x610   : > { %v4342_v56 = vpop.f32.mrf.mxu3 }
 0x611   : > { %v4351_v25 = vmul.f32 0.25, %v4342_v56  ;;  %v4462_v3 = vpop.f32.mrf.mxu2 }
 0x612   : > { %v10232_v44 = vmul.f32 0.25, %v4462_v3 }
 0x613   : > { %v4357_v30 = vsel %vm1230_vm1, %v4351_v25, -inf }
 0x614   : > { %v4477_v5 = vsel %vm1230_vm1, %v10232_v44, -inf }
 0x615   : > { %4358 = vmax.xlane.f32.xlu1 %v4357_v30  ;;  %4478 = vmax.xlane.f32.xlu0 %v4477_v5 }
 0x618   : > { %7718 = vmatmul.msk.bf16.vlgmr.msra.gmra.mxu2 %vm820_vm0, %v4692_v11 }
 0x619   : > { %v4345_v8 = vpop.f32.mrf.mxu3  ;;  %v4465_v42 = vpop.f32.mrf.mxu2 }
 0x61a   : > { %v10238_v51 = vmul.f32 0.25, %v4345_v8  ;;  %v10240_v53 = vmul.f32 0.25, %v4465_v42 }
 0x61c   : > { %v4360_v13 = vsel %vm1230_vm1, %v10238_v51, -inf  ;;  %v4480_v33 = vsel %vm1230_vm1, %v10240_v53, -inf }
 0x61d   : > { %4361 = vmax.xlane.f32.xlu0 %v4360_v13  ;;  %4481 = vmax.xlane.f32.xlu2 %v4480_v33 }
 0x621   : > { %v4347_v63 = vpop.f32.mrf.mxu3  ;;  %v4467_v18 = vpop.f32.mrf.mxu2 }
 0x622   : > { %v4353_v48 = vmul.f32 0.25, %v4347_v63  ;;  %v10250_v24 = vmul.f32 0.25, %v4467_v18 }
 0x624   : > { %v4363_v49 = vsel %vm1230_vm1, %v4353_v48, -inf  ;;  %v4483_v41 = vsel %vm1230_vm1, %v10250_v24, -inf }
 0x625   : > { %4364 = vmax.xlane.f32.xlu2 %v4363_v49 }
 0x628   : > { %7719 = vmatmul.msk.bf16.gmra.mxu2 %vm820_vm0, %v4694_v14 }
 0x62e   : > { %4402 = vrot.lane.b32.xlu1 %v10184_v1, %s8384_s18 }
 0x658   : > { %4484 = vmax.xlane.f32.xlu1 %v4483_v41 }
 0x67b   : > { %v4600_v9 = vpop.f32.mrf.mxu2 }
 0x67c   : > { %v10254_v62 = vmul.f32 0.25, %v4600_v9 }
 0x67e   : > { %v4614_v4 = vsel %vm1230_vm1, %v10254_v62, -inf }
 0x67f   : > { %v4356_v15 = vpop.xlane.xlu2 %4355  ;;  %4615 = vmax.xlane.f32.xlu2 %v4614_v4 }
 0x680   : > { %v4366_v16 = vsub.f32 %v4350_v27, %v4356_v15  ;;  %v4476_v2 = vpop.xlane.xlu1 %4475 }
 0x681   : > { %v4486_v20 = vsub.f32 %v4470_v23, %v4476_v2 }
 0x682   : > { %v4370_v36 = vmul.f32 1.442695, %v4366_v16 }
 0x683   : > { %v4602_v52 = vpop.f32.mrf.mxu2  ;;  %v4490_v55 = vmul.f32 1.442695, %v4486_v20 }
 0x684   : > { %8127 = vpow2.f32 %v4370_v36  ;;  %v10258_v45 = vmul.f32 0.25, %v4602_v52 }
 0x685   : > { %8129 = vpow2.f32 %v4490_v55 }
 0x686   : > { %v4617_v43 = vsel %vm1230_vm1, %v10258_v45, -inf }
 0x687   : > { %4618 = vmax.xlane.f32.xlu2 %v4617_v43 }
 0x688   : > { %v4359_v7 = vpop.xlane.xlu1 %4358  ;;  %v4479_v22 = vpop.xlane.xlu0 %4478 }
 0x689   : > { %v4367_v59 = vsub.f32 %v4351_v25, %v4359_v7  ;;  %v4487_v6 = vsub.f32 %v10232_v44, %v4479_v22 }
 0x68a   : > { %v10262_v61 = vpop.eup %8127 }
 0x68b   : > { %v4605_v35 = vpop.f32.mrf.mxu2  ;;  %v4378_v60 = vsel %vm1230_vm1, %v10262_v61, 0.0  ;;  %v4372_v0 = vmul.f32 1.442695, %v4367_v59  ;;  %v10276_v27 = vpop.eup %8129  ;;  %v4492_v30 = vmul.f32 1.442695, %v4487_v6 }
 0x68c   : > { %v10266_v19 = vmul.f32 0.25, %v4605_v35  ;;  %4379 = vadd.xlane.f32.xlu0 %v4378_v60  ;;  %v4498_v25 = vsel %vm1230_vm1, %v10276_v27, 0.0 }
 0x68d   : > { %8131 = vpow2.f32 %v4372_v0 }
 0x68e   : > { %v4620_v46 = vsel %vm1230_vm1, %v10266_v19, -inf }
 0x68f   : > { %4621 = vmax.xlane.f32.xlu1 %v4620_v46 }
 0x690   : > { %v10270_v12 = vpop.xlane.xlu2 %4481  ;;  %v4362_v11 = vpop.xlane.xlu0 %4361 }
 0x691   : > { %v4368_v33 = vsub.f32 %v10238_v51, %v4362_v11 }
 0x693   : > { %v4607_v50 = vpop.f32.mrf.mxu2  ;;  %v10285_v5 = vpop.eup %8131  ;;  %v4374_v49 = vmul.f32 1.442695, %v4368_v33 }
 0x694   : > { %v10272_v40 = vmul.f32 0.25, %v4607_v50 }
 0x696   : > { %v4623_v29 = vsel %vm1230_vm1, %v10272_v40, -inf }
 0x697   : > { %4624 = vmax.xlane.f32.xlu2 %v4623_v29 }
 0x698   : > { %v4365_v38 = vpop.xlane.xlu2 %4364 }
 0x699   : > { %v4369_v17 = vsub.f32 %v4353_v48, %v4365_v38  ;;  %v4381_v48 = vsel %vm1230_vm1, %v10285_v5, 0.0 }
 0x69b   : > { %v4376_v58 = vmul.f32 1.442695, %v4369_v17  ;;  %v4720_v23 = vpop.f32.mrf.mxu2 }
 0x69c   : > { %v10278_v31 = vmul.f32 0.25, %v4720_v23 }
 0x69d   : > { %8133 = vpow2.f32 %v4376_v58 }
 0x69e   : > { %v4734_v56 = vsel %vm1230_vm1, %v10278_v31, -inf  ;;  %8135 = vpow2.f32 %v4492_v30 }
 0x69f   : > { %4735 = vmax.xlane.f32.xlu1 %v4734_v56  ;;  %4499 = vadd.xlane.f32.xlu2 %v4498_v25  ;;  %8137 = vpow2.f32 %v4374_v49 }
 0x6a0   : > { %v4403_v3 = vpop.permute.xlu1 %4402 }
 0x6a1   : > { %4418 = vmatpush.bf16.msra.mxu3 %v4403_v3 }
 0x6a3   : > { %v10287_v8 = vpop.eup %8133  ;;  %v4722_v42 = vpop.f32.mrf.mxu2 }
 0x6a4   : > { %v10289_v13 = vmul.f32 0.25, %v4722_v42  ;;  %v4387_v44 = vsel %vm1230_vm1, %v10287_v8, 0.0  ;;  %v10298_v14 = vpop.eup %8135 }
 0x6a5   : > { %4388 = vadd.xlane.f32.xlu0 %v4387_v44  ;;  %4419 = vmatpush.bf16.msra.mxu3 %v4401_v37  ;;  %v4501_v41 = vsel %vm1230_vm1, %v10298_v14, 0.0  ;;  %v10302_v51 = vpop.eup %8137 }
 0x6a6   : > { %v4737_v63 = vsel %vm1230_vm1, %v10289_v13, -inf  ;;  %v4384_v16 = vsel %vm1230_vm1, %v10302_v51, 0.0 }
 0x6a7   : > { %4738 = vmax.xlane.f32.xlu1 %v4737_v63  ;;  %4382 = vadd.xlane.f32.xlu2 %v4381_v48 }
 0x6ab   : > { %v4725_v18 = vpop.f32.mrf.mxu2 }
 0x6ac   : > { %v10319_v60 = vmul.f32 0.25, %v4725_v18 }
 0x6ae   : > { %v4740_v20 = vsel %vm1230_vm1, %v10319_v60, -inf }
 0x6af   : > { %4502 = vadd.xlane.f32.xlu2 %v4501_v41 }
 0x6b3   : > { %v4727_v9 = vpop.f32.mrf.mxu2 }
 0x6b4   : > { %v10304_v4 = vmul.f32 0.25, %v4727_v9 }
 0x6b6   : > { %v4743_v15 = vsel %vm1230_vm1, %v10304_v4, -inf }
 0x6b7   : > { %4744 = vmax.xlane.f32.xlu1 %v4743_v15  ;;  %4385 = vadd.xlane.f32.xlu2 %v4384_v16 }
 0x6b9   : > { %4520 = vrot.lane.b32.xlu0 %v10160_v21, %s8385_s19  ;;  %v4488_v21 = vsub.f32 %v10240_v53, %v10270_v12 }
 0x6cb   : > { %v4485_v36 = vpop.xlane.xlu1 %4484 }
 0x6cc   : > { %v4489_v52 = vsub.f32 %v10250_v24, %v4485_v36  ;;  %v4494_v24 = vmul.f32 1.442695, %v4488_v21 }
 0x6ce   : > { %v4496_v43 = vmul.f32 1.442695, %v4489_v52 }
 0x6cf   : > { %4522 = vrot.lane.b32.xlu2 %v10184_v1, %s8385_s19 }
 0x6d0   : > { %8139 = vpow2.f32 %v4496_v43 }
 0x6d1   : > { %8141 = vpow2.f32 %v4494_v24 }
 0x6d6   : > { %v10315_v2 = vpop.eup %8139 }
 0x6d7   : > { %v4507_v35 = vsel %vm1230_vm1, %v10315_v2, 0.0  ;;  %v10326_v37 = vpop.eup %8141 }
 0x6d8   : > { %4508 = vadd.xlane.f32.xlu1 %v4507_v35  ;;  %v4504_v7 = vsel %vm1230_vm1, %v10326_v37, 0.0 }
 0x6e3   : > { %4741 = vmax.xlane.f32.xlu0 %v4740_v20 }
 0x6f2   : > { %v4616_v46 = vpop.xlane.xlu2 %4615 }
 0x6f3   : > { %v4626_v1 = vsub.f32 %v10254_v62, %v4616_v46 }
 0x6f5   : > { %v4630_v55 = vmul.f32 1.442695, %v4626_v1 }
 0x6f7   : > { %8143 = vpow2.f32 %v4630_v55 }
 0x6f8   : > { %4505 = vadd.xlane.f32.xlu2 %v4504_v7 }
 0x6fa   : > { %v4619_v50 = vpop.xlane.xlu2 %4618 }
 0x6fb   : > { %v4627_v59 = vsub.f32 %v10258_v45, %v4619_v50 }
 0x6fd   : > { %v10331_v29 = vpop.eup %8143  ;;  %v4632_v22 = vmul.f32 1.442695, %v4627_v59 }
 0x6fe   : > { %v4638_v53 = vsel %vm1230_vm1, %v10331_v29, 0.0 }
 0x6ff   : > { %8145 = vpow2.f32 %v4632_v22  ;;  %4639 = vadd.xlane.f32.xlu1 %v4638_v53  ;;  %v4380_v30 = vpop.xlane.xlu0 %4379 }
 0x702   : > { %v4622_v62 = vpop.xlane.xlu1 %4621 }
 0x703   : > { %v4628_v12 = vsub.f32 %v10266_v19, %v4622_v62 }
 0x705   : > { %v10336_v0 = vpop.eup %8145  ;;  %v4634_v38 = vmul.f32 1.442695, %v4628_v12 }
 0x706   : > { %v4641_v17 = vsel %vm1230_vm1, %v10336_v0, 0.0 }
 0x707   : > { %8147 = vpow2.f32 %v4634_v38  ;;  %4642 = vadd.xlane.f32.xlu1 %v4641_v17 }
 0x70a   : > { %v4625_v45 = vpop.xlane.xlu2 %4624 }
 0x70b   : > { %v4629_v58 = vsub.f32 %v10272_v40, %v4625_v45 }
 0x70d   : > { %v10341_v23 = vpop.eup %8147  ;;  %v4636_v6 = vmul.f32 1.442695, %v4629_v58 }
 0x70e   : > { %v4644_v56 = vsel %vm1230_vm1, %v10341_v23, 0.0 }
 0x70f   : > { %8149 = vpow2.f32 %v4636_v6  ;;  %4645 = vadd.xlane.f32.xlu0 %v4644_v56 }
 0x710   : > { %4660 = vrot.lane.b32.xlu2 %v10196_v47, %s8384_s18  ;;  %8151 = vrcp.f32 %v4380_v30 }
 0x712   : > { %v4500_v19 = vpop.xlane.xlu2 %4499  ;;  %v4736_v25 = vpop.xlane.xlu1 %4735 }
 0x713   : > { %v4746_v21 = vsub.f32 %v10278_v31, %v4736_v25 }
 0x715   : > { %v10347_v3 = vpop.eup %8149  ;;  %v4750_v24 = vmul.f32 1.442695, %v4746_v21 }
 0x716   : > { %v4647_v11 = vsel %vm1230_vm1, %v10347_v3, 0.0  ;;  %v8152_v63 = vpop.eup %8151 }
 0x717   : > { %4648 = vadd.xlane.f32.xlu0 %v4647_v11  ;;  %v4394_v49 = vmul.f32 %v8152_v63, %v10262_v61 }
 0x718   : > { %4782 = vrot.lane.b32.xlu2 %v10207_v32, %s8385_s19  ;;  %v4389_v16 = vpop.xlane.xlu0 %4388 }
 0x71a   : > { %v4383_v40 = vpop.xlane.xlu2 %4382  ;;  %v4739_v42 = vpop.xlane.xlu1 %4738 }
 0x71b   : > { %8153 = vrcp.f32 %v4383_v40  ;;  %v4747_v44 = vsub.f32 %v10289_v13, %v4739_v42 }
 0x71d   : > { %v4752_v33 = vmul.f32 1.442695, %v4747_v44 }
 0x71f   : > { %8155 = vpow2.f32 %v4752_v33 }
 0x720   : > { %4662 = vrot.lane.b32.xlu1 %v10207_v32, %s8384_s18  ;;  %8157 = vrcp.f32 %v4389_v16 }
 0x721   : > { %v8154_v48 = vpop.eup %8153 }
 0x722   : > { %v4395_v18 = vmul.f32 %v8154_v48, %v10285_v5  ;;  %v4503_v41 = vpop.xlane.xlu2 %4502 }
 0x724   : > { %v4398_v9 = vpack.c.bf16 %v4395_v18, %v4394_v49 }
 0x725   : > { %v10358_v15 = vpop.eup %8155 }
 0x726   : > { %7708 = vmatmul.msk.bf16.vlgmr.msra.gmra.mxu3 %vm1230_vm1, %v4398_v9  ;;  %v4761_v13 = vsel %vm1230_vm1, %v10358_v15, 0.0  ;;  %v8158_v32 = vpop.eup %8157 }
 0x727   : > { %4762 = vadd.xlane.f32.xlu0 %v4761_v13  ;;  %v4397_v5 = vmul.f32 %v8158_v32, %v10287_v8 }
 0x72a   : > { %v4386_v36 = vpop.xlane.xlu2 %4385  ;;  %v4745_v50 = vpop.xlane.xlu1 %4744 }
 0x72b   : > { %8159 = vrcp.f32 %v4386_v36  ;;  %v4521_v20 = vpop.permute.xlu0 %4520 }
 0x72c   : > { %8161 = vrcp.f32 %v4503_v41 }
 0x72d   : > { %8163 = vrcp.f32 %v4500_v19 }
 0x72e   : > { %8165 = vpow2.f32 %v4750_v24 }
 0x731   : > { %v8160_v52 = vpop.eup %8159 }
 0x732   : > { %v4523_v43 = vpop.permute.xlu2 %4522  ;;  %v4396_v61 = vmul.f32 %v8160_v52, %v10302_v51  ;;  %v8162_v46 = vpop.eup %8161 }
 0x733   : > { %4538 = vmatpush.bf16.msrb.mxu3 %v4523_v43  ;;  %v8164_v1 = vpop.eup %8163  ;;  %v4515_v51 = vmul.f32 %v8162_v46, %v10298_v14 }
 0x734   : > { %v4399_v35 = vpack.c.bf16 %v4397_v5, %v4396_v61  ;;  %v4514_v8 = vmul.f32 %v8164_v1, %v10276_v27  ;;  %v10371_v7 = vpop.eup %8165 }
 0x735   : > { %v4758_v31 = vsel %vm1230_vm1, %v10371_v7, 0.0 }
 0x736   : > { %7709 = vmatmul.msk.bf16.gmra.mxu3 %vm1230_vm1, %v4399_v35  ;;  %v4518_v55 = vpack.c.bf16 %v4515_v51, %v4514_v8 }
 0x737   : > { %4539 = vmatpush.bf16.msrb.mxu3 %v4521_v20 }
 0x73b   : > { %4780 = vrot.lane.b32.xlu0 %v10196_v47, %s8385_s19  ;;  %v4749_v47 = vsub.f32 %v10304_v4, %v4745_v50 }
 0x73d   : > { %v4756_v59 = vmul.f32 1.442695, %v4749_v47 }
 0x73f   : > { %8167 = vpow2.f32 %v4756_v59  ;;  %v8007_v59 = vld [vmem:[%s11346_s5 + $0x8] sm:$0xff] }
 0x740   : > { %4871 = vmatpush.bf16.msrb.mxu2 %v8007_v59 }
 0x745   : > { %v10378_v27 = vpop.eup %8167 }
 0x746   : > { %7712 = vmatmul.msk.bf16.vlgmr.msrb.gmra.mxu3 %vm1230_vm1, %v4518_v55  ;;  %v4767_v38 = vsel %vm1230_vm1, %v10378_v27, 0.0 }
 0x74a   : > { %4759 = vadd.xlane.f32.xlu1 %v4758_v31 }
 0x74b   : > { %v4509_v4 = vpop.xlane.xlu1 %4508 }
 0x756   : > { %v4742_v22 = vpop.xlane.xlu0 %4741 }
 0x757   : > { %v4748_v53 = vsub.f32 %v10319_v60, %v4742_v22 }
 0x759   : > { %v4754_v62 = vmul.f32 1.442695, %v4748_v53  ;;  %v8006_v53 = vld [vmem:[%s11346_s5] sm:$0xff] }
 0x75a   : > { %4872 = vmatpush.bf16.msrb.mxu2 %v8006_v53 }
 0x75b   : > { %8169 = vpow2.f32 %v4754_v62 }
 0x75c   : > { %8171 = vrcp.f32 %v4509_v4 }
 0x761   : > { %v10380_v14 = vpop.eup %8169 }
 0x762   : > { %v4764_v12 = vsel %vm1230_vm1, %v10380_v14, 0.0  ;;  %v8172_v60 = vpop.eup %8171 }
 0x763   : > { %4765 = vadd.xlane.f32.xlu2 %v4764_v12  ;;  %v4517_v6 = vmul.f32 %v8172_v60, %v10315_v2 }
 0x765   : > { %4768 = vadd.xlane.f32.xlu0 %v4767_v38 }
 0x76b   : > { %v4506_v17 = vpop.xlane.xlu2 %4505 }
 0x76c   : > { %8173 = vrcp.f32 %v4506_v17 }
 0x772   : > { %v8174_v45 = vpop.eup %8173  ;;  %v4640_v19 = vpop.xlane.xlu1 %4639 }
 0x773   : > { %v4516_v58 = vmul.f32 %v8174_v45, %v10326_v37  ;;  %v4661_v30 = vpop.permute.xlu2 %4660 }
 0x775   : > { %v4519_v56 = vpack.c.bf16 %v4517_v6, %v4516_v58 }
 0x777   : > { %7713 = vmatmul.msk.bf16.gmra.mxu3 %vm1230_vm1, %v4519_v56 }
 0x77a   : > { %v4643_v25 = vpop.xlane.xlu1 %4642 }
 0x77b   : > { %8175 = vrcp.f32 %v4643_v25  ;;  %v4783_v37 = vpop.permute.xlu2 %4782 }
 0x77c   : > { %8177 = vrcp.f32 %v4640_v19 }
 0x781   : > { %v8176_v40 = vpop.eup %8175 }
 0x782   : > { %v4646_v11 = vpop.xlane.xlu0 %4645  ;;  %v8178_v44 = vpop.eup %8177  ;;  %v4655_v33 = vmul.f32 %v8176_v40, %v10336_v0 }
 0x783   : > { %v4654_v63 = vmul.f32 %v8178_v44, %v10331_v29 }
 0x785   : > { %v4658_v2 = vpack.c.bf16 %v4655_v33, %v4654_v63 }
 0x78a   : > { %v4649_v48 = vpop.xlane.xlu0 %4648 }
 0x78b   : > { %8179 = vrcp.f32 %v4649_v48 }
 0x78c   : > { %8181 = vrcp.f32 %v4646_v11 }
 0x791   : > { %v8180_v49 = vpop.eup %8179 }
 0x792   : > { %v4663_v42 = vpop.permute.xlu1 %4662  ;;  %v8182_v18 = vpop.eup %8181  ;;  %v4657_v41 = vmul.f32 %v8180_v49, %v10347_v3 }
 0x793   : > { %4678 = vmatpush.bf16.msra.mxu3 %v4663_v42  ;;  %v4656_v16 = vmul.f32 %v8182_v18, %v10341_v23 }
 0x795   : > { %v4659_v13 = vpack.c.bf16 %v4657_v41, %v4656_v16  ;;  %v10422_v41 = vld [vmem:[%s11343_s2 + $0x5] ss:$0 sm:$0xff] }
 0x797   : > { %4679 = vmatpush.bf16.msra.mxu3 %v4661_v30 }
 0x79a   : > { %7716 = vmatmul.msk.bf16.vlgmr.msra.gmra.mxu3 %vm1230_vm1, %v4658_v2  ;;  %v4763_v9 = vpop.xlane.xlu0 %4762 }
 0x79b   : > { %4798 = vmatpush.bf16.msrb.mxu3 %v4783_v37  ;;  %8183 = vrcp.f32 %v4763_v9 }
 0x7a1   : > { %v8184_v61 = vpop.eup %8183 }
 0x7a2   : > { %v4775_v35 = vmul.f32 %v8184_v61, %v10358_v15 }
 0x7a9   : > { %v4421_v0 = vpop.f32.mrf.mxu3 }
 0x7aa   : > { %7717 = vmatmul.msk.bf16.gmra.mxu3 %vm1230_vm1, %v4659_v13 }
 0x7ad   : > { %v4781_v29 = vpop.permute.xlu0 %4780 }
 0x7ae   : > { %4799 = vmatpush.bf16.msrb.mxu3 %v4781_v29 }
 0x7b1   : > { %v4423_v36 = vpop.f32.mrf.mxu3 }
 0x7b9   : > { %v4426_v32 = vpop.f32.mrf.mxu3 }
 0x7bd   : > { %v4760_v52 = vpop.xlane.xlu1 %4759 }
 0x7be   : > { %8185 = vrcp.f32 %v4760_v52 }
 0x7c1   : > { %v4428_v43 = vpop.f32.mrf.mxu3 }
 0x7c4   : > { %v8186_v5 = vpop.eup %8185 }
 0x7c5   : > { %v4774_v3 = vmul.f32 %v8186_v5, %v10371_v7 }
 0x7c7   : > { %v4778_v20 = vpack.c.bf16 %v4775_v35, %v4774_v3 }
 0x7c9   : > { %v4541_v23 = vpop.f32.mrf.mxu3  ;;  %7720 = vmatmul.msk.bf16.vlgmr.msrb.gmra.mxu3 %vm1230_vm1, %v4778_v20 }
 0x7d1   : > { %v4543_v21 = vpop.f32.mrf.mxu3 }
 0x7d2   : > { %v8050_v24 = vpack.i.bf16 %v4543_v21, %v4541_v23 }
 0x7d4   : > { %8051 = vrot.lane.b32.xlu1 %v8050_v24, %s8386_s20 }
 0x7d6   : > { %v4766_v46 = vpop.xlane.xlu2 %4765 }
 0x7d7   : > { %8187 = vrcp.f32 %v4766_v46 }
 0x7d8   : > { %v4769_v1 = vpop.xlane.xlu0 %4768 }
 0x7d9   : > { %8189 = vrcp.f32 %v4769_v1 }
 0x7dd   : > { %v8188_v51 = vpop.eup %8187 }
 0x7de   : > { %v4776_v55 = vmul.f32 %v8188_v51, %v10380_v14 }
 0x7df   : > { %v8190_v8 = vpop.eup %8189 }
 0x7e0   : > { %v4777_v15 = vmul.f32 %v8190_v8, %v10378_v27 }
 0x7e2   : > { %v4779_v7 = vpack.c.bf16 %v4777_v15, %v4776_v55 }
 0x7e4   : > { %7721 = vmatmul.msk.bf16.gmra.mxu3 %vm1230_vm1, %v4779_v7 }
 0x7fa   : > { %v4546_v31 = vpop.f32.mrf.mxu3 }
 0x802   : > { %v4548_v50 = vpop.f32.mrf.mxu3 }
 0x803   : > { %v8055_v47 = vpack.i.bf16 %v4548_v50, %v4546_v31 }
 0x805   : > { %8056 = vrot.lane.b32.xlu2 %v8055_v47, %s8386_s20 }
 0x81d   : > { %v4681_v22 = vpop.f32.mrf.mxu3 }
 0x825   : > { %v4683_v62 = vpop.f32.mrf.mxu3 }
 0x82d   : > { %v4686_v27 = vpop.f32.mrf.mxu3 }
 0x835   : > { %v4688_v14 = vpop.f32.mrf.mxu3 }
 0x846   : > { %v8052_v12 = vpop.permute.xlu1 %8051 }
 0x847   : > { %v8054_v38 = vunpack.i.h.bf16 %v8052_v12  ;;  %v8053_v4 = vunpack.i.l.bf16 %v8052_v12 }
 0x849   : > { %v4568_v17 = vsel %vm820_vm0, %v4423_v36, %v8054_v38  ;;  %v4567_v60 = vsel %vm820_vm0, %v4421_v0, %v8053_v4  ;;  %v11625_v0 = vld [vmem:[#allocation2_spill] sm:$0xff] }
 0x84a   : > { %v4831_v45 = vpack.c.bf16 %v4568_v17, %v4567_v60 }
 0x84c   : > { %v4801_v58 = vpop.f32.mrf.mxu3  ;;  %7730 = vmatmul.msk.bf16.vlgmr.msrb.gmra.mxu2 %vm1230_vm1, %v4831_v45 }
 0x854   : > { %v4803_v6 = vpop.f32.mrf.mxu3 }
 0x855   : > { %v8060_v56 = vpack.i.bf16 %v4803_v6, %v4801_v58 }
 0x857   : > { %8061 = vrot.lane.b32.xlu1 %v8060_v56, %s8386_s20 }
 0x85f   : > { %v8057_v19 = vpop.permute.xlu2 %8056 }
 0x860   : > { %v8059_v25 = vunpack.i.h.bf16 %v8057_v19  ;;  %v8058_v30 = vunpack.i.l.bf16 %v8057_v19 }
 0x862   : > { %v4570_v11 = vsel %vm820_vm0, %v4428_v43, %v8059_v25  ;;  %v4569_v40 = vsel %vm820_vm0, %v4426_v32, %v8058_v30  ;;  %v11626_v43 = vld [vmem:[#allocation6_spill] sm:$0xff] }
 0x863   : > { %v4832_v42 = vpack.c.bf16 %v4570_v11, %v4569_v40 }
 0x865   : > { %7731 = vmatmul.msk.bf16.gmra.mxu2 %vm1230_vm1, %v4832_v42 }
 0x867   : > { %v4806_v44 = vpop.f32.mrf.mxu3 }
 0x86f   : > { %v4808_v33 = vpop.f32.mrf.mxu3 }
 0x870   : > { %v8065_v63 = vpack.i.bf16 %v4808_v33, %v4806_v44 }
 0x872   : > { %8066 = vrot.lane.b32.xlu0 %v8065_v63, %s8386_s20 }
 0x8c9   : > { %v8062_v37 = vpop.permute.xlu1 %8061 }
 0x8ca   : > { %v8064_v2 = vunpack.i.h.bf16 %v8062_v37  ;;  %v8063_v48 = vunpack.i.l.bf16 %v8062_v37 }
 0x8cc   : > { %v4828_v49 = vsel %vm820_vm0, %v4683_v62, %v8064_v2  ;;  %v4827_v18 = vsel %vm820_vm0, %v4681_v22, %v8063_v48 }
 0x8cd   : > { %v4833_v9 = vpack.c.bf16 %v4828_v49, %v4827_v18 }
 0x8cf   : > { %v4874_v16 = vpop.f32.mrf.mxu2  ;;  %7732 = vmatmul.msk.bf16.gmra.mxu2 %vm1230_vm1, %v4833_v9 }
 0x8d0   : > { %v4875_v13 = vadd.f32 %v10422_v41, %v4874_v16 }
 0x8d2   : > { %v10427_v29 = vadd.f32 %v4875_v13, %v11625_v0 }
 0x8d4   : > { %v4904_v36 = vsel %vm1230_vm1, %v10427_v29, 0.0 }
 0x8d5   : > { %4905 = vadd.xlane.f32.xlu1 %v4904_v36 }
 0x8d7   : > { %v4876_v32 = vpop.f32.mrf.mxu2 }
 0x8d8   : > { %v4877_v52 = vadd.f32 %v10422_v41, %v4876_v32 }
 0x8da   : > { %v10433_v61 = vadd.f32 %v4877_v52, %v11626_v43 }
 0x8dc   : > { %v4907_v5 = vsel %vm1230_vm1, %v10433_v61, 0.0 }
 0x8dd   : > { %4908 = vadd.xlane.f32.xlu2 %v4907_v5 }
 0x8e4   : > { %v8067_v35 = vpop.permute.xlu0 %8066 }
 0x8e5   : > { %v8069_v3 = vunpack.i.h.bf16 %v8067_v35  ;;  %v8068_v20 = vunpack.i.l.bf16 %v8067_v35  ;;  %v8009_v35 = vld [vmem:[%s11347_s6 + $0x8] sm:$0xff] }
 0x8e6   : > { %5138 = vmatpush.bf16.msra.mxu3 %v8009_v35 }
 0x8e7   : > { %v4830_v23 = vsel %vm820_vm0, %v4688_v14, %v8069_v3  ;;  %v4829_v21 = vsel %vm820_vm0, %v4686_v27, %v8068_v20 }
 0x8e8   : > { %v4834_v24 = vpack.c.bf16 %v4830_v23, %v4829_v21  ;;  %v4879_v46 = vpop.f32.mrf.mxu2 }
 0x8e9   : > { %v4880_v1 = vadd.f32 %v10422_v41, %v4879_v46 }
 0x8ea   : > { %7733 = vmatmul.msk.bf16.gmra.mxu2 %vm1230_vm1, %v4834_v24 }
 0x8eb   : > { %v10442_v51 = vadd.f32 %v4880_v1, %v10106_v57  ;;  %v8008_v1 = vld [vmem:[%s11347_s6] sm:$0xff] }
 0x8ec   : > { %5139 = vmatpush.bf16.msra.mxu3 %v8008_v1 }
 0x8ed   : > { %v4910_v8 = vsel %vm1230_vm1, %v10442_v51, 0.0 }
 0x8ee   : > { %4911 = vadd.xlane.f32.xlu0 %v4910_v8 }
 0x8f0   : > { %v4881_v55 = vpop.f32.mrf.mxu2 }
 0x8f1   : > { %v4882_v15 = vadd.f32 %v10422_v41, %v4881_v55 }
 0x8f3   : > { %v10448_v7 = vadd.f32 %v4882_v15, %v10028_v34 }
 0x8f5   : > { %v4913_v31 = vsel %vm1230_vm1, %v10448_v7, 0.0 }
 0x8f6   : > { %4914 = vadd.xlane.f32.xlu1 %v4913_v31 }
 0x948   : > { %v4906_v50 = vpop.xlane.xlu1 %4905 }
 0x949   : > { %v4928_v47 = vmul.f32 %v4906_v50, %v9388_v39 }
 0x94b   : > { %v10454_v57 = vsub.f32 %v10427_v29, %v4928_v47 }
 0x94d   : > { %v4944_v59 = vmul.f32 %v10454_v57, %v10454_v57 }
 0x94f   : > { %v4952_v22 = vsel %vm1230_vm1, %v4944_v59, 0.0 }
 0x950   : > { %v4909_v53 = vpop.xlane.xlu2 %4908  ;;  %4953 = vadd.xlane.f32.xlu2 %v4952_v22 }
 0x951   : > { %v4929_v34 = vmul.f32 %v4909_v53, %v9388_v39  ;;  %v10523_v53 = vld [vmem:[%s11343_s2 + $0x6] ss:$0 sm:$0xff] }
 0x952   : > { %v4884_v62 = vpop.f32.mrf.mxu2 }
 0x953   : > { %v10461_v27 = vsub.f32 %v10433_v61, %v4929_v34  ;;  %v4885_v19 = vadd.f32 %v10422_v41, %v4884_v62 }
 0x955   : > { %v4945_v14 = vmul.f32 %v10461_v27, %v10461_v27  ;;  %v10482_v11 = vadd.f32 %v4885_v19, %v11623_v28 }
 0x957   : > { %v4955_v12 = vsel %vm1230_vm1, %v4945_v14, 0.0  ;;  %v4916_v63 = vsel %vm1230_vm1, %v10482_v11, 0.0 }
 0x958   : > { %4956 = vadd.xlane.f32.xlu1 %v4955_v12 }
 0x95a   : > { %v4886_v38 = vpop.f32.mrf.mxu2 }
 0x95b   : > { %v4887_v4 = vadd.f32 %v10422_v41, %v4886_v38  ;;  %v10529_v38 = vld [vmem:[%s11343_s2 + $0x7] ss:$0 sm:$0xff] }
 0x95d   : > { %v10468_v17 = vadd.f32 %v4887_v4, %v11624_v26 }
 0x95f   : > { %v4919_v60 = vsel %vm1230_vm1, %v10468_v17, 0.0 }
 0x960   : > { %4920 = vadd.xlane.f32.xlu0 %v4919_v60 }
 0x961   : > { %v4912_v45 = vpop.xlane.xlu0 %4911 }
 0x962   : > { %v4930_v58 = vmul.f32 %v4912_v45, %v9388_v39 }
 0x964   : > { %v10474_v6 = vsub.f32 %v10442_v51, %v4930_v58 }
 0x966   : > { %v4946_v56 = vmul.f32 %v10474_v6, %v10474_v6 }
 0x968   : > { %v4958_v25 = vsel %vm1230_vm1, %v4946_v56, 0.0 }
 0x969   : > { %4959 = vadd.xlane.f32.xlu2 %v4958_v25  ;;  %v4915_v26 = vpop.xlane.xlu1 %4914 }
 0x96a   : > { %v4931_v30 = vmul.f32 %v4915_v26, %v9388_v39 }
 0x96c   : > { %v10485_v40 = vsub.f32 %v10448_v7, %v4931_v30 }
 0x96d   : > { %v4889_v42 = vpop.f32.mrf.mxu2 }
 0x96e   : > { %v4947_v44 = vmul.f32 %v10485_v40, %v10485_v40  ;;  %v4890_v33 = vadd.f32 %v10422_v41, %v4889_v42 }
 0x970   : > { %v4961_v37 = vsel %vm1230_vm1, %v4947_v44, 0.0  ;;  %v10494_v2 = vadd.f32 %v4890_v33, %v10109_v54 }
 0x971   : > { %4917 = vadd.xlane.f32.xlu2 %v4916_v63  ;;  %4962 = vadd.xlane.f32.xlu1 %v4961_v37 }
 0x972   : > { %v4922_v18 = vsel %vm1230_vm1, %v10494_v2, 0.0 }
 0x975   : > { %v4891_v28 = vpop.f32.mrf.mxu2 }
 0x976   : > { %v4892_v48 = vadd.f32 %v10422_v41, %v4891_v28 }
 0x978   : > { %v10498_v49 = vadd.f32 %v4892_v48, %v9991_v10 }
 0x979   : > { %4923 = vadd.xlane.f32.xlu1 %v4922_v18 }
 0x97a   : > { %v4925_v9 = vsel %vm1230_vm1, %v10498_v49, 0.0 }
 0x97b   : > { %4926 = vadd.xlane.f32.xlu2 %v4925_v9 }
 0x9c3   : > { %v4954_v16 = vpop.xlane.xlu2 %4953 }
 0x9c4   : > { %v4976_v13 = vmul.f32 %v4954_v16, %v9388_v39 }
 0x9c6   : > { %v4984_v0 = vadd.f32 1e-05, %v4976_v13 }
 0x9c8   : > { %8191 = vrsqrt.f32 %v4984_v0  ;;  %vm4998_vm9 = vweird.f32 %v4984_v0 }
 0x9cb   : > { %v4957_v54 = vpop.xlane.xlu1 %4956 }
 0x9cc   : > { %v4977_v36 = vmul.f32 %v4957_v54, %v9388_v39 }
 0x9ce   : > { %v8192_v41 = vpop.eup %8191  ;;  %v4985_v32 = vadd.f32 1e-05, %v4977_v36 }
 0x9cf   : > { %v4993_v10 = vmul.f32 %v8192_v41, %v4984_v0  ;;  %vm4999_vm8 = vweird.f32 %v8192_v41 }
 0x9d0   : > { %8193 = vrsqrt.f32 %v4985_v32  ;;  %vm5000_vm10 = vmor %vm4998_vm9, %vm4999_vm8  ;;  %vm5008_vm12 = vweird.f32 %v4985_v32 }
 0x9d1   : > { %v4994_v52 = vmul.f32 %v8192_v41, %v4993_v10 }
 0x9d3   : > { %v4995_v43 = vmul.f32 0.5, %v4994_v52  ;;  %v4921_v5 = vpop.xlane.xlu0 %4920 }
 0x9d4   : > { %v4933_v3 = vmul.f32 %v4921_v5, %v9388_v39 }
 0x9d5   : > { %v4996_v20 = vsub.f32 1.5, %v4995_v43 }
 0x9d6   : > { %v8194_v23 = vpop.eup %8193  ;;  %v10511_v21 = vsub.f32 %v10468_v17, %v4933_v3 }
 0x9d7   : > { %v4997_v24 = vmul.f32 %v8192_v41, %v4996_v20  ;;  %v5003_v46 = vmul.f32 %v8194_v23, %v4985_v32  ;;  %vm5009_vm11 = vweird.f32 %v8194_v23 }
 0x9d8   : > { %v4949_v8 = vmul.f32 %v10511_v21, %v10511_v21  ;;  %vm5010_vm13 = vmor %vm5008_vm12, %vm5009_vm11 }
 0x9d9   : > { %v5004_v55 = vmul.f32 %v8194_v23, %v5003_v46  ;;  %v5001_v31 = vsel %vm5000_vm10, %v8192_v41, %v4997_v24 }
 0x9da   : > { %v4967_v15 = vsel %vm1230_vm1, %v4949_v8, 0.0  ;;  %v5072_v34 = vmul.f32 %v5001_v31, %v10454_v57 }
 0x9db   : > { %v5005_v50 = vmul.f32 0.5, %v5004_v55  ;;  %4968 = vadd.xlane.f32.xlu1 %v4967_v15 }
 0x9dc   : > { %v4960_v47 = vpop.xlane.xlu2 %4959  ;;  %v5081_v4 = vmul.f32 %v10523_v53, %v5072_v34 }
 0x9dd   : > { %v5006_v59 = vsub.f32 1.5, %v5005_v50  ;;  %v4978_v22 = vmul.f32 %v4960_v47, %v9388_v39 }
 0x9de   : > { %v5090_v25 = vadd.f32 %v10529_v38, %v5081_v4 }
 0x9df   : > { %v5007_v62 = vmul.f32 %v8194_v23, %v5006_v59  ;;  %v4986_v14 = vadd.f32 1e-05, %v4978_v22 }
 0x9e1   : > { %v5011_v12 = vsel %vm5010_vm13, %v8194_v23, %v5007_v62  ;;  %8195 = vrsqrt.f32 %v4986_v14  ;;  %vm5018_vm15 = vweird.f32 %v4986_v14 }
 0x9e2   : > { %v5073_v60 = vmul.f32 %v5011_v12, %v10461_v27 }
 0x9e4   : > { %v5082_v45 = vmul.f32 %v10523_v53, %v5073_v60  ;;  %v4918_v58 = vpop.xlane.xlu2 %4917  ;;  %v4963_v56 = vpop.xlane.xlu1 %4962 }
 0x9e5   : > { %v4932_v57 = vmul.f32 %v4918_v58, %v9388_v39  ;;  %v4979_v19 = vmul.f32 %v4963_v56, %v9388_v39 }
 0x9e6   : > { %v5091_v26 = vadd.f32 %v10529_v38, %v5082_v45 }
 0x9e7   : > { %v8196_v30 = vpop.eup %8195  ;;  %v10539_v42 = vsub.f32 %v10482_v11, %v4932_v57  ;;  %v4987_v44 = vadd.f32 1e-05, %v4979_v19 }
 0x9e8   : > { %v5098_v33 = vpack.c.bf16 %v5091_v26, %v5090_v25  ;;  %v5013_v63 = vmul.f32 %v8196_v30, %v4986_v14  ;;  %vm5019_vm14 = vweird.f32 %v8196_v30 }
 0x9e9   : > { %8197 = vrsqrt.f32 %v4987_v44  ;;  %v4948_v27 = vmul.f32 %v10539_v42, %v10539_v42  ;;  %vm5020_vm3 = vmor %vm5018_vm15, %vm5019_vm14  ;;  %vm5028_vm5 = vweird.f32 %v4987_v44 }
 0x9ea   : > { %v5014_v37 = vmul.f32 %v8196_v30, %v5013_v63  ;;  %7742 = vmatmul.msk.bf16.vlgmr.msra.gmra.mxu3 %vm1230_vm1, %v5098_v33  ;;  %v10573_v33 = vld [vmem:[%s11344_s3 + $0x1] ss:$0 sm:$0xff] }
 0x9eb   : > { %v4964_v28 = vsel %vm1230_vm1, %v4948_v27, 0.0  ;;  %v8013_v27 = vld [vmem:[%s11348_s7 + $0x18] sm:$0xff] }
 0x9ec   : > { %v5015_v48 = vmul.f32 0.5, %v5014_v37  ;;  %4965 = vadd.xlane.f32.xlu0 %v4964_v28  ;;  %v4924_v18 = vpop.xlane.xlu1 %4923  ;;  %5288 = vmatpush.bf16.msra.mxu2 %v8013_v27 }
 0x9ed   : > { %v4934_v9 = vmul.f32 %v4924_v18, %v9388_v39  ;;  %v8012_v18 = vld [vmem:[%s11348_s7 + $0x10] sm:$0xff] }
 0x9ee   : > { %v5016_v16 = vsub.f32 1.5, %v5015_v48  ;;  %v4927_v13 = vpop.xlane.xlu2 %4926 }
 0x9ef   : > { %v8198_v0 = vpop.eup %8197  ;;  %v10547_v54 = vsub.f32 %v10494_v2, %v4934_v9  ;;  %v4935_v36 = vmul.f32 %v4927_v13, %v9388_v39 }
 0x9f0   : > { %v5017_v41 = vmul.f32 %v8196_v30, %v5016_v16  ;;  %v5023_v32 = vmul.f32 %v8198_v0, %v4987_v44  ;;  %vm5029_vm4 = vweird.f32 %v8198_v0  ;;  %5289 = vmatpush.bf16.msra.mxu2 %v8012_v18 }
 0x9f1   : > { %v10551_v10 = vsub.f32 %v10498_v49, %v4935_v36  ;;  %v4950_v52 = vmul.f32 %v10547_v54, %v10547_v54  ;;  %vm5030_vm6 = vmor %vm5028_vm5, %vm5029_vm4 }
 0x9f2   : > { %v5024_v43 = vmul.f32 %v8198_v0, %v5023_v32  ;;  %v5021_v3 = vsel %vm5020_vm3, %v8196_v30, %v5017_v41  ;;  %v8011_v32 = vld [vmem:[%s11348_s7 + $0x8] sm:$0xff] }
 0x9f3   : > { %v4970_v5 = vsel %vm1230_vm1, %v4950_v52, 0.0  ;;  %v4951_v35 = vmul.f32 %v10551_v10, %v10551_v10  ;;  %v5074_v46 = vmul.f32 %v5021_v3, %v10474_v6 }
 0x9f4   : > { %v5025_v20 = vmul.f32 0.5, %v5024_v43  ;;  %4971 = vadd.xlane.f32.xlu2 %v4970_v5  ;;  %5290 = vmatpush.bf16.msra.mxu2 %v8011_v32 }
 0x9f5   : > { %v4973_v23 = vsel %vm1230_vm1, %v4951_v35, 0.0  ;;  %v5083_v15 = vmul.f32 %v10523_v53, %v5074_v46 }
 0x9f6   : > { %v5026_v24 = vsub.f32 1.5, %v5025_v20  ;;  %4974 = vadd.xlane.f32.xlu0 %v4973_v23 }
 0x9f7   : > { %v5092_v50 = vadd.f32 %v10529_v38, %v5083_v15 }
 0x9f8   : > { %v5027_v1 = vmul.f32 %v8198_v0, %v5026_v24 }
 0x9fa   : > { %v5031_v8 = vsel %vm5030_vm6, %v8198_v0, %v5027_v1  ;;  %vm5271_vm6 = vcmask 523264  }
 0x9fb   : > { %v5075_v55 = vmul.f32 %v5031_v8, %v10485_v40  ;;  %v8010_v8 = vld [vmem:[%s11348_s7] sm:$0xff] }
 0x9fc   : > { %5291 = vmatpush.bf16.msra.mxu2 %v8010_v8 }
 0x9fd   : > { %v5084_v31 = vmul.f32 %v10523_v53, %v5075_v55 }
 0x9ff   : > { %v5093_v47 = vadd.f32 %v10529_v38, %v5084_v31 }
 0xa01   : > { %v5099_v59 = vpack.c.bf16 %v5093_v47, %v5092_v50 }
 0xa03   : > { %7743 = vmatmul.msk.bf16.gmra.mxu3 %vm1230_vm1, %v5099_v59 }
 0xa4e   : > { %v4969_v22 = vpop.xlane.xlu1 %4968 }
 0xa4f   : > { %v4981_v6 = vmul.f32 %v4969_v22, %v9388_v39 }
 0xa51   : > { %v4989_v34 = vadd.f32 1e-05, %v4981_v6 }
 0xa53   : > { %8199 = vrsqrt.f32 %v4989_v34  ;;  %vm5048_vm8 = vweird.f32 %v4989_v34 }
 0xa59   : > { %v8200_v62 = vpop.eup %8199 }
 0xa5a   : > { %v5043_v14 = vmul.f32 %v8200_v62, %v4989_v34  ;;  %vm5049_vm7 = vweird.f32 %v8200_v62 }
 0xa5b   : > { %vm5050_vm9 = vmor %vm5048_vm8, %vm5049_vm7 }
 0xa5c   : > { %v5044_v12 = vmul.f32 %v8200_v62, %v5043_v14 }
 0xa5e   : > { %v5045_v60 = vmul.f32 0.5, %v5044_v12 }
 0xa5f   : > { %v4966_v40 = vpop.xlane.xlu0 %4965 }
 0xa60   : > { %v4980_v4 = vmul.f32 %v4966_v40, %v9388_v39  ;;  %v5046_v58 = vsub.f32 1.5, %v5045_v60 }
 0xa62   : > { %v4988_v45 = vadd.f32 1e-05, %v4980_v4  ;;  %v5047_v26 = vmul.f32 %v8200_v62, %v5046_v58 }
 0xa64   : > { %8201 = vrsqrt.f32 %v4988_v45  ;;  %v5051_v9 = vsel %vm5050_vm9, %v8200_v62, %v5047_v26  ;;  %vm5038_vm11 = vweird.f32 %v4988_v45 }
 0xa65   : > { %v5077_v36 = vmul.f32 %v5051_v9, %v10511_v21 }
 0xa67   : > { %v4972_v56 = vpop.xlane.xlu2 %4971  ;;  %v5086_v1 = vmul.f32 %v10523_v53, %v5077_v36 }
 0xa68   : > { %v4982_v57 = vmul.f32 %v4972_v56, %v9388_v39 }
 0xa69   : > { %v4975_v19 = vpop.xlane.xlu0 %4974  ;;  %v5095_v62 = vadd.f32 %v10529_v38, %v5086_v1 }
 0xa6a   : > { %v8202_v25 = vpop.eup %8201  ;;  %v4990_v30 = vadd.f32 1e-05, %v4982_v57  ;;  %v4983_v44 = vmul.f32 %v4975_v19, %v9388_v39 }
 0xa6b   : > { %v5033_v63 = vmul.f32 %v8202_v25, %v4988_v45  ;;  %vm5039_vm10 = vweird.f32 %v8202_v25 }
 0xa6c   : > { %8203 = vrsqrt.f32 %v4990_v30  ;;  %v4991_v37 = vadd.f32 1e-05, %v4983_v44  ;;  %vm5040_vm12 = vmor %vm5038_vm11, %vm5039_vm10  ;;  %vm5058_vm15 = vweird.f32 %v4990_v30 }
 0xa6d   : > { %v5034_v28 = vmul.f32 %v8202_v25, %v5033_v63  ;;  %v5141_v48 = vpop.f32.mrf.mxu3 }
 0xa6e   : > { %8205 = vrsqrt.f32 %v4991_v37  ;;  %v10582_v16 = vadd.f32 %v10573_v33, %v5141_v48  ;;  %vm5068_vm4 = vweird.f32 %v4991_v37 }
 0xa6f   : > { %v5035_v13 = vmul.f32 0.5, %v5034_v28 }
 0xa70   : > { %v5169_v0 = vmul.f32 0.044715, %v10582_v16 }
 0xa71   : > { %v5036_v41 = vsub.f32 1.5, %v5035_v13  ;;  %v5161_v13 = vmul.f32 0.5, %v10582_v16 }
 0xa72   : > { %v8204_v52 = vpop.eup %8203  ;;  %v5177_v43 = vmul.f32 %v5169_v0, %v10582_v16 }
 0xa73   : > { %v5037_v5 = vmul.f32 %v8202_v25, %v5036_v41  ;;  %v5053_v35 = vmul.f32 %v8204_v52, %v4990_v30  ;;  %vm5059_vm13 = vweird.f32 %v8204_v52 }
 0xa74   : > { %v8206_v3 = vpop.eup %8205  ;;  %v5185_v20 = vmul.f32 %v5177_v43, %v10582_v16  ;;  %vm5060_vm3 = vmor %vm5058_vm15, %vm5059_vm13 }
 0xa75   : > { %v5041_v23 = vsel %vm5040_vm12, %v8202_v25, %v5037_v5  ;;  %v5054_v24 = vmul.f32 %v8204_v52, %v5053_v35  ;;  %v5063_v21 = vmul.f32 %v8206_v3, %v4991_v37  ;;  %v5143_v46 = vpop.f32.mrf.mxu3  ;;  %vm5069_vm14 = vweird.f32 %v8206_v3 }
 0xa76   : > { %v5076_v55 = vmul.f32 %v5041_v23, %v10539_v42  ;;  %v5193_v15 = vadd.f32 %v5185_v20, %v10582_v16  ;;  %v5144_v31 = vadd.f32 %v10573_v33, %v5143_v46  ;;  %vm5070_vm5 = vmor %vm5068_vm4, %vm5069_vm14 }
 0xa77   : > { %v5055_v50 = vmul.f32 0.5, %v5054_v24  ;;  %v5064_v47 = vmul.f32 %v8206_v3, %v5063_v21 }
 0xa78   : > { %v5170_v59 = vmul.f32 0.044715, %v5144_v31  ;;  %v5085_v22 = vmul.f32 %v10523_v53, %v5076_v55  ;;  %v5201_v14 = vmul.f32 0.7978846, %v5193_v15  ;;  %v5162_v0 = vmul.f32 0.5, %v5144_v31 }
 0xa79   : > { %v5056_v6 = vsub.f32 1.5, %v5055_v50  ;;  %v5065_v34 = vmul.f32 0.5, %v5064_v47 }
 0xa7a   : > { %v5178_v12 = vmul.f32 %v5170_v59, %v5144_v31  ;;  %v5094_v40 = vadd.f32 %v10529_v38, %v5085_v22  ;;  %8207 = vtanh.f32 %v5201_v14 }
 0xa7b   : > { %v5057_v42 = vmul.f32 %v8204_v52, %v5056_v6  ;;  %v5066_v4 = vsub.f32 1.5, %v5065_v34 }
 0xa7c   : > { %v5186_v60 = vmul.f32 %v5178_v12, %v5144_v31  ;;  %v5100_v45 = vpack.c.bf16 %v5095_v62, %v5094_v40 }
 0xa7d   : > { %v5067_v58 = vmul.f32 %v8206_v3, %v5066_v4  ;;  %v5061_v57 = vsel %vm5060_vm3, %v8204_v52, %v5057_v42 }
 0xa7e   : > { %v5194_v56 = vadd.f32 %v5186_v60, %v5144_v31  ;;  %7744 = vmatmul.msk.bf16.gmra.mxu3 %vm1230_vm1, %v5100_v45  ;;  %v5078_v44 = vmul.f32 %v5061_v57, %v10547_v54 }
 0xa7f   : > { %v5071_v19 = vsel %vm5070_vm5, %v8206_v3, %v5067_v58 }
 0xa80   : > { %v5079_v25 = vmul.f32 %v5071_v19, %v10551_v10  ;;  %v5202_v26 = vmul.f32 0.7978846, %v5194_v56  ;;  %v8208_v63 = vpop.eup %8207  ;;  %v5087_v28 = vmul.f32 %v10523_v53, %v5078_v44  ;;  %v10619_v56 = vld [vmem:[%s11343_s2 + $0x8] ss:$0 sm:$0xff] }
 0xa81   : > { %v5217_v37 = vadd.f32 1.0, %v8208_v63 }
 0xa82   : > { %8209 = vtanh.f32 %v5202_v26  ;;  %v5088_v30 = vmul.f32 %v10523_v53, %v5079_v25  ;;  %v5096_v54 = vadd.f32 %v10529_v38, %v5087_v28 }
 0xa83   : > { %v5225_v41 = vmul.f32 %v5217_v37, %v5161_v13 }
 0xa84   : > { %v5097_v9 = vadd.f32 %v10529_v38, %v5088_v30 }
 0xa86   : > { %v5146_v27 = vpop.f32.mrf.mxu3  ;;  %v5101_v43 = vpack.c.bf16 %v5097_v9, %v5096_v54 }
 0xa87   : > { %v5147_v48 = vadd.f32 %v10573_v33, %v5146_v27 }
 0xa88   : > { %v8210_v18 = vpop.eup %8209 }
 0xa89   : > { %v5218_v10 = vadd.f32 1.0, %v8210_v18  ;;  %v5171_v36 = vmul.f32 0.044715, %v5147_v48  ;;  %v5163_v15 = vmul.f32 0.5, %v5147_v48 }
 0xa8b   : > { %v5226_v32 = vmul.f32 %v5218_v10, %v5162_v0  ;;  %v5179_v52 = vmul.f32 %v5171_v36, %v5147_v48 }
 0xa8d   : > { %v5187_v5 = vmul.f32 %v5179_v52, %v5147_v48  ;;  %v5233_v53 = vpack.c.bf16 %v5226_v32, %v5225_v41 }
 0xa8e   : > { %v5148_v35 = vpop.f32.mrf.mxu3  ;;  %7745 = vmatmul.msk.bf16.gmra.mxu3 %vm1230_vm1, %v5101_v43 }
 0xa8f   : > { %v5195_v3 = vadd.f32 %v5187_v5, %v5147_v48  ;;  %v5149_v20 = vadd.f32 %v10573_v33, %v5148_v35  ;;  %7762 = vmatmul.msk.bf16.vlgmr.msra.gmra.mxu2 %vm5271_vm6, %v5233_v53 }
 0xa91   : > { %v5172_v16 = vmul.f32 0.044715, %v5149_v20  ;;  %v5203_v23 = vmul.f32 0.7978846, %v5195_v3  ;;  %v5164_v31 = vmul.f32 0.5, %v5149_v20 }
 0xa93   : > { %v5180_v24 = vmul.f32 %v5172_v16, %v5149_v20  ;;  %8211 = vtanh.f32 %v5203_v23 }
 0xa95   : > { %v5188_v21 = vmul.f32 %v5180_v24, %v5149_v20 }
 0xa97   : > { %v5196_v38 = vadd.f32 %v5188_v21, %v5149_v20 }
 0xa99   : > { %v5204_v46 = vmul.f32 0.7978846, %v5196_v38  ;;  %v8212_v1 = vpop.eup %8211 }
 0xa9a   : > { %v5219_v8 = vadd.f32 1.0, %v8212_v1 }
 0xa9b   : > { %8213 = vtanh.f32 %v5204_v46 }
 0xa9c   : > { %v5227_v47 = vmul.f32 %v5219_v8, %v5163_v15 }
 0xaa1   : > { %v8214_v55 = vpop.eup %8213 }
 0xaa2   : > { %v5220_v50 = vadd.f32 1.0, %v8214_v55 }
 0xaa4   : > { %v5228_v59 = vmul.f32 %v5220_v50, %v5164_v31 }
 0xaa6   : > { %v5234_v22 = vpack.c.bf16 %v5228_v59, %v5227_v47 }
 0xaa8   : > { %7763 = vmatmul.msk.bf16.gmra.mxu2 %vm5271_vm6, %v5234_v22 }
 0xb01   : > { %v5151_v6 = vpop.f32.mrf.mxu3 }
 0xb02   : > { %v5152_v34 = vadd.f32 %v10573_v33, %v5151_v6 }
 0xb04   : > { %v5173_v62 = vmul.f32 0.044715, %v5152_v34  ;;  %v5165_v43 = vmul.f32 0.5, %v5152_v34 }
 0xb06   : > { %v5181_v14 = vmul.f32 %v5173_v62, %v5152_v34 }
 0xb08   : > { %v5189_v12 = vmul.f32 %v5181_v14, %v5152_v34 }
 0xb09   : > { %v5153_v40 = vpop.f32.mrf.mxu3 }
 0xb0a   : > { %v5197_v42 = vadd.f32 %v5189_v12, %v5152_v34  ;;  %v5154_v4 = vadd.f32 %v10573_v33, %v5153_v40 }
 0xb0c   : > { %v5174_v60 = vmul.f32 0.044715, %v5154_v4  ;;  %v5205_v45 = vmul.f32 0.7978846, %v5197_v42  ;;  %v5166_v5 = vmul.f32 0.5, %v5154_v4 }
 0xb0e   : > { %v5182_v58 = vmul.f32 %v5174_v60, %v5154_v4  ;;  %8215 = vtanh.f32 %v5205_v45 }
 0xb10   : > { %v5190_v57 = vmul.f32 %v5182_v58, %v5154_v4 }
 0xb11   : > { %v5156_v19 = vpop.f32.mrf.mxu3 }
 0xb12   : > { %v5157_v25 = vadd.f32 %v10573_v33, %v5156_v19  ;;  %v5293_v26 = vpop.f32.mrf.mxu2  ;;  %v5198_v44 = vadd.f32 %v5190_v57, %v5154_v4 }
 0xb13   : > { %v5294_v63 = vadd.f32 %v10619_v56, %v5293_v26 }
 0xb14   : > { %v5175_v30 = vmul.f32 0.044715, %v5157_v25  ;;  %v5206_v27 = vmul.f32 0.7978846, %v5198_v44  ;;  %v8216_v18 = vpop.eup %8215  ;;  %v5167_v15 = vmul.f32 0.5, %v5157_v25 }
 0xb15   : > { %v10624_v28 = vadd.f32 %v5294_v63, %v10427_v29  ;;  %v5221_v41 = vadd.f32 1.0, %v8216_v18 }
 0xb16   : > { %v5183_v37 = vmul.f32 %v5175_v30, %v5157_v25  ;;  %8217 = vtanh.f32 %v5206_v27 }
 0xb17   : > { %v5323_v48 = vsel %vm1230_vm1, %v10624_v28, 0.0  ;;  %v5229_v16 = vmul.f32 %v5221_v41, %v5165_v43 }
 0xb18   : > { %v5191_v9 = vmul.f32 %v5183_v37, %v5157_v25  ;;  %5324 = vadd.xlane.f32.xlu1 %v5323_v48 }
 0xb19   : > { %v5158_v13 = vpop.f32.mrf.mxu3 }
 0xb1a   : > { %v5199_v0 = vadd.f32 %v5191_v9, %v5157_v25  ;;  %v5159_v10 = vadd.f32 %v10573_v33, %v5158_v13  ;;  %v5295_v36 = vpop.f32.mrf.mxu2 }
 0xb1b   : > { %v5296_v54 = vadd.f32 %v10619_v56, %v5295_v36 }
 0xb1c   : > { %v8218_v32 = vpop.eup %8217  ;;  %v5176_v52 = vmul.f32 0.044715, %v5159_v10  ;;  %v5207_v35 = vmul.f32 0.7978846, %v5199_v0  ;;  %v5168_v31 = vmul.f32 0.5, %v5159_v10 }
 0xb1d   : > { %v10631_v29 = vadd.f32 %v5296_v54, %v10433_v61  ;;  %v5222_v53 = vadd.f32 1.0, %v8218_v32 }
 0xb1e   : > { %v5184_v3 = vmul.f32 %v5176_v52, %v5159_v10  ;;  %8219 = vtanh.f32 %v5207_v35 }
 0xb1f   : > { %v5326_v20 = vsel %vm1230_vm1, %v10631_v29, 0.0  ;;  %v5230_v23 = vmul.f32 %v5222_v53, %v5166_v5 }
 0xb20   : > { %v5192_v33 = vmul.f32 %v5184_v3, %v5159_v10  ;;  %5327 = vadd.xlane.f32.xlu2 %v5326_v20 }
 0xb21   : > { %v5235_v24 = vpack.c.bf16 %v5230_v23, %v5229_v16 }
 0xb22   : > { %v5200_v21 = vadd.f32 %v5192_v33, %v5159_v10 }
 0xb23   : > { %7764 = vmatmul.msk.bf16.gmra.mxu2 %vm5271_vm6, %v5235_v24 }
 0xb24   : > { %v5208_v38 = vmul.f32 0.7978846, %v5200_v21  ;;  %v8220_v61 = vpop.eup %8219 }
 0xb25   : > { %v5223_v1 = vadd.f32 1.0, %v8220_v61 }
 0xb26   : > { %8221 = vtanh.f32 %v5208_v38 }
 0xb27   : > { %v5231_v59 = vmul.f32 %v5223_v1, %v5167_v15 }
 0xb2b   : > { %v5298_v46 = vpop.f32.mrf.mxu2 }
 0xb2c   : > { %v8222_v8 = vpop.eup %8221  ;;  %v5299_v55 = vadd.f32 %v10619_v56, %v5298_v46 }
 0xb2d   : > { %v5224_v50 = vadd.f32 1.0, %v8222_v8 }
 0xb2e   : > { %v10638_v47 = vadd.f32 %v5299_v55, %v10442_v51 }
 0xb2f   : > { %v5232_v22 = vmul.f32 %v5224_v50, %v5168_v31  ;;  %v8014_v50 = vld [vmem:[%s11345_s4 + $0x10] sm:$0xff] }
 0xb30   : > { %v5329_v6 = vsel %vm1230_vm1, %v10638_v47, 0.0 }
 0xb31   : > { %5330 = vadd.xlane.f32.xlu0 %v5329_v6  ;;  %v5236_v34 = vpack.c.bf16 %v5232_v22, %v5231_v59 }
 0xb33   : > { %v5300_v62 = vpop.f32.mrf.mxu2  ;;  %7765 = vmatmul.msk.bf16.gmra.mxu2 %vm5271_vm6, %v5236_v34 }
 0xb34   : > { %v5301_v14 = vadd.f32 %v10619_v56, %v5300_v62 }
 0xb36   : > { %v10645_v12 = vadd.f32 %v5301_v14, %v10448_v7 }
 0xb38   : > { %v5332_v40 = vsel %vm1230_vm1, %v10645_v12, 0.0 }
 0xb39   : > { %5333 = vadd.xlane.f32.xlu1 %v5332_v40 }
 0xb8b   : > { %v5325_v51 = vpop.xlane.xlu1 %5324 }
 0xb8c   : > { %v5347_v42 = vmul.f32 %v5325_v51, %v9388_v39 }
 0xb8e   : > { %v10651_v4 = vsub.f32 %v10624_v28, %v5347_v42  ;;  %v10714_v42 = vld [vmem:[%s11343_s2 + $0x9] ss:$0 sm:$0xff] }
 0xb90   : > { %v5363_v60 = vmul.f32 %v10651_v4, %v10651_v4 }
 0xb92   : > { %v5371_v45 = vsel %vm1230_vm1, %v5363_v60, 0.0 }
 0xb93   : > { %v5328_v58 = vpop.xlane.xlu2 %5327  ;;  %5372 = vadd.xlane.f32.xlu2 %v5371_v45 }
 0xb94   : > { %v5348_v7 = vmul.f32 %v5328_v58, %v9388_v39 }
 0xb96   : > { %v10658_v57 = vsub.f32 %v10631_v29, %v5348_v7 }
 0xb98   : > { %v5364_v19 = vmul.f32 %v10658_v57, %v10658_v57 }
 0xb9a   : > { %v5374_v25 = vsel %vm1230_vm1, %v5364_v19, 0.0 }
 0xb9b   : > { %5375 = vadd.xlane.f32.xlu0 %v5374_v25 }
 0xba4   : > { %v5331_v26 = vpop.xlane.xlu0 %5330 }
 0xba5   : > { %v5349_v44 = vmul.f32 %v5331_v26, %v9388_v39  ;;  %v10725_v26 = vld [vmem:[%s11343_s2 + $0xa] ss:$0 sm:$0xff] }
 0xba6   : > { %v5303_v63 = vpop.f32.mrf.mxu2 }
 0xba7   : > { %v10665_v30 = vsub.f32 %v10638_v47, %v5349_v44  ;;  %v5304_v27 = vadd.f32 %v10619_v56, %v5303_v63 }
 0xba9   : > { %v10669_v37 = vadd.f32 %v5304_v27, %v10482_v11  ;;  %v5365_v48 = vmul.f32 %v10665_v30, %v10665_v30 }
 0xbab   : > { %v5377_v18 = vsel %vm1230_vm1, %v5365_v48, 0.0  ;;  %v5335_v9 = vsel %vm1230_vm1, %v10669_v37, 0.0 }
 0xbac   : > { %5378 = vadd.xlane.f32.xlu1 %v5377_v18  ;;  %5336 = vadd.xlane.f32.xlu0 %v5335_v9  ;;  %v5334_v13 = vpop.xlane.xlu1 %5333 }
 0xbad   : > { %v5350_v0 = vmul.f32 %v5334_v13, %v9388_v39 }
 0xbae   : > { %v5305_v10 = vpop.f32.mrf.mxu2 }
 0xbaf   : > { %v10678_v36 = vsub.f32 %v10645_v12, %v5350_v0  ;;  %v5306_v11 = vadd.f32 %v10619_v56, %v5305_v10 }
 0xbb1   : > { %v10682_v54 = vadd.f32 %v5306_v11, %v10468_v17  ;;  %v5366_v41 = vmul.f32 %v10678_v36, %v10678_v36 }
 0xbb3   : > { %v5338_v32 = vsel %vm1230_vm1, %v10682_v54, 0.0  ;;  %v5380_v52 = vsel %vm1230_vm1, %v5366_v41, 0.0 }
 0xbb4   : > { %5339 = vadd.xlane.f32.xlu1 %v5338_v32  ;;  %5381 = vadd.xlane.f32.xlu2 %v5380_v52 }
 0xbb6   : > { %v5308_v43 = vpop.f32.mrf.mxu2 }
 0xbb7   : > { %v5309_v5 = vadd.f32 %v10619_v56, %v5308_v43 }
 0xbb9   : > { %v10691_v53 = vadd.f32 %v5309_v5, %v10494_v2 }
 0xbbb   : > { %v5341_v17 = vsel %vm1230_vm1, %v10691_v53, 0.0 }
 0xbbc   : > { %5342 = vadd.xlane.f32.xlu2 %v5341_v17 }
 0xbbe   : > { %v5310_v35 = vpop.f32.mrf.mxu2 }
 0xbbf   : > { %v5311_v3 = vadd.f32 %v10619_v56, %v5310_v35 }
 0xbc1   : > { %v10697_v20 = vadd.f32 %v5311_v3, %v10498_v49  ;;  %v8015_v49 = vld [vmem:[%s11345_s4 + $0x18] sm:$0xff] }
 0xbc2   : > { %5556 = vmatpush.bf16.msrb.mxu3 %v8015_v49 }
 0xbc3   : > { %v5344_v16 = vsel %vm1230_vm1, %v10697_v20, 0.0 }
 0xbc4   : > { %5345 = vadd.xlane.f32.xlu0 %v5344_v16 }
 0xbc6   : > { %5557 = vmatpush.bf16.msrb.mxu3 %v8014_v50 }
 0xc06   : > { %v5373_v23 = vpop.xlane.xlu2 %5372 }
 0xc07   : > { %v5395_v33 = vmul.f32 %v5373_v23, %v9388_v39 }
 0xc09   : > { %v5403_v24 = vadd.f32 1e-05, %v5395_v33 }
 0xc0b   : > { %8223 = vrsqrt.f32 %v5403_v24  ;;  %vm5417_vm8 = vweird.f32 %v5403_v24 }
 0xc0e   : > { %v5376_v2 = vpop.xlane.xlu0 %5375 }
 0xc0f   : > { %v5396_v21 = vmul.f32 %v5376_v2, %v9388_v39 }
 0xc11   : > { %v8224_v38 = vpop.eup %8223  ;;  %v5404_v61 = vadd.f32 1e-05, %v5396_v21 }
 0xc12   : > { %v5412_v46 = vmul.f32 %v8224_v38, %v5403_v24  ;;  %vm5418_vm7 = vweird.f32 %v8224_v38 }
 0xc13   : > { %8225 = vrsqrt.f32 %v5404_v61  ;;  %vm5419_vm9 = vmor %vm5417_vm8, %vm5418_vm7  ;;  %vm5427_vm11 = vweird.f32 %v5404_v61 }
 0xc14   : > { %v5413_v56 = vmul.f32 %v8224_v38, %v5412_v46 }
 0xc16   : > { %v5414_v1 = vmul.f32 0.5, %v5413_v56 }
 0xc18   : > { %v5415_v8 = vsub.f32 1.5, %v5414_v1 }
 0xc19   : > { %v8226_v55 = vpop.eup %8225 }
 0xc1a   : > { %v5416_v15 = vmul.f32 %v8224_v38, %v5415_v8  ;;  %v5422_v31 = vmul.f32 %v8226_v55, %v5404_v61  ;;  %vm5428_vm10 = vweird.f32 %v8226_v55 }
 0xc1b   : > { %vm5429_vm12 = vmor %vm5427_vm11, %vm5428_vm10 }
 0xc1c   : > { %v5423_v59 = vmul.f32 %v8226_v55, %v5422_v31  ;;  %v5420_v22 = vsel %vm5419_vm9, %v8224_v38, %v5416_v15 }
 0xc1d   : > { %v5491_v60 = vmul.f32 %v5420_v22, %v10651_v4 }
 0xc1e   : > { %v5424_v6 = vmul.f32 0.5, %v5423_v59 }
 0xc1f   : > { %v5337_v34 = vpop.xlane.xlu0 %5336  ;;  %v5379_v62 = vpop.xlane.xlu1 %5378  ;;  %v5500_v44 = vmul.f32 %v10714_v42, %v5491_v60 }
 0xc20   : > { %v5425_v14 = vsub.f32 1.5, %v5424_v6  ;;  %v5351_v40 = vmul.f32 %v5337_v34, %v9388_v39  ;;  %v5397_v51 = vmul.f32 %v5379_v62, %v9388_v39 }
 0xc21   : > { %v5509_v0 = vadd.f32 %v10725_v26, %v5500_v44 }
 0xc22   : > { %v5426_v45 = vmul.f32 %v8226_v55, %v5425_v14  ;;  %v10718_v58 = vsub.f32 %v10669_v37, %v5351_v40  ;;  %v5405_v7 = vadd.f32 1e-05, %v5397_v51 }
 0xc24   : > { %v5430_v19 = vsel %vm5429_vm12, %v8226_v55, %v5426_v45  ;;  %8227 = vrsqrt.f32 %v5405_v7  ;;  %v5367_v25 = vmul.f32 %v10718_v58, %v10718_v58  ;;  %vm5437_vm14 = vweird.f32 %v5405_v7 }
 0xc25   : > { %v5492_v4 = vmul.f32 %v5430_v19, %v10658_v57 }
 0xc26   : > { %v5383_v63 = vsel %vm1230_vm1, %v5367_v25, 0.0 }
 0xc27   : > { %v5501_v27 = vmul.f32 %v10714_v42, %v5492_v4  ;;  %5384 = vadd.xlane.f32.xlu1 %v5383_v63  ;;  %v5382_v48 = vpop.xlane.xlu2 %5381  ;;  %v5340_v18 = vpop.xlane.xlu1 %5339 }
 0xc28   : > { %v5398_v9 = vmul.f32 %v5382_v48, %v9388_v39  ;;  %v5352_v13 = vmul.f32 %v5340_v18, %v9388_v39 }
 0xc29   : > { %v5510_v10 = vadd.f32 %v10725_v26, %v5501_v27 }
 0xc2a   : > { %v8228_v11 = vpop.eup %8227  ;;  %v5406_v41 = vadd.f32 1e-05, %v5398_v9  ;;  %v10736_v32 = vsub.f32 %v10682_v54, %v5352_v13 }
 0xc2b   : > { %v5517_v57 = vpack.c.bf16 %v5510_v10, %v5509_v0  ;;  %v5432_v52 = vmul.f32 %v8228_v11, %v5405_v7  ;;  %vm5438_vm13 = vweird.f32 %v8228_v11 }
 0xc2c   : > { %8229 = vrsqrt.f32 %v5406_v41  ;;  %v5368_v43 = vmul.f32 %v10736_v32, %v10736_v32  ;;  %vm5439_vm15 = vmor %vm5437_vm14, %vm5438_vm13  ;;  %vm5447_vm4 = vweird.f32 %v5406_v41 }
 0xc2d   : > { %v5433_v5 = vmul.f32 %v8228_v11, %v5432_v52  ;;  %7778 = vmatmul.msk.bf16.vlgmr.msrb.gmra.mxu3 %vm1230_vm1, %v5517_v57 }
 0xc2e   : > { %v5386_v17 = vsel %vm1230_vm1, %v5368_v43, 0.0 }
 0xc2f   : > { %v5434_v35 = vmul.f32 0.5, %v5433_v5  ;;  %v5343_v3 = vpop.xlane.xlu2 %5342  ;;  %5387 = vadd.xlane.f32.xlu2 %v5386_v17 }
 0xc30   : > { %v5353_v16 = vmul.f32 %v5343_v3, %v9388_v39 }
 0xc31   : > { %v5435_v23 = vsub.f32 1.5, %v5434_v35 }
 0xc32   : > { %v8230_v33 = vpop.eup %8229  ;;  %v10744_v24 = vsub.f32 %v10691_v53, %v5353_v16 }
 0xc33   : > { %v5436_v2 = vmul.f32 %v8228_v11, %v5435_v23  ;;  %v5442_v21 = vmul.f32 %v8230_v33, %v5406_v41  ;;  %vm5448_vm3 = vweird.f32 %v8230_v33 }
 0xc34   : > { %v5369_v38 = vmul.f32 %v10744_v24, %v10744_v24  ;;  %vm5449_vm5 = vmor %vm5447_vm4, %vm5448_vm3 }
 0xc35   : > { %v5443_v61 = vmul.f32 %v8230_v33, %v5442_v21  ;;  %v5440_v56 = vsel %vm5439_vm15, %v8228_v11, %v5436_v2 }
 0xc36   : > { %v5389_v46 = vsel %vm1230_vm1, %v5369_v38, 0.0  ;;  %v5493_v15 = vmul.f32 %v5440_v56, %v10665_v30 }
 0xc37   : > { %v5444_v1 = vmul.f32 0.5, %v5443_v61  ;;  %v5346_v49 = vpop.xlane.xlu0 %5345  ;;  %5390 = vadd.xlane.f32.xlu0 %v5389_v46 }
 0xc38   : > { %v5354_v8 = vmul.f32 %v5346_v49, %v9388_v39  ;;  %v5502_v62 = vmul.f32 %v10714_v42, %v5493_v15 }
 0xc39   : > { %v5445_v55 = vsub.f32 1.5, %v5444_v1 }
 0xc3a   : > { %v10752_v31 = vsub.f32 %v10697_v20, %v5354_v8  ;;  %v5511_v30 = vadd.f32 %v10725_v26, %v5502_v62 }
 0xc3b   : > { %v5446_v50 = vmul.f32 %v8230_v33, %v5445_v55 }
 0xc3c   : > { %v5370_v59 = vmul.f32 %v10752_v31, %v10752_v31 }
 0xc3d   : > { %v5450_v22 = vsel %vm5449_vm5, %v8230_v33, %v5446_v50 }
 0xc3e   : > { %v5494_v6 = vmul.f32 %v5450_v22, %v10678_v36  ;;  %v5392_v34 = vsel %vm1230_vm1, %v5370_v59, 0.0 }
 0xc3f   : > { %5393 = vadd.xlane.f32.xlu1 %v5392_v34 }
 0xc40   : > { %v5503_v14 = vmul.f32 %v10714_v42, %v5494_v6 }
 0xc42   : > { %v5512_v40 = vadd.f32 %v10725_v26, %v5503_v14 }
 0xc44   : > { %v5518_v51 = vpack.c.bf16 %v5512_v40, %v5511_v30 }
 0xc46   : > { %7779 = vmatmul.msk.bf16.gmra.mxu3 %vm1230_vm1, %v5518_v51 }
 0xc9a   : > { %v5385_v60 = vpop.xlane.xlu1 %5384 }
 0xc9b   : > { %v5399_v45 = vmul.f32 %v5385_v60, %v9388_v39 }
 0xc9d   : > { %v5407_v7 = vadd.f32 1e-05, %v5399_v45 }
 0xc9f   : > { %8231 = vrsqrt.f32 %v5407_v7  ;;  %vm5457_vm8 = vweird.f32 %v5407_v7 }
 0xca2   : > { %v5388_v36 = vpop.xlane.xlu2 %5387 }
 0xca3   : > { %v5400_v19 = vmul.f32 %v5388_v36, %v9388_v39 }
 0xca5   : > { %v8232_v25 = vpop.eup %8231  ;;  %v5408_v44 = vadd.f32 1e-05, %v5400_v19 }
 0xca6   : > { %v5452_v4 = vmul.f32 %v8232_v25, %v5407_v7  ;;  %vm5458_vm7 = vweird.f32 %v8232_v25 }
 0xca7   : > { %8233 = vrsqrt.f32 %v5408_v44  ;;  %vm5459_vm9 = vmor %vm5457_vm8, %vm5458_vm7  ;;  %vm5467_vm11 = vweird.f32 %v5408_v44 }
 0xca8   : > { %v5453_v63 = vmul.f32 %v8232_v25, %v5452_v4 }
 0xcaa   : > { %v5454_v27 = vmul.f32 0.5, %v5453_v63  ;;  %v5391_v48 = vpop.xlane.xlu0 %5390 }
 0xcab   : > { %v5401_v18 = vmul.f32 %v5391_v48, %v9388_v39 }
 0xcac   : > { %v5455_v9 = vsub.f32 1.5, %v5454_v27 }
 0xcad   : > { %v8234_v13 = vpop.eup %8233  ;;  %v5409_v0 = vadd.f32 1e-05, %v5401_v18 }
 0xcae   : > { %v5456_v10 = vmul.f32 %v8232_v25, %v5455_v9  ;;  %v5462_v11 = vmul.f32 %v8234_v13, %v5408_v44  ;;  %vm5468_vm10 = vweird.f32 %v8234_v13 }
 0xcaf   : > { %8235 = vrsqrt.f32 %v5409_v0  ;;  %vm5469_vm12 = vmor %vm5467_vm11, %vm5468_vm10  ;;  %vm5477_vm14 = vweird.f32 %v5409_v0 }
 0xcb0   : > { %v5463_v41 = vmul.f32 %v8234_v13, %v5462_v11  ;;  %v5559_v57 = vpop.f32.mrf.mxu3  ;;  %v5460_v52 = vsel %vm5459_vm9, %v8232_v25, %v5456_v10 }
 0xcb1   : > { %v5495_v16 = vmul.f32 %v5460_v52, %v10718_v58 }
 0xcb2   : > { %v5464_v43 = vmul.f32 0.5, %v5463_v41  ;;  %v5394_v5 = vpop.xlane.xlu1 %5393 }
 0xcb3   : > { %v5402_v17 = vmul.f32 %v5394_v5, %v9388_v39  ;;  %v5504_v1 = vmul.f32 %v10714_v42, %v5495_v16 }
 0xcb4   : > { %v5465_v35 = vsub.f32 1.5, %v5464_v43 }
 0xcb5   : > { %v8236_v3 = vpop.eup %8235  ;;  %v5410_v23 = vadd.f32 1e-05, %v5402_v17  ;;  %v5513_v15 = vadd.f32 %v10725_v26, %v5504_v1 }
 0xcb6   : > { %v5466_v33 = vmul.f32 %v8234_v13, %v5465_v35  ;;  %v5472_v2 = vmul.f32 %v8236_v3, %v5409_v0  ;;  %vm5478_vm13 = vweird.f32 %v8236_v3 }
 0xcb7   : > { %8237 = vrsqrt.f32 %v5410_v23  ;;  %vm5479_vm15 = vmor %vm5477_vm14, %vm5478_vm13  ;;  %vm5487_vm4 = vweird.f32 %v5410_v23 }
 0xcb8   : > { %v5470_v21 = vsel %vm5469_vm12, %v8234_v13, %v5466_v33  ;;  %v5473_v38 = vmul.f32 %v8236_v3, %v5472_v2  ;;  %v5561_v61 = vpop.f32.mrf.mxu3 }
 0xcb9   : > { %v5496_v46 = vmul.f32 %v5470_v21, %v10736_v32  ;;  %v10769_v56 = vpack.c.bf16 %v5561_v61, %v5559_v57 }
 0xcba   : > { %v5474_v49 = vmul.f32 0.5, %v5473_v38 }
 0xcbb   : > { %5583 = vrot.lane.b32.xlu0 %v10769_v56, %s8381_s15  ;;  %v5505_v58 = vmul.f32 %v10714_v42, %v5496_v46 }
 0xcbc   : > { %v5475_v8 = vsub.f32 1.5, %v5474_v49 }
 0xcbd   : > { %v8238_v55 = vpop.eup %8237  ;;  %v5514_v50 = vadd.f32 %v10725_v26, %v5505_v58 }
 0xcbe   : > { %v5476_v59 = vmul.f32 %v8236_v3, %v5475_v8  ;;  %v5482_v22 = vmul.f32 %v8238_v55, %v5410_v23  ;;  %vm5488_vm3 = vweird.f32 %v8238_v55 }
 0xcbf   : > { %v5519_v32 = vpack.c.bf16 %v5514_v50, %v5513_v15  ;;  %vm5489_vm5 = vmor %vm5487_vm4, %vm5488_vm3 }
 0xcc0   : > { %v5483_v6 = vmul.f32 %v8238_v55, %v5482_v22  ;;  %v5480_v34 = vsel %vm5479_vm15, %v8236_v3, %v5476_v59 }
 0xcc1   : > { %7780 = vmatmul.msk.bf16.gmra.mxu3 %vm1230_vm1, %v5519_v32  ;;  %v5497_v30 = vmul.f32 %v5480_v34, %v10744_v24 }
 0xcc2   : > { %v5484_v62 = vmul.f32 0.5, %v5483_v6 }
 0xcc3   : > { %5703 = vrot.lane.b32.xlu0 %v10769_v56, %s8382_s16  ;;  %v5506_v7 = vmul.f32 %v10714_v42, %v5497_v30 }
 0xcc4   : > { %v5485_v14 = vsub.f32 1.5, %v5484_v62 }
 0xcc5   : > { %v5515_v19 = vadd.f32 %v10725_v26, %v5506_v7 }
 0xcc6   : > { %v5486_v40 = vmul.f32 %v8238_v55, %v5485_v14 }
 0xcc8   : > { %v5490_v51 = vsel %vm5489_vm5, %v8238_v55, %v5486_v40 }
 0xcc9   : > { %v5498_v60 = vmul.f32 %v5490_v51, %v10752_v31  ;;  %v5564_v45 = vpop.f32.mrf.mxu3 }
 0xccb   : > { %v5507_v36 = vmul.f32 %v10714_v42, %v5498_v60 }
 0xccd   : > { %v5516_v25 = vadd.f32 %v10725_v26, %v5507_v36 }
 0xccf   : > { %v5520_v44 = vpack.c.bf16 %v5516_v25, %v5515_v19 }
 0xcd1   : > { %v5566_v4 = vpop.f32.mrf.mxu3  ;;  %7781 = vmatmul.msk.bf16.gmra.mxu3 %vm1230_vm1, %v5520_v44 }
 0xcd2   : > { %v10787_v24 = vpack.c.bf16 %v5566_v4, %v5564_v45 }
 0xcd4   : > { %5701 = vrot.lane.b32.xlu0 %v10787_v24, %s8383_s17  ;;  %5705 = vrot.lane.b32.xlu1 %v10787_v24, %s8382_s16 }
 0xcd5   : > { %5585 = vrot.lane.b32.xlu2 %v10787_v24, %s8381_s15 }
 0xcdd   : > { %5699 = vrot.lane.b32.xlu2 %v10769_v56, %s8383_s17 }
 0xd2d   : > { %v5584_v31 = vpop.permute.xlu0 %5583 }
 0xd2e   : > { %v5594_v63 = vsel %vm820_vm0, %v5584_v31, 0 }
 0xd2f   : > { %v5586_v42 = vpop.permute.xlu2 %5585 }
 0xd30   : > { %v5597_v26 = vsel %vm820_vm0, %v5586_v42, 0 }
 0xd31   : > { %5605 = vmatpush.bf16.xpose.msrb.mxu2 %v5597_v26 }
 0xd35   : > { %v5704_v13 = vpop.permute.xlu0 %5703 }
 0xd36   : > { %v5714_v10 = vsel %vm820_vm0, %v5704_v13, 0 }
 0xd37   : > { %v5700_v52 = vpop.permute.xlu2 %5699 }
 0xd39   : > { %5606 = vmatpush.bf16.xpose.msrb.mxu2 %v5594_v63 }
 0xd40   : > { %7782 = vmatmul.msk.bf16.vlgmr.msrb.gmra.mxu2 %vm820_vm0, %v10769_v56 }
 0xd44   : > { %v5569_v27 = vpop.f32.mrf.mxu3 }
 0xd46   : > { %v5706_v48 = vpop.permute.xlu1 %5705  ;;  %v5702_v43 = vpop.permute.xlu0 %5701 }
 0xd47   : > { %v5717_v18 = vsel %vm820_vm0, %v5706_v48, 0 }
 0xd48   : > { %5725 = vmatpush.bf16.xpose.msra.mxu2 %v5717_v18 }
 0xd4c   : > { %v5571_v9 = vpop.f32.mrf.mxu3 }
 0xd4d   : > { %v10802_v0 = vpack.c.bf16 %v5571_v9, %v5569_v27 }
 0xd4f   : > { %5843 = vrot.lane.b32.xlu1 %v10802_v0, %s8381_s15 }
 0xd50   : > { %7783 = vmatmul.msk.bf16.gmra.mxu2 %vm820_vm0, %v10787_v24 }
 0xd51   : > { %5726 = vmatpush.bf16.xpose.msra.mxu2 %v5714_v10 }
 0xd54   : > { %v5574_v11 = vpop.f32.mrf.mxu3 }
 0xd57   : > { %5959 = vrot.lane.b32.xlu1 %v10802_v0, %s8383_s17 }
 0xd5c   : > { %v5576_v41 = vpop.f32.mrf.mxu3 }
 0xd5d   : > { %v10811_v57 = vpack.c.bf16 %v5576_v41, %v5574_v11 }
 0xd5f   : > { %5965 = vrot.lane.b32.xlu0 %v10811_v57, %s8382_s16  ;;  %5845 = vrot.lane.b32.xlu2 %v10811_v57, %s8381_s15 }
 0xd60   : > { %7786 = vmatmul.msk.bf16.vlgmr.msra.gmra.mxu2 %vm820_vm0, %v5700_v52 }
 0xd67   : > { %5961 = vrot.lane.b32.xlu0 %v10811_v57, %s8383_s17  ;;  %5963 = vrot.lane.b32.xlu2 %v10802_v0, %s8382_s16  ;;  %s7902_s17 = sshll.u32 %s11628_s29, 5 }
 0xd68   : > { %s454_s23 = scalar_lea.vmem %s11353_s12, %s7902_s17 }
 0xd6f   : > { %5668 = vrot.lane.b32.xlu0 %v10769_v56, %s8384_s18 }
 0xd70   : > { %7787 = vmatmul.msk.bf16.gmra.mxu2 %vm820_vm0, %v5702_v43 }
 0xdb9   : > { %v5846_v5 = vpop.permute.xlu2 %5845 }
 0xdba   : > { %v5857_v17 = vsel %vm820_vm0, %v5846_v5, 0 }
 0xdbb   : > { %5865 = vmatpush.bf16.xpose.msrb.mxu2 %v5857_v17 }
 0xdc1   : > { %v5844_v35 = vpop.permute.xlu1 %5843  ;;  %v5964_v8 = vpop.permute.xlu2 %5963 }
 0xdc2   : > { %v5854_v3 = vsel %vm820_vm0, %v5844_v35, 0  ;;  %v5974_v55 = vsel %vm820_vm0, %v5964_v8, 0 }
 0xdc3   : > { %v5608_v16 = vpop.f32.mrf.mxu2  ;;  %5866 = vmatpush.bf16.xpose.msrb.mxu2 %v5854_v3 }
 0xdc4   : > { %v5618_v23 = vmul.f32 0.25, %v5608_v16 }
 0xdc6   : > { %v5622_v33 = vsel %vm1230_vm1, %v5618_v23, -inf }
 0xdc7   : > { %5623 = vmax.xlane.f32.xlu2 %v5622_v33 }
 0xdc9   : > { %v5960_v59 = vpop.permute.xlu1 %5959 }
 0xdca   : > { %7790 = vmatmul.msk.bf16.vlgmr.msrb.gmra.mxu2 %vm820_vm0, %v10802_v0 }
 0xdcb   : > { %v5610_v2 = vpop.f32.mrf.mxu2 }
 0xdcc   : > { %v10830_v21 = vmul.f32 0.25, %v5610_v2 }
 0xdce   : > { %v5625_v38 = vsel %vm1230_vm1, %v10830_v21, -inf }
 0xdcf   : > { %5626 = vmax.xlane.f32.xlu1 %v5625_v38 }
 0xdd1   : > { %v5966_v61 = vpop.permute.xlu0 %5965 }
 0xdd2   : > { %v5977_v46 = vsel %vm820_vm0, %v5966_v61, 0 }
 0xdd3   : > { %v5613_v1 = vpop.f32.mrf.mxu2  ;;  %5985 = vmatpush.bf16.xpose.msra.mxu2 %v5977_v46 }
 0xdd4   : > { %v10835_v49 = vmul.f32 0.25, %v5613_v1 }
 0xdd6   : > { %v5628_v58 = vsel %vm1230_vm1, %v10835_v49, -inf }
 0xdd7   : > { %5629 = vmax.xlane.f32.xlu0 %v5628_v58 }
 0xdd9   : > { %v5962_v34 = vpop.permute.xlu0 %5961 }
 0xdda   : > { %7791 = vmatmul.msk.bf16.gmra.mxu2 %vm820_vm0, %v10811_v57 }
 0xddb   : > { %v5615_v15 = vpop.f32.mrf.mxu2  ;;  %5986 = vmatpush.bf16.xpose.msra.mxu2 %v5974_v55 }
 0xddc   : > { %v10852_v62 = vmul.f32 0.25, %v5615_v15 }
 0xdde   : > { %v5631_v14 = vsel %vm1230_vm1, %v10852_v62, -inf }
 0xddf   : > { %5790 = vrot.lane.b32.xlu2 %v10787_v24, %s8385_s19 }
 0xde1   : > { %v5669_v10 = vpop.permute.xlu0 %5668 }
 0xde3   : > { %v5728_v50 = vpop.f32.mrf.mxu2 }
 0xde4   : > { %v10858_v51 = vmul.f32 0.25, %v5728_v50 }
 0xde6   : > { %v5742_v45 = vsel %vm1230_vm1, %v10858_v51, -inf }
 0xde8   : > { %5670 = vrot.lane.b32.xlu1 %v10787_v24, %s8384_s18 }
 0xdea   : > { %7794 = vmatmul.msk.bf16.vlgmr.msra.gmra.mxu2 %vm820_vm0, %v5960_v59 }
 0xdeb   : > { %v5730_v22 = vpop.f32.mrf.mxu2 }
 0xdec   : > { %v10847_v32 = vmul.f32 0.25, %v5730_v22 }
 0xdee   : > { %v5745_v6 = vsel %vm1230_vm1, %v10847_v32, -inf }
 0xdef   : > { %5746 = vmax.xlane.f32.xlu0 %v5745_v6 }
 0xdf3   : > { %v5733_v30 = vpop.f32.mrf.mxu2 }
 0xdf4   : > { %v10856_v40 = vmul.f32 0.25, %v5733_v30 }
 0xdf6   : > { %v5748_v60 = vsel %vm1230_vm1, %v10856_v40, -inf }
 0xdfa   : > { %7795 = vmatmul.msk.bf16.gmra.mxu2 %vm820_vm0, %v5962_v34 }
 0xdfb   : > { %v5735_v7 = vpop.f32.mrf.mxu2 }
 0xdfc   : > { %v10864_v36 = vmul.f32 0.25, %v5735_v7 }
 0xdfe   : > { %v5751_v19 = vsel %vm1230_vm1, %v10864_v36, -inf }
 0xe08   : > { %5632 = vmax.xlane.f32.xlu2 %v5631_v14 }
 0xe10   : > { %5749 = vmax.xlane.f32.xlu2 %v5748_v60 }
 0xe12   : > { %5743 = vmax.xlane.f32.xlu1 %v5742_v45 }
 0xe1a   : > { %5752 = vmax.xlane.f32.xlu1 %v5751_v19 }
 0xe3a   : > { %v5624_v25 = vpop.xlane.xlu2 %5623 }
 0xe3b   : > { %v5634_v44 = vsub.f32 %v5618_v23, %v5624_v25 }
 0xe3d   : > { %v5638_v4 = vmul.f32 1.442695, %v5634_v44 }
 0xe3f   : > { %8239 = vpow2.f32 %v5638_v4 }
 0xe42   : > { %v5627_v27 = vpop.xlane.xlu1 %5626  ;;  %v5791_v52 = vpop.permute.xlu2 %5790 }
 0xe43   : > { %v5635_v43 = vsub.f32 %v10830_v21, %v5627_v27 }
 0xe45   : > { %v10868_v24 = vpop.eup %8239  ;;  %v5640_v17 = vmul.f32 1.442695, %v5635_v43 }
 0xe46   : > { %v5646_v42 = vsel %vm1230_vm1, %v10868_v24, 0.0 }
 0xe47   : > { %5647 = vadd.xlane.f32.xlu0 %v5646_v42  ;;  %8241 = vpow2.f32 %v5640_v17 }
 0xe4a   : > { %v5630_v35 = vpop.xlane.xlu0 %5629 }
 0xe4b   : > { %v5636_v23 = vsub.f32 %v10835_v49, %v5630_v35 }
 0xe4d   : > { %v5868_v26 = vpop.f32.mrf.mxu2  ;;  %v5642_v2 = vmul.f32 1.442695, %v5636_v23  ;;  %v10890_v21 = vpop.eup %8241 }
 0xe4e   : > { %v10872_v31 = vmul.f32 0.25, %v5868_v26  ;;  %v5649_v1 = vsel %vm1230_vm1, %v10890_v21, 0.0 }
 0xe4f   : > { %8243 = vpow2.f32 %v5642_v2 }
 0xe50   : > { %v5882_v63 = vsel %vm1230_vm1, %v10872_v31, -inf }
 0xe51   : > { %5883 = vmax.xlane.f32.xlu2 %v5882_v63 }
 0xe55   : > { %v5870_v48 = vpop.f32.mrf.mxu2  ;;  %v10898_v49 = vpop.eup %8243 }
 0xe56   : > { %v10876_v18 = vmul.f32 0.25, %v5870_v48  ;;  %v5652_v15 = vsel %vm1230_vm1, %v10898_v49, 0.0 }
 0xe58   : > { %v5885_v9 = vsel %vm1230_vm1, %v10876_v18, -inf }
 0xe59   : > { %5886 = vmax.xlane.f32.xlu2 %v5885_v9 }
 0xe5a   : > { %v5671_v13 = vpop.permute.xlu1 %5670 }
 0xe5b   : > { %5686 = vmatpush.bf16.msra.mxu3 %v5671_v13 }
 0xe5d   : > { %v5873_v11 = vpop.f32.mrf.mxu2 }
 0xe5e   : > { %v10880_v41 = vmul.f32 0.25, %v5873_v11 }
 0xe5f   : > { %5687 = vmatpush.bf16.msra.mxu3 %v5669_v10 }
 0xe60   : > { %v5888_v5 = vsel %vm1230_vm1, %v10880_v41, -inf }
 0xe61   : > { %5889 = vmax.xlane.f32.xlu1 %v5888_v5 }
 0xe62   : > { %v5747_v34 = vpop.xlane.xlu0 %5746 }
 0xe63   : > { %5806 = vmatpush.bf16.msrb.mxu3 %v5791_v52  ;;  %v5755_v25 = vsub.f32 %v10847_v32, %v5747_v34 }
 0xe65   : > { %v5875_v3 = vpop.f32.mrf.mxu2  ;;  %v5760_v4 = vmul.f32 1.442695, %v5755_v25 }
 0xe66   : > { %v10885_v16 = vmul.f32 0.25, %v5875_v3 }
 0xe68   : > { %v5891_v33 = vsel %vm1230_vm1, %v10885_v16, -inf }
 0xe69   : > { %5892 = vmax.xlane.f32.xlu2 %v5891_v33 }
 0xe6d   : > { %v5988_v38 = vpop.f32.mrf.mxu2 }
 0xe6e   : > { %v10892_v61 = vmul.f32 0.25, %v5988_v38 }
 0xe70   : > { %v6002_v46 = vsel %vm1230_vm1, %v10892_v61, -inf }
 0xe71   : > { %6003 = vmax.xlane.f32.xlu1 %v6002_v46  ;;  %5650 = vadd.xlane.f32.xlu2 %v5649_v1 }
 0xe75   : > { %v5990_v58 = vpop.f32.mrf.mxu2 }
 0xe76   : > { %v10900_v8 = vmul.f32 0.25, %v5990_v58 }
 0xe78   : > { %v6005_v55 = vsel %vm1230_vm1, %v10900_v8, -inf }
 0xe79   : > { %6006 = vmax.xlane.f32.xlu1 %v6005_v55  ;;  %5653 = vadd.xlane.f32.xlu2 %v5652_v15 }
 0xe7b   : > { %v5633_v50 = vpop.xlane.xlu2 %5632 }
 0xe7c   : > { %v5637_v59 = vsub.f32 %v10852_v62, %v5633_v50 }
 0xe7d   : > { %v5993_v22 = vpop.f32.mrf.mxu2 }
 0xe7e   : > { %v5644_v6 = vmul.f32 1.442695, %v5637_v59  ;;  %v10939_v43 = vmul.f32 0.25, %v5993_v22 }
 0xe80   : > { %8245 = vpow2.f32 %v5644_v6  ;;  %v6008_v35 = vsel %vm1230_vm1, %v10939_v43, -inf }
 0xe83   : > { %v5750_v42 = vpop.xlane.xlu2 %5749 }
 0xe84   : > { %v5756_v27 = vsub.f32 %v10856_v40, %v5750_v42 }
 0xe85   : > { %v5744_v14 = vpop.xlane.xlu1 %5743  ;;  %v5995_v30 = vpop.f32.mrf.mxu2 }
 0xe86   : > { %v10907_v60 = vpop.eup %8245  ;;  %v5754_v45 = vsub.f32 %v10858_v51, %v5744_v14  ;;  %v10910_v7 = vmul.f32 0.25, %v5995_v30  ;;  %v5762_v9 = vmul.f32 1.442695, %v5756_v27 }
 0xe87   : > { %v5655_v19 = vsel %vm1230_vm1, %v10907_v60, 0.0 }
 0xe88   : > { %v5758_v44 = vmul.f32 1.442695, %v5754_v45  ;;  %5656 = vadd.xlane.f32.xlu0 %v5655_v19  ;;  %v6011_v62 = vsel %vm1230_vm1, %v10910_v7, -inf }
 0xe89   : > { %6012 = vmax.xlane.f32.xlu1 %v6011_v62 }
 0xe8a   : > { %8247 = vpow2.f32 %v5758_v44 }
 0xe8b   : > { %8249 = vpow2.f32 %v5760_v4 }
 0xe8d   : > { %v5753_v26 = vpop.xlane.xlu1 %5752 }
 0xe8e   : > { %v5757_v63 = vsub.f32 %v10864_v36, %v5753_v26 }
 0xe90   : > { %v10918_v51 = vpop.eup %8247  ;;  %v5764_v48 = vmul.f32 1.442695, %v5757_v63 }
 0xe91   : > { %v5766_v32 = vsel %vm1230_vm1, %v10918_v51, 0.0  ;;  %v10923_v13 = vpop.eup %8249 }
 0xe92   : > { %8251 = vpow2.f32 %v5764_v48  ;;  %5767 = vadd.xlane.f32.xlu2 %v5766_v32  ;;  %v5769_v36 = vsel %vm1230_vm1, %v10923_v13, 0.0 }
 0xe93   : > { %8253 = vpow2.f32 %v5762_v9 }
 0xe98   : > { %v10925_v10 = vpop.eup %8251 }
 0xe99   : > { %v5775_v11 = vsel %vm1230_vm1, %v10925_v10, 0.0  ;;  %v10933_v40 = vpop.eup %8253 }
 0xe9a   : > { %5770 = vadd.xlane.f32.xlu2 %v5769_v36  ;;  %5776 = vadd.xlane.f32.xlu1 %v5775_v11  ;;  %v5772_v52 = vsel %vm1230_vm1, %v10933_v40, 0.0 }
 0xe9c   : > { %5788 = vrot.lane.b32.xlu0 %v10769_v56, %s8385_s19 }
 0xea2   : > { %5773 = vadd.xlane.f32.xlu2 %v5772_v52 }
 0xeba   : > { %5928 = vrot.lane.b32.xlu2 %v10802_v0, %s8384_s18  ;;  %v5648_v22 = vpop.xlane.xlu0 %5647 }
 0xec4   : > { %v5884_v5 = vpop.xlane.xlu2 %5883 }
 0xec5   : > { %v5894_v17 = vsub.f32 %v10872_v31, %v5884_v5 }
 0xec6   : > { %6009 = vmax.xlane.f32.xlu0 %v6008_v35 }
 0xec7   : > { %v5898_v3 = vmul.f32 1.442695, %v5894_v17 }
 0xec9   : > { %8255 = vpow2.f32 %v5898_v3 }
 0xecc   : > { %v5887_v56 = vpop.xlane.xlu2 %5886 }
 0xecd   : > { %v5895_v23 = vsub.f32 %v10876_v18, %v5887_v56 }
 0xecf   : > { %v10945_v33 = vpop.eup %8255  ;;  %v5900_v2 = vmul.f32 1.442695, %v5895_v23 }
 0xed0   : > { %v5906_v38 = vsel %vm1230_vm1, %v10945_v33, 0.0 }
 0xed1   : > { %8257 = vpow2.f32 %v5900_v2  ;;  %5907 = vadd.xlane.f32.xlu1 %v5906_v38 }
 0xed4   : > { %v5890_v46 = vpop.xlane.xlu1 %5889 }
 0xed5   : > { %v5896_v31 = vsub.f32 %v10880_v41, %v5890_v46 }
 0xed7   : > { %v10950_v1 = vpop.eup %8257  ;;  %v5902_v58 = vmul.f32 1.442695, %v5896_v31 }
 0xed8   : > { %v5909_v55 = vsel %vm1230_vm1, %v10950_v1, 0.0 }
 0xed9   : > { %8259 = vpow2.f32 %v5902_v58  ;;  %5910 = vadd.xlane.f32.xlu1 %v5909_v55 }
 0xedc   : > { %v5893_v18 = vpop.xlane.xlu2 %5892 }
 0xedd   : > { %v5897_v15 = vsub.f32 %v10885_v16, %v5893_v18 }
 0xedf   : > { %v10955_v50 = vpop.eup %8259  ;;  %v5904_v59 = vmul.f32 1.442695, %v5897_v15 }
 0xee0   : > { %v5912_v6 = vsel %vm1230_vm1, %v10955_v50, 0.0 }
 0xee1   : > { %8261 = vpow2.f32 %v5904_v59  ;;  %5913 = vadd.xlane.f32.xlu0 %v5912_v6 }
 0xee2   : > { %8263 = vrcp.f32 %v5648_v22 }
 0xee4   : > { %v5651_v41 = vpop.xlane.xlu2 %5650  ;;  %v6004_v34 = vpop.xlane.xlu1 %6003 }
 0xee5   : > { %8265 = vrcp.f32 %v5651_v41  ;;  %v6014_v11 = vsub.f32 %v10892_v61, %v6004_v34 }
 0xee7   : > { %v10959_v14 = vpop.eup %8261  ;;  %v6018_v5 = vmul.f32 1.442695, %v6014_v11 }
 0xee8   : > { %v5915_v30 = vsel %vm1230_vm1, %v10959_v14, 0.0  ;;  %v8264_v45 = vpop.eup %8263 }
 0xee9   : > { %5916 = vadd.xlane.f32.xlu0 %v5915_v30  ;;  %v5662_v19 = vmul.f32 %v8264_v45, %v10868_v24 }
 0xeeb   : > { %v8266_v16 = vpop.eup %8265 }
 0xeec   : > { %v5663_v25 = vmul.f32 %v8266_v16, %v10890_v21  ;;  %v6007_v44 = vpop.xlane.xlu1 %6006  ;;  %v5654_v63 = vpop.xlane.xlu2 %5653 }
 0xeed   : > { %v6015_v62 = vsub.f32 %v10900_v8, %v6007_v44 }
 0xeee   : > { %v5666_v4 = vpack.c.bf16 %v5663_v25, %v5662_v19 }
 0xeef   : > { %v6020_v42 = vmul.f32 1.442695, %v6015_v62 }
 0xef0   : > { %7784 = vmatmul.msk.bf16.vlgmr.msra.gmra.mxu3 %vm1230_vm1, %v5666_v4 }
 0xef1   : > { %8267 = vpow2.f32 %v6020_v42 }
 0xef2   : > { %5930 = vrot.lane.b32.xlu1 %v10811_v57, %s8384_s18  ;;  %8269 = vrcp.f32 %v5654_v63 }
 0xef7   : > { %v10969_v26 = vpop.eup %8267 }
 0xef8   : > { %v6029_v27 = vsel %vm1230_vm1, %v10969_v26, 0.0  ;;  %v8270_v21 = vpop.eup %8269 }
 0xef9   : > { %6030 = vadd.xlane.f32.xlu2 %v6029_v27  ;;  %v5664_v48 = vmul.f32 %v8270_v21, %v10898_v49 }
 0xefb   : > { %v5657_v24 = vpop.xlane.xlu0 %5656 }
 0xefc   : > { %8271 = vrcp.f32 %v5657_v24  ;;  %v6013_v17 = vpop.xlane.xlu1 %6012 }
 0xefd   : > { %6050 = vrot.lane.b32.xlu0 %v10811_v57, %s8385_s19  ;;  %v6017_v49 = vsub.f32 %v10910_v7, %v6013_v17 }
 0xeff   : > { %v6024_v3 = vmul.f32 1.442695, %v6017_v49 }
 0xf02   : > { %v8272_v8 = vpop.eup %8271 }
 0xf03   : > { %v5665_v32 = vmul.f32 %v8272_v8, %v10907_v60 }
 0xf05   : > { %v5768_v9 = vpop.xlane.xlu2 %5767  ;;  %6048 = vrot.lane.b32.xlu0 %v10802_v0, %s8385_s19  ;;  %v5667_v36 = vpack.c.bf16 %v5665_v32, %v5664_v48 }
 0xf06   : > { %8273 = vrcp.f32 %v5768_v9 }
 0xf07   : > { %7785 = vmatmul.msk.bf16.gmra.mxu3 %vm1230_vm1, %v5667_v36 }
 0xf0c   : > { %v8274_v35 = vpop.eup %8273 }
 0xf0d   : > { %v5771_v52 = vpop.xlane.xlu2 %5770  ;;  %v5782_v0 = vmul.f32 %v8274_v35, %v10918_v51  ;;  %v5777_v38 = vpop.xlane.xlu1 %5776 }
 0xf0e   : > { %8275 = vrcp.f32 %v5771_v52  ;;  %v5789_v57 = vpop.permute.xlu0 %5788 }
 0xf0f   : > { %5807 = vmatpush.bf16.msrb.mxu3 %v5789_v57  ;;  %8277 = vpow2.f32 %v6018_v5 }
 0xf10   : > { %8279 = vpow2.f32 %v6024_v3 }
 0xf14   : > { %v8276_v60 = vpop.eup %8275 }
 0xf15   : > { %v5783_v56 = vmul.f32 %v8276_v60, %v10923_v13  ;;  %v5774_v2 = vpop.xlane.xlu2 %5773  ;;  %v10984_v61 = vpop.eup %8277 }
 0xf16   : > { %8281 = vrcp.f32 %v5774_v2  ;;  %v6026_v7 = vsel %vm1230_vm1, %v10984_v61, 0.0  ;;  %v10989_v46 = vpop.eup %8279 }
 0xf17   : > { %v5786_v23 = vpack.c.bf16 %v5783_v56, %v5782_v0  ;;  %8283 = vrcp.f32 %v5777_v38  ;;  %v6035_v58 = vsel %vm1230_vm1, %v10989_v46, 0.0 }
 0xf19   : > { %7788 = vmatmul.msk.bf16.vlgmr.msrb.gmra.mxu3 %vm1230_vm1, %v5786_v23 }
 0xf1c   : > { %6027 = vadd.xlane.f32.xlu1 %v6026_v7  ;;  %v8282_v31 = vpop.eup %8281  ;;  %v8017_v7 = vld [vmem:[%s11346_s5 + $0x18] sm:$0xff] }
 0xf1d   : > { %v8284_v51 = vpop.eup %8283  ;;  %v5784_v13 = vmul.f32 %v8282_v31, %v10933_v40  ;;  %v5929_v44 = vpop.permute.xlu2 %5928  ;;  %6140 = vmatpush.bf16.msrb.mxu2 %v8017_v7  ;;  %v8016_v31 = vld [vmem:[%s11346_s5 + $0x10] sm:$0xff] }
 0xf1e   : > { %v5785_v55 = vmul.f32 %v8284_v51, %v10925_v10 }
 0xf20   : > { %v5787_v18 = vpack.c.bf16 %v5785_v55, %v5784_v13 }
 0xf21   : > { %6141 = vmatpush.bf16.msrb.mxu2 %v8016_v31 }
 0xf24   : > { %6036 = vadd.xlane.f32.xlu1 %v6035_v58 }
 0xf29   : > { %7789 = vmatmul.msk.bf16.gmra.mxu3 %vm1230_vm1, %v5787_v18 }
 0xf39   : > { %v6010_v15 = vpop.xlane.xlu0 %6009 }
 0xf3a   : > { %v6016_v59 = vsub.f32 %v10939_v43, %v6010_v15 }
 0xf3c   : > { %v6022_v22 = vmul.f32 1.442695, %v6016_v59 }
 0xf3e   : > { %8285 = vpow2.f32 %v6022_v22 }
 0xf44   : > { %v8286_v6 = vpop.eup %8285  ;;  %v5908_v34 = vpop.xlane.xlu1 %5907 }
 0xf45   : > { %v6032_v41 = vsel %vm1230_vm1, %v8286_v6, 0.0 }
 0xf46   : > { %6033 = vadd.xlane.f32.xlu0 %v6032_v41 }
 0xf4c   : > { %v5911_v40 = vpop.xlane.xlu1 %5910 }
 0xf4d   : > { %8287 = vrcp.f32 %v5911_v40 }
 0xf4e   : > { %8289 = vrcp.f32 %v5908_v34 }
 0xf53   : > { %v8288_v45 = vpop.eup %8287 }
 0xf54   : > { %v5914_v30 = vpop.xlane.xlu0 %5913  ;;  %v8290_v10 = vpop.eup %8289  ;;  %v5923_v19 = vmul.f32 %v8288_v45, %v10950_v1 }
 0xf55   : > { %v5922_v43 = vmul.f32 %v8290_v10, %v10945_v33 }
 0xf57   : > { %v5926_v62 = vpack.c.bf16 %v5923_v19, %v5922_v43 }
 0xf5c   : > { %v5917_v25 = vpop.xlane.xlu0 %5916 }
 0xf5d   : > { %8291 = vrcp.f32 %v5917_v25 }
 0xf5e   : > { %8293 = vrcp.f32 %v5914_v30 }
 0xf63   : > { %v8292_v42 = vpop.eup %8291 }
 0xf64   : > { %v5931_v16 = vpop.permute.xlu1 %5930  ;;  %v8294_v63 = vpop.eup %8293  ;;  %v5925_v27 = vmul.f32 %v8292_v42, %v10959_v14 }
 0xf65   : > { %5946 = vmatpush.bf16.msra.mxu3 %v5931_v16  ;;  %v5924_v21 = vmul.f32 %v8294_v63, %v10955_v50 }
 0xf67   : > { %v5927_v8 = vpack.c.bf16 %v5925_v27, %v5924_v21 }
 0xf69   : > { %5947 = vmatpush.bf16.msra.mxu3 %v5929_v44 }
 0xf6c   : > { %7792 = vmatmul.msk.bf16.vlgmr.msra.gmra.mxu3 %vm1230_vm1, %v5926_v62  ;;  %v6031_v32 = vpop.xlane.xlu2 %6030 }
 0xf6d   : > { %8295 = vrcp.f32 %v6031_v32 }
 0xf6f   : > { %v6051_v4 = vpop.permute.xlu0 %6050 }
 0xf70   : > { %6066 = vmatpush.bf16.msrb.mxu3 %v6051_v4 }
 0xf73   : > { %v5689_v1 = vpop.f32.mrf.mxu3  ;;  %v8296_v36 = vpop.eup %8295 }
 0xf74   : > { %v6043_v5 = vmul.f32 %v8296_v36, %v10969_v26 }
 0xf77   : > { %v6049_v24 = vpop.permute.xlu0 %6048 }
 0xf78   : > { %6067 = vmatpush.bf16.msrb.mxu3 %v6049_v24 }
 0xf7b   : > { %v5691_v33 = vpop.f32.mrf.mxu3 }
 0xf7c   : > { %7793 = vmatmul.msk.bf16.gmra.mxu3 %vm1230_vm1, %v5927_v8 }
 0xf8a   : > { %v5694_v48 = vpop.f32.mrf.mxu3 }
 0xf8f   : > { %v6028_v9 = vpop.xlane.xlu1 %6027 }
 0xf90   : > { %8297 = vrcp.f32 %v6028_v9 }
 0xf92   : > { %v5696_v11 = vpop.f32.mrf.mxu3 }
 0xf96   : > { %v8298_v52 = vpop.eup %8297 }
 0xf97   : > { %v6042_v14 = vmul.f32 %v8298_v52, %v10984_v61  ;;  %v6037_v3 = vpop.xlane.xlu1 %6036 }
 0xf98   : > { %8299 = vrcp.f32 %v6037_v3 }
 0xf99   : > { %v6046_v17 = vpack.c.bf16 %v6043_v5, %v6042_v14 }
 0xf9b   : > { %7796 = vmatmul.msk.bf16.vlgmr.msrb.gmra.mxu3 %vm1230_vm1, %v6046_v17 }
 0xf9c   : > { %v5809_v50 = vpop.f32.mrf.mxu3 }
 0xf9e   : > { %v8300_v26 = vpop.eup %8299 }
 0xf9f   : > { %v6045_v2 = vmul.f32 %v8300_v26, %v10989_v46 }
 0xfa4   : > { %v5811_v57 = vpop.f32.mrf.mxu3 }
 0xfa5   : > { %v8070_v49 = vpack.i.bf16 %v5811_v57, %v5809_v50 }
 0xfa7   : > { %8071 = vrot.lane.b32.xlu2 %v8070_v49, %s8386_s20 }
 0xfac   : > { %v5814_v35 = vpop.f32.mrf.mxu3 }
 0xfb4   : > { %v5816_v60 = vpop.f32.mrf.mxu3 }
 0xfb5   : > { %v8075_v0 = vpack.i.bf16 %v5816_v60, %v5814_v35 }
 0xfb7   : > { %8076 = vrot.lane.b32.xlu1 %v8075_v0, %s8386_s20 }
 0xfb9   : > { %v6034_v56 = vpop.xlane.xlu0 %6033 }
 0xfba   : > { %8301 = vrcp.f32 %v6034_v56 }
 0xfc0   : > { %v8302_v23 = vpop.eup %8301 }
 0xfc1   : > { %v6044_v61 = vmul.f32 %v8302_v23, %v8286_v6 }
 0xfc3   : > { %v6047_v38 = vpack.c.bf16 %v6045_v2, %v6044_v61 }
 0xfc5   : > { %7797 = vmatmul.msk.bf16.gmra.mxu3 %vm1230_vm1, %v6047_v38 }
 0xfef   : > { %v5949_v51 = vpop.f32.mrf.mxu3 }
 0xff7   : > { %v5951_v58 = vpop.f32.mrf.mxu3 }
 0xfff   : > { %v5954_v22 = vpop.f32.mrf.mxu3 }
0x1001   : > { %v8072_v13 = vpop.permute.xlu2 %8071 }
0x1002   : > { %v8074_v55 = vunpack.i.h.bf16 %v8072_v13  ;;  %v8073_v18 = vunpack.i.l.bf16 %v8072_v13 }
0x1004   : > { %v5836_v46 = vsel %vm820_vm0, %v5691_v33, %v8074_v55  ;;  %v5835_v15 = vsel %vm820_vm0, %v5689_v1, %v8073_v18  ;;  %v11030_v1 = vld [vmem:[%s11343_s2 + $0xb] ss:$0 sm:$0xff] }
0x1005   : > { %v6099_v59 = vpack.c.bf16 %v5836_v46, %v5835_v15 }
0x1007   : > { %7810 = vmatmul.msk.bf16.vlgmr.msrb.gmra.mxu2 %vm1230_vm1, %v6099_v59  ;;  %v5956_v6 = vpop.f32.mrf.mxu3 }
0x101e   : > { %v6069_v41 = vpop.f32.mrf.mxu3 }
0x1026   : > { %v6071_v34 = vpop.f32.mrf.mxu3 }
0x1027   : > { %v8080_v40 = vpack.i.bf16 %v6071_v34, %v6069_v41 }
0x1029   : > { %v8077_v30 = vpop.permute.xlu1 %8076  ;;  %8081 = vrot.lane.b32.xlu2 %v8080_v40, %s8386_s20 }
0x102a   : > { %v8079_v45 = vunpack.i.h.bf16 %v8077_v30  ;;  %v8078_v16 = vunpack.i.l.bf16 %v8077_v30 }
0x102c   : > { %v5838_v10 = vsel %vm820_vm0, %v5696_v11, %v8079_v45  ;;  %v5837_v19 = vsel %vm820_vm0, %v5694_v48, %v8078_v16 }
0x102d   : > { %v6100_v25 = vpack.c.bf16 %v5838_v10, %v5837_v19 }
0x102f   : > { %7811 = vmatmul.msk.bf16.gmra.mxu2 %vm1230_vm1, %v6100_v25 }
0x1048   : > { %v6074_v44 = vpop.f32.mrf.mxu3 }
0x1050   : > { %v6076_v43 = vpop.f32.mrf.mxu3 }
0x1051   : > { %v8085_v62 = vpack.i.bf16 %v6076_v43, %v6074_v44 }
0x1053   : > { %8086 = vrot.lane.b32.xlu0 %v8085_v62, %s8386_s20 }
0x1083   : > { %v8082_v4 = vpop.permute.xlu2 %8081 }
0x1084   : > { %v8084_v42 = vunpack.i.h.bf16 %v8082_v4  ;;  %v8083_v63 = vunpack.i.l.bf16 %v8082_v4 }
0x1086   : > { %v6096_v27 = vsel %vm820_vm0, %v5951_v58, %v8084_v42  ;;  %v6095_v24 = vsel %vm820_vm0, %v5949_v51, %v8083_v63 }
0x1087   : > { %v6101_v21 = vpack.c.bf16 %v6096_v27, %v6095_v24 }
0x1089   : > { %7812 = vmatmul.msk.bf16.gmra.mxu2 %vm1230_vm1, %v6101_v21 }
0x108a   : > { %v6143_v8 = vpop.f32.mrf.mxu2 }
0x108b   : > { %v6144_v33 = vadd.f32 %v11030_v1, %v6143_v8 }
0x108d   : > { %v11035_v48 = vadd.f32 %v6144_v33, %v10624_v28 }
0x108f   : > { %v6173_v32 = vsel %vm1230_vm1, %v11035_v48, 0.0 }
0x1090   : > { %6174 = vadd.xlane.f32.xlu1 %v6173_v32 }
0x1092   : > { %v6145_v9 = vpop.f32.mrf.mxu2 }
0x1093   : > { %v6146_v36 = vadd.f32 %v11030_v1, %v6145_v9 }
0x1095   : > { %v11041_v11 = vadd.f32 %v6146_v36, %v10631_v29 }
0x1097   : > { %v6176_v52 = vsel %vm1230_vm1, %v11041_v11, 0.0 }
0x1098   : > { %6177 = vadd.xlane.f32.xlu2 %v6176_v52 }
0x10b2   : > { %v6148_v5 = vpop.f32.mrf.mxu2 }
0x10b3   : > { %v6149_v14 = vadd.f32 %v11030_v1, %v6148_v5 }
0x10b5   : > { %v11047_v28 = vadd.f32 %v6149_v14, %v10638_v47 }
0x10b7   : > { %v6179_v17 = vsel %vm1230_vm1, %v11047_v28, 0.0 }
0x10b8   : > { %6180 = vadd.xlane.f32.xlu0 %v6179_v17 }
0x10ba   : > { %v6150_v50 = vpop.f32.mrf.mxu2 }
0x10bb   : > { %v6151_v57 = vadd.f32 %v11030_v1, %v6150_v50 }
0x10bd   : > { %v11053_v29 = vadd.f32 %v6151_v57, %v10645_v12 }
0x10bf   : > { %v6182_v49 = vsel %vm1230_vm1, %v11053_v29, 0.0 }
0x10c0   : > { %6183 = vadd.xlane.f32.xlu1 %v6182_v49 }
0x10c5   : > { %v8087_v35 = vpop.permute.xlu0 %8086 }
0x10c6   : > { %v8089_v60 = vunpack.i.h.bf16 %v8087_v35  ;;  %v8088_v3 = vunpack.i.l.bf16 %v8087_v35 }
0x10c8   : > { %v6098_v47 = vsel %vm820_vm0, %v5956_v6, %v8089_v60  ;;  %v6097_v0 = vsel %vm820_vm0, %v5954_v22, %v8088_v3 }
0x10c9   : > { %v6102_v56 = vpack.c.bf16 %v6098_v47, %v6097_v0  ;;  %v8019_v47 = vld [vmem:[%s11347_s6 + $0x18] sm:$0xff] }
0x10ca   : > { %6408 = vmatpush.bf16.msra.mxu3 %v8019_v47 }
0x10cb   : > { %7813 = vmatmul.msk.bf16.gmra.mxu2 %vm1230_vm1, %v6102_v56  ;;  %v8018_v56 = vld [vmem:[%s11347_s6 + $0x10] sm:$0xff] }
0x10ce   : > { %6409 = vmatpush.bf16.msra.mxu3 %v8018_v56 }
0x1103   : > { %v6175_v26 = vpop.xlane.xlu1 %6174 }
0x1104   : > { %v6197_v2 = vmul.f32 %v6175_v26, %v9388_v39 }
0x1106   : > { %v11066_v38 = vsub.f32 %v11035_v48, %v6197_v2 }
0x1108   : > { %v6213_v55 = vmul.f32 %v11066_v38, %v11066_v38 }
0x110a   : > { %v6221_v46 = vsel %vm1230_vm1, %v6213_v55, 0.0 }
0x110b   : > { %v6178_v31 = vpop.xlane.xlu2 %6177 }
0x110c   : > { %v6153_v23 = vpop.f32.mrf.mxu2  ;;  %v6198_v13 = vmul.f32 %v6178_v31, %v9388_v39 }
0x110d   : > { %v6154_v12 = vadd.f32 %v11030_v1, %v6153_v23 }
0x110f   : > { %v11063_v61 = vadd.f32 %v6154_v12, %v10669_v37  ;;  %v11078_v37 = vsub.f32 %v11041_v11, %v6198_v13  ;;  %v11137_v13 = vld [vmem:[%s11343_s2 + $0xc] ss:$0 sm:$0xff] }
0x1111   : > { %v6185_v7 = vsel %vm1230_vm1, %v11063_v61, 0.0  ;;  %v6214_v59 = vmul.f32 %v11078_v37, %v11078_v37 }
0x1112   : > { %6186 = vadd.xlane.f32.xlu2 %v6185_v7 }
0x1113   : > { %v6224_v22 = vsel %vm1230_vm1, %v6214_v59, 0.0 }
0x1114   : > { %v6155_v51 = vpop.f32.mrf.mxu2 }
0x1115   : > { %v6156_v58 = vadd.f32 %v11030_v1, %v6155_v51 }
0x1117   : > { %v11075_v18 = vadd.f32 %v6156_v58, %v10682_v54 }
0x1119   : > { %v6188_v15 = vsel %vm1230_vm1, %v11075_v18, 0.0 }
0x111a   : > { %6222 = vadd.xlane.f32.xlu2 %v6221_v46  ;;  %6189 = vadd.xlane.f32.xlu1 %v6188_v15  ;;  %v11143_v15 = vld [vmem:[%s11343_s2 + $0xd] ss:$0 sm:$0xff] }
0x1122   : > { %6225 = vadd.xlane.f32.xlu1 %v6224_v22 }
0x112b   : > { %v6181_v6 = vpop.xlane.xlu0 %6180 }
0x112c   : > { %v6199_v54 = vmul.f32 %v6181_v6, %v9388_v39 }
0x112e   : > { %v11088_v41 = vsub.f32 %v11047_v28, %v6199_v54 }
0x1130   : > { %v6215_v34 = vmul.f32 %v11088_v41, %v11088_v41 }
0x1132   : > { %v6227_v40 = vsel %vm1230_vm1, %v6215_v34, 0.0 }
0x1133   : > { %6228 = vadd.xlane.f32.xlu1 %v6227_v40  ;;  %v6184_v30 = vpop.xlane.xlu1 %6183 }
0x1134   : > { %v6200_v16 = vmul.f32 %v6184_v30, %v9388_v39 }
0x1136   : > { %v11099_v25 = vsub.f32 %v11053_v29, %v6200_v16 }
0x1138   : > { %v6216_v4 = vmul.f32 %v11099_v25, %v11099_v25 }
0x113a   : > { %v6230_v63 = vsel %vm1230_vm1, %v6216_v4, 0.0 }
0x114e   : > { %v6158_v45 = vpop.f32.mrf.mxu2 }
0x114f   : > { %v6159_v10 = vadd.f32 %v11030_v1, %v6158_v45 }
0x1151   : > { %v11096_v19 = vadd.f32 %v6159_v10, %v10691_v53 }
0x1153   : > { %v6191_v44 = vsel %vm1230_vm1, %v11096_v19, 0.0 }
0x1154   : > { %6192 = vadd.xlane.f32.xlu2 %v6191_v44 }
0x1156   : > { %v6160_v43 = vpop.f32.mrf.mxu2 }
0x1157   : > { %v6161_v62 = vadd.f32 %v11030_v1, %v6160_v43 }
0x1159   : > { %v11107_v42 = vadd.f32 %v6161_v62, %v10697_v20 }
0x115b   : > { %v6194_v53 = vsel %vm1230_vm1, %v11107_v42, 0.0 }
0x115c   : > { %6231 = vadd.xlane.f32.xlu2 %v6230_v63  ;;  %6195 = vadd.xlane.f32.xlu0 %v6194_v53 }
0x1185   : > { %v6187_v27 = vpop.xlane.xlu2 %6186 }
0x1186   : > { %v6201_v24 = vmul.f32 %v6187_v27, %v9388_v39 }
0x1188   : > { %v11114_v21 = vsub.f32 %v11063_v61, %v6201_v24 }
0x118a   : > { %v6217_v1 = vmul.f32 %v11114_v21, %v11114_v21 }
0x118c   : > { %v6233_v8 = vsel %vm1230_vm1, %v6217_v1, 0.0 }
0x118d   : > { %v6223_v20 = vpop.xlane.xlu2 %6222  ;;  %v6190_v33 = vpop.xlane.xlu1 %6189  ;;  %6234 = vadd.xlane.f32.xlu0 %v6233_v8 }
0x118e   : > { %v6245_v32 = vmul.f32 %v6223_v20, %v9388_v39  ;;  %v6202_v9 = vmul.f32 %v6190_v33, %v9388_v39 }
0x1190   : > { %v6253_v36 = vadd.f32 1e-05, %v6245_v32  ;;  %v11122_v52 = vsub.f32 %v11075_v18, %v6202_v9 }
0x1192   : > { %8303 = vrsqrt.f32 %v6253_v36  ;;  %v6218_v5 = vmul.f32 %v11122_v52, %v11122_v52  ;;  %vm6267_vm8 = vweird.f32 %v6253_v36 }
0x1194   : > { %v6236_v14 = vsel %vm1230_vm1, %v6218_v5, 0.0 }
0x1195   : > { %v6226_v17 = vpop.xlane.xlu1 %6225  ;;  %6237 = vadd.xlane.f32.xlu1 %v6236_v14 }
0x1196   : > { %v6246_v50 = vmul.f32 %v6226_v17, %v9388_v39 }
0x1198   : > { %v8304_v57 = vpop.eup %8303  ;;  %v6254_v49 = vadd.f32 1e-05, %v6246_v50 }
0x1199   : > { %v6262_v35 = vmul.f32 %v8304_v57, %v6253_v36  ;;  %vm6268_vm7 = vweird.f32 %v8304_v57 }
0x119a   : > { %8305 = vrsqrt.f32 %v6254_v49  ;;  %vm6269_vm9 = vmor %vm6267_vm8, %vm6268_vm7  ;;  %vm6277_vm11 = vweird.f32 %v6254_v49 }
0x119b   : > { %v6263_v60 = vmul.f32 %v8304_v57, %v6262_v35 }
0x119d   : > { %v6264_v3 = vmul.f32 0.5, %v6263_v60 }
0x119f   : > { %v6265_v0 = vsub.f32 1.5, %v6264_v3 }
0x11a0   : > { %v8306_v26 = vpop.eup %8305 }
0x11a1   : > { %v6266_v23 = vmul.f32 %v8304_v57, %v6265_v0  ;;  %v6272_v2 = vmul.f32 %v8306_v26, %v6254_v49  ;;  %vm6278_vm10 = vweird.f32 %v8306_v26 }
0x11a2   : > { %vm6279_vm12 = vmor %vm6277_vm11, %vm6278_vm10 }
0x11a3   : > { %v6273_v12 = vmul.f32 %v8306_v26, %v6272_v2  ;;  %v6270_v7 = vsel %vm6269_vm9, %v8304_v57, %v6266_v23 }
0x11a4   : > { %v6341_v58 = vmul.f32 %v6270_v7, %v11066_v38 }
0x11a5   : > { %v6274_v31 = vmul.f32 0.5, %v6273_v12 }
0x11a6   : > { %v6350_v59 = vmul.f32 %v11137_v13, %v6341_v58  ;;  %v6229_v40 = vpop.xlane.xlu1 %6228 }
0x11a7   : > { %v6275_v51 = vsub.f32 1.5, %v6274_v31  ;;  %v6247_v30 = vmul.f32 %v6229_v40, %v9388_v39 }
0x11a8   : > { %v6359_v54 = vadd.f32 %v11143_v15, %v6350_v59 }
0x11a9   : > { %v6276_v55 = vmul.f32 %v8306_v26, %v6275_v51  ;;  %v6255_v45 = vadd.f32 1e-05, %v6247_v30 }
0x11ab   : > { %v6280_v46 = vsel %vm6279_vm12, %v8306_v26, %v6276_v55  ;;  %8307 = vrsqrt.f32 %v6255_v45  ;;  %vm6287_vm14 = vweird.f32 %v6255_v45 }
0x11ac   : > { %v6342_v22 = vmul.f32 %v6280_v46, %v11078_v37 }
0x11ae   : > { %v6351_v6 = vmul.f32 %v11137_v13, %v6342_v22 }
0x11b0   : > { %v6360_v34 = vadd.f32 %v11143_v15, %v6351_v6 }
0x11b1   : > { %v8308_v10 = vpop.eup %8307 }
0x11b2   : > { %v6367_v38 = vpack.c.bf16 %v6360_v34, %v6359_v54  ;;  %v6282_v43 = vmul.f32 %v8308_v10, %v6255_v45  ;;  %vm6288_vm13 = vweird.f32 %v8308_v10 }
0x11b3   : > { %vm6289_vm15 = vmor %vm6287_vm14, %vm6288_vm13 }
0x11b4   : > { %7826 = vmatmul.msk.bf16.vlgmr.msra.gmra.mxu3 %vm1230_vm1, %v6367_v38  ;;  %v6283_v63 = vmul.f32 %v8308_v10, %v6282_v43 }
0x11b6   : > { %v6284_v33 = vmul.f32 0.5, %v6283_v63 }
0x11b8   : > { %v6285_v36 = vsub.f32 1.5, %v6284_v33  ;;  %v8023_v33 = vld [vmem:[%s11348_s7 + $0x38] sm:$0xff] }
0x11b9   : > { %6558 = vmatpush.bf16.msra.mxu2 %v8023_v33 }
0x11ba   : > { %v6286_v14 = vmul.f32 %v8308_v10, %v6285_v36  ;;  %v8022_v36 = vld [vmem:[%s11348_s7 + $0x30] sm:$0xff] }
0x11bc   : > { %v6290_v57 = vsel %vm6289_vm15, %v8308_v10, %v6286_v14 }
0x11bd   : > { %v6343_v60 = vmul.f32 %v6290_v57, %v11088_v41  ;;  %6559 = vmatpush.bf16.msra.mxu2 %v8022_v36 }
0x11bf   : > { %v6352_v56 = vmul.f32 %v11137_v13, %v6343_v60 }
0x11c1   : > { %v6361_v23 = vadd.f32 %v11143_v15, %v6352_v56 }
0x11c7   : > { %v6193_v16 = vpop.xlane.xlu2 %6192 }
0x11c8   : > { %v6203_v44 = vmul.f32 %v6193_v16, %v9388_v39 }
0x11ca   : > { %v11154_v37 = vsub.f32 %v11096_v19, %v6203_v44 }
0x11cc   : > { %v6219_v62 = vmul.f32 %v11154_v37, %v11154_v37 }
0x11ce   : > { %v6239_v4 = vsel %vm1230_vm1, %v6219_v62, 0.0 }
0x11cf   : > { %6240 = vadd.xlane.f32.xlu2 %v6239_v4  ;;  %v6232_v53 = vpop.xlane.xlu2 %6231  ;;  %v6196_v27 = vpop.xlane.xlu0 %6195 }
0x11d0   : > { %v6248_v24 = vmul.f32 %v6232_v53, %v9388_v39  ;;  %v6204_v1 = vmul.f32 %v6196_v27, %v9388_v39 }
0x11d2   : > { %v6256_v8 = vadd.f32 1e-05, %v6248_v24  ;;  %v11162_v20 = vsub.f32 %v11107_v42, %v6204_v1 }
0x11d4   : > { %8309 = vrsqrt.f32 %v6256_v8  ;;  %v6220_v32 = vmul.f32 %v11162_v20, %v11162_v20  ;;  %vm6297_vm4 = vweird.f32 %v6256_v8 }
0x11d6   : > { %v6242_v9 = vsel %vm1230_vm1, %v6220_v32, 0.0 }
0x11d7   : > { %6243 = vadd.xlane.f32.xlu0 %v6242_v9 }
0x11da   : > { %v8310_v5 = vpop.eup %8309 }
0x11db   : > { %v6292_v17 = vmul.f32 %v8310_v5, %v6256_v8  ;;  %vm6298_vm3 = vweird.f32 %v8310_v5 }
0x11dc   : > { %vm6299_vm5 = vmor %vm6297_vm4, %vm6298_vm3 }
0x11dd   : > { %v6293_v50 = vmul.f32 %v8310_v5, %v6292_v17 }
0x11df   : > { %v6294_v49 = vmul.f32 0.5, %v6293_v50  ;;  %v8021_v50 = vld [vmem:[%s11348_s7 + $0x28] sm:$0xff] }
0x11e0   : > { %6560 = vmatpush.bf16.msra.mxu2 %v8021_v50 }
0x11e1   : > { %v6295_v35 = vsub.f32 1.5, %v6294_v49 }
0x11e3   : > { %v6296_v3 = vmul.f32 %v8310_v5, %v6295_v35 }
0x11e5   : > { %v6300_v47 = vsel %vm6299_vm5, %v8310_v5, %v6296_v3 }
0x11e6   : > { %v6344_v0 = vmul.f32 %v6300_v47, %v11099_v25  ;;  %v8020_v47 = vld [vmem:[%s11348_s7 + $0x20] sm:$0xff] }
0x11e7   : > { %6561 = vmatpush.bf16.msra.mxu2 %v8020_v47 }
0x11e8   : > { %v6353_v26 = vmul.f32 %v11137_v13, %v6344_v0 }
0x11ea   : > { %v6362_v2 = vadd.f32 %v11143_v15, %v6353_v26 }
0x11ec   : > { %v6368_v12 = vpack.c.bf16 %v6362_v2, %v6361_v23 }
0x11ee   : > { %7827 = vmatmul.msk.bf16.gmra.mxu3 %vm1230_vm1, %v6368_v12 }
0x1200   : > { %v6235_v7 = vpop.xlane.xlu0 %6234 }
0x1201   : > { %v6249_v41 = vmul.f32 %v6235_v7, %v9388_v39 }
0x1203   : > { %v6257_v31 = vadd.f32 1e-05, %v6249_v41 }
0x1205   : > { %8311 = vrsqrt.f32 %v6257_v31  ;;  %vm6307_vm8 = vweird.f32 %v6257_v31 }
0x1208   : > { %v6238_v51 = vpop.xlane.xlu1 %6237 }
0x1209   : > { %v6250_v58 = vmul.f32 %v6238_v51, %v9388_v39 }
0x120b   : > { %v8312_v25 = vpop.eup %8311  ;;  %v6258_v55 = vadd.f32 1e-05, %v6250_v58 }
0x120c   : > { %v6302_v46 = vmul.f32 %v8312_v25, %v6257_v31  ;;  %vm6308_vm7 = vweird.f32 %v8312_v25 }
0x120d   : > { %8313 = vrsqrt.f32 %v6258_v55  ;;  %vm6309_vm9 = vmor %vm6307_vm8, %vm6308_vm7  ;;  %vm6317_vm11 = vweird.f32 %v6258_v55 }
0x120e   : > { %v6303_v59 = vmul.f32 %v8312_v25, %v6302_v46 }
0x1210   : > { %v6304_v22 = vmul.f32 0.5, %v6303_v59 }
0x1212   : > { %v6305_v6 = vsub.f32 1.5, %v6304_v22 }
0x1213   : > { %v8314_v54 = vpop.eup %8313 }
0x1214   : > { %v6306_v34 = vmul.f32 %v8312_v25, %v6305_v6  ;;  %v6312_v38 = vmul.f32 %v8314_v54, %v6258_v55  ;;  %vm6318_vm10 = vweird.f32 %v8314_v54 }
0x1215   : > { %vm6319_vm12 = vmor %vm6317_vm11, %vm6318_vm10 }
0x1216   : > { %v6313_v40 = vmul.f32 %v8314_v54, %v6312_v38  ;;  %v6310_v30 = vsel %vm6309_vm9, %v8312_v25, %v6306_v34 }
0x1217   : > { %v6345_v10 = vmul.f32 %v6310_v30, %v11114_v21  ;;  %v11186_v21 = vld [vmem:[%s11344_s3 + $0x2] ss:$0 sm:$0xff] }
0x1218   : > { %v6314_v45 = vmul.f32 0.5, %v6313_v40 }
0x1219   : > { %v6354_v4 = vmul.f32 %v11137_v13, %v6345_v10 }
0x121a   : > { %v6315_v16 = vsub.f32 1.5, %v6314_v45 }
0x121b   : > { %v6363_v53 = vadd.f32 %v11143_v15, %v6354_v4 }
0x121c   : > { %v6316_v44 = vmul.f32 %v8314_v54, %v6315_v16 }
0x121e   : > { %v6320_v43 = vsel %vm6319_vm12, %v8314_v54, %v6316_v44 }
0x121f   : > { %v6346_v62 = vmul.f32 %v6320_v43, %v11122_v52 }
0x1221   : > { %v6355_v63 = vmul.f32 %v11137_v13, %v6346_v62 }
0x1223   : > { %v6364_v27 = vadd.f32 %v11143_v15, %v6355_v63 }
0x1225   : > { %v6369_v24 = vpack.c.bf16 %v6364_v27, %v6363_v53 }
0x1227   : > { %7828 = vmatmul.msk.bf16.gmra.mxu3 %vm1230_vm1, %v6369_v24 }
0x1237   : > { %v6411_v1 = vpop.f32.mrf.mxu3 }
0x1238   : > { %v6412_v8 = vadd.f32 %v11186_v21, %v6411_v1 }
0x123a   : > { %v6439_v52 = vmul.f32 0.044715, %v6412_v8  ;;  %v6431_v59 = vmul.f32 0.5, %v6412_v8 }
0x123c   : > { %v6447_v32 = vmul.f32 %v6439_v52, %v6412_v8 }
0x123e   : > { %v6455_v9 = vmul.f32 %v6447_v32, %v6412_v8 }
0x123f   : > { %v6413_v5 = vpop.f32.mrf.mxu3 }
0x1240   : > { %v6463_v14 = vadd.f32 %v6455_v9, %v6412_v8  ;;  %v6414_v17 = vadd.f32 %v11186_v21, %v6413_v5 }
0x1242   : > { %v6440_v57 = vmul.f32 0.044715, %v6414_v17  ;;  %v6241_v49 = vpop.xlane.xlu2 %6240  ;;  %v6471_v60 = vmul.f32 0.7978846, %v6463_v14  ;;  %v6432_v22 = vmul.f32 0.5, %v6414_v17 }
0x1243   : > { %v6251_v35 = vmul.f32 %v6241_v49, %v9388_v39 }
0x1244   : > { %v6448_v3 = vmul.f32 %v6440_v57, %v6414_v17 }
0x1245   : > { %v6259_v0 = vadd.f32 1e-05, %v6251_v35 }
0x1246   : > { %v6456_v56 = vmul.f32 %v6448_v3, %v6414_v17 }
0x1247   : > { %8315 = vrsqrt.f32 %v6259_v0  ;;  %vm6327_vm14 = vweird.f32 %v6259_v0 }
0x1248   : > { %8317 = vtanh.f32 %v6471_v60  ;;  %v6464_v26 = vadd.f32 %v6456_v56, %v6414_v17 }
0x124a   : > { %v6472_v23 = vmul.f32 0.7978846, %v6464_v26  ;;  %v6244_v2 = vpop.xlane.xlu0 %6243 }
0x124b   : > { %v6252_v12 = vmul.f32 %v6244_v2, %v9388_v39 }
0x124c   : > { %8319 = vtanh.f32 %v6472_v23 }
0x124d   : > { %v8316_v7 = vpop.eup %8315  ;;  %v6260_v41 = vadd.f32 1e-05, %v6252_v12 }
0x124e   : > { %v8318_v31 = vpop.eup %8317  ;;  %v6322_v51 = vmul.f32 %v8316_v7, %v6259_v0  ;;  %vm6328_vm13 = vweird.f32 %v8316_v7 }
0x124f   : > { %8321 = vrsqrt.f32 %v6260_v41  ;;  %v6487_v25 = vadd.f32 1.0, %v8318_v31  ;;  %vm6329_vm15 = vmor %vm6327_vm14, %vm6328_vm13  ;;  %vm6337_vm4 = vweird.f32 %v6260_v41 }
0x1250   : > { %v6323_v58 = vmul.f32 %v8316_v7, %v6322_v51 }
0x1251   : > { %v6495_v38 = vmul.f32 %v6487_v25, %v6431_v59 }
0x1252   : > { %v8320_v55 = vpop.eup %8319  ;;  %v6324_v46 = vmul.f32 0.5, %v6323_v58 }
0x1253   : > { %v6488_v6 = vadd.f32 1.0, %v8320_v55 }
0x1254   : > { %v6325_v54 = vsub.f32 1.5, %v6324_v46 }
0x1255   : > { %v8322_v34 = vpop.eup %8321  ;;  %v6496_v40 = vmul.f32 %v6488_v6, %v6432_v22 }
0x1256   : > { %v6326_v30 = vmul.f32 %v8316_v7, %v6325_v54  ;;  %v6332_v45 = vmul.f32 %v8322_v34, %v6260_v41  ;;  %vm6338_vm3 = vweird.f32 %v8322_v34 }
0x1257   : > { %v6503_v16 = vpack.c.bf16 %v6496_v40, %v6495_v38  ;;  %vm6339_vm5 = vmor %vm6337_vm4, %vm6338_vm3 }
0x1258   : > { %v6333_v10 = vmul.f32 %v8322_v34, %v6332_v45  ;;  %v6330_v44 = vsel %vm6329_vm15, %v8316_v7, %v6326_v30 }
0x1259   : > { %7854 = vmatmul.msk.bf16.vlgmr.msra.gmra.mxu2 %vm5271_vm6, %v6503_v16  ;;  %v6347_v4 = vmul.f32 %v6330_v44, %v11154_v37 }
0x125a   : > { %v6334_v43 = vmul.f32 0.5, %v6333_v10 }
0x125b   : > { %v6356_v24 = vmul.f32 %v11137_v13, %v6347_v4  ;;  %v11220_v4 = vld [vmem:[%s11349_s8 + $0x8] sm:$0xff] }
0x125c   : > { %v6335_v62 = vsub.f32 1.5, %v6334_v43  ;;  %6629 = vmatpush.bf16.msrb.mxu3 %v11220_v4 }
0x125d   : > { %v6365_v8 = vadd.f32 %v11143_v15, %v6356_v24  ;;  %v8104_v24 = vld [vmem:[%s11343_s2 + $0xe] ss:$0 sm:$0xff] }
0x125e   : > { %v6336_v63 = vmul.f32 %v8322_v34, %v6335_v62 }
0x1260   : > { %v6340_v53 = vsel %vm6339_vm5, %v8322_v34, %v6336_v63 }
0x1261   : > { %v6348_v27 = vmul.f32 %v6340_v53, %v11162_v20  ;;  %v11226_v53 = vld [vmem:[%s11349_s8] sm:$0xff] }
0x1262   : > { %6630 = vmatpush.bf16.msrb.mxu3 %v11226_v53 }
0x1263   : > { %v6357_v1 = vmul.f32 %v11137_v13, %v6348_v27 }
0x1265   : > { %v6366_v52 = vadd.f32 %v11143_v15, %v6357_v1 }
0x1267   : > { %v6370_v33 = vpack.c.bf16 %v6366_v52, %v6365_v8 }
0x1269   : > { %7829 = vmatmul.msk.bf16.gmra.mxu3 %vm1230_vm1, %v6370_v33 }
0x1271   : > { %v6416_v32 = vpop.f32.mrf.mxu3 }
0x1272   : > { %v6417_v37 = vadd.f32 %v11186_v21, %v6416_v32 }
0x1274   : > { %v6441_v9 = vmul.f32 0.044715, %v6417_v37  ;;  %v6433_v0 = vmul.f32 0.5, %v6417_v37 }
0x1276   : > { %v6449_v36 = vmul.f32 %v6441_v9, %v6417_v37 }
0x1278   : > { %v6457_v5 = vmul.f32 %v6449_v36, %v6417_v37 }
0x1279   : > { %v6418_v14 = vpop.f32.mrf.mxu3 }
0x127a   : > { %v6465_v17 = vadd.f32 %v6457_v5, %v6417_v37  ;;  %v6419_v20 = vadd.f32 %v11186_v21, %v6418_v14 }
0x127c   : > { %v6442_v50 = vmul.f32 0.044715, %v6419_v20  ;;  %v6473_v57 = vmul.f32 0.7978846, %v6465_v17  ;;  %v6434_v56 = vmul.f32 0.5, %v6419_v20 }
0x127e   : > { %v6450_v13 = vmul.f32 %v6442_v50, %v6419_v20  ;;  %8323 = vtanh.f32 %v6473_v57 }
0x1280   : > { %v6458_v49 = vmul.f32 %v6450_v13, %v6419_v20 }
0x1282   : > { %v6466_v35 = vadd.f32 %v6458_v49, %v6419_v20 }
0x1284   : > { %v6474_v15 = vmul.f32 0.7978846, %v6466_v35  ;;  %v8324_v60 = vpop.eup %8323 }
0x1285   : > { %v6489_v3 = vadd.f32 1.0, %v8324_v60 }
0x1286   : > { %8325 = vtanh.f32 %v6474_v15 }
0x1287   : > { %v6497_v23 = vmul.f32 %v6489_v3, %v6433_v0 }
0x128c   : > { %v8326_v47 = vpop.eup %8325 }
0x128d   : > { %v6490_v26 = vadd.f32 1.0, %v8326_v47 }
0x128f   : > { %v6498_v2 = vmul.f32 %v6490_v26, %v6434_v56 }
0x1291   : > { %v6504_v12 = vpack.c.bf16 %v6498_v2, %v6497_v23 }
0x1293   : > { %7855 = vmatmul.msk.bf16.gmra.mxu2 %vm5271_vm6, %v6504_v12 }
0x12aa   : > { %v6421_v7 = vpop.f32.mrf.mxu3 }
0x12ab   : > { %v6422_v41 = vadd.f32 %v11186_v21, %v6421_v7 }
0x12ad   : > { %v6443_v31 = vmul.f32 0.044715, %v6422_v41  ;;  %v6435_v16 = vmul.f32 0.5, %v6422_v41 }
0x12af   : > { %v6451_v51 = vmul.f32 %v6443_v31, %v6422_v41 }
0x12b1   : > { %v6459_v58 = vmul.f32 %v6451_v51, %v6422_v41 }
0x12b2   : > { %v6423_v25 = vpop.f32.mrf.mxu3 }
0x12b3   : > { %v6467_v55 = vadd.f32 %v6459_v58, %v6422_v41  ;;  %v6424_v46 = vadd.f32 %v11186_v21, %v6423_v25 }
0x12b5   : > { %v6444_v59 = vmul.f32 0.044715, %v6424_v46  ;;  %v6475_v22 = vmul.f32 0.7978846, %v6467_v55  ;;  %v6436_v10 = vmul.f32 0.5, %v6424_v46 }
0x12b7   : > { %v6452_v6 = vmul.f32 %v6444_v59, %v6424_v46  ;;  %8327 = vtanh.f32 %v6475_v22 }
0x12b9   : > { %v6460_v54 = vmul.f32 %v6452_v6, %v6424_v46 }
0x12bb   : > { %v6468_v34 = vadd.f32 %v6460_v54, %v6424_v46 }
0x12bd   : > { %v6476_v38 = vmul.f32 0.7978846, %v6468_v34  ;;  %v8328_v40 = vpop.eup %8327 }
0x12be   : > { %v6491_v30 = vadd.f32 1.0, %v8328_v40 }
0x12bf   : > { %8329 = vtanh.f32 %v6476_v38 }
0x12c0   : > { %v6499_v43 = vmul.f32 %v6491_v30, %v6435_v16 }
0x12c5   : > { %v8330_v45 = vpop.eup %8329 }
0x12c6   : > { %v6492_v44 = vadd.f32 1.0, %v8330_v45 }
0x12c8   : > { %v6500_v62 = vmul.f32 %v6492_v44, %v6436_v10 }
0x12ca   : > { %v6505_v63 = vpack.c.bf16 %v6500_v62, %v6499_v43 }
0x12cc   : > { %7856 = vmatmul.msk.bf16.gmra.mxu2 %vm5271_vm6, %v6505_v63 }
0x12dc   : > { %v6563_v27 = vpop.f32.mrf.mxu2 }
0x12dd   : > { %v6564_v1 = vadd.f32 %v8104_v24, %v6563_v27 }
0x12df   : > { %v6583_v33 = vadd.f32 %v6564_v1, %v11035_v48 }
0x12e4   : > { %v6565_v8 = vpop.f32.mrf.mxu2 }
0x12e5   : > { %v6566_v52 = vadd.f32 %v8104_v24, %v6565_v8 }
0x12e7   : > { %v6584_v32 = vadd.f32 %v6566_v52, %v11041_v11 }
0x12e9   : > { %v6591_v37 = vpack.c.bf16 %v6584_v32, %v6583_v33 }
0x12eb   : > { %7866 = vmatmul.msk.bf16.vlgmr.msrb.gmra.mxu3 %vm1230_vm1, %v6591_v37 }
0x12ec   : > { %v6426_v9 = vpop.f32.mrf.mxu3 }
0x12ed   : > { %v6427_v36 = vadd.f32 %v11186_v21, %v6426_v9 }
0x12ef   : > { %v6445_v5 = vmul.f32 0.044715, %v6427_v36  ;;  %v6437_v0 = vmul.f32 0.5, %v6427_v36 }
0x12f1   : > { %v6453_v14 = vmul.f32 %v6445_v5, %v6427_v36 }
0x12f3   : > { %v6461_v17 = vmul.f32 %v6453_v14, %v6427_v36 }
0x12f4   : > { %v6428_v20 = vpop.f32.mrf.mxu3 }
0x12f5   : > { %v6469_v50 = vadd.f32 %v6461_v17, %v6427_v36  ;;  %v6429_v57 = vadd.f32 %v11186_v21, %v6428_v20 }
0x12f7   : > { %v6446_v13 = vmul.f32 0.044715, %v6429_v57  ;;  %v6477_v49 = vmul.f32 0.7978846, %v6469_v50  ;;  %v6438_v56 = vmul.f32 0.5, %v6429_v57 }
0x12f9   : > { %v6454_v35 = vmul.f32 %v6446_v13, %v6429_v57  ;;  %8331 = vtanh.f32 %v6477_v49 }
0x12fb   : > { %v6462_v15 = vmul.f32 %v6454_v35, %v6429_v57 }
0x12fd   : > { %v6470_v48 = vadd.f32 %v6462_v15, %v6429_v57 }
0x12ff   : > { %v6478_v11 = vmul.f32 0.7978846, %v6470_v48  ;;  %v8332_v60 = vpop.eup %8331 }
0x1300   : > { %v6493_v3 = vadd.f32 1.0, %v8332_v60 }
0x1301   : > { %8333 = vtanh.f32 %v6478_v11 }
0x1302   : > { %v6501_v23 = vmul.f32 %v6493_v3, %v6437_v0 }
0x1307   : > { %v8334_v47 = vpop.eup %8333 }
0x1308   : > { %v6494_v26 = vadd.f32 1.0, %v8334_v47 }
0x130a   : > { %v6502_v2 = vmul.f32 %v6494_v26, %v6438_v56 }
0x130c   : > { %v6506_v12 = vpack.c.bf16 %v6502_v2, %v6501_v23 }
0x130e   : > { %7857 = vmatmul.msk.bf16.gmra.mxu2 %vm5271_vm6, %v6506_v12 }
0x1316   : > { %v6568_v21 = vpop.f32.mrf.mxu2 }
0x1317   : > { %v6569_v7 = vadd.f32 %v8104_v24, %v6568_v21 }
0x1319   : > { %v6585_v51 = vadd.f32 %v6569_v7, %v11047_v28 }
0x131e   : > { %v6570_v41 = vpop.f32.mrf.mxu2 }
0x131f   : > { %v6571_v31 = vadd.f32 %v8104_v24, %v6570_v41 }
0x1321   : > { %v6586_v58 = vadd.f32 %v6571_v31, %v11053_v29 }
0x1323   : > { %v6592_v25 = vpack.c.bf16 %v6586_v58, %v6585_v51 }
0x1325   : > { %7867 = vmatmul.msk.bf16.gmra.mxu3 %vm1230_vm1, %v6592_v25 }
0x134f   : > { %v6573_v55 = vpop.f32.mrf.mxu2 }
0x1350   : > { %v6574_v46 = vadd.f32 %v8104_v24, %v6573_v55 }
0x1352   : > { %v6587_v6 = vadd.f32 %v6574_v46, %v11063_v61 }
0x1357   : > { %v6575_v59 = vpop.f32.mrf.mxu2 }
0x1358   : > { %v6576_v22 = vadd.f32 %v8104_v24, %v6575_v59 }
0x135a   : > { %v6588_v54 = vadd.f32 %v6576_v22, %v11075_v18 }
0x135c   : > { %v6593_v34 = vpack.c.bf16 %v6588_v54, %v6587_v6 }
0x135e   : > { %7868 = vmatmul.msk.bf16.gmra.mxu3 %vm1230_vm1, %v6593_v34 }
0x136e   : > { %v6632_v38 = vpop.f32.mrf.mxu3 }
0x136f   : > { %v6652_v40 = vmul.f32 0.17677669, %v6632_v38  ;;  %v6768_v38 = vsel %vm820_vm0, %v11220_v4, 0 }
0x1370   : > { %6776 = vmatpush.bf16.xpose.msrb.mxu2 %v6768_v38 }
0x1371   : > { %v6660_v28 = vsel %vm820_vm0, %v6652_v40, -inf }
0x1372   : > { %6661 = vmax.xlane.f32.xlu1 %v6660_v28 }
0x1376   : > { %v6634_v29 = vpop.f32.mrf.mxu3 }
0x1377   : > { %v6653_v30 = vmul.f32 0.17677669, %v6634_v29 }
0x1379   : > { %v6663_v45 = vsel %vm820_vm0, %v6653_v30, -inf }
0x137a   : > { %6664 = vmax.xlane.f32.xlu2 %v6663_v45 }
0x1391   : > { %v6578_v16 = vpop.f32.mrf.mxu2 }
0x1392   : > { %v6579_v10 = vadd.f32 %v8104_v24, %v6578_v16 }
0x1394   : > { %v6589_v61 = vadd.f32 %v6579_v10, %v11096_v19 }
0x1399   : > { %v6580_v44 = vpop.f32.mrf.mxu2 }
0x139a   : > { %v6581_v43 = vadd.f32 %v8104_v24, %v6580_v44 }
0x139c   : > { %v6590_v18 = vadd.f32 %v6581_v43, %v11107_v42 }
0x139e   : > { %v6594_v62 = vpack.c.bf16 %v6590_v18, %v6589_v61 }
0x13a0   : > { %7869 = vmatmul.msk.bf16.gmra.mxu3 %vm1230_vm1, %v6594_v62 }
0x13a8   : > { %v6637_v63 = vpop.f32.mrf.mxu3 }
0x13a9   : > { %v6654_v27 = vmul.f32 0.17677669, %v6637_v63 }
0x13ab   : > { %v6666_v1 = vsel %vm820_vm0, %v6654_v27, -inf }
0x13ac   : > { %6667 = vmax.xlane.f32.xlu0 %v6666_v1 }
0x13b0   : > { %v6639_v8 = vpop.f32.mrf.mxu3 }
0x13b1   : > { %v6655_v52 = vmul.f32 0.17677669, %v6639_v8 }
0x13b3   : > { %v6669_v33 = vsel %vm820_vm0, %v6655_v52, -inf }
0x13b4   : > { %6670 = vmax.xlane.f32.xlu1 %v6669_v33 }
0x13e1   : > { %v6642_v32 = vpop.f32.mrf.mxu3 }
0x13e2   : > { %v6656_v37 = vmul.f32 0.17677669, %v6642_v32 }
0x13e4   : > { %v6672_v24 = vsel %vm820_vm0, %v6656_v37, -inf }
0x13e5   : > { %v6662_v19 = vpop.xlane.xlu1 %6661  ;;  %6673 = vmax.xlane.f32.xlu2 %v6672_v24 }
0x13e6   : > { %v6684_v42 = vsub.f32 %v6652_v40, %v6662_v19  ;;  %v6765_v40 = vsel %vm820_vm0, %v11226_v53, 0 }
0x13e7   : > { %6777 = vmatpush.bf16.xpose.msrb.mxu2 %v6765_v40 }
0x13e8   : > { %v6692_v9 = vmul.f32 1.442695, %v6684_v42 }
0x13e9   : > { %v6644_v36 = vpop.f32.mrf.mxu3 }
0x13ea   : > { %v6657_v5 = vmul.f32 0.17677669, %v6644_v36  ;;  %8335 = vpow2.f32 %v6692_v9 }
0x13ec   : > { %v6675_v14 = vsel %vm820_vm0, %v6657_v5, -inf }
0x13ed   : > { %6676 = vmax.xlane.f32.xlu0 %v6675_v14  ;;  %v6665_v50 = vpop.xlane.xlu2 %6664 }
0x13ee   : > { %v6685_v57 = vsub.f32 %v6653_v30, %v6665_v50 }
0x13f0   : > { %v11254_v17 = vpop.eup %8335  ;;  %v6694_v13 = vmul.f32 1.442695, %v6685_v57 }
0x13f1   : > { %v6708_v20 = vsel %vm820_vm0, %v11254_v17, 0.0 }
0x13f2   : > { %8337 = vpow2.f32 %v6694_v13 }
0x13f5   : > { %6709 = vadd.xlane.f32.xlu0 %v6708_v20 }
0x13f8   : > { %v8338_v56 = vpop.eup %8337 }
0x13f9   : > { %v6711_v2 = vsel %vm820_vm0, %v8338_v56, 0.0 }
0x141f   : > { %v6668_v49 = vpop.xlane.xlu0 %6667 }
0x1420   : > { %v6686_v48 = vsub.f32 %v6654_v27, %v6668_v49 }
0x1422   : > { %v6696_v47 = vmul.f32 1.442695, %v6686_v48 }
0x1423   : > { %v6647_v35 = vpop.f32.mrf.mxu3 }
0x1424   : > { %v6658_v15 = vmul.f32 0.17677669, %v6647_v35 }
0x1426   : > { %v6678_v11 = vsel %vm820_vm0, %v6658_v15, -inf }
0x1427   : > { %v6671_v60 = vpop.xlane.xlu1 %6670  ;;  %6679 = vmax.xlane.f32.xlu1 %v6678_v11 }
0x1428   : > { %v6687_v3 = vsub.f32 %v6655_v52, %v6671_v60 }
0x142a   : > { %v6698_v0 = vmul.f32 1.442695, %v6687_v3 }
0x142b   : > { %v6649_v26 = vpop.f32.mrf.mxu3 }
0x142c   : > { %8339 = vpow2.f32 %v6698_v0  ;;  %v6659_v23 = vmul.f32 0.17677669, %v6649_v26 }
0x142d   : > { %8341 = vpow2.f32 %v6696_v47 }
0x142e   : > { %v6681_v12 = vsel %vm820_vm0, %v6659_v23, -inf }
0x142f   : > { %6712 = vadd.xlane.f32.xlu1 %v6711_v2  ;;  %6682 = vmax.xlane.f32.xlu2 %v6681_v12 }
0x1432   : > { %v8340_v21 = vpop.eup %8339 }
0x1433   : > { %v8342_v7 = vpop.eup %8341  ;;  %v6717_v41 = vsel %vm820_vm0, %v8340_v21, 0.0 }
0x1434   : > { %6718 = vadd.xlane.f32.xlu0 %v6717_v41  ;;  %v6714_v31 = vsel %vm820_vm0, %v8342_v7, 0.0 }
0x1437   : > { %6715 = vadd.xlane.f32.xlu2 %v6714_v31 }
0x1458   : > { %v6674_v51 = vpop.xlane.xlu2 %6673 }
0x1459   : > { %v6688_v58 = vsub.f32 %v6656_v37, %v6674_v51 }
0x145b   : > { %v6700_v25 = vmul.f32 1.442695, %v6688_v58 }
0x145d   : > { %8343 = vpow2.f32 %v6700_v25 }
0x1460   : > { %v6677_v55 = vpop.xlane.xlu0 %6676 }
0x1461   : > { %v6689_v46 = vsub.f32 %v6657_v5, %v6677_v55 }
0x1463   : > { %v8344_v59 = vpop.eup %8343  ;;  %v6702_v22 = vmul.f32 1.442695, %v6689_v46 }
0x1464   : > { %v6720_v6 = vsel %vm820_vm0, %v8344_v59, 0.0 }
0x1465   : > { %8345 = vpow2.f32 %v6702_v22  ;;  %6721 = vadd.xlane.f32.xlu1 %v6720_v6 }
0x1468   : > { %v6710_v45 = vpop.xlane.xlu0 %6709 }
0x146b   : > { %v8346_v54 = vpop.eup %8345 }
0x146c   : > { %v6723_v34 = vsel %vm820_vm0, %v8346_v54, 0.0 }
0x146d   : > { %6724 = vadd.xlane.f32.xlu2 %v6723_v34 }
0x149a   : > { %v6680_v28 = vpop.xlane.xlu1 %6679 }
0x149b   : > { %v6690_v29 = vsub.f32 %v6658_v15, %v6680_v28 }
0x149d   : > { %v6704_v30 = vmul.f32 1.442695, %v6690_v29 }
0x149f   : > { %8347 = vpow2.f32 %v6704_v30 }
0x14a0   : > { %8349 = vrcp.f32 %v6710_v45 }
0x14a2   : > { %v6713_v16 = vpop.xlane.xlu1 %6712  ;;  %v6683_v10 = vpop.xlane.xlu2 %6682 }
0x14a3   : > { %8351 = vrcp.f32 %v6713_v16  ;;  %v6691_v44 = vsub.f32 %v6659_v23, %v6683_v10 }
0x14a5   : > { %v8348_v43 = vpop.eup %8347  ;;  %v6706_v61 = vmul.f32 1.442695, %v6691_v44 }
0x14a6   : > { %v6726_v18 = vsel %vm820_vm0, %v8348_v43, 0.0  ;;  %v8350_v4 = vpop.eup %8349 }
0x14a7   : > { %8353 = vpow2.f32 %v6706_v61  ;;  %6727 = vadd.xlane.f32.xlu0 %v6726_v18  ;;  %v6740_v53 = vmul.f32 %v8350_v4, %v11254_v17  ;;  %v6719_v52 = vpop.xlane.xlu0 %6718 }
0x14a9   : > { %v8352_v62 = vpop.eup %8351 }
0x14aa   : > { %v6741_v63 = vmul.f32 %v8352_v62, %v8338_v56  ;;  %v6716_v1 = vpop.xlane.xlu2 %6715 }
0x14ab   : > { %8355 = vrcp.f32 %v6716_v1 }
0x14ac   : > { %v6748_v27 = vpack.c.bf16 %v6741_v63, %v6740_v53  ;;  %8357 = vrcp.f32 %v6719_v52 }
0x14ad   : > { %v8354_v8 = vpop.eup %8353 }
0x14ae   : > { %7870 = vmatmul.msk.bf16.vlgmr.msrb.gmra.mxu2 %vm820_vm0, %v6748_v27  ;;  %v6729_v33 = vsel %vm820_vm0, %v8354_v8, 0.0 }
0x14af   : > { %6730 = vadd.xlane.f32.xlu1 %v6729_v33 }
0x14b1   : > { %v8356_v32 = vpop.eup %8355 }
0x14b2   : > { %v8358_v37 = vpop.eup %8357  ;;  %v6742_v24 = vmul.f32 %v8356_v32, %v8342_v7 }
0x14b3   : > { %v6743_v19 = vmul.f32 %v8358_v37, %v8340_v21 }
0x14b5   : > { %v6749_v42 = vpack.c.bf16 %v6743_v19, %v6742_v24 }
0x14be   : > { %7871 = vmatmul.msk.bf16.gmra.mxu2 %vm820_vm0, %v6749_v42 }
0x14d8   : > { %v6722_v9 = vpop.xlane.xlu1 %6721 }
0x14d9   : > { %8359 = vrcp.f32 %v6722_v9  ;;  %v8027_v9 = vld [vmem:[%s11350_s9 + $0x8] sm:$0xff] }
0x14da   : > { %6920 = vmatpush.bf16.msra.mxu3 %v8027_v9 }
0x14df   : > { %v8360_v5 = vpop.eup %8359 }
0x14e0   : > { %v6725_v36 = vpop.xlane.xlu2 %6724  ;;  %v6744_v17 = vmul.f32 %v8360_v5, %v8344_v59 }
0x14e1   : > { %8361 = vrcp.f32 %v6725_v36  ;;  %v8026_v36 = vld [vmem:[%s11350_s9] sm:$0xff] }
0x14e2   : > { %6921 = vmatpush.bf16.msra.mxu3 %v8026_v36 }
0x14e7   : > { %v8362_v14 = vpop.eup %8361 }
0x14e8   : > { %v6745_v20 = vmul.f32 %v8362_v14, %v8346_v54 }
0x14ea   : > { %v6750_v50 = vpack.c.bf16 %v6745_v20, %v6744_v17 }
0x14ec   : > { %7872 = vmatmul.msk.bf16.gmra.mxu2 %vm820_vm0, %v6750_v50 }
0x151a   : > { %v6728_v57 = vpop.xlane.xlu0 %6727 }
0x151b   : > { %8363 = vrcp.f32 %v6728_v57 }
0x1521   : > { %v8364_v49 = vpop.eup %8363 }
0x1522   : > { %v6731_v13 = vpop.xlane.xlu1 %6730  ;;  %v6746_v15 = vmul.f32 %v8364_v49, %v8348_v43  ;;  %v8106_v49 = vld [vmem:[%s11343_s2 + $0x2] ss:$0 sm:$0xff] }
0x1523   : > { %8365 = vrcp.f32 %v6731_v13 }
0x1529   : > { %v8366_v35 = vpop.eup %8365 }
0x152a   : > { %v6747_v48 = vmul.f32 %v8366_v35, %v8354_v8 }
0x152c   : > { %v6751_v11 = vpack.c.bf16 %v6747_v48, %v6746_v15 }
0x152e   : > { %7873 = vmatmul.msk.bf16.gmra.mxu2 %vm820_vm0, %v6751_v11  ;;  %vm6839_vm0 = vcmask 254976  }
0x1531   : > { %v6779_v60 = vpop.f32.mrf.mxu2 }
0x1532   : > { %6799 = vst.msk [vmem:[%s454_s23] sm:$0xff] %vm1230_vm1, %v6779_v60  ;;  %v6807_v0 = vsel %vm1230_vm1, %v6779_v60, -inf }
0x1539   : > { %v6781_v3 = vpop.f32.mrf.mxu2 }
0x153a   : > { %6800 = vst.msk [vmem:[%s454_s23 + $0x8] sm:$0xff] %vm1230_vm1, %v6781_v3  ;;  %v6808_v2 = vsel %vm1230_vm1, %v6781_v3, -inf }
0x1541   : > { %v6784_v47 = vpop.f32.mrf.mxu2 }
0x1542   : > { %6801 = vst.msk [vmem:[%s454_s23 + $0x10] sm:$0xff] %vm1230_vm1, %v6784_v47  ;;  %v6809_v56 = vsel %vm1230_vm1, %v6784_v47, -inf }
0x1543   : > { %v6810_v26 = vmax.f32 %v6807_v0, %v6809_v56 }
0x1549   : > { %v6786_v23 = vpop.f32.mrf.mxu2 }
0x154a   : > { %6802 = vst.msk [vmem:[%s454_s23 + $0x18] sm:$0xff] %vm1230_vm1, %v6786_v23  ;;  %v6811_v12 = vsel %vm1230_vm1, %v6786_v23, -inf }
0x154b   : > { %v6812_v21 = vmax.f32 %v6808_v2, %v6811_v12 }
0x154d   : > { %v6813_v7 = vmax.f32 %v6810_v26, %v6812_v21 }
0x154f   : > { %v6814_v58 = vrot.slane %v6813_v7, 4 }
0x1551   : > { %v6815_v55 = vmax.f32 %v6813_v7, %v6814_v58  ;;  %v8031_v7 = vld [vmem:[%s11351_s10 + $0x18] sm:$0xff] }
0x1552   : > { %6980 = vmatpush.bf16.msrb.mxu3 %v8031_v7 }
0x1553   : > { %v6816_v38 = vrot.slane %v6815_v55, 2 }
0x1555   : > { %v6817_v29 = vmax.f32 %v6815_v55, %v6816_v38  ;;  %v8028_v55 = vld [vmem:[%s11351_s10] sm:$0xff] }
0x1557   : > { %v6818_v10 = vrot.slane %v6817_v29, 1 }
0x1559   : > { %v6819_v43 = vmax.f32 %v6817_v29, %v6818_v10 }
0x156f   : > { %v6789_v41 = vpop.f32.mrf.mxu2 }
0x1570   : > { %6803 = vst.msk [vmem:[%s454_s23 + $0x20] sm:$0xff] %vm1230_vm1, %v6789_v41  ;;  %v6820_v59 = vsel %vm1230_vm1, %v6789_v41, -inf  ;;  %v8030_v41 = vld [vmem:[%s11351_s10 + $0x10] sm:$0xff] }
0x1571   : > { %6981 = vmatpush.bf16.msrb.mxu3 %v8030_v41 }
0x1577   : > { %v6791_v31 = vpop.f32.mrf.mxu2 }
0x1578   : > { %6804 = vst.msk [vmem:[%s454_s23 + $0x28] sm:$0xff] %vm1230_vm1, %v6791_v31  ;;  %v6821_v22 = vsel %vm1230_vm1, %v6791_v31, -inf  ;;  %v8107_v31 = vld [vmem:[%s11344_s3] ss:$0 sm:$0xff] }
0x15b1   : > { %v6794_v51 = vpop.f32.mrf.mxu2 }
0x15b2   : > { %6805 = vst.msk [vmem:[%s454_s23 + $0x30] sm:$0xff] %vm1230_vm1, %v6794_v51  ;;  %v6822_v25 = vsel %vm1230_vm1, %v6794_v51, -inf  ;;  %v8029_v51 = vld [vmem:[%s11351_s10 + $0x8] sm:$0xff] }
0x15b3   : > { %v6823_v54 = vmax.f32 %v6820_v59, %v6822_v25  ;;  %6982 = vmatpush.bf16.msrb.mxu3 %v8029_v51 }
0x15b7   : > { %6983 = vmatpush.bf16.msrb.mxu3 %v8028_v55 }
0x15b9   : > { %v6796_v46 = vpop.f32.mrf.mxu2 }
0x15ba   : > { %6806 = vst.msk [vmem:[%s454_s23 + $0x38] sm:$0xff] %vm1230_vm1, %v6796_v46  ;;  %v6824_v6 = vsel %vm1230_vm1, %v6796_v46, -inf }
0x15bb   : > { %v6825_v34 = vmax.f32 %v6821_v22, %v6824_v6 }
0x15bd   : > { %v6826_v40 = vmax.f32 %v6823_v54, %v6825_v34 }
0x15bf   : > { %v6827_v28 = vrot.slane %v6826_v40, 4 }
0x15c1   : > { %v6828_v30 = vmax.f32 %v6826_v40, %v6827_v28 }
0x15c3   : > { %v6829_v45 = vrot.slane %v6828_v30, 2 }
0x15c5   : > { %v6830_v16 = vmax.f32 %v6828_v30, %v6829_v45  ;;  %v8108_v45 = vld [vmem:[%s11352_s11] ss:$0 sm:$0xff] }
0x15c7   : > { %v6831_v44 = vrot.slane %v6830_v16, 1 }
0x15c9   : > { %v6832_v61 = vmax.f32 %v6830_v16, %v6831_v44 }
0x15cb   : > { %v6837_v18 = vsel %vm3889_vm2, %v6832_v61, %v6819_v43 }
0x15cc   : > { %v6840_v4 = vsel %vm6839_vm0, %v6837_v18, 0.0 }
0x15cd   : > { %6841 = vadd.xlane.f32.xlu2 %v6840_v4 }
0x1640   : > { %v6842_v62 = vpop.xlane.xlu2 %6841 }
0x1641   : > { %v6843_v53 = vmul.f32 %v6842_v62, %v9388_v39 }
0x1643   : > { %v6845_v63 = vrot.slane %v6843_v53, 1  ;;  %v6848_v27 = vsub.f32 %v6819_v43, %v6843_v53 }
0x1645   : > { %v6849_v1 = vsub.f32 %v6832_v61, %v6845_v63  ;;  %v6850_v52 = vmul.f32 %v6848_v27, %v6848_v27 }
0x1647   : > { %v6851_v8 = vmul.f32 %v6849_v1, %v6849_v1 }
0x1649   : > { %v6854_v33 = vrot.slane %v6851_v8, 7 }
0x164b   : > { %v6855_v32 = vsel %vm3889_vm2, %v6854_v33, %v6850_v52 }
0x164c   : > { %v6857_v37 = vsel %vm6839_vm0, %v6855_v32, 0.0 }
0x164d   : > { %6858 = vadd.xlane.f32.xlu0 %v6857_v37 }
0x16c0   : > { %v6859_v24 = vpop.xlane.xlu0 %6858 }
0x16c1   : > { %v6860_v19 = vmul.f32 %v6859_v24, %v9388_v39  ;;  %v8105_v39 = vld [vmem:[%s11343_s2 + $0x1] ss:$0 sm:$0xff] }
0x16c3   : > { %v6861_v42 = vadd.f32 1e-05, %v6860_v19 }
0x16c5   : > { %8367 = vrsqrt.f32 %v6861_v42  ;;  %vm6868_vm8 = vweird.f32 %v6861_v42 }
0x16cb   : > { %v8368_v5 = vpop.eup %8367 }
0x16cc   : > { %v6863_v14 = vmul.f32 %v8368_v5, %v6861_v42  ;;  %vm6869_vm7 = vweird.f32 %v8368_v5 }
0x16cd   : > { %vm6870_vm9 = vmor %vm6868_vm8, %vm6869_vm7 }
0x16ce   : > { %v6864_v17 = vmul.f32 %v8368_v5, %v6863_v14 }
0x16d0   : > { %v6865_v20 = vmul.f32 0.5, %v6864_v17 }
0x16d2   : > { %v6866_v50 = vsub.f32 1.5, %v6865_v20 }
0x16d4   : > { %v6867_v57 = vmul.f32 %v8368_v5, %v6866_v50 }
0x16d6   : > { %v6871_v13 = vsel %vm6870_vm9, %v8368_v5, %v6867_v57 }
0x16d7   : > { %v6873_v35 = vrot.slane %v6871_v13, 1  ;;  %v6876_v15 = vmul.f32 %v6871_v13, %v6848_v27 }
0x16d9   : > { %v6877_v48 = vmul.f32 %v6873_v35, %v6849_v1  ;;  %v6879_v11 = vmul.f32 %v8105_v39, %v6876_v15 }
0x16db   : > { %v6880_v60 = vmul.f32 %v8105_v39, %v6877_v48  ;;  %v6882_v3 = vadd.f32 %v8106_v49, %v6879_v11 }
0x16dd   : > { %v6883_v47 = vadd.f32 %v8106_v49, %v6880_v60  ;;  %v6884_v0 = vpack.c.bf16 %v6882_v3, %v6882_v3 }
0x16df   : > { %v6885_v56 = vpack.c.bf16 %v6883_v47, %v6883_v47  ;;  %v6894_v23 = vunpack.c.l.b16 %v6884_v0 }
0x16e1   : > { %v6895_v26 = vunpack.c.l.b16 %v6885_v56 }
0x16e3   : > { %v6896_v2 = vrot.slane %v6895_v26, 7 }
0x16e5   : > { %v6897_v12 = vsel %vm3889_vm2, %v6896_v2, %v6894_v23 }
0x16e6   : > { %v6898_v21 = vpack.c.b16 %v6897_v12, %v6897_v12 }
0x16e8   : > { %7882 = vmatmul.msk.bf16.vlgmr.msra.gmra.mxu3 %vm1230_vm1, %v6898_v21 }
0x176b   : > { %v6923_v58 = vpop.f32.mrf.mxu3 }
0x176c   : > { %v6924_v25 = vadd.f32 %v8107_v31, %v6923_v58 }
0x176e   : > { %v6928_v46 = vmul.f32 0.044715, %v6924_v25  ;;  %v6927_v40 = vmul.f32 0.5, %v6924_v25 }
0x1770   : > { %v6929_v59 = vmul.f32 %v6928_v46, %v6924_v25 }
0x1772   : > { %v6930_v22 = vmul.f32 %v6929_v59, %v6924_v25 }
0x1773   : > { %v6925_v6 = vpop.f32.mrf.mxu3 }
0x1774   : > { %v6931_v54 = vadd.f32 %v6930_v22, %v6924_v25 }
0x1776   : > { %v6932_v34 = vmul.f32 0.7978846, %v6931_v54 }
0x1778   : > { %8369 = vtanh.f32 %v6932_v34 }
0x177e   : > { %v8370_v38 = vpop.eup %8369 }
0x177f   : > { %v6934_v28 = vadd.f32 1.0, %v8370_v38 }
0x1781   : > { %v6935_v29 = vmul.f32 %v6934_v28, %v6927_v40 }
0x1783   : > { %v6936_v30 = vpack.c.bf16 %v6935_v29, %v6935_v29 }
0x1785   : > { %7899 = vmatmul.msk.bf16.vlgmr.msrb.gmra.mxu3 %vm5271_vm6, %v6936_v30 }
0x1808   : > { %v6985_v16 = vpop.f32.mrf.mxu3 }
0x1809   : > { %v6986_v10 = vadd.f32 %v8108_v45, %v6985_v16 }
0x180b   : > { %6989 = vst [vmem:[%s459_s22] sm:$0x3] %v6986_v10 }
0x1810   : > { %v6987_v44 = vpop.f32.mrf.mxu3 }
0x1811 PF: > { %s24_s25 = sadd.s32 1, %s8378_s25  }
0x1812   : > { %p21_p5 = scmp.ge.s32.totalorder %s24_s25, 4  }
0x1814   :  { %23 = sbr.rel (!%p21_p5) target bundleno = 1 (0x1), region = 115 }

</bundles_post_ra>
